<compile_context>
chip_gen: v7x
topology: tpu7x:2x2x1
jax: 0.10.0
libtpu: 0.0.40
codegen_flags: <defaults>
</compile_context>

<pallas_src>
import numpy as np
import jax
import jax.numpy as jnp
from jax import lax
from jax.experimental import pallas as pl
from jax.experimental.pallas import tpu as pltpu


# ----------------------------- helpers ---------------------------------------

def _round_up(x, m):
    return ((x + m - 1) // m) * m


def _vmem_limit(*nbytes):
    # Generous: everything double-buffered + 8 MiB headroom; never below the
    # 32 MiB scoped default, never above 56 MiB (v7x physical is 64 MiB).
    need = 2 * int(sum(nbytes)) + (8 << 20)
    return int(min(max(need, 32 << 20), 56 << 20))


# ----------------------------- Pallas kernels -------------------------------

def conv_relu_pool_kernel(p_ref, w_ref, b_ref, o_ref):
    # p_ref: (TM, K)  im2col patches for pool-window position g = program_id(1)
    # w_ref: (K, C)   flattened conv weight
    # b_ref: (1, C)   bias
    # o_ref: (TM, C)  pooled + ReLU'd conv output (revisited across g)
    g = pl.program_id(1)
    z = jnp.dot(p_ref[...], w_ref[...], preferred_element_type=jnp.float32)

    @pl.when(g == 0)
    def _init():
        o_ref[...] = z

    @pl.when(g != 0)
    def _accumulate_max():
        o_ref[...] = jnp.maximum(o_ref[...], z)

    @pl.when(g == pl.num_programs(1) - 1)
    def _finalize():
        # bias + ReLU hoisted out of the per-branch path (commutes with max).
        o_ref[...] = jnp.maximum(o_ref[...] + b_ref[...], 0.0)


def conv_pool_mlp_kernel(p_ref, wc_ref, bc_ref, w1_ref, b1_ref, w2_ref, b2_ref,
                         o_ref, acc_ref):
    # Fused: last conv (1x1 spatial) + pool + ReLU, then fc1 + ReLU + fc2.
    # p_ref: (TM, K); wc: (K, C); bc: (1, C)
    # w1: (C, H); b1: (1, H); w2: (H, Opad); b2: (1, Opad)
    # o_ref: (TM, Opad) logits (padded columns); acc_ref: (TM, C) VMEM scratch
    g = pl.program_id(1)
    z = jnp.dot(p_ref[...], wc_ref[...], preferred_element_type=jnp.float32)

    @pl.when(g == 0)
    def _init():
        acc_ref[...] = z

    @pl.when(g != 0)
    def _accumulate_max():
        acc_ref[...] = jnp.maximum(acc_ref[...], z)

    @pl.when(g == pl.num_programs(1) - 1)
    def _finalize():
        x = jnp.maximum(acc_ref[...] + bc_ref[...], 0.0)            # (TM, C)
        h = jnp.maximum(
            jnp.dot(x, w1_ref[...], preferred_element_type=jnp.float32)
            + b1_ref[...], 0.0)                                      # (TM, H)
        o = jnp.dot(h, w2_ref[...], preferred_element_type=jnp.float32) + b2_ref[...]
        o_ref[...] = o.astype(o_ref.dtype)


# ----------------------------- pallas_call wrappers --------------------------

def conv_relu_pool(patches, w_mat, b_row, *, max_tm=1024):
    """patches: (4, M, K); w_mat: (K, C); b_row: (1, C) -> (M, C)."""
    G, M, K = patches.shape
    C = w_mat.shape[1]

    tm = min(max_tm, _round_up(M, 8))
    m_pad = _round_up(M, tm)
    n_tiles = m_pad // tm
    if m_pad != M:
        patches = jnp.pad(patches, ((0, 0), (0, m_pad - M), (0, 0)))
    p_flat = patches.reshape(G * m_pad, K)          # group-major flat layout

    out = pl.pallas_call(
        conv_relu_pool_kernel,
        out_shape=jax.ShapeDtypeStruct((m_pad, C), jnp.float32),
        grid=(n_tiles, G),
        in_specs=[
            pl.BlockSpec((tm, K), lambda i, g: (g * n_tiles + i, 0)),
            pl.BlockSpec((K, C), lambda i, g: (0, 0)),
            pl.BlockSpec((1, C), lambda i, g: (0, 0)),
        ],
        out_specs=pl.BlockSpec((tm, C), lambda i, g: (i, 0)),
        compiler_params=pltpu.CompilerParams(
            dimension_semantics=("parallel", "arbitrary"),
            vmem_limit_bytes=_vmem_limit(tm * K * 4, tm * C * 4, K * C * 4),
        ),
    )(p_flat, w_mat, b_row)
    return out[:M] if m_pad != M else out


def conv_pool_mlp(patches, wc, bc, w1, b1, w2, b2, *, max_tm=1024):
    """Fused final conv+pool+ReLU -> fc1+ReLU -> fc2.  Returns (M, n_classes)."""
    G, M, K = patches.shape
    C = wc.shape[1]
    H = w1.shape[1]
    n_out = w2.shape[1]
    o_pad = _round_up(n_out, 128)                   # lane-dense head output
    w2p = jnp.pad(w2, ((0, 0), (0, o_pad - n_out)))
    b2p = jnp.pad(b2, ((0, 0), (0, o_pad - n_out)))

    tm = min(max_tm, _round_up(M, 8))
    m_pad = _round_up(M, tm)
    n_tiles = m_pad // tm
    if m_pad != M:
        patches = jnp.pad(patches, ((0, 0), (0, m_pad - M), (0, 0)))
    p_flat = patches.reshape(G * m_pad, K)

    out = pl.pallas_call(
        conv_pool_mlp_kernel,
        out_shape=jax.ShapeDtypeStruct((m_pad, o_pad), jnp.float32),
        grid=(n_tiles, G),
        in_specs=[
            pl.BlockSpec((tm, K), lambda i, g: (g * n_tiles + i, 0)),
            pl.BlockSpec((K, C), lambda i, g: (0, 0)),
            pl.BlockSpec((1, C), lambda i, g: (0, 0)),
            pl.BlockSpec((C, H), lambda i, g: (0, 0)),
            pl.BlockSpec((1, H), lambda i, g: (0, 0)),
            pl.BlockSpec((H, o_pad), lambda i, g: (0, 0)),
            pl.BlockSpec((1, o_pad), lambda i, g: (0, 0)),
        ],
        out_specs=pl.BlockSpec((tm, o_pad), lambda i, g: (i, 0)),
        scratch_shapes=[pltpu.VMEM((tm, C), jnp.float32)],
        compiler_params=pltpu.CompilerParams(
            dimension_semantics=("parallel", "arbitrary"),
            vmem_limit_bytes=_vmem_limit(
                tm * K * 4, tm * o_pad * 4, K * C * 4, C * H * 4, H * o_pad * 4),
        ),
    )(p_flat, wc, bc, w1, b1, w2p, b2p)
    return out[:M, :n_out]


# ----------------------------- plain-JAX glue --------------------------------

def pooled_im2col(x, ksz):
    # x: (N, H, W, Cin) -> (4, N*Hp*Wp, K) with K order (kh, kw, ci); groups are
    # the 4 positions of the subsequent 2x2 max-pool window.
    N, H, W, Cin = x.shape
    Ho, Wo = H - ksz + 1, W - ksz + 1
    Hp, Wp = Ho // 2, Wo // 2
    cols = [x[:, kh:kh + Ho, kw:kw + Wo, :] for kh in range(ksz) for kw in range(ksz)]
    full = jnp.concatenate(cols, axis=-1)            # (N, Ho, Wo, K)
    K = ksz * ksz * Cin
    # Single contiguous reshape/transpose instead of 4 strided group slices.
    g = full[:, :2 * Hp, :2 * Wp, :].reshape(N, Hp, 2, Wp, 2, K)
    g = jnp.transpose(g, (2, 4, 0, 1, 3, 5)).reshape(4, N * Hp * Wp, K)
    return g, (N, Hp, Wp)


def init_params(key):
    ks = jax.random.split(key, 10)

    def u(k, shape, fan_in):
        bound = 1.0 / float(np.sqrt(fan_in))
        return jax.random.uniform(k, shape, jnp.float32, -bound, bound)

    def conv_w(k, cout, cin, ksz):
        # PyTorch layout (Cout, Cin, KH, KW) -> (KH*KW*Cin, Cout) matching im2col.
        w = u(k, (cout, cin, ksz, ksz), cin * ksz * ksz)
        return jnp.transpose(w, (2, 3, 1, 0)).reshape(ksz * ksz * cin, cout)

    return dict(
        w1=conv_w(ks[0], 32, 1, 5),  b1=u(ks[1], (1, 32), 1 * 5 * 5),
        w2=conv_w(ks[2], 32, 32, 5), b2=u(ks[3], (1, 32), 32 * 5 * 5),
        w3=conv_w(ks[4], 32, 32, 3), b3=u(ks[5], (1, 32), 32 * 3 * 3),
        wf1=jnp.transpose(u(ks[6], (128, 32), 32)),   bf1=u(ks[7], (1, 128), 32),
        wf2=jnp.transpose(u(ks[8], (7, 128), 128)),   bf2=u(ks[9], (1, 7), 128),
    )


def cnn_forward(x_nchw, params):
    x = jnp.transpose(x_nchw, (0, 2, 3, 1))          # NCHW -> NHWC

    p, (N, Hp, Wp) = pooled_im2col(x, 5)             # conv1 + relu + pool
    x = conv_relu_pool(p, params["w1"], params["b1"]).reshape(N, Hp, Wp, 32)

    p, (N, Hp, Wp) = pooled_im2col(x, 5)             # conv2 + relu + pool
    x = conv_relu_pool(p, params["w2"], params["b2"]).reshape(N, Hp, Wp, 32)

    p, (N, Hp, Wp) = pooled_im2col(x, 3)             # conv3 + relu + pool
    x = conv_relu_pool(p, params["w3"], params["b3"]).reshape(N, Hp, Wp, 32)

    p, (N, Hp, Wp) = pooled_im2col(x, 3)             # conv3 again + pool, fused with MLP head
    return conv_pool_mlp(p, params["w3"], params["b3"],
                         params["wf1"], params["bf1"],
                         params["wf2"], params["bf2"])


# ----------------------------- pure-JAX reference ----------------------------

def reference_forward(x_nchw, params):
    x = jnp.transpose(x_nchw, (0, 2, 3, 1))

    def block(x, w_mat, b, ksz, cin):
        w = w_mat.reshape(ksz, ksz, cin, 32)
        y = lax.conv_general_dilated(x, w, (1, 1), "VALID",
                                     dimension_numbers=("NHWC", "HWIO", "NHWC"))
        y = jnp.maximum(y + b.reshape(1, 1, 1, -1), 0.0)
        return lax.reduce_window(y, -jnp.inf, lax.max, (1, 2, 2, 1), (1, 2, 2, 1), "VALID")

    x = block(x, params["w1"], params["b1"], 5, 1)
    x = block(x, params["w2"], params["b2"], 5, 32)
    x = block(x, params["w3"], params["b3"], 3, 32)
    x = block(x, params["w3"], params["b3"], 3, 32)
    x = x.reshape(x.shape[0], 32)
    h = jnp.maximum(x @ params["wf1"] + params["bf1"], 0.0)
    return h @ params["wf2"] + params["bf2"]


# ----------------------------- main -------------------------------------------

if __name__ == "__main__":
    key = jax.random.PRNGKey(0)
    kx, kp = jax.random.split(key)
    x = jax.random.normal(kx, (2, 1, 64, 64), dtype=jnp.float32)   # NCHW, like PyTorch
    params = init_params(kp)

    fwd = jax.jit(cnn_forward)
    logits = jax.block_until_ready(fwd(x, params))

    ref = jax.block_until_ready(reference_forward(x, params))
    np.testing.assert_allclose(np.asarray(logits), np.asarray(ref), rtol=1e-3, atol=1e-3)
    assert logits.shape == (2, 7)

    print("KERNEL_OK")
</pallas_src>

<mosaic_0001>
module attributes {stable_mosaic.version = 11 : i64} {
  func.func @conv_relu_pool_kernel(%arg0: i32, %arg1: i32, %arg2: memref<1024x25xf32, #tpu.memory_space<vmem>>, %arg3: memref<25x32xf32, #tpu.memory_space<vmem>>, %arg4: memref<1x32xf32, #tpu.memory_space<vmem>>, %arg5: memref<1024x32xf32, #tpu.memory_space<vmem>>) attributes {dimension_semantics = [#tpu.dimension_semantics<parallel>, #tpu.dimension_semantics<arbitrary>], iteration_bounds = array<i64: 2, 4>, scalar_prefetch = 0 : i64, scratch_operands = 0 : i64, tpu.core_type = #tpu.core_type<tc>, window_params = [{transform_indices = @transform_0, window_bounds = array<i64: 1024, 25>}, {pipeline_mode = #tpu.pipeline_mode<synchronous>, transform_indices = @transform_1, window_bounds = array<i64: 25, 32>}, {pipeline_mode = #tpu.pipeline_mode<synchronous>, transform_indices = @transform_2, window_bounds = array<i64: 1, 32>}, {transform_indices = @transform_3, window_bounds = array<i64: 1024, 32>}]} {
    %c0 = arith.constant 0 : index
    %c0_0 = arith.constant 0 : index
    %0 = vector.load %arg2[%c0, %c0_0] : memref<1024x25xf32, #tpu.memory_space<vmem>>, vector<1024x25xf32>
    %c0_1 = arith.constant 0 : index
    %c0_2 = arith.constant 0 : index
    %1 = vector.load %arg3[%c0_1, %c0_2] : memref<25x32xf32, #tpu.memory_space<vmem>>, vector<25x32xf32>
    %cst = arith.constant dense<0.000000e+00> : vector<1024x32xf32>
    %2 = tpu.matmul %0, %1, %cst {dimension_numbers = #tpu.dot_dimension_numbers<[1], [0], [0], [1], [0, 0, 1, 1], [], []>} : vector<1024x25xf32>, vector<25x32xf32>, vector<1024x32xf32> -> vector<1024x32xf32>
    %c0_i32 = arith.constant 0 : i32
    %3 = arith.cmpi eq, %arg1, %c0_i32 : i32
    %4 = arith.extui %3 : i1 to i32
    %c0_i32_3 = arith.constant 0 : i32
    %5 = arith.cmpi ne, %4, %c0_i32_3 : i32
    scf.if %5 {
      %c0_7 = arith.constant 0 : index
      %c0_8 = arith.constant 0 : index
      %12 = vector.load %arg5[%c0_7, %c0_8] : memref<1024x32xf32, #tpu.memory_space<vmem>>, vector<1024x32xf32>
      tpu.vector_store %arg5[%c0_7, %c0_8], %2 {strides = array<i32>} : memref<1024x32xf32, #tpu.memory_space<vmem>>, vector<1024x32xf32>,
    } else {
    }
    %c0_i32_4 = arith.constant 0 : i32
    %6 = arith.cmpi ne, %arg1, %c0_i32_4 : i32
    %7 = arith.extui %6 : i1 to i32
    %c0_i32_5 = arith.constant 0 : i32
    %8 = arith.cmpi ne, %7, %c0_i32_5 : i32
    scf.if %8 {
      %c0_7 = arith.constant 0 : index
      %c0_8 = arith.constant 0 : index
      %12 = vector.load %arg5[%c0_7, %c0_8] : memref<1024x32xf32, #tpu.memory_space<vmem>>, vector<1024x32xf32>
      %13 = arith.maximumf %12, %2 : vector<1024x32xf32>
      %c0_9 = arith.constant 0 : index
      %c0_10 = arith.constant 0 : index
      %14 = vector.load %arg5[%c0_9, %c0_10] : memref<1024x32xf32, #tpu.memory_space<vmem>>, vector<1024x32xf32>
      tpu.vector_store %arg5[%c0_9, %c0_10], %13 {strides = array<i32>} : memref<1024x32xf32, #tpu.memory_space<vmem>>, vector<1024x32xf32>,
    } else {
    }
    %c3_i32 = arith.constant 3 : i32
    %9 = arith.cmpi eq, %arg1, %c3_i32 : i32
    %10 = arith.extui %9 : i1 to i32
    %c0_i32_6 = arith.constant 0 : i32
    %11 = arith.cmpi ne, %10, %c0_i32_6 : i32
    scf.if %11 {
      %c0_7 = arith.constant 0 : index
      %c0_8 = arith.constant 0 : index
      %12 = vector.load %arg5[%c0_7, %c0_8] : memref<1024x32xf32, #tpu.memory_space<vmem>>, vector<1024x32xf32>
      %c0_9 = arith.constant 0 : index
      %c0_10 = arith.constant 0 : index
      %13 = vector.load %arg4[%c0_9, %c0_10] : memref<1x32xf32, #tpu.memory_space<vmem>>, vector<1x32xf32>
      %14 = vector.broadcast %13 : vector<1x32xf32> to vector<1024x32xf32>
      %15 = arith.addf %12, %14 : vector<1024x32xf32>
      %cst_11 = arith.constant 0.000000e+00 : f32
      %16 = vector.broadcast %cst_11 : f32 to vector<1024x32xf32>
      %17 = arith.maximumf %15, %16 : vector<1024x32xf32>
      %c0_12 = arith.constant 0 : index
      %c0_13 = arith.constant 0 : index
      %18 = vector.load %arg5[%c0_12, %c0_13] : memref<1024x32xf32, #tpu.memory_space<vmem>>, vector<1024x32xf32>
      tpu.vector_store %arg5[%c0_12, %c0_13], %17 {strides = array<i32>} : memref<1024x32xf32, #tpu.memory_space<vmem>>, vector<1024x32xf32>,
    } else {
    }
    return
  }
  func.func @transform_0(%arg0: i32, %arg1: i32) -> (i32, i32) {
    %c2_i32 = arith.constant 2 : i32
    %0 = arith.muli %arg1, %c2_i32 : i32
    %1 = arith.addi %0, %arg0 : i32
    %c0_i32 = arith.constant 0 : i32
    %c0_i32_0 = arith.constant 0 : i32
    return %1, %c0_i32 : i32, i32
  }
  func.func @transform_1(%arg0: i32, %arg1: i32) -> (i32, i32) {
    %c0_i32 = arith.constant 0 : i32
    %c0_i32_0 = arith.constant 0 : i32
    %c0_i32_1 = arith.constant 0 : i32
    return %c0_i32, %c0_i32_0 : i32, i32
  }
  func.func @transform_2(%arg0: i32, %arg1: i32) -> (i32, i32) {
    %c0_i32 = arith.constant 0 : i32
    %c0_i32_0 = arith.constant 0 : i32
    %c0_i32_1 = arith.constant 0 : i32
    return %c0_i32, %c0_i32_0 : i32, i32
  }
  func.func @transform_3(%arg0: i32, %arg1: i32) -> (i32, i32) {
    %c0_i32 = arith.constant 0 : i32
    %c0_i32_0 = arith.constant 0 : i32
    return %arg0, %c0_i32 : i32, i32
  }
}

module attributes {stable_mosaic.version = 11 : i64} {
  func.func @conv_relu_pool_kernel(%arg0: i32, %arg1: i32, %arg2: memref<344x800xf32, #tpu.memory_space<vmem>>, %arg3: memref<800x32xf32, #tpu.memory_space<vmem>>, %arg4: memref<1x32xf32, #tpu.memory_space<vmem>>, %arg5: memref<344x32xf32, #tpu.memory_space<vmem>>) attributes {dimension_semantics = [#tpu.dimension_semantics<parallel>, #tpu.dimension_semantics<arbitrary>], iteration_bounds = array<i64: 1, 4>, scalar_prefetch = 0 : i64, scratch_operands = 0 : i64, tpu.core_type = #tpu.core_type<tc>, window_params = [{transform_indices = @transform_0, window_bounds = array<i64: 344, 800>}, {pipeline_mode = #tpu.pipeline_mode<synchronous>, transform_indices = @transform_1, window_bounds = array<i64: 800, 32>}, {pipeline_mode = #tpu.pipeline_mode<synchronous>, transform_indices = @transform_2, window_bounds = array<i64: 1, 32>}, {transform_indices = @transform_3, window_bounds = array<i64: 344, 32>}]} {
    %c0 = arith.constant 0 : index
    %c0_0 = arith.constant 0 : index
    %0 = vector.load %arg2[%c0, %c0_0] : memref<344x800xf32, #tpu.memory_space<vmem>>, vector<344x800xf32>
    %c0_1 = arith.constant 0 : index
    %c0_2 = arith.constant 0 : index
    %1 = vector.load %arg3[%c0_1, %c0_2] : memref<800x32xf32, #tpu.memory_space<vmem>>, vector<800x32xf32>
    %cst = arith.constant dense<0.000000e+00> : vector<344x32xf32>
    %2 = tpu.matmul %0, %1, %cst {dimension_numbers = #tpu.dot_dimension_numbers<[1], [0], [0], [1], [0, 0, 1, 1], [], []>} : vector<344x800xf32>, vector<800x32xf32>, vector<344x32xf32> -> vector<344x32xf32>
    %c0_i32 = arith.constant 0 : i32
    %3 = arith.cmpi eq, %arg1, %c0_i32 : i32
    %4 = arith.extui %3 : i1 to i32
    %c0_i32_3 = arith.constant 0 : i32
    %5 = arith.cmpi ne, %4, %c0_i32_3 : i32
    scf.if %5 {
      %c0_7 = arith.constant 0 : index
      %c0_8 = arith.constant 0 : index
      %12 = vector.load %arg5[%c0_7, %c0_8] : memref<344x32xf32, #tpu.memory_space<vmem>>, vector<344x32xf32>
      tpu.vector_store %arg5[%c0_7, %c0_8], %2 {strides = array<i32>} : memref<344x32xf32, #tpu.memory_space<vmem>>, vector<344x32xf32>,
    } else {
    }
    %c0_i32_4 = arith.constant 0 : i32
    %6 = arith.cmpi ne, %arg1, %c0_i32_4 : i32
    %7 = arith.extui %6 : i1 to i32
    %c0_i32_5 = arith.constant 0 : i32
    %8 = arith.cmpi ne, %7, %c0_i32_5 : i32
    scf.if %8 {
      %c0_7 = arith.constant 0 : index
      %c0_8 = arith.constant 0 : index
      %12 = vector.load %arg5[%c0_7, %c0_8] : memref<344x32xf32, #tpu.memory_space<vmem>>, vector<344x32xf32>
      %13 = arith.maximumf %12, %2 : vector<344x32xf32>
      %c0_9 = arith.constant 0 : index
      %c0_10 = arith.constant 0 : index
      %14 = vector.load %arg5[%c0_9, %c0_10] : memref<344x32xf32, #tpu.memory_space<vmem>>, vector<344x32xf32>
      tpu.vector_store %arg5[%c0_9, %c0_10], %13 {strides = array<i32>} : memref<344x32xf32, #tpu.memory_space<vmem>>, vector<344x32xf32>,
    } else {
    }
    %c3_i32 = arith.constant 3 : i32
    %9 = arith.cmpi eq, %arg1, %c3_i32 : i32
    %10 = arith.extui %9 : i1 to i32
    %c0_i32_6 = arith.constant 0 : i32
    %11 = arith.cmpi ne, %10, %c0_i32_6 : i32
    scf.if %11 {
      %c0_7 = arith.constant 0 : index
      %c0_8 = arith.constant 0 : index
      %12 = vector.load %arg5[%c0_7, %c0_8] : memref<344x32xf32, #tpu.memory_space<vmem>>, vector<344x32xf32>
      %c0_9 = arith.constant 0 : index
      %c0_10 = arith.constant 0 : index
      %13 = vector.load %arg4[%c0_9, %c0_10] : memref<1x32xf32, #tpu.memory_space<vmem>>, vector<1x32xf32>
      %14 = vector.broadcast %13 : vector<1x32xf32> to vector<344x32xf32>
      %15 = arith.addf %12, %14 : vector<344x32xf32>
      %cst_11 = arith.constant 0.000000e+00 : f32
      %16 = vector.broadcast %cst_11 : f32 to vector<344x32xf32>
      %17 = arith.maximumf %15, %16 : vector<344x32xf32>
      %c0_12 = arith.constant 0 : index
      %c0_13 = arith.constant 0 : index
      %18 = vector.load %arg5[%c0_12, %c0_13] : memref<344x32xf32, #tpu.memory_space<vmem>>, vector<344x32xf32>
      tpu.vector_store %arg5[%c0_12, %c0_13], %17 {strides = array<i32>} : memref<344x32xf32, #tpu.memory_space<vmem>>, vector<344x32xf32>,
    } else {
    }
    return
  }
  func.func @transform_0(%arg0: i32, %arg1: i32) -> (i32, i32) {
    %c1_i32 = arith.constant 1 : i32
    %0 = arith.muli %arg1, %c1_i32 : i32
    %1 = arith.addi %0, %arg0 : i32
    %c0_i32 = arith.constant 0 : i32
    %c0_i32_0 = arith.constant 0 : i32
    return %1, %c0_i32 : i32, i32
  }
  func.func @transform_1(%arg0: i32, %arg1: i32) -> (i32, i32) {
    %c0_i32 = arith.constant 0 : i32
    %c0_i32_0 = arith.constant 0 : i32
    %c0_i32_1 = arith.constant 0 : i32
    return %c0_i32, %c0_i32_0 : i32, i32
  }
  func.func @transform_2(%arg0: i32, %arg1: i32) -> (i32, i32) {
    %c0_i32 = arith.constant 0 : i32
    %c0_i32_0 = arith.constant 0 : i32
    %c0_i32_1 = arith.constant 0 : i32
    return %c0_i32, %c0_i32_0 : i32, i32
  }
  func.func @transform_3(%arg0: i32, %arg1: i32) -> (i32, i32) {
    %c0_i32 = arith.constant 0 : i32
    %c0_i32_0 = arith.constant 0 : i32
    return %arg0, %c0_i32 : i32, i32
  }
}

module attributes {stable_mosaic.version = 11 : i64} {
  func.func @conv_relu_pool_kernel(%arg0: i32, %arg1: i32, %arg2: memref<56x288xf32, #tpu.memory_space<vmem>>, %arg3: memref<288x32xf32, #tpu.memory_space<vmem>>, %arg4: memref<1x32xf32, #tpu.memory_space<vmem>>, %arg5: memref<56x32xf32, #tpu.memory_space<vmem>>) attributes {dimension_semantics = [#tpu.dimension_semantics<parallel>, #tpu.dimension_semantics<arbitrary>], iteration_bounds = array<i64: 1, 4>, scalar_prefetch = 0 : i64, scratch_operands = 0 : i64, tpu.core_type = #tpu.core_type<tc>, window_params = [{transform_indices = @transform_0, window_bounds = array<i64: 56, 288>}, {pipeline_mode = #tpu.pipeline_mode<synchronous>, transform_indices = @transform_1, window_bounds = array<i64: 288, 32>}, {pipeline_mode = #tpu.pipeline_mode<synchronous>, transform_indices = @transform_2, window_bounds = array<i64: 1, 32>}, {transform_indices = @transform_3, window_bounds = array<i64: 56, 32>}]} {
    %c0 = arith.constant 0 : index
    %c0_0 = arith.constant 0 : index
    %0 = vector.load %arg2[%c0, %c0_0] : memref<56x288xf32, #tpu.memory_space<vmem>>, vector<56x288xf32>
    %c0_1 = arith.constant 0 : index
    %c0_2 = arith.constant 0 : index
    %1 = vector.load %arg3[%c0_1, %c0_2] : memref<288x32xf32, #tpu.memory_space<vmem>>, vector<288x32xf32>
    %cst = arith.constant dense<0.000000e+00> : vector<56x32xf32>
    %2 = tpu.matmul %0, %1, %cst {dimension_numbers = #tpu.dot_dimension_numbers<[1], [0], [0], [1], [0, 0, 1, 1], [], []>} : vector<56x288xf32>, vector<288x32xf32>, vector<56x32xf32> -> vector<56x32xf32>
    %c0_i32 = arith.constant 0 : i32
    %3 = arith.cmpi eq, %arg1, %c0_i32 : i32
    %4 = arith.extui %3 : i1 to i32
    %c0_i32_3 = arith.constant 0 : i32
    %5 = arith.cmpi ne, %4, %c0_i32_3 : i32
    scf.if %5 {
      %c0_7 = arith.constant 0 : index
      %c0_8 = arith.constant 0 : index
      %12 = vector.load %arg5[%c0_7, %c0_8] : memref<56x32xf32, #tpu.memory_space<vmem>>, vector<56x32xf32>
      tpu.vector_store %arg5[%c0_7, %c0_8], %2 {strides = array<i32>} : memref<56x32xf32, #tpu.memory_space<vmem>>, vector<56x32xf32>,
    } else {
    }
    %c0_i32_4 = arith.constant 0 : i32
    %6 = arith.cmpi ne, %arg1, %c0_i32_4 : i32
    %7 = arith.extui %6 : i1 to i32
    %c0_i32_5 = arith.constant 0 : i32
    %8 = arith.cmpi ne, %7, %c0_i32_5 : i32
    scf.if %8 {
      %c0_7 = arith.constant 0 : index
      %c0_8 = arith.constant 0 : index
      %12 = vector.load %arg5[%c0_7, %c0_8] : memref<56x32xf32, #tpu.memory_space<vmem>>, vector<56x32xf32>
      %13 = arith.maximumf %12, %2 : vector<56x32xf32>
      %c0_9 = arith.constant 0 : index
      %c0_10 = arith.constant 0 : index
      %14 = vector.load %arg5[%c0_9, %c0_10] : memref<56x32xf32, #tpu.memory_space<vmem>>, vector<56x32xf32>
      tpu.vector_store %arg5[%c0_9, %c0_10], %13 {strides = array<i32>} : memref<56x32xf32, #tpu.memory_space<vmem>>, vector<56x32xf32>,
    } else {
    }
    %c3_i32 = arith.constant 3 : i32
    %9 = arith.cmpi eq, %arg1, %c3_i32 : i32
    %10 = arith.extui %9 : i1 to i32
    %c0_i32_6 = arith.constant 0 : i32
    %11 = arith.cmpi ne, %10, %c0_i32_6 : i32
    scf.if %11 {
      %c0_7 = arith.constant 0 : index
      %c0_8 = arith.constant 0 : index
      %12 = vector.load %arg5[%c0_7, %c0_8] : memref<56x32xf32, #tpu.memory_space<vmem>>, vector<56x32xf32>
      %c0_9 = arith.constant 0 : index
      %c0_10 = arith.constant 0 : index
      %13 = vector.load %arg4[%c0_9, %c0_10] : memref<1x32xf32, #tpu.memory_space<vmem>>, vector<1x32xf32>
      %14 = vector.broadcast %13 : vector<1x32xf32> to vector<56x32xf32>
      %15 = arith.addf %12, %14 : vector<56x32xf32>
      %cst_11 = arith.constant 0.000000e+00 : f32
      %16 = vector.broadcast %cst_11 : f32 to vector<56x32xf32>
      %17 = arith.maximumf %15, %16 : vector<56x32xf32>
      %c0_12 = arith.constant 0 : index
      %c0_13 = arith.constant 0 : index
      %18 = vector.load %arg5[%c0_12, %c0_13] : memref<56x32xf32, #tpu.memory_space<vmem>>, vector<56x32xf32>
      tpu.vector_store %arg5[%c0_12, %c0_13], %17 {strides = array<i32>} : memref<56x32xf32, #tpu.memory_space<vmem>>, vector<56x32xf32>,
    } else {
    }
    return
  }
  func.func @transform_0(%arg0: i32, %arg1: i32) -> (i32, i32) {
    %c1_i32 = arith.constant 1 : i32
    %0 = arith.muli %arg1, %c1_i32 : i32
    %1 = arith.addi %0, %arg0 : i32
    %c0_i32 = arith.constant 0 : i32
    %c0_i32_0 = arith.constant 0 : i32
    return %1, %c0_i32 : i32, i32
  }
  func.func @transform_1(%arg0: i32, %arg1: i32) -> (i32, i32) {
    %c0_i32 = arith.constant 0 : i32
    %c0_i32_0 = arith.constant 0 : i32
    %c0_i32_1 = arith.constant 0 : i32
    return %c0_i32, %c0_i32_0 : i32, i32
  }
  func.func @transform_2(%arg0: i32, %arg1: i32) -> (i32, i32) {
    %c0_i32 = arith.constant 0 : i32
    %c0_i32_0 = arith.constant 0 : i32
    %c0_i32_1 = arith.constant 0 : i32
    return %c0_i32, %c0_i32_0 : i32, i32
  }
  func.func @transform_3(%arg0: i32, %arg1: i32) -> (i32, i32) {
    %c0_i32 = arith.constant 0 : i32
    %c0_i32_0 = arith.constant 0 : i32
    return %arg0, %c0_i32 : i32, i32
  }
}

module attributes {stable_mosaic.version = 11 : i64} {
  func.func @conv_pool_mlp_kernel(%arg0: i32, %arg1: i32, %arg2: memref<8x288xf32, #tpu.memory_space<vmem>>, %arg3: memref<288x32xf32, #tpu.memory_space<vmem>>, %arg4: memref<1x32xf32, #tpu.memory_space<vmem>>, %arg5: memref<32x128xf32, #tpu.memory_space<vmem>>, %arg6: memref<1x128xf32, #tpu.memory_space<vmem>>, %arg7: memref<128x128xf32, #tpu.memory_space<vmem>>, %arg8: memref<1x128xf32, #tpu.memory_space<vmem>>, %arg9: memref<8x128xf32, #tpu.memory_space<vmem>>, %arg10: memref<8x32xf32, #tpu.memory_space<vmem>>) attributes {dimension_semantics = [#tpu.dimension_semantics<parallel>, #tpu.dimension_semantics<arbitrary>], iteration_bounds = array<i64: 1, 4>, scalar_prefetch = 0 : i64, scratch_operands = 1 : i64, tpu.core_type = #tpu.core_type<tc>, window_params = [{transform_indices = @transform_0, window_bounds = array<i64: 8, 288>}, {pipeline_mode = #tpu.pipeline_mode<synchronous>, transform_indices = @transform_1, window_bounds = array<i64: 288, 32>}, {pipeline_mode = #tpu.pipeline_mode<synchronous>, transform_indices = @transform_2, window_bounds = array<i64: 1, 32>}, {pipeline_mode = #tpu.pipeline_mode<synchronous>, transform_indices = @transform_3, window_bounds = array<i64: 32, 128>}, {pipeline_mode = #tpu.pipeline_mode<synchronous>, transform_indices = @transform_4, window_bounds = array<i64: 1, 128>}, {pipeline_mode = #tpu.pipeline_mode<synchronous>, transform_indices = @transform_5, window_bounds = array<i64: 128, 128>}, {pipeline_mode = #tpu.pipeline_mode<synchronous>, transform_indices = @transform_6, window_bounds = array<i64: 1, 128>}, {transform_indices = @transform_7, window_bounds = array<i64: 8, 128>}]} {
    %c0 = arith.constant 0 : index
    %c0_0 = arith.constant 0 : index
    %0 = vector.load %arg2[%c0, %c0_0] : memref<8x288xf32, #tpu.memory_space<vmem>>, vector<8x288xf32>
    %c0_1 = arith.constant 0 : index
    %c0_2 = arith.constant 0 : index
    %1 = vector.load %arg3[%c0_1, %c0_2] : memref<288x32xf32, #tpu.memory_space<vmem>>, vector<288x32xf32>
    %cst = arith.constant dense<0.000000e+00> : vector<8x32xf32>
    %2 = tpu.matmul %0, %1, %cst {dimension_numbers = #tpu.dot_dimension_numbers<[1], [0], [0], [1], [0, 0, 1, 1], [], []>} : vector<8x288xf32>, vector<288x32xf32>, vector<8x32xf32> -> vector<8x32xf32>
    %c0_i32 = arith.constant 0 : i32
    %3 = arith.cmpi eq, %arg1, %c0_i32 : i32
    %4 = arith.extui %3 : i1 to i32
    %c0_i32_3 = arith.constant 0 : i32
    %5 = arith.cmpi ne, %4, %c0_i32_3 : i32
    scf.if %5 {
      %c0_7 = arith.constant 0 : index
      %c0_8 = arith.constant 0 : index
      %12 = vector.load %arg10[%c0_7, %c0_8] : memref<8x32xf32, #tpu.memory_space<vmem>>, vector<8x32xf32>
      tpu.vector_store %arg10[%c0_7, %c0_8], %2 {strides = array<i32>} : memref<8x32xf32, #tpu.memory_space<vmem>>, vector<8x32xf32>,
    } else {
    }
    %c0_i32_4 = arith.constant 0 : i32
    %6 = arith.cmpi ne, %arg1, %c0_i32_4 : i32
    %7 = arith.extui %6 : i1 to i32
    %c0_i32_5 = arith.constant 0 : i32
    %8 = arith.cmpi ne, %7, %c0_i32_5 : i32
    scf.if %8 {
      %c0_7 = arith.constant 0 : index
      %c0_8 = arith.constant 0 : index
      %12 = vector.load %arg10[%c0_7, %c0_8] : memref<8x32xf32, #tpu.memory_space<vmem>>, vector<8x32xf32>
      %13 = arith.maximumf %12, %2 : vector<8x32xf32>
      %c0_9 = arith.constant 0 : index
      %c0_10 = arith.constant 0 : index
      %14 = vector.load %arg10[%c0_9, %c0_10] : memref<8x32xf32, #tpu.memory_space<vmem>>, vector<8x32xf32>
      tpu.vector_store %arg10[%c0_9, %c0_10], %13 {strides = array<i32>} : memref<8x32xf32, #tpu.memory_space<vmem>>, vector<8x32xf32>,
    } else {
    }
    %c3_i32 = arith.constant 3 : i32
    %9 = arith.cmpi eq, %arg1, %c3_i32 : i32
    %10 = arith.extui %9 : i1 to i32
    %c0_i32_6 = arith.constant 0 : i32
    %11 = arith.cmpi ne, %10, %c0_i32_6 : i32
    scf.if %11 {
      %c0_7 = arith.constant 0 : index
      %c0_8 = arith.constant 0 : index
      %12 = vector.load %arg10[%c0_7, %c0_8] : memref<8x32xf32, #tpu.memory_space<vmem>>, vector<8x32xf32>
      %c0_9 = arith.constant 0 : index
      %c0_10 = arith.constant 0 : index
      %13 = vector.load %arg4[%c0_9, %c0_10] : memref<1x32xf32, #tpu.memory_space<vmem>>, vector<1x32xf32>
      %14 = vector.broadcast %13 : vector<1x32xf32> to vector<8x32xf32>
      %15 = arith.addf %12, %14 : vector<8x32xf32>
      %cst_11 = arith.constant 0.000000e+00 : f32
      %16 = vector.broadcast %cst_11 : f32 to vector<8x32xf32>
      %17 = arith.maximumf %15, %16 : vector<8x32xf32>
      %c0_12 = arith.constant 0 : index
      %c0_13 = arith.constant 0 : index
      %18 = vector.load %arg5[%c0_12, %c0_13] : memref<32x128xf32, #tpu.memory_space<vmem>>, vector<32x128xf32>
      %cst_14 = arith.constant dense<0.000000e+00> : vector<8x128xf32>
      %19 = tpu.matmul %17, %18, %cst_14 {dimension_numbers = #tpu.dot_dimension_numbers<[1], [0], [0], [1], [0, 0, 1, 1], [], []>} : vector<8x32xf32>, vector<32x128xf32>, vector<8x128xf32> -> vector<8x128xf32>
      %c0_15 = arith.constant 0 : index
      %c0_16 = arith.constant 0 : index
      %20 = vector.load %arg6[%c0_15, %c0_16] : memref<1x128xf32, #tpu.memory_space<vmem>>, vector<1x128xf32>
      %21 = vector.broadcast %20 : vector<1x128xf32> to vector<8x128xf32>
      %22 = arith.addf %19, %21 : vector<8x128xf32>
      %cst_17 = arith.constant 0.000000e+00 : f32
      %23 = vector.broadcast %cst_17 : f32 to vector<8x128xf32>
      %24 = arith.maximumf %22, %23 : vector<8x128xf32>
      %c0_18 = arith.constant 0 : index
      %c0_19 = arith.constant 0 : index
      %25 = vector.load %arg7[%c0_18, %c0_19] : memref<128x128xf32, #tpu.memory_space<vmem>>, vector<128x128xf32>
      %cst_20 = arith.constant dense<0.000000e+00> : vector<8x128xf32>
      %26 = tpu.matmul %24, %25, %cst_20 {dimension_numbers = #tpu.dot_dimension_numbers<[1], [0], [0], [1], [0, 0, 1, 1], [], []>} : vector<8x128xf32>, vector<128x128xf32>, vector<8x128xf32> -> vector<8x128xf32>
      %c0_21 = arith.constant 0 : index
      %c0_22 = arith.constant 0 : index
      %27 = vector.load %arg8[%c0_21, %c0_22] : memref<1x128xf32, #tpu.memory_space<vmem>>, vector<1x128xf32>
      %28 = vector.broadcast %27 : vector<1x128xf32> to vector<8x128xf32>
      %29 = arith.addf %26, %28 : vector<8x128xf32>
      %c0_23 = arith.constant 0 : index
      %c0_24 = arith.constant 0 : index
      %30 = vector.load %arg9[%c0_23, %c0_24] : memref<8x128xf32, #tpu.memory_space<vmem>>, vector<8x128xf32>
      tpu.vector_store %arg9[%c0_23, %c0_24], %29 {strides = array<i32>} : memref<8x128xf32, #tpu.memory_space<vmem>>, vector<8x128xf32>,
    } else {
    }
    return
  }
  func.func @transform_0(%arg0: i32, %arg1: i32) -> (i32, i32) {
    %c1_i32 = arith.constant 1 : i32
    %0 = arith.muli %arg1, %c1_i32 : i32
    %1 = arith.addi %0, %arg0 : i32
    %c0_i32 = arith.constant 0 : i32
    %c0_i32_0 = arith.constant 0 : i32
    return %1, %c0_i32 : i32, i32
  }
  func.func @transform_1(%arg0: i32, %arg1: i32) -> (i32, i32) {
    %c0_i32 = arith.constant 0 : i32
    %c0_i32_0 = arith.constant 0 : i32
    %c0_i32_1 = arith.constant 0 : i32
    return %c0_i32, %c0_i32_0 : i32, i32
  }
  func.func @transform_2(%arg0: i32, %arg1: i32) -> (i32, i32) {
    %c0_i32 = arith.constant 0 : i32
    %c0_i32_0 = arith.constant 0 : i32
    %c0_i32_1 = arith.constant 0 : i32
    return %c0_i32, %c0_i32_0 : i32, i32
  }
  func.func @transform_3(%arg0: i32, %arg1: i32) -> (i32, i32) {
    %c0_i32 = arith.constant 0 : i32
    %c0_i32_0 = arith.constant 0 : i32
    %c0_i32_1 = arith.constant 0 : i32
    return %c0_i32, %c0_i32_0 : i32, i32
  }
  func.func @transform_4(%arg0: i32, %arg1: i32) -> (i32, i32) {
    %c0_i32 = arith.constant 0 : i32
    %c0_i32_0 = arith.constant 0 : i32
    %c0_i32_1 = arith.constant 0 : i32
    return %c0_i32, %c0_i32_0 : i32, i32
  }
  func.func @transform_5(%arg0: i32, %arg1: i32) -> (i32, i32) {
    %c0_i32 = arith.constant 0 : i32
    %c0_i32_0 = arith.constant 0 : i32
    %c0_i32_1 = arith.constant 0 : i32
    return %c0_i32, %c0_i32_0 : i32, i32
  }
  func.func @transform_6(%arg0: i32, %arg1: i32) -> (i32, i32) {
    %c0_i32 = arith.constant 0 : i32
    %c0_i32_0 = arith.constant 0 : i32
    %c0_i32_1 = arith.constant 0 : i32
    return %c0_i32, %c0_i32_0 : i32, i32
  }
  func.func @transform_7(%arg0: i32, %arg1: i32) -> (i32, i32) {
    %c0_i32 = arith.constant 0 : i32
    %c0_i32_0 = arith.constant 0 : i32
    return %arg0, %c0_i32 : i32, i32
  }
}

</mosaic_0001>

<bundles_post_ra>
// kernel: cnn_forward.4
= control target key start
LH: loop header
LB: loop body
LE: loop exit
PB: predicated region body
PF: predicated region fallthrough
CT: control target
= control target key end

     0   :  { %s3135_s12 = smov 0   ;;  %s3137_s13 = smov 0   ;;  %s5133_s0 = inlined_call_operand.vmem [shape: f32[8192,25], index: 0, kind: input, shape index: {}]   ;;  %s5134_s1 = inlined_call_operand.vmem [shape: f32[25,32], index: 1, kind: input, shape index: {}]   ;;  %s5135_s2 = inlined_call_operand.vmem [shape: f32[1,32], index: 2, kind: input, shape index: {}]   ;;  %s5136_s3 = inlined_call_operand.vmem [shape: f32[2048,32], index: 3, kind: output, shape index: {}]  }
   0x1   :  { %s3139_s14 = smov 0   ;;  %s3141_s15 = smov 0  }
   0x2   :  { %s3143_s16 = smov 0  }
   0x3 LB: > { %s22_s17 = sadd.s32 1, %s3104_s14  ;;  %s25_s18 = sadd.s32 1, %s3108_s15  ;;  %s3112_s16 = sphi %s3143_s16, %s13_s16   ;;  %s3108_s15 = sphi %s3141_s15, %s5368_s15   ;;  %s3104_s14 = sphi %s3139_s14, %s5367_s14   ;;  %s3100_s13 = sphi %s3137_s13, %s5366_s13   ;;  %s3096_s12 = sphi %s3135_s12, %s5365_s12  }
   0x4   : > { %p23_p0 = scmp.ge.s32.totalorder %s22_s17, 4  ;;  %p2546_p1 = scmp.ge.s32.totalorder %s3112_s16, 1 }
   0x5   : > { %p158_p2 = scmp.lt.s32.totalorder %s3112_s16, 9 }
   0x6   : > { %s5370_s17 = smov (%p23_p0, %s22_s17), 0  ;;  %s5372_s18 = smov (!%p23_p0, %s25_s18), %s3108_s15 }
   0x7   : > { %p159_p3 = pnand %p2546_p1, %p158_p2  ;;  %p27_p4 = scmp.ge.s32.totalorder %s5372_s18, 2 }
   0x9   : > { %s5374_s18 = smov (%p27_p4, %s5372_s18), 0  ;;  %162 = sbr.rel (%p159_p3) target bundleno = 554 (0x22a), region = 32 }
  0x10   : > { %s2550_s19 = sshll.u32 %s3100_s13, 7  ;;  %v328_v0 = vld [vmem:[%s5134_s1] sm:$0xff]  ;;  %v329_v1 = vld [vmem:[%s5134_s1 + $0x8] sm:$0xff]  ;;  %v330_v2 = vld [vmem:[%s5134_s1 + $0x10] sm:$0xff]  ;;  %vm717_vm0 = vcmask 1040384   ;;  %s2547_s28 = sshll.u32 %s3096_s12, 1 }
  0x11   : > { %p195_p5 = scmp.lt.s32.totalorder %s2550_s19, 255  ;;  %v3019_v3 = vpack.c.bf16 %v329_v1, %v328_v0  ;;  %v331_v4 = vld [vmem:[%s5134_s1 + $0x18] sm:$0x1]  ;;  %vm3114_vm1 = vmmov 1   ;;  %s185_s29 = sadd.s32 %s3100_s13, %s2547_s28  ;;  %vm332_vm3 = vcmask 203776  }
  0x12   : > { %v3023_v5 = vpack.c.bf16 %v331_v4, %v330_v2  ;;  %vm3024_vm2 = vmpackc.low %vm717_vm0, %vm3114_vm1  ;;  %s2548_s30 = sshll.u32 %s185_s29, 7  ;;  %p2681_p7 = scmp.ne.s32.totalorder %s3096_s12, 0 }
  0x13   : > { %s5376_s19 = smov (!%p195_p5, %s2550_s19), 255  ;;  %3020 = vmatprep.subr.bf16.mxu0 %v3019_v3  ;;  %3029 = vmatprep.subr.bf16.mxu1 %v3019_v3  ;;  %p187_p6 = scmp.lt.s32.totalorder %s2548_s30, 1023  ;;  %vm1430_vm4 = vcmask (!%p2681_p7), 261120  }
  0x14   : > { %3022 = vmatpush3.bf16.msra.mxu0 %v3019_v3  ;;  %3031 = vmatpush3.bf16.msra.mxu1 %v3019_v3  ;;  %s2551_s4 = sshll.u32 %s5376_s19, 3 }
  0x15   : > { %3025 = vmatprep.subr.msk.bf16.mxu0 %vm3024_vm2, %v3023_v5  ;;  %3030 = vmatprep.subr.msk.bf16.mxu1 %vm3024_vm2, %v3023_v5  ;;  %s3183_s7 = scalar_lea.vmem %s5136_s3, %s2551_s4  ;;  %s5378_s30 = smov (!%p187_p6, %s2548_s30), 1023 }
  0x16   : > { %s2549_s8 = sshll.u32 %s5378_s30, 3 }
  0x17   : > { %s3188_s11 = scalar_lea.vmem %s5133_s0, %s2549_s8 }
  0x18   : > { %3028 = vmatpush3.bf16.msk.msra.mxu0 %vm3024_vm2, %v3023_v5  ;;  %3032 = vmatpush3.bf16.msk.msra.mxu1 %vm3024_vm2, %v3023_v5  ;;  %v200_v6 = vld [vmem:[%s3188_s11] sm:$0xff]  ;;  %v201_v8 = vld [vmem:[%s3188_s11 + $0x8] sm:$0xff]  ;;  %v202_v10 = vld [vmem:[%s3188_s11 + $0x10] sm:$0xff] }
  0x19   : > { %v264_v7 = vld [vmem:[%s3188_s11 + $0x200] sm:$0xff]  ;;  %2827 = vmatprep.mubr.msk.f32.mxu0 %vm332_vm3, %v200_v6  ;;  %v265_v9 = vld [vmem:[%s3188_s11 + $0x208] sm:$0xff]  ;;  %v266_v11 = vld [vmem:[%s3188_s11 + $0x210] sm:$0xff] }
  0x1a   : > { %2923 = vmatprep.mubr.msk.f32.mxu1 %vm332_vm3, %v264_v7  ;;  %v203_v12 = vld [vmem:[%s3188_s11 + $0x18] sm:$0xff]  ;;  %v204_v14 = vld [vmem:[%s3188_s11 + $0x20] sm:$0xff]  ;;  %v205_v16 = vld [vmem:[%s3188_s11 + $0x28] sm:$0xff] }
  0x1b   : > { %2828 = vmatmul.mubr.msk.f32.vlgmr.msra.gmra.mrb[0].mxu0 %vm332_vm3, %v201_v8  ;;  %2924 = vmatmul.mubr.msk.f32.vlgmr.msra.gmra.mrb[0].mxu1 %vm332_vm3, %v265_v9  ;;  %v267_v13 = vld [vmem:[%s3188_s11 + $0x218] sm:$0xff]  ;;  %v268_v15 = vld [vmem:[%s3188_s11 + $0x220] sm:$0xff]  ;;  %v269_v17 = vld [vmem:[%s3188_s11 + $0x228] sm:$0xff] }
  0x1c   : > { %2830 = vmatprep.mubr.msk.f32.mxu0 %vm332_vm3, %v202_v10  ;;  %2926 = vmatprep.mubr.msk.f32.mxu1 %vm332_vm3, %v266_v11  ;;  %v206_v18 = vld [vmem:[%s3188_s11 + $0x30] sm:$0xff]  ;;  %v207_v20 = vld [vmem:[%s3188_s11 + $0x38] sm:$0xff]  ;;  %v208_v22 = vld [vmem:[%s3188_s11 + $0x40] sm:$0xff] }
  0x1d   : > { %v270_v19 = vld [vmem:[%s3188_s11 + $0x230] sm:$0xff]  ;;  %v271_v21 = vld [vmem:[%s3188_s11 + $0x238] sm:$0xff]  ;;  %v272_v23 = vld [vmem:[%s3188_s11 + $0x240] sm:$0xff] }
  0x1e   : > { %v209_v24 = vld [vmem:[%s3188_s11 + $0x48] sm:$0xff]  ;;  %v210_v26 = vld [vmem:[%s3188_s11 + $0x50] sm:$0xff]  ;;  %v211_v28 = vld [vmem:[%s3188_s11 + $0x58] sm:$0xff] }
  0x1f   : > { %2831 = vmatmul.mubr.msk.f32.gmra.mrb[2].mxu0 %vm332_vm3, %v203_v12  ;;  %2927 = vmatmul.mubr.msk.f32.gmra.mrb[2].mxu1 %vm332_vm3, %v267_v13  ;;  %v273_v25 = vld [vmem:[%s3188_s11 + $0x248] sm:$0xff]  ;;  %v274_v27 = vld [vmem:[%s3188_s11 + $0x250] sm:$0xff]  ;;  %v275_v29 = vld [vmem:[%s3188_s11 + $0x258] sm:$0xff] }
  0x20   : > { %2833 = vmatprep.mubr.msk.f32.mxu0 %vm332_vm3, %v204_v14  ;;  %2929 = vmatprep.mubr.msk.f32.mxu1 %vm332_vm3, %v268_v15  ;;  %v212_v30 = vld [vmem:[%s3188_s11 + $0x60] sm:$0xff]  ;;  %v213_v32 = vld [vmem:[%s3188_s11 + $0x68] sm:$0xff]  ;;  %v214_v34 = vld [vmem:[%s3188_s11 + $0x70] sm:$0xff] }
  0x21   : > { %v276_v31 = vld [vmem:[%s3188_s11 + $0x260] sm:$0xff]  ;;  %v277_v33 = vld [vmem:[%s3188_s11 + $0x268] sm:$0xff]  ;;  %v278_v35 = vld [vmem:[%s3188_s11 + $0x270] sm:$0xff] }
  0x22   : > { %v215_v36 = vld [vmem:[%s3188_s11 + $0x78] sm:$0xff]  ;;  %v216_v38 = vld [vmem:[%s3188_s11 + $0x80] sm:$0xff]  ;;  %v217_v40 = vld [vmem:[%s3188_s11 + $0x88] sm:$0xff] }
  0x23   : > { %2834 = vmatmul.mubr.msk.f32.gmra.mrb[4].mxu0 %vm332_vm3, %v205_v16  ;;  %2930 = vmatmul.mubr.msk.f32.gmra.mrb[4].mxu1 %vm332_vm3, %v269_v17  ;;  %v279_v37 = vld [vmem:[%s3188_s11 + $0x278] sm:$0xff]  ;;  %v280_v39 = vld [vmem:[%s3188_s11 + $0x280] sm:$0xff]  ;;  %v281_v41 = vld [vmem:[%s3188_s11 + $0x288] sm:$0xff] }
  0x24   : > { %2836 = vmatprep.mubr.msk.f32.mxu0 %vm332_vm3, %v206_v18  ;;  %2932 = vmatprep.mubr.msk.f32.mxu1 %vm332_vm3, %v270_v19  ;;  %v218_v42 = vld [vmem:[%s3188_s11 + $0x90] sm:$0xff]  ;;  %v219_v44 = vld [vmem:[%s3188_s11 + $0x98] sm:$0xff]  ;;  %v220_v46 = vld [vmem:[%s3188_s11 + $0xa0] sm:$0xff] }
  0x25   : > { %v282_v43 = vld [vmem:[%s3188_s11 + $0x290] sm:$0xff]  ;;  %v283_v45 = vld [vmem:[%s3188_s11 + $0x298] sm:$0xff]  ;;  %v284_v47 = vld [vmem:[%s3188_s11 + $0x2a0] sm:$0xff] }
  0x26   : > { %v221_v48 = vld [vmem:[%s3188_s11 + $0xa8] sm:$0xff]  ;;  %v222_v50 = vld [vmem:[%s3188_s11 + $0xb0] sm:$0xff]  ;;  %v223_v52 = vld [vmem:[%s3188_s11 + $0xb8] sm:$0xff] }
  0x27   : > { %2837 = vmatmul.mubr.msk.f32.gmra.mrb[6].mxu0 %vm332_vm3, %v207_v20  ;;  %2933 = vmatmul.mubr.msk.f32.gmra.mrb[6].mxu1 %vm332_vm3, %v271_v21  ;;  %v285_v49 = vld [vmem:[%s3188_s11 + $0x2a8] sm:$0xff]  ;;  %v286_v51 = vld [vmem:[%s3188_s11 + $0x2b0] sm:$0xff]  ;;  %v287_v53 = vld [vmem:[%s3188_s11 + $0x2b8] sm:$0xff] }
  0x28   : > { %2839 = vmatprep.mubr.msk.f32.mxu0 %vm332_vm3, %v208_v22  ;;  %2935 = vmatprep.mubr.msk.f32.mxu1 %vm332_vm3, %v272_v23  ;;  %v224_v54 = vld [vmem:[%s3188_s11 + $0xc0] sm:$0xff]  ;;  %v225_v56 = vld [vmem:[%s3188_s11 + $0xc8] sm:$0xff]  ;;  %v226_v58 = vld [vmem:[%s3188_s11 + $0xd0] sm:$0xff] }
  0x29   : > { %v288_v55 = vld [vmem:[%s3188_s11 + $0x2c0] sm:$0xff]  ;;  %v289_v57 = vld [vmem:[%s3188_s11 + $0x2c8] sm:$0xff]  ;;  %v290_v59 = vld [vmem:[%s3188_s11 + $0x2d0] sm:$0xff] }
  0x2a   : > { %v227_v60 = vld [vmem:[%s3188_s11 + $0xd8] sm:$0xff]  ;;  %v228_v62 = vld [vmem:[%s3188_s11 + $0xe0] sm:$0xff]  ;;  %v229_v0 = vld [vmem:[%s3188_s11 + $0xe8] sm:$0xff] }
  0x2b   : > { %2840 = vmatmul.mubr.msk.f32.gmra.mrb[8].mxu0 %vm332_vm3, %v209_v24  ;;  %2936 = vmatmul.mubr.msk.f32.gmra.mrb[8].mxu1 %vm332_vm3, %v273_v25  ;;  %v291_v61 = vld [vmem:[%s3188_s11 + $0x2d8] sm:$0xff]  ;;  %v292_v63 = vld [vmem:[%s3188_s11 + $0x2e0] sm:$0xff]  ;;  %v293_v1 = vld [vmem:[%s3188_s11 + $0x2e8] sm:$0xff] }
  0x2c   : > { %2842 = vmatprep.mubr.msk.f32.mxu0 %vm332_vm3, %v210_v26  ;;  %2938 = vmatprep.mubr.msk.f32.mxu1 %vm332_vm3, %v274_v27  ;;  %v230_v2 = vld [vmem:[%s3188_s11 + $0xf0] sm:$0xff]  ;;  %v231_v4 = vld [vmem:[%s3188_s11 + $0xf8] sm:$0xff]  ;;  %v232_v6 = vld [vmem:[%s3188_s11 + $0x100] sm:$0xff] }
  0x2d   : > { %v294_v3 = vld [vmem:[%s3188_s11 + $0x2f0] sm:$0xff]  ;;  %v295_v5 = vld [vmem:[%s3188_s11 + $0x2f8] sm:$0xff]  ;;  %v296_v7 = vld [vmem:[%s3188_s11 + $0x300] sm:$0xff] }
  0x2e   : > { %v233_v8 = vld [vmem:[%s3188_s11 + $0x108] sm:$0xff]  ;;  %v234_v10 = vld [vmem:[%s3188_s11 + $0x110] sm:$0xff]  ;;  %v235_v12 = vld [vmem:[%s3188_s11 + $0x118] sm:$0xff] }
  0x2f   : > { %2843 = vmatmul.mubr.msk.f32.gmra.mrb[10].mxu0 %vm332_vm3, %v211_v28  ;;  %2939 = vmatmul.mubr.msk.f32.gmra.mrb[10].mxu1 %vm332_vm3, %v275_v29  ;;  %v297_v9 = vld [vmem:[%s3188_s11 + $0x308] sm:$0xff]  ;;  %v298_v11 = vld [vmem:[%s3188_s11 + $0x310] sm:$0xff]  ;;  %v299_v13 = vld [vmem:[%s3188_s11 + $0x318] sm:$0xff] }
  0x30   : > { %2845 = vmatprep.mubr.msk.f32.mxu0 %vm332_vm3, %v212_v30  ;;  %2941 = vmatprep.mubr.msk.f32.mxu1 %vm332_vm3, %v276_v31  ;;  %v236_v14 = vld [vmem:[%s3188_s11 + $0x120] sm:$0xff]  ;;  %v237_v16 = vld [vmem:[%s3188_s11 + $0x128] sm:$0xff]  ;;  %v238_v18 = vld [vmem:[%s3188_s11 + $0x130] sm:$0xff] }
  0x31   : > { %v300_v15 = vld [vmem:[%s3188_s11 + $0x320] sm:$0xff]  ;;  %v301_v17 = vld [vmem:[%s3188_s11 + $0x328] sm:$0xff]  ;;  %v302_v19 = vld [vmem:[%s3188_s11 + $0x330] sm:$0xff] }
  0x32   : > { %v239_v20 = vld [vmem:[%s3188_s11 + $0x138] sm:$0xff]  ;;  %v240_v22 = vld [vmem:[%s3188_s11 + $0x140] sm:$0xff]  ;;  %v241_v24 = vld [vmem:[%s3188_s11 + $0x148] sm:$0xff] }
  0x33   : > { %2846 = vmatmul.mubr.msk.f32.gmra.mrb[12].mxu0 %vm332_vm3, %v213_v32  ;;  %2942 = vmatmul.mubr.msk.f32.gmra.mrb[12].mxu1 %vm332_vm3, %v277_v33  ;;  %v303_v21 = vld [vmem:[%s3188_s11 + $0x338] sm:$0xff]  ;;  %v304_v23 = vld [vmem:[%s3188_s11 + $0x340] sm:$0xff]  ;;  %v305_v25 = vld [vmem:[%s3188_s11 + $0x348] sm:$0xff] }
  0x34   : > { %2848 = vmatprep.mubr.msk.f32.mxu0 %vm332_vm3, %v214_v34  ;;  %2944 = vmatprep.mubr.msk.f32.mxu1 %vm332_vm3, %v278_v35  ;;  %v242_v26 = vld [vmem:[%s3188_s11 + $0x150] sm:$0xff]  ;;  %v243_v28 = vld [vmem:[%s3188_s11 + $0x158] sm:$0xff]  ;;  %v244_v30 = vld [vmem:[%s3188_s11 + $0x160] sm:$0xff] }
  0x35   : > { %v306_v27 = vld [vmem:[%s3188_s11 + $0x350] sm:$0xff]  ;;  %v307_v29 = vld [vmem:[%s3188_s11 + $0x358] sm:$0xff]  ;;  %v308_v31 = vld [vmem:[%s3188_s11 + $0x360] sm:$0xff] }
  0x36   : > { %v245_v32 = vld [vmem:[%s3188_s11 + $0x168] sm:$0xff]  ;;  %v246_v34 = vld [vmem:[%s3188_s11 + $0x170] sm:$0xff] }
  0x37   : > { %2849 = vmatmul.mubr.msk.f32.gmra.mrb[14].mxu0 %vm332_vm3, %v215_v36  ;;  %2945 = vmatmul.mubr.msk.f32.gmra.mrb[14].mxu1 %vm332_vm3, %v279_v37  ;;  %v309_v33 = vld [vmem:[%s3188_s11 + $0x368] sm:$0xff]  ;;  %v310_v35 = vld [vmem:[%s3188_s11 + $0x370] sm:$0xff]  ;;  %v247_v36 = vld [vmem:[%s3188_s11 + $0x178] sm:$0xff] }
  0x38   : > { %2851 = vmatprep.mubr.msk.f32.mxu0 %vm332_vm3, %v216_v38  ;;  %2947 = vmatprep.mubr.msk.f32.mxu1 %vm332_vm3, %v280_v39  ;;  %v311_v37 = vld [vmem:[%s3188_s11 + $0x378] sm:$0xff]  ;;  %v248_v38 = vld [vmem:[%s3188_s11 + $0x180] sm:$0xff] }
  0x39   : > { %v312_v39 = vld [vmem:[%s3188_s11 + $0x380] sm:$0xff] }
  0x3b   : > { %2852 = vmatmul.mubr.msk.f32.gmra.mrb[16].mxu0 %vm332_vm3, %v217_v40  ;;  %2948 = vmatmul.mubr.msk.f32.gmra.mrb[16].mxu1 %vm332_vm3, %v281_v41  ;;  %v249_v40 = vld [vmem:[%s3188_s11 + $0x188] sm:$0xff] }
  0x3c   : > { %2854 = vmatprep.mubr.msk.f32.mxu0 %vm332_vm3, %v218_v42  ;;  %2950 = vmatprep.mubr.msk.f32.mxu1 %vm332_vm3, %v282_v43  ;;  %v313_v41 = vld [vmem:[%s3188_s11 + $0x388] sm:$0xff]  ;;  %v250_v42 = vld [vmem:[%s3188_s11 + $0x190] sm:$0xff] }
  0x3d   : > { %v314_v43 = vld [vmem:[%s3188_s11 + $0x390] sm:$0xff] }
  0x3f   : > { %2855 = vmatmul.mubr.msk.f32.gmra.mrb[18].mxu0 %vm332_vm3, %v219_v44  ;;  %2951 = vmatmul.mubr.msk.f32.gmra.mrb[18].mxu1 %vm332_vm3, %v283_v45  ;;  %v251_v44 = vld [vmem:[%s3188_s11 + $0x198] sm:$0xff] }
  0x40   : > { %2857 = vmatprep.mubr.msk.f32.mxu0 %vm332_vm3, %v220_v46  ;;  %2953 = vmatprep.mubr.msk.f32.mxu1 %vm332_vm3, %v284_v47  ;;  %v315_v45 = vld [vmem:[%s3188_s11 + $0x398] sm:$0xff]  ;;  %v252_v46 = vld [vmem:[%s3188_s11 + $0x1a0] sm:$0xff] }
  0x41   : > { %v316_v47 = vld [vmem:[%s3188_s11 + $0x3a0] sm:$0xff] }
  0x43   : > { %2858 = vmatmul.mubr.msk.f32.gmra.mrb[20].mxu0 %vm332_vm3, %v221_v48  ;;  %2954 = vmatmul.mubr.msk.f32.gmra.mrb[20].mxu1 %vm332_vm3, %v285_v49  ;;  %v253_v48 = vld [vmem:[%s3188_s11 + $0x1a8] sm:$0xff] }
  0x44   : > { %2860 = vmatprep.mubr.msk.f32.mxu0 %vm332_vm3, %v222_v50  ;;  %2956 = vmatprep.mubr.msk.f32.mxu1 %vm332_vm3, %v286_v51  ;;  %v317_v49 = vld [vmem:[%s3188_s11 + $0x3a8] sm:$0xff]  ;;  %v254_v50 = vld [vmem:[%s3188_s11 + $0x1b0] sm:$0xff] }
  0x45   : > { %v318_v51 = vld [vmem:[%s3188_s11 + $0x3b0] sm:$0xff] }
  0x47   : > { %2861 = vmatmul.mubr.msk.f32.gmra.mrb[22].mxu0 %vm332_vm3, %v223_v52  ;;  %2957 = vmatmul.mubr.msk.f32.gmra.mrb[22].mxu1 %vm332_vm3, %v287_v53  ;;  %v255_v52 = vld [vmem:[%s3188_s11 + $0x1b8] sm:$0xff] }
  0x48   : > { %2863 = vmatprep.mubr.msk.f32.mxu0 %vm332_vm3, %v224_v54  ;;  %2959 = vmatprep.mubr.msk.f32.mxu1 %vm332_vm3, %v288_v55  ;;  %v319_v53 = vld [vmem:[%s3188_s11 + $0x3b8] sm:$0xff]  ;;  %v256_v54 = vld [vmem:[%s3188_s11 + $0x1c0] sm:$0xff] }
  0x49   : > { %v320_v55 = vld [vmem:[%s3188_s11 + $0x3c0] sm:$0xff] }
  0x4b   : > { %2864 = vmatmul.mubr.msk.f32.gmra.mrb[24].mxu0 %vm332_vm3, %v225_v56  ;;  %2960 = vmatmul.mubr.msk.f32.gmra.mrb[24].mxu1 %vm332_vm3, %v289_v57  ;;  %v257_v56 = vld [vmem:[%s3188_s11 + $0x1c8] sm:$0xff] }
  0x4c   : > { %2866 = vmatprep.mubr.msk.f32.mxu0 %vm332_vm3, %v226_v58  ;;  %2962 = vmatprep.mubr.msk.f32.mxu1 %vm332_vm3, %v290_v59  ;;  %v321_v57 = vld [vmem:[%s3188_s11 + $0x3c8] sm:$0xff]  ;;  %v258_v58 = vld [vmem:[%s3188_s11 + $0x1d0] sm:$0xff] }
  0x4d   : > { %v322_v59 = vld [vmem:[%s3188_s11 + $0x3d0] sm:$0xff] }
  0x4f   : > { %2867 = vmatmul.mubr.msk.f32.gmra.mrb[26].mxu0 %vm332_vm3, %v227_v60  ;;  %2963 = vmatmul.mubr.msk.f32.gmra.mrb[26].mxu1 %vm332_vm3, %v291_v61  ;;  %v259_v60 = vld [vmem:[%s3188_s11 + $0x1d8] sm:$0xff] }
  0x50   : > { %2869 = vmatprep.mubr.msk.f32.mxu0 %vm332_vm3, %v228_v62  ;;  %2965 = vmatprep.mubr.msk.f32.mxu1 %vm332_vm3, %v292_v63  ;;  %v323_v61 = vld [vmem:[%s3188_s11 + $0x3d8] sm:$0xff]  ;;  %v260_v62 = vld [vmem:[%s3188_s11 + $0x1e0] sm:$0xff] }
  0x51   : > { %v324_v63 = vld [vmem:[%s3188_s11 + $0x3e0] sm:$0xff] }
  0x53   : > { %2870 = vmatmul.mubr.msk.f32.gmra.mrb[28].mxu0 %vm332_vm3, %v229_v0  ;;  %2966 = vmatmul.mubr.msk.f32.gmra.mrb[28].mxu1 %vm332_vm3, %v293_v1  ;;  %v261_v0 = vld [vmem:[%s3188_s11 + $0x1e8] sm:$0xff] }
  0x54   : > { %2872 = vmatprep.mubr.msk.f32.mxu0 %vm332_vm3, %v230_v2  ;;  %2968 = vmatprep.mubr.msk.f32.mxu1 %vm332_vm3, %v294_v3  ;;  %v325_v1 = vld [vmem:[%s3188_s11 + $0x3e8] sm:$0xff]  ;;  %v262_v2 = vld [vmem:[%s3188_s11 + $0x1f0] sm:$0xff] }
  0x55   : > { %v326_v3 = vld [vmem:[%s3188_s11 + $0x3f0] sm:$0xff] }
  0x57   : > { %2873 = vmatmul.mubr.msk.f32.gmra.mrb[30].mxu0 %vm332_vm3, %v231_v4  ;;  %2969 = vmatmul.mubr.msk.f32.gmra.mrb[30].mxu1 %vm332_vm3, %v295_v5  ;;  %v263_v4 = vld [vmem:[%s3188_s11 + $0x1f8] sm:$0xff] }
  0x58   : > { %2875 = vmatprep.mubr.msk.f32.mxu0 %vm332_vm3, %v232_v6  ;;  %2971 = vmatprep.mubr.msk.f32.mxu1 %vm332_vm3, %v296_v7  ;;  %v327_v5 = vld [vmem:[%s3188_s11 + $0x3f8] sm:$0xff] }
  0x5b   : > { %2876 = vmatmul.mubr.msk.f32.gmra.mrb[32].mxu0 %vm332_vm3, %v233_v8  ;;  %2972 = vmatmul.mubr.msk.f32.gmra.mrb[32].mxu1 %vm332_vm3, %v297_v9 }
  0x5c   : > { %2878 = vmatprep.mubr.msk.f32.mxu0 %vm332_vm3, %v234_v10  ;;  %2974 = vmatprep.mubr.msk.f32.mxu1 %vm332_vm3, %v298_v11 }
  0x5f   : > { %2879 = vmatmul.mubr.msk.f32.gmra.mrb[34].mxu0 %vm332_vm3, %v235_v12  ;;  %2975 = vmatmul.mubr.msk.f32.gmra.mrb[34].mxu1 %vm332_vm3, %v299_v13 }
  0x60   : > { %2881 = vmatprep.mubr.msk.f32.mxu0 %vm332_vm3, %v236_v14  ;;  %2977 = vmatprep.mubr.msk.f32.mxu1 %vm332_vm3, %v300_v15 }
  0x63   : > { %2882 = vmatmul.mubr.msk.f32.gmra.mrb[36].mxu0 %vm332_vm3, %v237_v16  ;;  %2978 = vmatmul.mubr.msk.f32.gmra.mrb[36].mxu1 %vm332_vm3, %v301_v17 }
  0x64   : > { %2884 = vmatprep.mubr.msk.f32.mxu0 %vm332_vm3, %v238_v18  ;;  %2980 = vmatprep.mubr.msk.f32.mxu1 %vm332_vm3, %v302_v19 }
  0x67   : > { %2885 = vmatmul.mubr.msk.f32.gmra.mrb[38].mxu0 %vm332_vm3, %v239_v20  ;;  %2981 = vmatmul.mubr.msk.f32.gmra.mrb[38].mxu1 %vm332_vm3, %v303_v21 }
  0x68   : > { %2887 = vmatprep.mubr.msk.f32.mxu0 %vm332_vm3, %v240_v22  ;;  %2983 = vmatprep.mubr.msk.f32.mxu1 %vm332_vm3, %v304_v23 }
  0x6b   : > { %2888 = vmatmul.mubr.msk.f32.gmra.mrb[40].mxu0 %vm332_vm3, %v241_v24  ;;  %2984 = vmatmul.mubr.msk.f32.gmra.mrb[40].mxu1 %vm332_vm3, %v305_v25 }
  0x6c   : > { %2890 = vmatprep.mubr.msk.f32.mxu0 %vm332_vm3, %v242_v26  ;;  %2986 = vmatprep.mubr.msk.f32.mxu1 %vm332_vm3, %v306_v27 }
  0x6f   : > { %2891 = vmatmul.mubr.msk.f32.gmra.mrb[42].mxu0 %vm332_vm3, %v243_v28  ;;  %2987 = vmatmul.mubr.msk.f32.gmra.mrb[42].mxu1 %vm332_vm3, %v307_v29 }
  0x70   : > { %2893 = vmatprep.mubr.msk.f32.mxu0 %vm332_vm3, %v244_v30  ;;  %2989 = vmatprep.mubr.msk.f32.mxu1 %vm332_vm3, %v308_v31 }
  0x73   : > { %2894 = vmatmul.mubr.msk.f32.gmra.mrb[44].mxu0 %vm332_vm3, %v245_v32  ;;  %2990 = vmatmul.mubr.msk.f32.gmra.mrb[44].mxu1 %vm332_vm3, %v309_v33 }
  0x74   : > { %2896 = vmatprep.mubr.msk.f32.mxu0 %vm332_vm3, %v246_v34  ;;  %2992 = vmatprep.mubr.msk.f32.mxu1 %vm332_vm3, %v310_v35 }
  0x77   : > { %2897 = vmatmul.mubr.msk.f32.gmra.mrb[46].mxu0 %vm332_vm3, %v247_v36  ;;  %2993 = vmatmul.mubr.msk.f32.gmra.mrb[46].mxu1 %vm332_vm3, %v311_v37 }
  0x78   : > { %2899 = vmatprep.mubr.msk.f32.mxu0 %vm332_vm3, %v248_v38  ;;  %2995 = vmatprep.mubr.msk.f32.mxu1 %vm332_vm3, %v312_v39 }
  0x7b   : > { %2900 = vmatmul.mubr.msk.f32.gmra.mrb[48].mxu0 %vm332_vm3, %v249_v40  ;;  %2996 = vmatmul.mubr.msk.f32.gmra.mrb[48].mxu1 %vm332_vm3, %v313_v41 }
  0x7c   : > { %2902 = vmatprep.mubr.msk.f32.mxu0 %vm332_vm3, %v250_v42  ;;  %2998 = vmatprep.mubr.msk.f32.mxu1 %vm332_vm3, %v314_v43 }
  0x7f   : > { %2903 = vmatmul.mubr.msk.f32.gmra.mrb[50].mxu0 %vm332_vm3, %v251_v44  ;;  %2999 = vmatmul.mubr.msk.f32.gmra.mrb[50].mxu1 %vm332_vm3, %v315_v45 }
  0x80   : > { %2905 = vmatprep.mubr.msk.f32.mxu0 %vm332_vm3, %v252_v46  ;;  %3001 = vmatprep.mubr.msk.f32.mxu1 %vm332_vm3, %v316_v47 }
  0x83   : > { %2906 = vmatmul.mubr.msk.f32.gmra.mrb[52].mxu0 %vm332_vm3, %v253_v48  ;;  %3002 = vmatmul.mubr.msk.f32.gmra.mrb[52].mxu1 %vm332_vm3, %v317_v49 }
  0x84   : > { %2908 = vmatprep.mubr.msk.f32.mxu0 %vm332_vm3, %v254_v50  ;;  %3004 = vmatprep.mubr.msk.f32.mxu1 %vm332_vm3, %v318_v51 }
  0x87   : > { %2909 = vmatmul.mubr.msk.f32.gmra.mrb[54].mxu0 %vm332_vm3, %v255_v52  ;;  %3005 = vmatmul.mubr.msk.f32.gmra.mrb[54].mxu1 %vm332_vm3, %v319_v53 }
  0x88   : > { %2911 = vmatprep.mubr.msk.f32.mxu0 %vm332_vm3, %v256_v54  ;;  %3007 = vmatprep.mubr.msk.f32.mxu1 %vm332_vm3, %v320_v55 }
  0x8b   : > { %2912 = vmatmul.mubr.msk.f32.gmra.mrb[56].mxu0 %vm332_vm3, %v257_v56  ;;  %3008 = vmatmul.mubr.msk.f32.gmra.mrb[56].mxu1 %vm332_vm3, %v321_v57 }
  0x8c   : > { %2914 = vmatprep.mubr.msk.f32.mxu0 %vm332_vm3, %v258_v58  ;;  %3010 = vmatprep.mubr.msk.f32.mxu1 %vm332_vm3, %v322_v59 }
  0x8f   : > { %2915 = vmatmul.mubr.msk.f32.gmra.mrb[58].mxu0 %vm332_vm3, %v259_v60  ;;  %3011 = vmatmul.mubr.msk.f32.gmra.mrb[58].mxu1 %vm332_vm3, %v323_v61 }
  0x90   : > { %2917 = vmatprep.mubr.msk.f32.mxu0 %vm332_vm3, %v260_v62  ;;  %3013 = vmatprep.mubr.msk.f32.mxu1 %vm332_vm3, %v324_v63 }
  0x93   : > { %2918 = vmatmul.mubr.msk.f32.gmra.mrb[60].mxu0 %vm332_vm3, %v261_v0  ;;  %3014 = vmatmul.mubr.msk.f32.gmra.mrb[60].mxu1 %vm332_vm3, %v325_v1 }
  0x94   : > { %2920 = vmatprep.mubr.msk.f32.mxu0 %vm332_vm3, %v262_v2  ;;  %3016 = vmatprep.mubr.msk.f32.mxu1 %vm332_vm3, %v326_v3 }
  0x97   : > { %2921 = vmatmul.mubr.msk.f32.gmra.mrb[62].mxu0 %vm332_vm3, %v263_v4  ;;  %3017 = vmatmul.mubr.msk.f32.gmra.mrb[62].mxu1 %vm332_vm3, %v327_v5 }
  0xee   : > { %v3446_v6 = vpop.f32.mrb[0].mxu0  ;;  %v3448_v7 = vpop.f32.mrb[0].mxu1 }
  0xef   : > { %5149 = vst [vmem:[#allocation2_spill] sm:$0xff] %v3448_v7  ;;  %v3450_v8 = vpop.f32.mrb[1].mxu0  ;;  %v3452_v9 = vpop.f32.mrb[1].mxu1  ;;  %1432 = vst.msk [vmem:[%s3183_s7 + $0x8] sm:$0xff] (!%p2681_p7), %vm1430_vm4, %v3446_v6 }
  0xf0   : > { %5150 = vst [vmem:[#allocation3_spill] sm:$0xff] %v3452_v9  ;;  %1431 = vst.msk [vmem:[%s3183_s7] sm:$0xff] (!%p2681_p7), %vm1430_vm4, %v3450_v8 }
  0xf2   : > { %v3454_v10 = vpop.f32.mrb[2].mxu0  ;;  %v3456_v11 = vpop.f32.mrb[2].mxu1 }
  0xf3   : > { %5151 = vst [vmem:[#allocation4_spill] sm:$0xff] %v3456_v11  ;;  %v3458_v12 = vpop.f32.mrb[3].mxu0  ;;  %v3460_v13 = vpop.f32.mrb[3].mxu1  ;;  %1434 = vst.msk [vmem:[%s3183_s7 + $0x18] sm:$0xff] (!%p2681_p7), %vm1430_vm4, %v3454_v10 }
  0xf4   : > { %5152 = vst [vmem:[#allocation5_spill] sm:$0xff] %v3460_v13  ;;  %1433 = vst.msk [vmem:[%s3183_s7 + $0x10] sm:$0xff] (!%p2681_p7), %vm1430_vm4, %v3458_v12 }
  0xf6   : > { %v3462_v14 = vpop.f32.mrb[4].mxu0  ;;  %v3464_v15 = vpop.f32.mrb[4].mxu1 }
  0xf7   : > { %5153 = vst [vmem:[#allocation6_spill] sm:$0xff] %v3464_v15  ;;  %v3466_v16 = vpop.f32.mrb[5].mxu0  ;;  %v3468_v17 = vpop.f32.mrb[5].mxu1  ;;  %1436 = vst.msk [vmem:[%s3183_s7 + $0x28] sm:$0xff] (!%p2681_p7), %vm1430_vm4, %v3462_v14 }
  0xf8   : > { %5154 = vst [vmem:[#allocation7_spill] sm:$0xff] %v3468_v17  ;;  %1435 = vst.msk [vmem:[%s3183_s7 + $0x20] sm:$0xff] (!%p2681_p7), %vm1430_vm4, %v3466_v16 }
  0xfa   : > { %v3470_v18 = vpop.f32.mrb[6].mxu0  ;;  %v3472_v19 = vpop.f32.mrb[6].mxu1 }
  0xfb   : > { %5155 = vst [vmem:[#allocation8_spill] sm:$0xff] %v3472_v19  ;;  %v3474_v20 = vpop.f32.mrb[7].mxu0  ;;  %v3476_v21 = vpop.f32.mrb[7].mxu1  ;;  %1438 = vst.msk [vmem:[%s3183_s7 + $0x38] sm:$0xff] (!%p2681_p7), %vm1430_vm4, %v3470_v18 }
  0xfc   : > { %5156 = vst [vmem:[#allocation9_spill] sm:$0xff] %v3476_v21  ;;  %1437 = vst.msk [vmem:[%s3183_s7 + $0x30] sm:$0xff] (!%p2681_p7), %vm1430_vm4, %v3474_v20 }
  0xfe   : > { %v3478_v22 = vpop.f32.mrb[8].mxu0  ;;  %v3480_v23 = vpop.f32.mrb[8].mxu1 }
  0xff   : > { %5157 = vst [vmem:[#allocation10_spill] sm:$0xff] %v3480_v23  ;;  %v3482_v24 = vpop.f32.mrb[9].mxu0  ;;  %v3484_v25 = vpop.f32.mrb[9].mxu1  ;;  %1440 = vst.msk [vmem:[%s3183_s7 + $0x48] sm:$0xff] (!%p2681_p7), %vm1430_vm4, %v3478_v22 }
 0x100   : > { %5158 = vst [vmem:[#allocation11_spill] sm:$0xff] %v3484_v25  ;;  %1439 = vst.msk [vmem:[%s3183_s7 + $0x40] sm:$0xff] (!%p2681_p7), %vm1430_vm4, %v3482_v24 }
 0x102   : > { %v3486_v26 = vpop.f32.mrb[10].mxu0  ;;  %v3488_v27 = vpop.f32.mrb[10].mxu1 }
 0x103   : > { %5159 = vst [vmem:[#allocation12_spill] sm:$0xff] %v3488_v27  ;;  %v3490_v28 = vpop.f32.mrb[11].mxu0  ;;  %v3492_v29 = vpop.f32.mrb[11].mxu1  ;;  %1442 = vst.msk [vmem:[%s3183_s7 + $0x58] sm:$0xff] (!%p2681_p7), %vm1430_vm4, %v3486_v26 }
 0x104   : > { %5160 = vst [vmem:[#allocation13_spill] sm:$0xff] %v3492_v29  ;;  %1441 = vst.msk [vmem:[%s3183_s7 + $0x50] sm:$0xff] (!%p2681_p7), %vm1430_vm4, %v3490_v28 }
 0x106   : > { %v3494_v30 = vpop.f32.mrb[12].mxu0  ;;  %v3496_v31 = vpop.f32.mrb[12].mxu1 }
 0x107   : > { %5161 = vst [vmem:[#allocation14_spill] sm:$0xff] %v3496_v31  ;;  %v3498_v32 = vpop.f32.mrb[13].mxu0  ;;  %v3500_v33 = vpop.f32.mrb[13].mxu1  ;;  %1444 = vst.msk [vmem:[%s3183_s7 + $0x68] sm:$0xff] (!%p2681_p7), %vm1430_vm4, %v3494_v30 }
 0x108   : > { %5162 = vst [vmem:[#allocation15_spill] sm:$0xff] %v3500_v33  ;;  %1443 = vst.msk [vmem:[%s3183_s7 + $0x60] sm:$0xff] (!%p2681_p7), %vm1430_vm4, %v3498_v32 }
 0x10a   : > { %v3502_v34 = vpop.f32.mrb[14].mxu0  ;;  %v3504_v35 = vpop.f32.mrb[14].mxu1 }
 0x10b   : > { %5163 = vst [vmem:[#allocation16_spill] sm:$0xff] %v3504_v35  ;;  %v3506_v36 = vpop.f32.mrb[15].mxu0  ;;  %v3508_v37 = vpop.f32.mrb[15].mxu1  ;;  %1446 = vst.msk [vmem:[%s3183_s7 + $0x78] sm:$0xff] (!%p2681_p7), %vm1430_vm4, %v3502_v34 }
 0x10c   : > { %5164 = vst [vmem:[#allocation17_spill] sm:$0xff] %v3508_v37  ;;  %1445 = vst.msk [vmem:[%s3183_s7 + $0x70] sm:$0xff] (!%p2681_p7), %vm1430_vm4, %v3506_v36 }
 0x10e   : > { %v3510_v38 = vpop.f32.mrb[16].mxu0  ;;  %v3512_v39 = vpop.f32.mrb[16].mxu1 }
 0x10f   : > { %5165 = vst [vmem:[#allocation18_spill] sm:$0xff] %v3512_v39  ;;  %v3514_v40 = vpop.f32.mrb[17].mxu0  ;;  %v3516_v41 = vpop.f32.mrb[17].mxu1  ;;  %1448 = vst.msk [vmem:[%s3183_s7 + $0x88] sm:$0xff] (!%p2681_p7), %vm1430_vm4, %v3510_v38 }
 0x110   : > { %5166 = vst [vmem:[#allocation19_spill] sm:$0xff] %v3516_v41  ;;  %1447 = vst.msk [vmem:[%s3183_s7 + $0x80] sm:$0xff] (!%p2681_p7), %vm1430_vm4, %v3514_v40 }
 0x112   : > { %v3518_v42 = vpop.f32.mrb[18].mxu0  ;;  %v3520_v43 = vpop.f32.mrb[18].mxu1 }
 0x113   : > { %5167 = vst [vmem:[#allocation20_spill] sm:$0xff] %v3520_v43  ;;  %v3522_v44 = vpop.f32.mrb[19].mxu0  ;;  %v3524_v45 = vpop.f32.mrb[19].mxu1  ;;  %1450 = vst.msk [vmem:[%s3183_s7 + $0x98] sm:$0xff] (!%p2681_p7), %vm1430_vm4, %v3518_v42 }
 0x114   : > { %5168 = vst [vmem:[#allocation21_spill] sm:$0xff] %v3524_v45  ;;  %1449 = vst.msk [vmem:[%s3183_s7 + $0x90] sm:$0xff] (!%p2681_p7), %vm1430_vm4, %v3522_v44 }
 0x116   : > { %v3526_v46 = vpop.f32.mrb[20].mxu0  ;;  %v3528_v47 = vpop.f32.mrb[20].mxu1 }
 0x117   : > { %5169 = vst [vmem:[#allocation22_spill] sm:$0xff] %v3528_v47  ;;  %v3530_v48 = vpop.f32.mrb[21].mxu0  ;;  %v3532_v49 = vpop.f32.mrb[21].mxu1  ;;  %1452 = vst.msk [vmem:[%s3183_s7 + $0xa8] sm:$0xff] (!%p2681_p7), %vm1430_vm4, %v3526_v46 }
 0x118   : > { %5170 = vst [vmem:[#allocation23_spill] sm:$0xff] %v3532_v49  ;;  %1451 = vst.msk [vmem:[%s3183_s7 + $0xa0] sm:$0xff] (!%p2681_p7), %vm1430_vm4, %v3530_v48 }
 0x11a   : > { %v3534_v50 = vpop.f32.mrb[22].mxu0  ;;  %v3536_v51 = vpop.f32.mrb[22].mxu1 }
 0x11b   : > { %5171 = vst [vmem:[#allocation24_spill] sm:$0xff] %v3536_v51  ;;  %v3538_v52 = vpop.f32.mrb[23].mxu0  ;;  %v3540_v53 = vpop.f32.mrb[23].mxu1  ;;  %1454 = vst.msk [vmem:[%s3183_s7 + $0xb8] sm:$0xff] (!%p2681_p7), %vm1430_vm4, %v3534_v50 }
 0x11c   : > { %5172 = vst [vmem:[#allocation25_spill] sm:$0xff] %v3540_v53  ;;  %1453 = vst.msk [vmem:[%s3183_s7 + $0xb0] sm:$0xff] (!%p2681_p7), %vm1430_vm4, %v3538_v52 }
 0x11e   : > { %v3542_v54 = vpop.f32.mrb[24].mxu0  ;;  %v3544_v55 = vpop.f32.mrb[24].mxu1 }
 0x11f   : > { %5173 = vst [vmem:[#allocation26_spill] sm:$0xff] %v3544_v55  ;;  %v3546_v56 = vpop.f32.mrb[25].mxu0  ;;  %v3548_v57 = vpop.f32.mrb[25].mxu1  ;;  %1456 = vst.msk [vmem:[%s3183_s7 + $0xc8] sm:$0xff] (!%p2681_p7), %vm1430_vm4, %v3542_v54 }
 0x120   : > { %5174 = vst [vmem:[#allocation27_spill] sm:$0xff] %v3548_v57  ;;  %1455 = vst.msk [vmem:[%s3183_s7 + $0xc0] sm:$0xff] (!%p2681_p7), %vm1430_vm4, %v3546_v56 }
 0x122   : > { %v3550_v58 = vpop.f32.mrb[26].mxu0  ;;  %v3552_v59 = vpop.f32.mrb[26].mxu1 }
 0x123   : > { %5175 = vst [vmem:[#allocation28_spill] sm:$0xff] %v3552_v59  ;;  %v3554_v60 = vpop.f32.mrb[27].mxu0  ;;  %v3556_v61 = vpop.f32.mrb[27].mxu1  ;;  %1458 = vst.msk [vmem:[%s3183_s7 + $0xd8] sm:$0xff] (!%p2681_p7), %vm1430_vm4, %v3550_v58 }
 0x124   : > { %5176 = vst [vmem:[#allocation29_spill] sm:$0xff] %v3556_v61  ;;  %1457 = vst.msk [vmem:[%s3183_s7 + $0xd0] sm:$0xff] (!%p2681_p7), %vm1430_vm4, %v3554_v60 }
 0x126   : > { %v3558_v62 = vpop.f32.mrb[28].mxu0  ;;  %v3560_v63 = vpop.f32.mrb[28].mxu1 }
 0x127   : > { %5177 = vst [vmem:[#allocation30_spill] sm:$0xff] %v3560_v63  ;;  %v3562_v0 = vpop.f32.mrb[29].mxu0  ;;  %v3564_v1 = vpop.f32.mrb[29].mxu1  ;;  %1460 = vst.msk [vmem:[%s3183_s7 + $0xe8] sm:$0xff] (!%p2681_p7), %vm1430_vm4, %v3558_v62 }
 0x128   : > { %5178 = vst [vmem:[#allocation31_spill] sm:$0xff] %v3564_v1  ;;  %1459 = vst.msk [vmem:[%s3183_s7 + $0xe0] sm:$0xff] (!%p2681_p7), %vm1430_vm4, %v3562_v0 }
 0x12a   : > { %v3566_v2 = vpop.f32.mrb[30].mxu0  ;;  %v3568_v3 = vpop.f32.mrb[30].mxu1 }
 0x12b   : > { %5179 = vst [vmem:[#allocation32_spill] sm:$0xff] %v3568_v3  ;;  %v3570_v4 = vpop.f32.mrb[31].mxu0  ;;  %v3572_v5 = vpop.f32.mrb[31].mxu1  ;;  %1462 = vst.msk [vmem:[%s3183_s7 + $0xf8] sm:$0xff] (!%p2681_p7), %vm1430_vm4, %v3566_v2 }
 0x12c   : > { %5180 = vst [vmem:[#allocation33_spill] sm:$0xff] %v3572_v5  ;;  %1461 = vst.msk [vmem:[%s3183_s7 + $0xf0] sm:$0xff] (!%p2681_p7), %vm1430_vm4, %v3570_v4 }
 0x12e   : > { %v3574_v59 = vpop.f32.mrb[32].mxu0  ;;  %v3576_v55 = vpop.f32.mrb[32].mxu1 }
 0x12f   : > { %5181 = vst [vmem:[#allocation34_spill] sm:$0xff] %v3576_v55  ;;  %v3578_v61 = vpop.f32.mrb[33].mxu0  ;;  %v3580_v57 = vpop.f32.mrb[33].mxu1  ;;  %1464 = vst.msk [vmem:[%s3183_s7 + $0x108] sm:$0xff] (!%p2681_p7), %vm1430_vm4, %v3574_v59 }
 0x130   : > { %5182 = vst [vmem:[#allocation35_spill] sm:$0xff] %v3580_v57  ;;  %1463 = vst.msk [vmem:[%s3183_s7 + $0x100] sm:$0xff] (!%p2681_p7), %vm1430_vm4, %v3578_v61 }
 0x132   : > { %v3582_v63 = vpop.f32.mrb[34].mxu0  ;;  %v3584_v51 = vpop.f32.mrb[34].mxu1 }
 0x133   : > { %5183 = vst [vmem:[#allocation36_spill] sm:$0xff] %v3584_v51  ;;  %v3586_v1 = vpop.f32.mrb[35].mxu0  ;;  %v3588_v53 = vpop.f32.mrb[35].mxu1  ;;  %1466 = vst.msk [vmem:[%s3183_s7 + $0x118] sm:$0xff] (!%p2681_p7), %vm1430_vm4, %v3582_v63 }
 0x134   : > { %5184 = vst [vmem:[#allocation37_spill] sm:$0xff] %v3588_v53  ;;  %1465 = vst.msk [vmem:[%s3183_s7 + $0x110] sm:$0xff] (!%p2681_p7), %vm1430_vm4, %v3586_v1 }
 0x136   : > { %v3590_v3 = vpop.f32.mrb[36].mxu0  ;;  %v3592_v47 = vpop.f32.mrb[36].mxu1 }
 0x137   : > { %5185 = vst [vmem:[#allocation38_spill] sm:$0xff] %v3592_v47  ;;  %v3594_v5 = vpop.f32.mrb[37].mxu0  ;;  %v3596_v49 = vpop.f32.mrb[37].mxu1  ;;  %1468 = vst.msk [vmem:[%s3183_s7 + $0x128] sm:$0xff] (!%p2681_p7), %vm1430_vm4, %v3590_v3 }
 0x138   : > { %5186 = vst [vmem:[#allocation39_spill] sm:$0xff] %v3596_v49  ;;  %1467 = vst.msk [vmem:[%s3183_s7 + $0x120] sm:$0xff] (!%p2681_p7), %vm1430_vm4, %v3594_v5 }
 0x13a   : > { %v3598_v55 = vpop.f32.mrb[38].mxu0  ;;  %v3600_v43 = vpop.f32.mrb[38].mxu1 }
 0x13b   : > { %5187 = vst [vmem:[#allocation40_spill] sm:$0xff] %v3600_v43  ;;  %v3602_v57 = vpop.f32.mrb[39].mxu0  ;;  %v3604_v45 = vpop.f32.mrb[39].mxu1  ;;  %1470 = vst.msk [vmem:[%s3183_s7 + $0x138] sm:$0xff] (!%p2681_p7), %vm1430_vm4, %v3598_v55 }
 0x13c   : > { %5188 = vst [vmem:[#allocation41_spill] sm:$0xff] %v3604_v45  ;;  %1469 = vst.msk [vmem:[%s3183_s7 + $0x130] sm:$0xff] (!%p2681_p7), %vm1430_vm4, %v3602_v57 }
 0x13e   : > { %v3606_v51 = vpop.f32.mrb[40].mxu0  ;;  %v3608_v39 = vpop.f32.mrb[40].mxu1 }
 0x13f   : > { %5189 = vst [vmem:[#allocation42_spill] sm:$0xff] %v3608_v39  ;;  %v3610_v53 = vpop.f32.mrb[41].mxu0  ;;  %v3612_v41 = vpop.f32.mrb[41].mxu1  ;;  %1472 = vst.msk [vmem:[%s3183_s7 + $0x148] sm:$0xff] (!%p2681_p7), %vm1430_vm4, %v3606_v51 }
 0x140   : > { %5190 = vst [vmem:[#allocation43_spill] sm:$0xff] %v3612_v41  ;;  %1471 = vst.msk [vmem:[%s3183_s7 + $0x140] sm:$0xff] (!%p2681_p7), %vm1430_vm4, %v3610_v53 }
 0x142   : > { %v3614_v47 = vpop.f32.mrb[42].mxu0  ;;  %v3616_v35 = vpop.f32.mrb[42].mxu1 }
 0x143   : > { %5191 = vst [vmem:[#allocation44_spill] sm:$0xff] %v3616_v35  ;;  %v3618_v49 = vpop.f32.mrb[43].mxu0  ;;  %v3620_v37 = vpop.f32.mrb[43].mxu1  ;;  %1474 = vst.msk [vmem:[%s3183_s7 + $0x158] sm:$0xff] (!%p2681_p7), %vm1430_vm4, %v3614_v47 }
 0x144   : > { %5192 = vst [vmem:[#allocation45_spill] sm:$0xff] %v3620_v37  ;;  %1473 = vst.msk [vmem:[%s3183_s7 + $0x150] sm:$0xff] (!%p2681_p7), %vm1430_vm4, %v3618_v49 }
 0x146   : > { %v3622_v43 = vpop.f32.mrb[44].mxu0  ;;  %v3624_v31 = vpop.f32.mrb[44].mxu1 }
 0x147   : > { %5193 = vst [vmem:[#allocation46_spill] sm:$0xff] %v3624_v31  ;;  %v3626_v45 = vpop.f32.mrb[45].mxu0  ;;  %v3628_v33 = vpop.f32.mrb[45].mxu1  ;;  %1476 = vst.msk [vmem:[%s3183_s7 + $0x168] sm:$0xff] (!%p2681_p7), %vm1430_vm4, %v3622_v43 }
 0x148   : > { %5194 = vst [vmem:[#allocation47_spill] sm:$0xff] %v3628_v33  ;;  %1475 = vst.msk [vmem:[%s3183_s7 + $0x160] sm:$0xff] (!%p2681_p7), %vm1430_vm4, %v3626_v45 }
 0x14a   : > { %v3630_v39 = vpop.f32.mrb[46].mxu0  ;;  %v3632_v27 = vpop.f32.mrb[46].mxu1 }
 0x14b   : > { %5195 = vst [vmem:[#allocation48_spill] sm:$0xff] %v3630_v39  ;;  %5196 = vst [vmem:[#allocation49_spill] sm:$0xff] %v3632_v27  ;;  %v3634_v41 = vpop.f32.mrb[47].mxu0  ;;  %v3636_v29 = vpop.f32.mrb[47].mxu1 }
 0x14c   : > { %5197 = vst [vmem:[#allocation50_spill] sm:$0xff] %v3636_v29  ;;  %1477 = vst.msk [vmem:[%s3183_s7 + $0x170] sm:$0xff] (!%p2681_p7), %vm1430_vm4, %v3634_v41 }
 0x14d   : > { %1478 = vst.msk [vmem:[%s3183_s7 + $0x178] sm:$0xff] (!%p2681_p7), %vm1430_vm4, %v3630_v39 }
 0x14e   : > { %v3638_v35 = vpop.f32.mrb[48].mxu0  ;;  %v3640_v23 = vpop.f32.mrb[48].mxu1 }
 0x14f   : > { %5198 = vst [vmem:[#allocation51_spill] sm:$0xff] %v3638_v35  ;;  %5199 = vst [vmem:[#allocation52_spill] sm:$0xff] %v3640_v23  ;;  %v3642_v37 = vpop.f32.mrb[49].mxu0  ;;  %v3644_v25 = vpop.f32.mrb[49].mxu1 }
 0x150   : > { %5200 = vst [vmem:[#allocation53_spill] sm:$0xff] %v3642_v37  ;;  %5201 = vst [vmem:[#allocation54_spill] sm:$0xff] %v3644_v25 }
 0x151   : > { %1479 = vst.msk [vmem:[%s3183_s7 + $0x180] sm:$0xff] (!%p2681_p7), %vm1430_vm4, %v3642_v37  ;;  %1480 = vst.msk [vmem:[%s3183_s7 + $0x188] sm:$0xff] (!%p2681_p7), %vm1430_vm4, %v3638_v35 }
 0x152   : > { %v3646_v31 = vpop.f32.mrb[50].mxu0  ;;  %v3648_v19 = vpop.f32.mrb[50].mxu1 }
 0x153   : > { %5202 = vst [vmem:[#allocation55_spill] sm:$0xff] %v3646_v31  ;;  %5203 = vst [vmem:[#allocation56_spill] sm:$0xff] %v3648_v19  ;;  %v3650_v33 = vpop.f32.mrb[51].mxu0  ;;  %v3652_v21 = vpop.f32.mrb[51].mxu1 }
 0x154   : > { %5204 = vst [vmem:[#allocation57_spill] sm:$0xff] %v3650_v33  ;;  %5205 = vst [vmem:[#allocation58_spill] sm:$0xff] %v3652_v21 }
 0x155   : > { %1481 = vst.msk [vmem:[%s3183_s7 + $0x190] sm:$0xff] (!%p2681_p7), %vm1430_vm4, %v3650_v33  ;;  %1482 = vst.msk [vmem:[%s3183_s7 + $0x198] sm:$0xff] (!%p2681_p7), %vm1430_vm4, %v3646_v31 }
 0x156   : > { %v3654_v27 = vpop.f32.mrb[52].mxu0  ;;  %v3656_v15 = vpop.f32.mrb[52].mxu1 }
 0x157   : > { %5206 = vst [vmem:[#allocation59_spill] sm:$0xff] %v3654_v27  ;;  %5207 = vst [vmem:[#allocation60_spill] sm:$0xff] %v3656_v15  ;;  %v3658_v29 = vpop.f32.mrb[53].mxu0  ;;  %v3660_v17 = vpop.f32.mrb[53].mxu1 }
 0x158   : > { %5208 = vst [vmem:[#allocation61_spill] sm:$0xff] %v3660_v17  ;;  %1483 = vst.msk [vmem:[%s3183_s7 + $0x1a0] sm:$0xff] (!%p2681_p7), %vm1430_vm4, %v3658_v29 }
 0x15a   : > { %v3662_v23 = vpop.f32.mrb[54].mxu0  ;;  %v3664_v11 = vpop.f32.mrb[54].mxu1 }
 0x15b   : > { %5209 = vst [vmem:[#allocation62_spill] sm:$0xff] %v3662_v23  ;;  %5210 = vst [vmem:[#allocation63_spill] sm:$0xff] %v3664_v11  ;;  %v3666_v25 = vpop.f32.mrb[55].mxu0  ;;  %v3668_v13 = vpop.f32.mrb[55].mxu1 }
 0x15c   : > { %5211 = vst [vmem:[#allocation64_spill] sm:$0xff] %v3666_v25  ;;  %5212 = vst [vmem:[#allocation65_spill] sm:$0xff] %v3668_v13 }
 0x15e   : > { %v3670_v19 = vpop.f32.mrb[56].mxu0  ;;  %v3672_v7 = vpop.f32.mrb[56].mxu1  ;;  %v5225_v39 = vld [vmem:[#allocation59_spill] sm:$0xff] (!%p2681_p7) }
 0x15f   : > { %5213 = vst [vmem:[#allocation66_spill] sm:$0xff] %v3670_v19  ;;  %5214 = vst [vmem:[#allocation67_spill] sm:$0xff] %v3672_v7  ;;  %v3674_v21 = vpop.f32.mrb[57].mxu0  ;;  %v3676_v9 = vpop.f32.mrb[57].mxu1 }
 0x160   : > { %5215 = vst [vmem:[#allocation68_spill] sm:$0xff] %v3674_v21  ;;  %5216 = vst [vmem:[#allocation69_spill] sm:$0xff] %v3676_v9 }
 0x161   : > { %1484 = vst.msk [vmem:[%s3183_s7 + $0x1a8] sm:$0xff] (!%p2681_p7), %vm1430_vm4, %v5225_v39 }
 0x162   : > { %v3678_v15 = vpop.f32.mrb[58].mxu0  ;;  %v3680_v27 = vpop.f32.mrb[58].mxu1  ;;  %v5227_v35 = vld [vmem:[#allocation62_spill] sm:$0xff] (!%p2681_p7) }
 0x163   : > { %5217 = vst [vmem:[#allocation70_spill] sm:$0xff] %v3678_v15  ;;  %v3682_v17 = vpop.f32.mrb[59].mxu0  ;;  %v3684_v23 = vpop.f32.mrb[59].mxu1  ;;  %v5226_v37 = vld [vmem:[#allocation64_spill] sm:$0xff] (!%p2681_p7)  ;;  %1486 = vst.msk [vmem:[%s3183_s7 + $0x1b8] sm:$0xff] (!%p2681_p7), %vm1430_vm4, %v5227_v35  ;;  %v5233_v35 = vld [vmem:[#allocation5_spill] sm:$0xff] (!%p2681_p7) }
 0x164   : > { %1485 = vst.msk [vmem:[%s3183_s7 + $0x1b0] sm:$0xff] (!%p2681_p7), %vm1430_vm4, %v5226_v37  ;;  %1489 = vst.msk [vmem:[%s3183_s7 + $0x1d0] sm:$0xff] (!%p2681_p7), %vm1430_vm4, %v3682_v17  ;;  %v5234_v37 = vld [vmem:[#allocation4_spill] sm:$0xff] (!%p2681_p7) }
 0x165   : > { %1497 = vst.msk [vmem:[%s3183_s7 + $0x210] sm:$0xff] (!%p2681_p7), %vm1430_vm4, %v5233_v35  ;;  %1498 = vst.msk [vmem:[%s3183_s7 + $0x218] sm:$0xff] (!%p2681_p7), %vm1430_vm4, %v5234_v37  ;;  %v5239_v35 = vld [vmem:[#allocation11_spill] sm:$0xff] (!%p2681_p7)  ;;  %v5240_v37 = vld [vmem:[#allocation10_spill] sm:$0xff] (!%p2681_p7) }
 0x166   : > { %v3686_v11 = vpop.f32.mrb[60].mxu0  ;;  %v3688_v25 = vpop.f32.mrb[60].mxu1  ;;  %1429 = sbr.rel (%p2681_p7) target bundleno = 396 (0x18c), region = 36  ;;  %v5229_v31 = vld [vmem:[#allocation66_spill] sm:$0xff] (!%p2681_p7)  ;;  %1503 = vst.msk [vmem:[%s3183_s7 + $0x240] sm:$0xff] (!%p2681_p7), %vm1430_vm4, %v5239_v35  ;;  %1504 = vst.msk [vmem:[%s3183_s7 + $0x248] sm:$0xff] (!%p2681_p7), %vm1430_vm4, %v5240_v37 }
 0x167   : > { %5218 = vst [vmem:[#allocation71_spill] sm:$0xff] %v3686_v11  ;;  %5219 = vst [vmem:[#allocation72_spill] sm:$0xff] %v3688_v25  ;;  %v3690_v13 = vpop.f32.mrb[61].mxu0  ;;  %v3692_v19 = vpop.f32.mrb[61].mxu1  ;;  %v5228_v33 = vld [vmem:[#allocation68_spill] sm:$0xff] (!%p2681_p7)  ;;  %v5245_v35 = vld [vmem:[#allocation17_spill] sm:$0xff] (!%p2681_p7) }
 0x168   : > { %5220 = vst [vmem:[#allocation73_spill] sm:$0xff] %v3692_v19  ;;  %1487 = vst.msk [vmem:[%s3183_s7 + $0x1c0] sm:$0xff] (!%p2681_p7), %vm1430_vm4, %v5228_v33  ;;  %v5232_v33 = vld [vmem:[#allocation2_spill] sm:$0xff] (!%p2681_p7)  ;;  %v5246_v37 = vld [vmem:[#allocation16_spill] sm:$0xff] (!%p2681_p7) }
 0x169   : > { %1488 = vst.msk [vmem:[%s3183_s7 + $0x1c8] sm:$0xff] (!%p2681_p7), %vm1430_vm4, %v5229_v31  ;;  %1491 = vst.msk [vmem:[%s3183_s7 + $0x1e0] sm:$0xff] (!%p2681_p7), %vm1430_vm4, %v3690_v13  ;;  %v5231_v31 = vld [vmem:[#allocation3_spill] sm:$0xff] (!%p2681_p7) }
 0x16a   : > { %v3694_v7 = vpop.f32.mrb[62].mxu0  ;;  %v3696_v21 = vpop.f32.mrb[62].mxu1  ;;  %v5230_v39 = vld [vmem:[#allocation70_spill] sm:$0xff] (!%p2681_p7)  ;;  %1492 = vst.msk [vmem:[%s3183_s7 + $0x1e8] sm:$0xff] (!%p2681_p7), %vm1430_vm4, %v3686_v11  ;;  %1495 = vst.msk [vmem:[%s3183_s7 + $0x200] sm:$0xff] (!%p2681_p7), %vm1430_vm4, %v5231_v31  ;;  %v5237_v31 = vld [vmem:[#allocation9_spill] sm:$0xff] (!%p2681_p7) }
 0x16b   : > { %5221 = vst [vmem:[#allocation74_spill] sm:$0xff] %v3694_v7  ;;  %5222 = vst [vmem:[#allocation75_spill] sm:$0xff] %v3696_v21  ;;  %v3698_v9 = vpop.f32.mrb[63].mxu0  ;;  %v3700_v15 = vpop.f32.mrb[63].mxu1  ;;  %v5286_v11 = vld [vmem:[#allocation63_spill] sm:$0xff] (!%p2681_p7) }
 0x16c   : > { %5223 = vst [vmem:[#allocation76_spill] sm:$0xff] %v3698_v9  ;;  %5224 = vst [vmem:[#allocation77_spill] sm:$0xff] %v3700_v15 }
 0x16d   : > { %1490 = vst.msk [vmem:[%s3183_s7 + $0x1d8] sm:$0xff] %vm1430_vm4, %v5230_v39  ;;  %1493 = vst.msk [vmem:[%s3183_s7 + $0x1f0] sm:$0xff] %vm1430_vm4, %v3698_v9  ;;  %v5235_v39 = vld [vmem:[#allocation7_spill] sm:$0xff]  ;;  %v5282_v9 = vld [vmem:[#allocation56_spill] sm:$0xff] }
 0x16e   : > { %1494 = vst.msk [vmem:[%s3183_s7 + $0x1f8] sm:$0xff] %vm1430_vm4, %v3694_v7  ;;  %1496 = vst.msk [vmem:[%s3183_s7 + $0x208] sm:$0xff] %vm1430_vm4, %v5232_v33  ;;  %v5236_v7 = vld [vmem:[#allocation6_spill] sm:$0xff]  ;;  %v5238_v33 = vld [vmem:[#allocation8_spill] sm:$0xff] }
 0x16f   : > { %1499 = vst.msk [vmem:[%s3183_s7 + $0x220] sm:$0xff] %vm1430_vm4, %v5235_v39  ;;  %1500 = vst.msk [vmem:[%s3183_s7 + $0x228] sm:$0xff] %vm1430_vm4, %v5236_v7  ;;  %v5241_v39 = vld [vmem:[#allocation13_spill] sm:$0xff]  ;;  %v5242_v7 = vld [vmem:[#allocation12_spill] sm:$0xff] }
 0x170   : > { %1501 = vst.msk [vmem:[%s3183_s7 + $0x230] sm:$0xff] %vm1430_vm4, %v5237_v31  ;;  %1502 = vst.msk [vmem:[%s3183_s7 + $0x238] sm:$0xff] %vm1430_vm4, %v5238_v33  ;;  %v5243_v31 = vld [vmem:[#allocation15_spill] sm:$0xff]  ;;  %v5244_v33 = vld [vmem:[#allocation14_spill] sm:$0xff] }
 0x171   : > { %1505 = vst.msk [vmem:[%s3183_s7 + $0x250] sm:$0xff] %vm1430_vm4, %v5241_v39  ;;  %1506 = vst.msk [vmem:[%s3183_s7 + $0x258] sm:$0xff] %vm1430_vm4, %v5242_v7  ;;  %v5247_v39 = vld [vmem:[#allocation19_spill] sm:$0xff]  ;;  %v5248_v7 = vld [vmem:[#allocation18_spill] sm:$0xff] }
 0x172   : > { %1507 = vst.msk [vmem:[%s3183_s7 + $0x260] sm:$0xff] %vm1430_vm4, %v5243_v31  ;;  %1508 = vst.msk [vmem:[%s3183_s7 + $0x268] sm:$0xff] %vm1430_vm4, %v5244_v33  ;;  %v5249_v31 = vld [vmem:[#allocation21_spill] sm:$0xff]  ;;  %v5250_v33 = vld [vmem:[#allocation20_spill] sm:$0xff] }
 0x173   : > { %1509 = vst.msk [vmem:[%s3183_s7 + $0x270] sm:$0xff] %vm1430_vm4, %v5245_v35  ;;  %1510 = vst.msk [vmem:[%s3183_s7 + $0x278] sm:$0xff] %vm1430_vm4, %v5246_v37  ;;  %v5251_v35 = vld [vmem:[#allocation23_spill] sm:$0xff]  ;;  %v5252_v37 = vld [vmem:[#allocation22_spill] sm:$0xff] }
 0x174   : > { %1511 = vst.msk [vmem:[%s3183_s7 + $0x280] sm:$0xff] %vm1430_vm4, %v5247_v39  ;;  %1512 = vst.msk [vmem:[%s3183_s7 + $0x288] sm:$0xff] %vm1430_vm4, %v5248_v7  ;;  %v5253_v39 = vld [vmem:[#allocation25_spill] sm:$0xff]  ;;  %v5254_v7 = vld [vmem:[#allocation24_spill] sm:$0xff] }
 0x175   : > { %1513 = vst.msk [vmem:[%s3183_s7 + $0x290] sm:$0xff] %vm1430_vm4, %v5249_v31  ;;  %1514 = vst.msk [vmem:[%s3183_s7 + $0x298] sm:$0xff] %vm1430_vm4, %v5250_v33  ;;  %v5255_v31 = vld [vmem:[#allocation27_spill] sm:$0xff]  ;;  %v5256_v33 = vld [vmem:[#allocation26_spill] sm:$0xff] }
 0x176   : > { %1515 = vst.msk [vmem:[%s3183_s7 + $0x2a0] sm:$0xff] %vm1430_vm4, %v5251_v35  ;;  %1516 = vst.msk [vmem:[%s3183_s7 + $0x2a8] sm:$0xff] %vm1430_vm4, %v5252_v37  ;;  %v5257_v35 = vld [vmem:[#allocation29_spill] sm:$0xff]  ;;  %v5258_v37 = vld [vmem:[#allocation28_spill] sm:$0xff] }
 0x177   : > { %1517 = vst.msk [vmem:[%s3183_s7 + $0x2b0] sm:$0xff] %vm1430_vm4, %v5253_v39  ;;  %1518 = vst.msk [vmem:[%s3183_s7 + $0x2b8] sm:$0xff] %vm1430_vm4, %v5254_v7  ;;  %v5259_v39 = vld [vmem:[#allocation31_spill] sm:$0xff]  ;;  %v5260_v7 = vld [vmem:[#allocation30_spill] sm:$0xff] }
 0x178   : > { %1519 = vst.msk [vmem:[%s3183_s7 + $0x2c0] sm:$0xff] %vm1430_vm4, %v5255_v31  ;;  %1520 = vst.msk [vmem:[%s3183_s7 + $0x2c8] sm:$0xff] %vm1430_vm4, %v5256_v33  ;;  %v5261_v31 = vld [vmem:[#allocation33_spill] sm:$0xff]  ;;  %v5262_v33 = vld [vmem:[#allocation32_spill] sm:$0xff] }
 0x179   : > { %1521 = vst.msk [vmem:[%s3183_s7 + $0x2d0] sm:$0xff] %vm1430_vm4, %v5257_v35  ;;  %1522 = vst.msk [vmem:[%s3183_s7 + $0x2d8] sm:$0xff] %vm1430_vm4, %v5258_v37  ;;  %v5263_v35 = vld [vmem:[#allocation35_spill] sm:$0xff]  ;;  %v5264_v37 = vld [vmem:[#allocation34_spill] sm:$0xff] }
 0x17a   : > { %1523 = vst.msk [vmem:[%s3183_s7 + $0x2e0] sm:$0xff] %vm1430_vm4, %v5259_v39  ;;  %1524 = vst.msk [vmem:[%s3183_s7 + $0x2e8] sm:$0xff] %vm1430_vm4, %v5260_v7  ;;  %v5265_v39 = vld [vmem:[#allocation37_spill] sm:$0xff]  ;;  %v5266_v7 = vld [vmem:[#allocation36_spill] sm:$0xff] }
 0x17b   : > { %1525 = vst.msk [vmem:[%s3183_s7 + $0x2f0] sm:$0xff] %vm1430_vm4, %v5261_v31  ;;  %1526 = vst.msk [vmem:[%s3183_s7 + $0x2f8] sm:$0xff] %vm1430_vm4, %v5262_v33  ;;  %v5267_v31 = vld [vmem:[#allocation39_spill] sm:$0xff]  ;;  %v5268_v33 = vld [vmem:[#allocation38_spill] sm:$0xff] }
 0x17c   : > { %1527 = vst.msk [vmem:[%s3183_s7 + $0x300] sm:$0xff] %vm1430_vm4, %v5263_v35  ;;  %1528 = vst.msk [vmem:[%s3183_s7 + $0x308] sm:$0xff] %vm1430_vm4, %v5264_v37  ;;  %v5269_v35 = vld [vmem:[#allocation41_spill] sm:$0xff]  ;;  %v5270_v37 = vld [vmem:[#allocation40_spill] sm:$0xff] }
 0x17d   : > { %1529 = vst.msk [vmem:[%s3183_s7 + $0x310] sm:$0xff] %vm1430_vm4, %v5265_v39  ;;  %1530 = vst.msk [vmem:[%s3183_s7 + $0x318] sm:$0xff] %vm1430_vm4, %v5266_v7  ;;  %v5271_v39 = vld [vmem:[#allocation43_spill] sm:$0xff]  ;;  %v5272_v7 = vld [vmem:[#allocation42_spill] sm:$0xff] }
 0x17e   : > { %1531 = vst.msk [vmem:[%s3183_s7 + $0x320] sm:$0xff] %vm1430_vm4, %v5267_v31  ;;  %1532 = vst.msk [vmem:[%s3183_s7 + $0x328] sm:$0xff] %vm1430_vm4, %v5268_v33  ;;  %v5273_v31 = vld [vmem:[#allocation45_spill] sm:$0xff]  ;;  %v5274_v33 = vld [vmem:[#allocation44_spill] sm:$0xff] }
 0x17f   : > { %1533 = vst.msk [vmem:[%s3183_s7 + $0x330] sm:$0xff] %vm1430_vm4, %v5269_v35  ;;  %1534 = vst.msk [vmem:[%s3183_s7 + $0x338] sm:$0xff] %vm1430_vm4, %v5270_v37  ;;  %v5275_v35 = vld [vmem:[#allocation47_spill] sm:$0xff]  ;;  %v5276_v37 = vld [vmem:[#allocation46_spill] sm:$0xff] }
 0x180   : > { %1535 = vst.msk [vmem:[%s3183_s7 + $0x340] sm:$0xff] %vm1430_vm4, %v5271_v39  ;;  %1536 = vst.msk [vmem:[%s3183_s7 + $0x348] sm:$0xff] %vm1430_vm4, %v5272_v7  ;;  %v5277_v39 = vld [vmem:[#allocation50_spill] sm:$0xff]  ;;  %v5278_v7 = vld [vmem:[#allocation49_spill] sm:$0xff] }
 0x181   : > { %1537 = vst.msk [vmem:[%s3183_s7 + $0x350] sm:$0xff] %vm1430_vm4, %v5273_v31  ;;  %1538 = vst.msk [vmem:[%s3183_s7 + $0x358] sm:$0xff] %vm1430_vm4, %v5274_v33  ;;  %v5279_v31 = vld [vmem:[#allocation54_spill] sm:$0xff]  ;;  %v5280_v33 = vld [vmem:[#allocation52_spill] sm:$0xff] }
 0x182   : > { %1539 = vst.msk [vmem:[%s3183_s7 + $0x360] sm:$0xff] %vm1430_vm4, %v5275_v35  ;;  %1540 = vst.msk [vmem:[%s3183_s7 + $0x368] sm:$0xff] %vm1430_vm4, %v5276_v37  ;;  %v5281_v35 = vld [vmem:[#allocation58_spill] sm:$0xff]  ;;  %v5283_v37 = vld [vmem:[#allocation61_spill] sm:$0xff] }
 0x183   : > { %1541 = vst.msk [vmem:[%s3183_s7 + $0x370] sm:$0xff] %vm1430_vm4, %v5277_v39  ;;  %1542 = vst.msk [vmem:[%s3183_s7 + $0x378] sm:$0xff] %vm1430_vm4, %v5278_v7  ;;  %v5284_v39 = vld [vmem:[#allocation60_spill] sm:$0xff]  ;;  %v5285_v7 = vld [vmem:[#allocation65_spill] sm:$0xff] }
 0x184   : > { %1543 = vst.msk [vmem:[%s3183_s7 + $0x380] sm:$0xff] %vm1430_vm4, %v5279_v31  ;;  %1544 = vst.msk [vmem:[%s3183_s7 + $0x388] sm:$0xff] %vm1430_vm4, %v5280_v33  ;;  %v5287_v31 = vld [vmem:[#allocation69_spill] sm:$0xff]  ;;  %v5288_v33 = vld [vmem:[#allocation67_spill] sm:$0xff] }
 0x185   : > { %1545 = vst.msk [vmem:[%s3183_s7 + $0x390] sm:$0xff] %vm1430_vm4, %v5281_v35  ;;  %1546 = vst.msk [vmem:[%s3183_s7 + $0x398] sm:$0xff] %vm1430_vm4, %v5282_v9 }
 0x186   : > { %1547 = vst.msk [vmem:[%s3183_s7 + $0x3a0] sm:$0xff] %vm1430_vm4, %v5283_v37  ;;  %1548 = vst.msk [vmem:[%s3183_s7 + $0x3a8] sm:$0xff] %vm1430_vm4, %v5284_v39 }
 0x187   : > { %1549 = vst.msk [vmem:[%s3183_s7 + $0x3b0] sm:$0xff] %vm1430_vm4, %v5285_v7  ;;  %1550 = vst.msk [vmem:[%s3183_s7 + $0x3b8] sm:$0xff] %vm1430_vm4, %v5286_v11 }
 0x188   : > { %1551 = vst.msk [vmem:[%s3183_s7 + $0x3c0] sm:$0xff] %vm1430_vm4, %v5287_v31  ;;  %1552 = vst.msk [vmem:[%s3183_s7 + $0x3c8] sm:$0xff] %vm1430_vm4, %v5288_v33 }
 0x189   : > { %1553 = vst.msk [vmem:[%s3183_s7 + $0x3d0] sm:$0xff] %vm1430_vm4, %v3684_v23  ;;  %1554 = vst.msk [vmem:[%s3183_s7 + $0x3d8] sm:$0xff] %vm1430_vm4, %v3680_v27 }
 0x18a   : > { %1555 = vst.msk [vmem:[%s3183_s7 + $0x3e0] sm:$0xff] %vm1430_vm4, %v3692_v19  ;;  %1556 = vst.msk [vmem:[%s3183_s7 + $0x3e8] sm:$0xff] %vm1430_vm4, %v3688_v25 }
 0x18b   : > { %1557 = vst.msk [vmem:[%s3183_s7 + $0x3f0] sm:$0xff] %vm1430_vm4, %v3700_v15  ;;  %1558 = vst.msk [vmem:[%s3183_s7 + $0x3f8] sm:$0xff] %vm1430_vm4, %v3696_v21 }
 0x18c PF: > { %p2682_p8 = scmp.eq.s32.totalorder %s3096_s12, 0 }
 0x18d   : > { %v1563_v9 = vld [vmem:[%s3183_s7] sm:$0xff] (!%p2682_p8)  ;;  %vm1819_vm5 = vcmask (!%p2682_p8), 261120   ;;  %v1564_v11 = vld [vmem:[%s3183_s7 + $0x8] sm:$0xff] (!%p2682_p8)  ;;  %v1565_v35 = vld [vmem:[%s3183_s7 + $0x10] sm:$0xff] (!%p2682_p8) }
 0x18e   : > { %1562 = sbr.rel (%p2682_p8) target bundleno = 483 (0x1e3), region = 40  ;;  %v1691_v37 = vmax.f32 (!%p2682_p8), %v1563_v9, %v3450_v8  ;;  %v1692_v39 = vmax.f32 (!%p2682_p8), %v1564_v11, %v3446_v6  ;;  %v1693_v7 = vmax.f32 (!%p2682_p8), %v1565_v35, %v3458_v12  ;;  %v1566_v31 = vld [vmem:[%s3183_s7 + $0x18] sm:$0xff] (!%p2682_p8)  ;;  %v1567_v33 = vld [vmem:[%s3183_s7 + $0x20] sm:$0xff] (!%p2682_p8)  ;;  %v1568_v21 = vld [vmem:[%s3183_s7 + $0x28] sm:$0xff] (!%p2682_p8) }
 0x18f   : > { %v1694_v15 = vmax.f32 (!%p2682_p8), %v1566_v31, %v3454_v10  ;;  %v1695_v25 = vmax.f32 (!%p2682_p8), %v1567_v33, %v3466_v16  ;;  %v1696_v19 = vmax.f32 (!%p2682_p8), %v1568_v21, %v3462_v14  ;;  %v1569_v8 = vld [vmem:[%s3183_s7 + $0x30] sm:$0xff] (!%p2682_p8)  ;;  %v1570_v9 = vld [vmem:[%s3183_s7 + $0x38] sm:$0xff] (!%p2682_p8)  ;;  %v1571_v6 = vld [vmem:[%s3183_s7 + $0x40] sm:$0xff] (!%p2682_p8) }
 0x190   : > { %1820 = vst.msk [vmem:[%s3183_s7] sm:$0xff] (!%p2682_p8), %vm1819_vm5, %v1691_v37  ;;  %1821 = vst.msk [vmem:[%s3183_s7 + $0x8] sm:$0xff] (!%p2682_p8), %vm1819_vm5, %v1692_v39  ;;  %v1697_v10 = vmax.f32 (!%p2682_p8), %v1569_v8, %v3474_v20  ;;  %v1698_v12 = vmax.f32 (!%p2682_p8), %v1570_v9, %v3470_v18  ;;  %v1699_v14 = vmax.f32 (!%p2682_p8), %v1571_v6, %v3482_v24  ;;  %v1572_v16 = vld [vmem:[%s3183_s7 + $0x48] sm:$0xff] (!%p2682_p8)  ;;  %v1573_v21 = vld [vmem:[%s3183_s7 + $0x50] sm:$0xff] (!%p2682_p8) }
 0x191   : > { %1822 = vst.msk [vmem:[%s3183_s7 + $0x10] sm:$0xff] (!%p2682_p8), %vm1819_vm5, %v1693_v7  ;;  %v1574_v11 = vld [vmem:[%s3183_s7 + $0x58] sm:$0xff] (!%p2682_p8)  ;;  %1823 = vst.msk [vmem:[%s3183_s7 + $0x18] sm:$0xff] (!%p2682_p8), %vm1819_vm5, %v1694_v15  ;;  %v1700_v20 = vmax.f32 (!%p2682_p8), %v1572_v16, %v3478_v22  ;;  %v1701_v18 = vmax.f32 (!%p2682_p8), %v1573_v21, %v3490_v28  ;;  %v1575_v35 = vld [vmem:[%s3183_s7 + $0x60] sm:$0xff] (!%p2682_p8) }
 0x192   : > { %1824 = vst.msk [vmem:[%s3183_s7 + $0x20] sm:$0xff] (!%p2682_p8), %vm1819_vm5, %v1695_v25  ;;  %1825 = vst.msk [vmem:[%s3183_s7 + $0x28] sm:$0xff] (!%p2682_p8), %vm1819_vm5, %v1696_v19  ;;  %v1702_v24 = vmax.f32 (!%p2682_p8), %v1574_v11, %v3486_v26  ;;  %v1576_v37 = vld [vmem:[%s3183_s7 + $0x68] sm:$0xff] (!%p2682_p8)  ;;  %v1577_v39 = vld [vmem:[%s3183_s7 + $0x70] sm:$0xff] (!%p2682_p8)  ;;  %v1703_v15 = vmax.f32 (!%p2682_p8), %v1575_v35, %v3498_v32 }
 0x193   : > { %1826 = vst.msk [vmem:[%s3183_s7 + $0x30] sm:$0xff] (!%p2682_p8), %vm1819_vm5, %v1697_v10  ;;  %1827 = vst.msk [vmem:[%s3183_s7 + $0x38] sm:$0xff] (!%p2682_p8), %vm1819_vm5, %v1698_v12  ;;  %v1704_v19 = vmax.f32 (!%p2682_p8), %v1576_v37, %v3494_v30  ;;  %v1705_v22 = vmax.f32 (!%p2682_p8), %v1577_v39, %v3506_v36  ;;  %v1578_v25 = vld [vmem:[%s3183_s7 + $0x78] sm:$0xff] (!%p2682_p8)  ;;  %v1579_v26 = vld [vmem:[%s3183_s7 + $0x80] sm:$0xff] (!%p2682_p8) }
 0x194   : > { %1828 = vst.msk [vmem:[%s3183_s7 + $0x40] sm:$0xff] (!%p2682_p8), %vm1819_vm5, %v1699_v14  ;;  %v1580_v28 = vld [vmem:[%s3183_s7 + $0x88] sm:$0xff] (!%p2682_p8)  ;;  %1829 = vst.msk [vmem:[%s3183_s7 + $0x48] sm:$0xff] (!%p2682_p8), %vm1819_vm5, %v1700_v20  ;;  %v1706_v32 = vmax.f32 (!%p2682_p8), %v1578_v25, %v3502_v34  ;;  %v1707_v30 = vmax.f32 (!%p2682_p8), %v1579_v26, %v3514_v40  ;;  %v1581_v7 = vld [vmem:[%s3183_s7 + $0x90] sm:$0xff] (!%p2682_p8) }
 0x195   : > { %1830 = vst.msk [vmem:[%s3183_s7 + $0x50] sm:$0xff] %vm1819_vm5, %v1701_v18  ;;  %1831 = vst.msk [vmem:[%s3183_s7 + $0x58] sm:$0xff] %vm1819_vm5, %v1702_v24  ;;  %v1708_v36 = vmax.f32 %v1580_v28, %v3510_v38  ;;  %v1582_v31 = vld [vmem:[%s3183_s7 + $0x98] sm:$0xff]  ;;  %v1583_v33 = vld [vmem:[%s3183_s7 + $0xa0] sm:$0xff]  ;;  %v1709_v34 = vmax.f32 %v1581_v7, %v3522_v44 }
 0x196   : > { %1832 = vst.msk [vmem:[%s3183_s7 + $0x60] sm:$0xff] %vm1819_vm5, %v1703_v15  ;;  %1833 = vst.msk [vmem:[%s3183_s7 + $0x68] sm:$0xff] %vm1819_vm5, %v1704_v19  ;;  %v1710_v40 = vmax.f32 %v1582_v31, %v3518_v42  ;;  %v1711_v38 = vmax.f32 %v1583_v33, %v3530_v48  ;;  %v1584_v8 = vld [vmem:[%s3183_s7 + $0xa8] sm:$0xff]  ;;  %v1585_v9 = vld [vmem:[%s3183_s7 + $0xb0] sm:$0xff] }
 0x197   : > { %1834 = vst.msk [vmem:[%s3183_s7 + $0x70] sm:$0xff] %vm1819_vm5, %v1705_v22  ;;  %v1586_v6 = vld [vmem:[%s3183_s7 + $0xb8] sm:$0xff]  ;;  %1835 = vst.msk [vmem:[%s3183_s7 + $0x78] sm:$0xff] %vm1819_vm5, %v1706_v32  ;;  %v1712_v44 = vmax.f32 %v1584_v8, %v3526_v46  ;;  %v1713_v42 = vmax.f32 %v1585_v9, %v3538_v52  ;;  %v1587_v10 = vld [vmem:[%s3183_s7 + $0xc0] sm:$0xff] }
 0x198   : > { %1836 = vst.msk [vmem:[%s3183_s7 + $0x80] sm:$0xff] %vm1819_vm5, %v1707_v30  ;;  %1837 = vst.msk [vmem:[%s3183_s7 + $0x88] sm:$0xff] %vm1819_vm5, %v1708_v36  ;;  %v1714_v48 = vmax.f32 %v1586_v6, %v3534_v50  ;;  %v1588_v12 = vld [vmem:[%s3183_s7 + $0xc8] sm:$0xff]  ;;  %v1589_v14 = vld [vmem:[%s3183_s7 + $0xd0] sm:$0xff]  ;;  %v1715_v46 = vmax.f32 %v1587_v10, %v3546_v56 }
 0x199   : > { %1838 = vst.msk [vmem:[%s3183_s7 + $0x90] sm:$0xff] %vm1819_vm5, %v1709_v34  ;;  %1839 = vst.msk [vmem:[%s3183_s7 + $0x98] sm:$0xff] %vm1819_vm5, %v1710_v40  ;;  %v1716_v52 = vmax.f32 %v1588_v12, %v3542_v54  ;;  %v1717_v50 = vmax.f32 %v1589_v14, %v3554_v60  ;;  %v1590_v16 = vld [vmem:[%s3183_s7 + $0xd8] sm:$0xff]  ;;  %v1591_v21 = vld [vmem:[%s3183_s7 + $0xe0] sm:$0xff] }
 0x19a   : > { %1840 = vst.msk [vmem:[%s3183_s7 + $0xa0] sm:$0xff] %vm1819_vm5, %v1711_v38  ;;  %v1592_v11 = vld [vmem:[%s3183_s7 + $0xe8] sm:$0xff]  ;;  %1841 = vst.msk [vmem:[%s3183_s7 + $0xa8] sm:$0xff] %vm1819_vm5, %v1712_v44  ;;  %v1718_v56 = vmax.f32 %v1590_v16, %v3550_v58  ;;  %v1719_v54 = vmax.f32 %v1591_v21, %v3562_v0  ;;  %v1593_v20 = vld [vmem:[%s3183_s7 + $0xf0] sm:$0xff] }
 0x19b   : > { %1842 = vst.msk [vmem:[%s3183_s7 + $0xb0] sm:$0xff] %vm1819_vm5, %v1713_v42  ;;  %1843 = vst.msk [vmem:[%s3183_s7 + $0xb8] sm:$0xff] %vm1819_vm5, %v1714_v48  ;;  %v1720_v60 = vmax.f32 %v1592_v11, %v3558_v62  ;;  %v1594_v18 = vld [vmem:[%s3183_s7 + $0xf8] sm:$0xff]  ;;  %v1595_v24 = vld [vmem:[%s3183_s7 + $0x100] sm:$0xff]  ;;  %v1721_v58 = vmax.f32 %v1593_v20, %v3570_v4 }
 0x19c   : > { %1844 = vst.msk [vmem:[%s3183_s7 + $0xc0] sm:$0xff] %vm1819_vm5, %v1715_v46  ;;  %1845 = vst.msk [vmem:[%s3183_s7 + $0xc8] sm:$0xff] %vm1819_vm5, %v1716_v52  ;;  %v1722_v0 = vmax.f32 %v1594_v18, %v3566_v2  ;;  %v1723_v62 = vmax.f32 %v1595_v24, %v3578_v61  ;;  %v1596_v35 = vld [vmem:[%s3183_s7 + $0x108] sm:$0xff]  ;;  %v1597_v37 = vld [vmem:[%s3183_s7 + $0x110] sm:$0xff] }
 0x19d   : > { %1846 = vst.msk [vmem:[%s3183_s7 + $0xd0] sm:$0xff] %vm1819_vm5, %v1717_v50  ;;  %v1598_v39 = vld [vmem:[%s3183_s7 + $0x118] sm:$0xff]  ;;  %1847 = vst.msk [vmem:[%s3183_s7 + $0xd8] sm:$0xff] %vm1819_vm5, %v1718_v56  ;;  %v1724_v4 = vmax.f32 %v1596_v35, %v3574_v59  ;;  %v1725_v2 = vmax.f32 %v1597_v37, %v3586_v1  ;;  %v1599_v15 = vld [vmem:[%s3183_s7 + $0x120] sm:$0xff] }
 0x19e   : > { %1848 = vst.msk [vmem:[%s3183_s7 + $0xe0] sm:$0xff] %vm1819_vm5, %v1719_v54  ;;  %1849 = vst.msk [vmem:[%s3183_s7 + $0xe8] sm:$0xff] %vm1819_vm5, %v1720_v60  ;;  %v1726_v61 = vmax.f32 %v1598_v39, %v3582_v63  ;;  %v1600_v19 = vld [vmem:[%s3183_s7 + $0x128] sm:$0xff]  ;;  %v1601_v22 = vld [vmem:[%s3183_s7 + $0x130] sm:$0xff]  ;;  %v1727_v59 = vmax.f32 %v1599_v15, %v3594_v5 }
 0x19f   : > { %1850 = vst.msk [vmem:[%s3183_s7 + $0xf0] sm:$0xff] %vm1819_vm5, %v1721_v58  ;;  %1851 = vst.msk [vmem:[%s3183_s7 + $0xf8] sm:$0xff] %vm1819_vm5, %v1722_v0  ;;  %v1728_v1 = vmax.f32 %v1600_v19, %v3590_v3  ;;  %v1729_v63 = vmax.f32 %v1601_v22, %v3602_v57  ;;  %v1602_v25 = vld [vmem:[%s3183_s7 + $0x138] sm:$0xff]  ;;  %v1603_v26 = vld [vmem:[%s3183_s7 + $0x140] sm:$0xff] }
 0x1a0   : > { %1852 = vst.msk [vmem:[%s3183_s7 + $0x100] sm:$0xff] %vm1819_vm5, %v1723_v62  ;;  %v1604_v28 = vld [vmem:[%s3183_s7 + $0x148] sm:$0xff]  ;;  %1853 = vst.msk [vmem:[%s3183_s7 + $0x108] sm:$0xff] %vm1819_vm5, %v1724_v4  ;;  %v1730_v5 = vmax.f32 %v1602_v25, %v3598_v55  ;;  %v1731_v3 = vmax.f32 %v1603_v26, %v3610_v53  ;;  %v1605_v32 = vld [vmem:[%s3183_s7 + $0x150] sm:$0xff] }
 0x1a1   : > { %1854 = vst.msk [vmem:[%s3183_s7 + $0x110] sm:$0xff] %vm1819_vm5, %v1725_v2  ;;  %1855 = vst.msk [vmem:[%s3183_s7 + $0x118] sm:$0xff] %vm1819_vm5, %v1726_v61  ;;  %v1732_v57 = vmax.f32 %v1604_v28, %v3606_v51  ;;  %v1606_v30 = vld [vmem:[%s3183_s7 + $0x158] sm:$0xff]  ;;  %v1607_v36 = vld [vmem:[%s3183_s7 + $0x160] sm:$0xff]  ;;  %v1733_v55 = vmax.f32 %v1605_v32, %v3618_v49 }
 0x1a2   : > { %1856 = vst.msk [vmem:[%s3183_s7 + $0x120] sm:$0xff] %vm1819_vm5, %v1727_v59  ;;  %1857 = vst.msk [vmem:[%s3183_s7 + $0x128] sm:$0xff] %vm1819_vm5, %v1728_v1  ;;  %v1734_v53 = vmax.f32 %v1606_v30, %v3614_v47  ;;  %v1735_v51 = vmax.f32 %v1607_v36, %v3626_v45  ;;  %v1608_v7 = vld [vmem:[%s3183_s7 + $0x168] sm:$0xff]  ;;  %v1609_v31 = vld [vmem:[%s3183_s7 + $0x170] sm:$0xff] }
 0x1a3   : > { %1858 = vst.msk [vmem:[%s3183_s7 + $0x130] sm:$0xff] %vm1819_vm5, %v1729_v63  ;;  %v1610_v33 = vld [vmem:[%s3183_s7 + $0x178] sm:$0xff]  ;;  %1859 = vst.msk [vmem:[%s3183_s7 + $0x138] sm:$0xff] %vm1819_vm5, %v1730_v5  ;;  %v1736_v49 = vmax.f32 %v1608_v7, %v3622_v43  ;;  %v1737_v47 = vmax.f32 %v1609_v31, %v3634_v41  ;;  %v5289_v34 = vld [vmem:[#allocation48_spill] sm:$0xff] }
 0x1a4   : > { %1860 = vst.msk [vmem:[%s3183_s7 + $0x140] sm:$0xff] %vm1819_vm5, %v1731_v3  ;;  %1861 = vst.msk [vmem:[%s3183_s7 + $0x148] sm:$0xff] %vm1819_vm5, %v1732_v57  ;;  %v1738_v45 = vmax.f32 %v1610_v33, %v5289_v34  ;;  %v1611_v40 = vld [vmem:[%s3183_s7 + $0x180] sm:$0xff]  ;;  %v1612_v38 = vld [vmem:[%s3183_s7 + $0x188] sm:$0xff] }
 0x1a5   : > { %v1613_v8 = vld [vmem:[%s3183_s7 + $0x190] sm:$0xff]  ;;  %1862 = vst.msk [vmem:[%s3183_s7 + $0x150] sm:$0xff] %vm1819_vm5, %v1733_v55  ;;  %1863 = vst.msk [vmem:[%s3183_s7 + $0x158] sm:$0xff] %vm1819_vm5, %v1734_v53  ;;  %v5290_v9 = vld [vmem:[#allocation53_spill] sm:$0xff] }
 0x1a6   : > { %1864 = vst.msk [vmem:[%s3183_s7 + $0x160] sm:$0xff] %vm1819_vm5, %v1735_v51  ;;  %v1739_v43 = vmax.f32 %v1611_v40, %v5290_v9  ;;  %v5291_v6 = vld [vmem:[#allocation51_spill] sm:$0xff]  ;;  %v5292_v44 = vld [vmem:[#allocation57_spill] sm:$0xff]  ;;  %v1615_v10 = vld [vmem:[%s3183_s7 + $0x1a0] sm:$0xff] }
 0x1a7   : > { %v1740_v41 = vmax.f32 %v1612_v38, %v5291_v6  ;;  %v1741_v42 = vmax.f32 %v1613_v8, %v5292_v44  ;;  %v1614_v48 = vld [vmem:[%s3183_s7 + $0x198] sm:$0xff]  ;;  %v1616_v12 = vld [vmem:[%s3183_s7 + $0x1a8] sm:$0xff]  ;;  %1865 = vst.msk [vmem:[%s3183_s7 + $0x168] sm:$0xff] %vm1819_vm5, %v1736_v49  ;;  %1866 = vst.msk [vmem:[%s3183_s7 + $0x170] sm:$0xff] %vm1819_vm5, %v1737_v47  ;;  %v1743_v52 = vmax.f32 %v1615_v10, %v3658_v29 }
 0x1a8   : > { %1867 = vst.msk [vmem:[%s3183_s7 + $0x178] sm:$0xff] %vm1819_vm5, %v1738_v45  ;;  %v5293_v14 = vld [vmem:[#allocation55_spill] sm:$0xff]  ;;  %v1617_v21 = vld [vmem:[%s3183_s7 + $0x1b0] sm:$0xff]  ;;  %v1618_v11 = vld [vmem:[%s3183_s7 + $0x1b8] sm:$0xff] }
 0x1a9   : > { %v1742_v46 = vmax.f32 %v1614_v48, %v5293_v14  ;;  %v5294_v50 = vld [vmem:[#allocation59_spill] sm:$0xff]  ;;  %v1619_v56 = vld [vmem:[%s3183_s7 + $0x1c0] sm:$0xff]  ;;  %1868 = vst.msk [vmem:[%s3183_s7 + $0x180] sm:$0xff] %vm1819_vm5, %v1739_v43  ;;  %1869 = vst.msk [vmem:[%s3183_s7 + $0x188] sm:$0xff] %vm1819_vm5, %v1740_v41 }
 0x1aa   : > { %v1744_v16 = vmax.f32 %v1616_v12, %v5294_v50  ;;  %1870 = vst.msk [vmem:[%s3183_s7 + $0x190] sm:$0xff] %vm1819_vm5, %v1741_v42  ;;  %v5295_v54 = vld [vmem:[#allocation64_spill] sm:$0xff]  ;;  %v5296_v20 = vld [vmem:[#allocation62_spill] sm:$0xff]  ;;  %v1620_v58 = vld [vmem:[%s3183_s7 + $0x1c8] sm:$0xff] }
 0x1ab   : > { %v1745_v60 = vmax.f32 %v1617_v21, %v5295_v54  ;;  %v1746_v29 = vmax.f32 %v1618_v11, %v5296_v20  ;;  %v5297_v18 = vld [vmem:[#allocation68_spill] sm:$0xff]  ;;  %v1622_v62 = vld [vmem:[%s3183_s7 + $0x1d8] sm:$0xff]  ;;  %1871 = vst.msk [vmem:[%s3183_s7 + $0x198] sm:$0xff] %vm1819_vm5, %v1742_v46  ;;  %1872 = vst.msk [vmem:[%s3183_s7 + $0x1a0] sm:$0xff] %vm1819_vm5, %v1743_v52 }
 0x1ac   : > { %v1747_v24 = vmax.f32 %v1619_v56, %v5297_v18  ;;  %v1621_v0 = vld [vmem:[%s3183_s7 + $0x1d0] sm:$0xff]  ;;  %1873 = vst.msk [vmem:[%s3183_s7 + $0x1a8] sm:$0xff] %vm1819_vm5, %v1744_v16  ;;  %v5298_v35 = vld [vmem:[#allocation66_spill] sm:$0xff]  ;;  %v1624_v15 = vld [vmem:[%s3183_s7 + $0x1e8] sm:$0xff] }
 0x1ad   : > { %v1748_v37 = vmax.f32 %v1620_v58, %v5298_v35  ;;  %v1749_v39 = vmax.f32 %v1621_v0, %v3682_v17  ;;  %v5299_v4 = vld [vmem:[#allocation70_spill] sm:$0xff]  ;;  %v1625_v19 = vld [vmem:[%s3183_s7 + $0x1f0] sm:$0xff]  ;;  %1874 = vst.msk [vmem:[%s3183_s7 + $0x1b0] sm:$0xff] %vm1819_vm5, %v1745_v60  ;;  %1875 = vst.msk [vmem:[%s3183_s7 + $0x1b8] sm:$0xff] %vm1819_vm5, %v1746_v29 }
 0x1ae   : > { %v1750_v2 = vmax.f32 %v1622_v62, %v5299_v4  ;;  %v1623_v61 = vld [vmem:[%s3183_s7 + $0x1e0] sm:$0xff]  ;;  %1876 = vst.msk [vmem:[%s3183_s7 + $0x1c0] sm:$0xff] %vm1819_vm5, %v1747_v24  ;;  %v5300_v59 = vld [vmem:[#allocation71_spill] sm:$0xff]  ;;  %v5301_v1 = vld [vmem:[#allocation76_spill] sm:$0xff] }
 0x1af   : > { %v1751_v22 = vmax.f32 %v1623_v61, %v3690_v13  ;;  %v1752_v17 = vmax.f32 %v1624_v15, %v5300_v59  ;;  %v1753_v63 = vmax.f32 %v1625_v19, %v5301_v1  ;;  %v1626_v25 = vld [vmem:[%s3183_s7 + $0x1f8] sm:$0xff]  ;;  %v1627_v26 = vld [vmem:[%s3183_s7 + $0x200] sm:$0xff]  ;;  %v1628_v28 = vld [vmem:[%s3183_s7 + $0x208] sm:$0xff]  ;;  %1877 = vst.msk [vmem:[%s3183_s7 + $0x1c8] sm:$0xff] %vm1819_vm5, %v1748_v37 }
 0x1b0   : > { %1878 = vst.msk [vmem:[%s3183_s7 + $0x1d0] sm:$0xff] %vm1819_vm5, %v1749_v39  ;;  %1879 = vst.msk [vmem:[%s3183_s7 + $0x1d8] sm:$0xff] %vm1819_vm5, %v1750_v2  ;;  %v5302_v5 = vld [vmem:[#allocation74_spill] sm:$0xff]  ;;  %v5303_v3 = vld [vmem:[#allocation3_spill] sm:$0xff] }
 0x1b1   : > { %v1754_v13 = vmax.f32 %v1626_v25, %v5302_v5  ;;  %v1755_v57 = vmax.f32 %v1627_v26, %v5303_v3  ;;  %v5304_v32 = vld [vmem:[#allocation2_spill] sm:$0xff]  ;;  %v1629_v36 = vld [vmem:[%s3183_s7 + $0x210] sm:$0xff]  ;;  %v1630_v55 = vld [vmem:[%s3183_s7 + $0x218] sm:$0xff]  ;;  %1880 = vst.msk [vmem:[%s3183_s7 + $0x1e0] sm:$0xff] %vm1819_vm5, %v1751_v22 }
 0x1b2   : > { %v1756_v30 = vmax.f32 %v1628_v28, %v5304_v32  ;;  %v1631_v53 = vld [vmem:[%s3183_s7 + $0x220] sm:$0xff]  ;;  %1881 = vst.msk [vmem:[%s3183_s7 + $0x1e8] sm:$0xff] %vm1819_vm5, %v1752_v17  ;;  %1882 = vst.msk [vmem:[%s3183_s7 + $0x1f0] sm:$0xff] %vm1819_vm5, %v1753_v63  ;;  %v5305_v51 = vld [vmem:[#allocation5_spill] sm:$0xff] }
 0x1b3   : > { %v1757_v7 = vmax.f32 %v1629_v36, %v5305_v51  ;;  %v5306_v31 = vld [vmem:[#allocation4_spill] sm:$0xff]  ;;  %v5307_v49 = vld [vmem:[#allocation7_spill] sm:$0xff]  ;;  %v1634_v40 = vld [vmem:[%s3183_s7 + $0x238] sm:$0xff]  ;;  %1883 = vst.msk [vmem:[%s3183_s7 + $0x1f8] sm:$0xff] %vm1819_vm5, %v1754_v13 }
 0x1b4   : > { %v1758_v33 = vmax.f32 %v1630_v55, %v5306_v31  ;;  %v1759_v47 = vmax.f32 %v1631_v53, %v5307_v49  ;;  %v1632_v34 = vld [vmem:[%s3183_s7 + $0x228] sm:$0xff]  ;;  %v1633_v45 = vld [vmem:[%s3183_s7 + $0x230] sm:$0xff]  ;;  %1884 = vst.msk [vmem:[%s3183_s7 + $0x200] sm:$0xff] %vm1819_vm5, %v1755_v57  ;;  %1885 = vst.msk [vmem:[%s3183_s7 + $0x208] sm:$0xff] %vm1819_vm5, %v1756_v30 }
 0x1b5   : > { %v5308_v38 = vld [vmem:[#allocation6_spill] sm:$0xff]  ;;  %v5309_v9 = vld [vmem:[#allocation9_spill] sm:$0xff]  ;;  %v5310_v6 = vld [vmem:[#allocation8_spill] sm:$0xff]  ;;  %1886 = vst.msk [vmem:[%s3183_s7 + $0x210] sm:$0xff] %vm1819_vm5, %v1757_v7 }
 0x1b6   : > { %v1760_v8 = vmax.f32 %v1632_v34, %v5308_v38  ;;  %v1761_v43 = vmax.f32 %v1633_v45, %v5309_v9  ;;  %v1762_v41 = vmax.f32 %v1634_v40, %v5310_v6  ;;  %v1635_v44 = vld [vmem:[%s3183_s7 + $0x240] sm:$0xff]  ;;  %v1636_v42 = vld [vmem:[%s3183_s7 + $0x248] sm:$0xff]  ;;  %v1637_v48 = vld [vmem:[%s3183_s7 + $0x250] sm:$0xff]  ;;  %1887 = vst.msk [vmem:[%s3183_s7 + $0x218] sm:$0xff] %vm1819_vm5, %v1758_v33 }
 0x1b7   : > { %1888 = vst.msk [vmem:[%s3183_s7 + $0x220] sm:$0xff] %vm1819_vm5, %v1759_v47  ;;  %v5311_v10 = vld [vmem:[#allocation11_spill] sm:$0xff]  ;;  %v5312_v14 = vld [vmem:[#allocation10_spill] sm:$0xff]  ;;  %v5313_v52 = vld [vmem:[#allocation13_spill] sm:$0xff] }
 0x1b8   : > { %v1763_v12 = vmax.f32 %v1635_v44, %v5311_v10  ;;  %v1764_v46 = vmax.f32 %v1636_v42, %v5312_v14  ;;  %v1765_v50 = vmax.f32 %v1637_v48, %v5313_v52  ;;  %v1638_v16 = vld [vmem:[%s3183_s7 + $0x258] sm:$0xff]  ;;  %v1639_v21 = vld [vmem:[%s3183_s7 + $0x260] sm:$0xff]  ;;  %v1640_v11 = vld [vmem:[%s3183_s7 + $0x268] sm:$0xff]  ;;  %1889 = vst.msk [vmem:[%s3183_s7 + $0x228] sm:$0xff] %vm1819_vm5, %v1760_v8 }
 0x1b9   : > { %1890 = vst.msk [vmem:[%s3183_s7 + $0x230] sm:$0xff] %vm1819_vm5, %v1761_v43  ;;  %1891 = vst.msk [vmem:[%s3183_s7 + $0x238] sm:$0xff] %vm1819_vm5, %v1762_v41  ;;  %v5314_v56 = vld [vmem:[#allocation12_spill] sm:$0xff]  ;;  %v5315_v60 = vld [vmem:[#allocation15_spill] sm:$0xff] }
 0x1ba   : > { %v1766_v54 = vmax.f32 %v1638_v16, %v5314_v56  ;;  %v1767_v20 = vmax.f32 %v1639_v21, %v5315_v60  ;;  %v5316_v29 = vld [vmem:[#allocation14_spill] sm:$0xff]  ;;  %v1641_v24 = vld [vmem:[%s3183_s7 + $0x270] sm:$0xff]  ;;  %v1642_v58 = vld [vmem:[%s3183_s7 + $0x278] sm:$0xff]  ;;  %1892 = vst.msk [vmem:[%s3183_s7 + $0x240] sm:$0xff] %vm1819_vm5, %v1763_v12 }
 0x1bb   : > { %v1768_v18 = vmax.f32 %v1640_v11, %v5316_v29  ;;  %v1643_v0 = vld [vmem:[%s3183_s7 + $0x280] sm:$0xff]  ;;  %1893 = vst.msk [vmem:[%s3183_s7 + $0x248] sm:$0xff] %vm1819_vm5, %v1764_v46  ;;  %1894 = vst.msk [vmem:[%s3183_s7 + $0x250] sm:$0xff] %vm1819_vm5, %v1765_v50  ;;  %v5317_v62 = vld [vmem:[#allocation17_spill] sm:$0xff] }
 0x1bc   : > { %v1769_v35 = vmax.f32 %v1641_v24, %v5317_v62  ;;  %v5318_v37 = vld [vmem:[#allocation16_spill] sm:$0xff]  ;;  %v5319_v4 = vld [vmem:[#allocation19_spill] sm:$0xff]  ;;  %v1646_v19 = vld [vmem:[%s3183_s7 + $0x298] sm:$0xff]  ;;  %1895 = vst.msk [vmem:[%s3183_s7 + $0x258] sm:$0xff] %vm1819_vm5, %v1766_v54 }
 0x1bd   : > { %v1770_v39 = vmax.f32 %v1642_v58, %v5318_v37  ;;  %v1771_v2 = vmax.f32 %v1643_v0, %v5319_v4  ;;  %v1644_v61 = vld [vmem:[%s3183_s7 + $0x288] sm:$0xff]  ;;  %v1645_v15 = vld [vmem:[%s3183_s7 + $0x290] sm:$0xff]  ;;  %1896 = vst.msk [vmem:[%s3183_s7 + $0x260] sm:$0xff] %vm1819_vm5, %v1767_v20  ;;  %1897 = vst.msk [vmem:[%s3183_s7 + $0x268] sm:$0xff] %vm1819_vm5, %v1768_v18 }
 0x1be   : > { %v5320_v22 = vld [vmem:[#allocation18_spill] sm:$0xff]  ;;  %v5321_v17 = vld [vmem:[#allocation21_spill] sm:$0xff]  ;;  %v5322_v63 = vld [vmem:[#allocation20_spill] sm:$0xff]  ;;  %1898 = vst.msk [vmem:[%s3183_s7 + $0x270] sm:$0xff] %vm1819_vm5, %v1769_v35 }
 0x1bf   : > { %v1772_v59 = vmax.f32 %v1644_v61, %v5320_v22  ;;  %v1773_v1 = vmax.f32 %v1645_v15, %v5321_v17  ;;  %v1774_v25 = vmax.f32 %v1646_v19, %v5322_v63  ;;  %v1647_v26 = vld [vmem:[%s3183_s7 + $0x2a0] sm:$0xff]  ;;  %v1648_v28 = vld [vmem:[%s3183_s7 + $0x2a8] sm:$0xff]  ;;  %v1649_v5 = vld [vmem:[%s3183_s7 + $0x2b0] sm:$0xff]  ;;  %1899 = vst.msk [vmem:[%s3183_s7 + $0x278] sm:$0xff] %vm1819_vm5, %v1770_v39 }
 0x1c0   : > { %1900 = vst.msk [vmem:[%s3183_s7 + $0x280] sm:$0xff] %vm1819_vm5, %v1771_v2  ;;  %v5323_v13 = vld [vmem:[#allocation23_spill] sm:$0xff]  ;;  %v5324_v57 = vld [vmem:[#allocation22_spill] sm:$0xff]  ;;  %v5325_v30 = vld [vmem:[#allocation25_spill] sm:$0xff] }
 0x1c1   : > { %v1775_v3 = vmax.f32 %v1647_v26, %v5323_v13  ;;  %v1776_v32 = vmax.f32 %v1648_v28, %v5324_v57  ;;  %v1777_v36 = vmax.f32 %v1649_v5, %v5325_v30  ;;  %v1650_v55 = vld [vmem:[%s3183_s7 + $0x2b8] sm:$0xff]  ;;  %v1651_v53 = vld [vmem:[%s3183_s7 + $0x2c0] sm:$0xff]  ;;  %v1652_v51 = vld [vmem:[%s3183_s7 + $0x2c8] sm:$0xff]  ;;  %1901 = vst.msk [vmem:[%s3183_s7 + $0x288] sm:$0xff] %vm1819_vm5, %v1772_v59 }
 0x1c2   : > { %1902 = vst.msk [vmem:[%s3183_s7 + $0x290] sm:$0xff] %vm1819_vm5, %v1773_v1  ;;  %1903 = vst.msk [vmem:[%s3183_s7 + $0x298] sm:$0xff] %vm1819_vm5, %v1774_v25  ;;  %v5326_v7 = vld [vmem:[#allocation24_spill] sm:$0xff]  ;;  %v5327_v33 = vld [vmem:[#allocation27_spill] sm:$0xff] }
 0x1c3   : > { %v1778_v31 = vmax.f32 %v1650_v55, %v5326_v7  ;;  %v1779_v49 = vmax.f32 %v1651_v53, %v5327_v33  ;;  %v5328_v47 = vld [vmem:[#allocation26_spill] sm:$0xff]  ;;  %v1653_v45 = vld [vmem:[%s3183_s7 + $0x2d0] sm:$0xff]  ;;  %v1654_v40 = vld [vmem:[%s3183_s7 + $0x2d8] sm:$0xff]  ;;  %1904 = vst.msk [vmem:[%s3183_s7 + $0x2a0] sm:$0xff] %vm1819_vm5, %v1775_v3 }
 0x1c4   : > { %v1780_v34 = vmax.f32 %v1652_v51, %v5328_v47  ;;  %v1655_v38 = vld [vmem:[%s3183_s7 + $0x2e0] sm:$0xff]  ;;  %1905 = vst.msk [vmem:[%s3183_s7 + $0x2a8] sm:$0xff] %vm1819_vm5, %v1776_v32  ;;  %1906 = vst.msk [vmem:[%s3183_s7 + $0x2b0] sm:$0xff] %vm1819_vm5, %v1777_v36  ;;  %v5329_v8 = vld [vmem:[#allocation29_spill] sm:$0xff] }
 0x1c5   : > { %v1781_v9 = vmax.f32 %v1653_v45, %v5329_v8  ;;  %v5330_v43 = vld [vmem:[#allocation28_spill] sm:$0xff]  ;;  %v5331_v41 = vld [vmem:[#allocation31_spill] sm:$0xff]  ;;  %v1658_v10 = vld [vmem:[%s3183_s7 + $0x2f8] sm:$0xff]  ;;  %1907 = vst.msk [vmem:[%s3183_s7 + $0x2b8] sm:$0xff] %vm1819_vm5, %v1778_v31 }
 0x1c6   : > { %v1782_v6 = vmax.f32 %v1654_v40, %v5330_v43  ;;  %v1783_v44 = vmax.f32 %v1655_v38, %v5331_v41  ;;  %v1656_v42 = vld [vmem:[%s3183_s7 + $0x2e8] sm:$0xff]  ;;  %v1657_v48 = vld [vmem:[%s3183_s7 + $0x2f0] sm:$0xff]  ;;  %1908 = vst.msk [vmem:[%s3183_s7 + $0x2c0] sm:$0xff] %vm1819_vm5, %v1779_v49  ;;  %1909 = vst.msk [vmem:[%s3183_s7 + $0x2c8] sm:$0xff] %vm1819_vm5, %v1780_v34 }
 0x1c7   : > { %v5332_v12 = vld [vmem:[#allocation30_spill] sm:$0xff]  ;;  %v5333_v46 = vld [vmem:[#allocation33_spill] sm:$0xff]  ;;  %v5334_v50 = vld [vmem:[#allocation32_spill] sm:$0xff]  ;;  %1910 = vst.msk [vmem:[%s3183_s7 + $0x2d0] sm:$0xff] %vm1819_vm5, %v1781_v9 }
 0x1c8   : > { %v1784_v14 = vmax.f32 %v1656_v42, %v5332_v12  ;;  %v1785_v52 = vmax.f32 %v1657_v48, %v5333_v46  ;;  %v1786_v16 = vmax.f32 %v1658_v10, %v5334_v50  ;;  %v1659_v21 = vld [vmem:[%s3183_s7 + $0x300] sm:$0xff]  ;;  %v1660_v11 = vld [vmem:[%s3183_s7 + $0x308] sm:$0xff]  ;;  %v1661_v56 = vld [vmem:[%s3183_s7 + $0x310] sm:$0xff]  ;;  %1911 = vst.msk [vmem:[%s3183_s7 + $0x2d8] sm:$0xff] %vm1819_vm5, %v1782_v6 }
 0x1c9   : > { %1912 = vst.msk [vmem:[%s3183_s7 + $0x2e0] sm:$0xff] %vm1819_vm5, %v1783_v44  ;;  %v5335_v54 = vld [vmem:[#allocation35_spill] sm:$0xff]  ;;  %v5336_v20 = vld [vmem:[#allocation34_spill] sm:$0xff]  ;;  %v5337_v18 = vld [vmem:[#allocation37_spill] sm:$0xff] }
 0x1ca   : > { %v1787_v60 = vmax.f32 %v1659_v21, %v5335_v54  ;;  %v1788_v29 = vmax.f32 %v1660_v11, %v5336_v20  ;;  %v1789_v24 = vmax.f32 %v1661_v56, %v5337_v18  ;;  %v1662_v58 = vld [vmem:[%s3183_s7 + $0x318] sm:$0xff]  ;;  %v1663_v0 = vld [vmem:[%s3183_s7 + $0x320] sm:$0xff]  ;;  %v1664_v62 = vld [vmem:[%s3183_s7 + $0x328] sm:$0xff]  ;;  %1913 = vst.msk [vmem:[%s3183_s7 + $0x2e8] sm:$0xff] %vm1819_vm5, %v1784_v14 }
 0x1cb   : > { %1914 = vst.msk [vmem:[%s3183_s7 + $0x2f0] sm:$0xff] %vm1819_vm5, %v1785_v52  ;;  %1915 = vst.msk [vmem:[%s3183_s7 + $0x2f8] sm:$0xff] %vm1819_vm5, %v1786_v16  ;;  %v5338_v35 = vld [vmem:[#allocation36_spill] sm:$0xff]  ;;  %v5339_v39 = vld [vmem:[#allocation39_spill] sm:$0xff] }
 0x1cc   : > { %v1790_v37 = vmax.f32 %v1662_v58, %v5338_v35  ;;  %v1791_v4 = vmax.f32 %v1663_v0, %v5339_v39  ;;  %v5340_v2 = vld [vmem:[#allocation38_spill] sm:$0xff]  ;;  %v1665_v15 = vld [vmem:[%s3183_s7 + $0x330] sm:$0xff]  ;;  %v1666_v19 = vld [vmem:[%s3183_s7 + $0x338] sm:$0xff]  ;;  %1916 = vst.msk [vmem:[%s3183_s7 + $0x300] sm:$0xff] %vm1819_vm5, %v1787_v60 }
 0x1cd   : > { %v1792_v61 = vmax.f32 %v1664_v62, %v5340_v2  ;;  %v1667_v22 = vld [vmem:[%s3183_s7 + $0x340] sm:$0xff]  ;;  %1917 = vst.msk [vmem:[%s3183_s7 + $0x308] sm:$0xff] %vm1819_vm5, %v1788_v29  ;;  %1918 = vst.msk [vmem:[%s3183_s7 + $0x310] sm:$0xff] %vm1819_vm5, %v1789_v24  ;;  %v5341_v59 = vld [vmem:[#allocation41_spill] sm:$0xff] }
 0x1ce   : > { %v1793_v17 = vmax.f32 %v1665_v15, %v5341_v59  ;;  %v5342_v1 = vld [vmem:[#allocation40_spill] sm:$0xff]  ;;  %v5343_v25 = vld [vmem:[#allocation43_spill] sm:$0xff]  ;;  %v1670_v13 = vld [vmem:[%s3183_s7 + $0x358] sm:$0xff]  ;;  %1919 = vst.msk [vmem:[%s3183_s7 + $0x318] sm:$0xff] %vm1819_vm5, %v1790_v37 }
 0x1cf   : > { %v1794_v63 = vmax.f32 %v1666_v19, %v5342_v1  ;;  %v1795_v26 = vmax.f32 %v1667_v22, %v5343_v25  ;;  %v1668_v28 = vld [vmem:[%s3183_s7 + $0x348] sm:$0xff]  ;;  %v1669_v5 = vld [vmem:[%s3183_s7 + $0x350] sm:$0xff]  ;;  %1920 = vst.msk [vmem:[%s3183_s7 + $0x320] sm:$0xff] %vm1819_vm5, %v1791_v4  ;;  %1921 = vst.msk [vmem:[%s3183_s7 + $0x328] sm:$0xff] %vm1819_vm5, %v1792_v61 }
 0x1d0   : > { %v5344_v3 = vld [vmem:[#allocation42_spill] sm:$0xff]  ;;  %v5345_v32 = vld [vmem:[#allocation45_spill] sm:$0xff]  ;;  %v5346_v36 = vld [vmem:[#allocation44_spill] sm:$0xff]  ;;  %1922 = vst.msk [vmem:[%s3183_s7 + $0x330] sm:$0xff] %vm1819_vm5, %v1793_v17 }
 0x1d1   : > { %v1796_v57 = vmax.f32 %v1668_v28, %v5344_v3  ;;  %v1797_v30 = vmax.f32 %v1669_v5, %v5345_v32  ;;  %v1798_v55 = vmax.f32 %v1670_v13, %v5346_v36  ;;  %v1671_v53 = vld [vmem:[%s3183_s7 + $0x360] sm:$0xff]  ;;  %v1672_v51 = vld [vmem:[%s3183_s7 + $0x368] sm:$0xff]  ;;  %v1673_v7 = vld [vmem:[%s3183_s7 + $0x370] sm:$0xff]  ;;  %1923 = vst.msk [vmem:[%s3183_s7 + $0x338] sm:$0xff] %vm1819_vm5, %v1794_v63 }
 0x1d2   : > { %1924 = vst.msk [vmem:[%s3183_s7 + $0x340] sm:$0xff] %vm1819_vm5, %v1795_v26  ;;  %v5347_v31 = vld [vmem:[#allocation47_spill] sm:$0xff]  ;;  %v5348_v49 = vld [vmem:[#allocation46_spill] sm:$0xff]  ;;  %v1674_v40 = vld [vmem:[%s3183_s7 + $0x378] sm:$0xff] }
 0x1d3   : > { %v1799_v33 = vmax.f32 %v1671_v53, %v5347_v31  ;;  %v1800_v47 = vmax.f32 %v1672_v51, %v5348_v49  ;;  %v5349_v34 = vld [vmem:[#allocation50_spill] sm:$0xff]  ;;  %v1676_v8 = vld [vmem:[%s3183_s7 + $0x388] sm:$0xff]  ;;  %1925 = vst.msk [vmem:[%s3183_s7 + $0x348] sm:$0xff] %vm1819_vm5, %v1796_v57  ;;  %1926 = vst.msk [vmem:[%s3183_s7 + $0x350] sm:$0xff] %vm1819_vm5, %v1797_v30 }
 0x1d4   : > { %v1801_v45 = vmax.f32 %v1673_v7, %v5349_v34  ;;  %v1675_v38 = vld [vmem:[%s3183_s7 + $0x380] sm:$0xff]  ;;  %1927 = vst.msk [vmem:[%s3183_s7 + $0x358] sm:$0xff] %vm1819_vm5, %v1798_v55  ;;  %v5350_v9 = vld [vmem:[#allocation49_spill] sm:$0xff]  ;;  %v5352_v44 = vld [vmem:[#allocation52_spill] sm:$0xff] }
 0x1d5   : > { %v1802_v43 = vmax.f32 %v1674_v40, %v5350_v9  ;;  %v5351_v6 = vld [vmem:[#allocation54_spill] sm:$0xff]  ;;  %v1804_v42 = vmax.f32 %v1676_v8, %v5352_v44  ;;  %v1677_v48 = vld [vmem:[%s3183_s7 + $0x390] sm:$0xff]  ;;  %v1678_v10 = vld [vmem:[%s3183_s7 + $0x398] sm:$0xff]  ;;  %1928 = vst.msk [vmem:[%s3183_s7 + $0x360] sm:$0xff] %vm1819_vm5, %v1799_v33 }
 0x1d6   : > { %v1803_v41 = vmax.f32 %v1675_v38, %v5351_v6  ;;  %v1679_v12 = vld [vmem:[%s3183_s7 + $0x3a0] sm:$0xff]  ;;  %1929 = vst.msk [vmem:[%s3183_s7 + $0x368] sm:$0xff] %vm1819_vm5, %v1800_v47  ;;  %1930 = vst.msk [vmem:[%s3183_s7 + $0x370] sm:$0xff] %vm1819_vm5, %v1801_v45  ;;  %v5354_v52 = vld [vmem:[#allocation56_spill] sm:$0xff] }
 0x1d7   : > { %v5353_v14 = vld [vmem:[#allocation58_spill] sm:$0xff]  ;;  %v1806_v50 = vmax.f32 %v1678_v10, %v5354_v52  ;;  %v5355_v16 = vld [vmem:[#allocation61_spill] sm:$0xff]  ;;  %v1680_v11 = vld [vmem:[%s3183_s7 + $0x3a8] sm:$0xff]  ;;  %1931 = vst.msk [vmem:[%s3183_s7 + $0x378] sm:$0xff] %vm1819_vm5, %v1802_v43 }
 0x1d8   : > { %v1805_v46 = vmax.f32 %v1677_v48, %v5353_v14  ;;  %v1807_v21 = vmax.f32 %v1679_v12, %v5355_v16  ;;  %v1681_v56 = vld [vmem:[%s3183_s7 + $0x3b0] sm:$0xff]  ;;  %v1682_v54 = vld [vmem:[%s3183_s7 + $0x3b8] sm:$0xff]  ;;  %1932 = vst.msk [vmem:[%s3183_s7 + $0x380] sm:$0xff] %vm1819_vm5, %v1803_v41  ;;  %1933 = vst.msk [vmem:[%s3183_s7 + $0x388] sm:$0xff] %vm1819_vm5, %v1804_v42 }
 0x1d9   : > { %v5356_v60 = vld [vmem:[#allocation60_spill] sm:$0xff]  ;;  %v5357_v29 = vld [vmem:[#allocation65_spill] sm:$0xff]  ;;  %v5358_v24 = vld [vmem:[#allocation63_spill] sm:$0xff]  ;;  %1935 = vst.msk [vmem:[%s3183_s7 + $0x398] sm:$0xff] %vm1819_vm5, %v1806_v50 }
 0x1da   : > { %v1808_v20 = vmax.f32 %v1680_v11, %v5356_v60  ;;  %v1809_v18 = vmax.f32 %v1681_v56, %v5357_v29  ;;  %v1810_v58 = vmax.f32 %v1682_v54, %v5358_v24  ;;  %v1683_v0 = vld [vmem:[%s3183_s7 + $0x3c0] sm:$0xff]  ;;  %v1684_v62 = vld [vmem:[%s3183_s7 + $0x3c8] sm:$0xff]  ;;  %v1685_v35 = vld [vmem:[%s3183_s7 + $0x3d0] sm:$0xff]  ;;  %1934 = vst.msk [vmem:[%s3183_s7 + $0x390] sm:$0xff] %vm1819_vm5, %v1805_v46 }
 0x1db   : > { %1936 = vst.msk [vmem:[%s3183_s7 + $0x3a0] sm:$0xff] %vm1819_vm5, %v1807_v21  ;;  %v5359_v37 = vld [vmem:[#allocation69_spill] sm:$0xff]  ;;  %v5360_v4 = vld [vmem:[#allocation67_spill] sm:$0xff]  ;;  %v1813_v61 = vmax.f32 %v1685_v35, %v3684_v23  ;;  %v1687_v19 = vld [vmem:[%s3183_s7 + $0x3e0] sm:$0xff] }
 0x1dc   : > { %v1811_v39 = vmax.f32 %v1683_v0, %v5359_v37  ;;  %v1812_v2 = vmax.f32 %v1684_v62, %v5360_v4  ;;  %v1686_v15 = vld [vmem:[%s3183_s7 + $0x3d8] sm:$0xff]  ;;  %v1688_v22 = vld [vmem:[%s3183_s7 + $0x3e8] sm:$0xff]  ;;  %1937 = vst.msk [vmem:[%s3183_s7 + $0x3a8] sm:$0xff] %vm1819_vm5, %v1808_v20  ;;  %1938 = vst.msk [vmem:[%s3183_s7 + $0x3b0] sm:$0xff] %vm1819_vm5, %v1809_v18 }
 0x1dd   : > { %1939 = vst.msk [vmem:[%s3183_s7 + $0x3b8] sm:$0xff] %vm1819_vm5, %v1810_v58  ;;  %v1814_v59 = vmax.f32 %v1686_v15, %v3680_v27  ;;  %v5361_v17 = vld [vmem:[#allocation73_spill] sm:$0xff]  ;;  %v5362_v63 = vld [vmem:[#allocation72_spill] sm:$0xff]  ;;  %1942 = vst.msk [vmem:[%s3183_s7 + $0x3d0] sm:$0xff] %vm1819_vm5, %v1813_v61 }
 0x1de   : > { %v1815_v1 = vmax.f32 %v1687_v19, %v5361_v17  ;;  %v1816_v23 = vmax.f32 %v1688_v22, %v5362_v63  ;;  %v1689_v25 = vld [vmem:[%s3183_s7 + $0x3f0] sm:$0xff]  ;;  %v1690_v26 = vld [vmem:[%s3183_s7 + $0x3f8] sm:$0xff]  ;;  %1940 = vst.msk [vmem:[%s3183_s7 + $0x3c0] sm:$0xff] %vm1819_vm5, %v1811_v39  ;;  %1941 = vst.msk [vmem:[%s3183_s7 + $0x3c8] sm:$0xff] %vm1819_vm5, %v1812_v2 }
 0x1df   : > { %v5363_v28 = vld [vmem:[#allocation77_spill] sm:$0xff]  ;;  %v5364_v13 = vld [vmem:[#allocation75_spill] sm:$0xff]  ;;  %1943 = vst.msk [vmem:[%s3183_s7 + $0x3d8] sm:$0xff] %vm1819_vm5, %v1814_v59 }
 0x1e0   : > { %v1817_v5 = vmax.f32 %v1689_v25, %v5363_v28  ;;  %v1818_v3 = vmax.f32 %v1690_v26, %v5364_v13  ;;  %1944 = vst.msk [vmem:[%s3183_s7 + $0x3e0] sm:$0xff] %vm1819_vm5, %v1815_v1  ;;  %1945 = vst.msk [vmem:[%s3183_s7 + $0x3e8] sm:$0xff] %vm1819_vm5, %v1816_v23 }
 0x1e2   : > { %1946 = vst.msk [vmem:[%s3183_s7 + $0x3f0] sm:$0xff] %vm1819_vm5, %v1817_v5  ;;  %1947 = vst.msk [vmem:[%s3183_s7 + $0x3f8] sm:$0xff] %vm1819_vm5, %v1818_v3 }
 0x1e3 PF: > { %p2683_p9 = scmp.ne.s32.totalorder %s3096_s12, 3 }
 0x1e4   : > { %v4605_v57 = vld [vmem:[%s5135_s2] ss:$0 sm:$0xff] (!%p2683_p9)  ;;  %vm2343_vm6 = vcmask (!%p2683_p9), 261120   ;;  %v1965_v14 = vld [vmem:[%s3183_s7 + $0x68] sm:$0xff] (!%p2683_p9)  ;;  %v1966_v21 = vld [vmem:[%s3183_s7 + $0x70] sm:$0xff] (!%p2683_p9) }
 0x1e5   : > { %1951 = sbr.rel (%p2683_p9) target bundleno = 554 (0x22a), region = 44  ;;  %v1952_v27 = vld [vmem:[%s3183_s7] sm:$0xff] (!%p2683_p9)  ;;  %v1953_v32 = vld [vmem:[%s3183_s7 + $0x8] sm:$0xff] (!%p2683_p9)  ;;  %v1967_v11 = vld [vmem:[%s3183_s7 + $0x78] sm:$0xff] (!%p2683_p9)  ;;  %v2100_v0 = vadd.f32 (!%p2683_p9), %v4605_v57, %v1965_v14  ;;  %v2101_v62 = vadd.f32 (!%p2683_p9), %v4605_v57, %v1966_v21 }
 0x1e6   : > { %v2087_v30 = vadd.f32 (!%p2683_p9), %v4605_v57, %v1952_v27  ;;  %v2088_v36 = vadd.f32 (!%p2683_p9), %v4605_v57, %v1953_v32  ;;  %v1954_v55 = vld [vmem:[%s3183_s7 + $0x10] sm:$0xff] (!%p2683_p9)  ;;  %v1955_v53 = vld [vmem:[%s3183_s7 + $0x18] sm:$0xff] (!%p2683_p9)  ;;  %v1964_v12 = vld [vmem:[%s3183_s7 + $0x60] sm:$0xff] (!%p2683_p9)  ;;  %v2102_v15 = vadd.f32 (!%p2683_p9), %v4605_v57, %v1967_v11 }
 0x1e7   : > { %v1956_v51 = vld [vmem:[%s3183_s7 + $0x20] sm:$0xff] (!%p2683_p9)  ;;  %v2089_v7 = vadd.f32 (!%p2683_p9), %v4605_v57, %v1954_v55  ;;  %v2090_v31 = vadd.f32 (!%p2683_p9), %v4605_v57, %v1955_v53  ;;  %v1957_v49 = vld [vmem:[%s3183_s7 + $0x28] sm:$0xff] (!%p2683_p9)  ;;  %v2099_v20 = vadd.f32 (!%p2683_p9), %v4605_v57, %v1964_v12  ;;  %v1970_v35 = vld [vmem:[%s3183_s7 + $0x90] sm:$0xff] (!%p2683_p9)  ;;  %v2228_v59 = vmax.f32 (!%p2683_p9), %v2100_v0, 0.0 }
 0x1e8   : > { %v2091_v33 = vadd.f32 (!%p2683_p9), %v4605_v57, %v1956_v51  ;;  %v1958_v47 = vld [vmem:[%s3183_s7 + $0x30] sm:$0xff] (!%p2683_p9)  ;;  %v1959_v34 = vld [vmem:[%s3183_s7 + $0x38] sm:$0xff] (!%p2683_p9)  ;;  %v2215_v45 = vmax.f32 (!%p2683_p9), %v2087_v30, 0.0  ;;  %v2216_v40 = vmax.f32 (!%p2683_p9), %v2088_v36, 0.0  ;;  %v2092_v38 = vadd.f32 (!%p2683_p9), %v4605_v57, %v1957_v49  ;;  %v1968_v29 = vld [vmem:[%s3183_s7 + $0x80] sm:$0xff] (!%p2683_p9) }
 0x1e9   : > { %v2093_v8 = vadd.f32 (!%p2683_p9), %v4605_v57, %v1958_v47  ;;  %v1960_v9 = vld [vmem:[%s3183_s7 + $0x40] sm:$0xff] (!%p2683_p9)  ;;  %v1961_v43 = vld [vmem:[%s3183_s7 + $0x48] sm:$0xff] (!%p2683_p9)  ;;  %v2217_v41 = vmax.f32 (!%p2683_p9), %v2089_v7, 0.0  ;;  %v2218_v44 = vmax.f32 (!%p2683_p9), %v2090_v31, 0.0  ;;  %v2094_v48 = vadd.f32 (!%p2683_p9), %v4605_v57, %v1959_v34  ;;  %v1971_v37 = vld [vmem:[%s3183_s7 + $0x98] sm:$0xff] (!%p2683_p9)  ;;  %2357 = vst.msk [vmem:[%s3183_s7 + $0x68] sm:$0xff] (!%p2683_p9), %vm2343_vm6, %v2228_v59 }
 0x1ea   : > { %v1962_v6 = vld [vmem:[%s3183_s7 + $0x50] sm:$0xff] (!%p2683_p9)  ;;  %v2219_v42 = vmax.f32 (!%p2683_p9), %v2091_v33, 0.0  ;;  %v1963_v10 = vld [vmem:[%s3183_s7 + $0x58] sm:$0xff] (!%p2683_p9)  ;;  %2344 = vst.msk [vmem:[%s3183_s7] sm:$0xff] (!%p2683_p9), %vm2343_vm6, %v2215_v45  ;;  %2345 = vst.msk [vmem:[%s3183_s7 + $0x8] sm:$0xff] (!%p2683_p9), %vm2343_vm6, %v2216_v40  ;;  %v2220_v46 = vmax.f32 (!%p2683_p9), %v2092_v38, 0.0  ;;  %v2095_v50 = vadd.f32 (!%p2683_p9), %v4605_v57, %v1960_v9  ;;  %v2096_v16 = vadd.f32 (!%p2683_p9), %v4605_v57, %v1961_v43 }
 0x1eb   : > { %v2221_v52 = vmax.f32 (!%p2683_p9), %v2093_v8, 0.0  ;;  %2346 = vst.msk [vmem:[%s3183_s7 + $0x10] sm:$0xff] (!%p2683_p9), %vm2343_vm6, %v2217_v41  ;;  %2347 = vst.msk [vmem:[%s3183_s7 + $0x18] sm:$0xff] (!%p2683_p9), %vm2343_vm6, %v2218_v44  ;;  %v2222_v56 = vmax.f32 (!%p2683_p9), %v2094_v48, 0.0  ;;  %v2097_v54 = vadd.f32 (!%p2683_p9), %v4605_v57, %v1962_v6  ;;  %v2098_v60 = vadd.f32 (!%p2683_p9), %v4605_v57, %v1963_v10  ;;  %v1969_v18 = vld [vmem:[%s3183_s7 + $0x88] sm:$0xff] (!%p2683_p9)  ;;  %v1972_v39 = vld [vmem:[%s3183_s7 + $0xa0] sm:$0xff] (!%p2683_p9) }
 0x1ec   : > { %2348 = vst.msk [vmem:[%s3183_s7 + $0x20] sm:$0xff] %vm2343_vm6, %v2219_v42  ;;  %2349 = vst.msk [vmem:[%s3183_s7 + $0x28] sm:$0xff] %vm2343_vm6, %v2220_v46  ;;  %v2223_v24 = vmax.f32 %v2095_v50, 0.0  ;;  %v2224_v58 = vmax.f32 %v2096_v16, 0.0  ;;  %v2227_v61 = vmax.f32 %v2099_v20, 0.0  ;;  %v1973_v19 = vld [vmem:[%s3183_s7 + $0xa8] sm:$0xff]  ;;  %v2103_v1 = vadd.f32 %v4605_v57, %v1968_v29 }
 0x1ed   : > { %2350 = vst.msk [vmem:[%s3183_s7 + $0x30] sm:$0xff] %vm2343_vm6, %v2221_v52  ;;  %2351 = vst.msk [vmem:[%s3183_s7 + $0x38] sm:$0xff] %vm2343_vm6, %v2222_v56  ;;  %v2225_v4 = vmax.f32 %v2097_v54, 0.0  ;;  %v2226_v2 = vmax.f32 %v2098_v60, 0.0  ;;  %v1974_v22 = vld [vmem:[%s3183_s7 + $0xb0] sm:$0xff]  ;;  %v2229_v17 = vmax.f32 %v2101_v62, 0.0  ;;  %v2104_v63 = vadd.f32 %v4605_v57, %v1969_v18 }
 0x1ee   : > { %2352 = vst.msk [vmem:[%s3183_s7 + $0x40] sm:$0xff] %vm2343_vm6, %v2223_v24  ;;  %2353 = vst.msk [vmem:[%s3183_s7 + $0x48] sm:$0xff] %vm2343_vm6, %v2224_v58  ;;  %v1975_v23 = vld [vmem:[%s3183_s7 + $0xb8] sm:$0xff]  ;;  %v2230_v25 = vmax.f32 %v2102_v15, 0.0  ;;  %v2105_v26 = vadd.f32 %v4605_v57, %v1970_v35  ;;  %v2106_v28 = vadd.f32 %v4605_v57, %v1971_v37  ;;  %v2107_v5 = vadd.f32 %v4605_v57, %v1972_v39  ;;  %v1976_v13 = vld [vmem:[%s3183_s7 + $0xc0] sm:$0xff] }
 0x1ef   : > { %2354 = vst.msk [vmem:[%s3183_s7 + $0x50] sm:$0xff] %vm2343_vm6, %v2225_v4  ;;  %2355 = vst.msk [vmem:[%s3183_s7 + $0x58] sm:$0xff] %vm2343_vm6, %v2226_v2  ;;  %v1977_v3 = vld [vmem:[%s3183_s7 + $0xc8] sm:$0xff]  ;;  %v2231_v27 = vmax.f32 %v2103_v1, 0.0  ;;  %v2232_v32 = vmax.f32 %v2104_v63, 0.0  ;;  %v2108_v30 = vadd.f32 %v4605_v57, %v1973_v19  ;;  %v2109_v36 = vadd.f32 %v4605_v57, %v1974_v22  ;;  %v1978_v55 = vld [vmem:[%s3183_s7 + $0xd0] sm:$0xff] }
 0x1f0   : > { %2356 = vst.msk [vmem:[%s3183_s7 + $0x60] sm:$0xff] %vm2343_vm6, %v2227_v61  ;;  %2358 = vst.msk [vmem:[%s3183_s7 + $0x70] sm:$0xff] %vm2343_vm6, %v2229_v17  ;;  %v1979_v53 = vld [vmem:[%s3183_s7 + $0xd8] sm:$0xff]  ;;  %v1980_v51 = vld [vmem:[%s3183_s7 + $0xe0] sm:$0xff]  ;;  %v2233_v7 = vmax.f32 %v2105_v26, 0.0  ;;  %v2234_v31 = vmax.f32 %v2106_v28, 0.0  ;;  %v2110_v49 = vadd.f32 %v4605_v57, %v1975_v23  ;;  %v2111_v38 = vadd.f32 %v4605_v57, %v1976_v13 }
 0x1f1   : > { %2359 = vst.msk [vmem:[%s3183_s7 + $0x78] sm:$0xff] %vm2343_vm6, %v2230_v25  ;;  %v2235_v33 = vmax.f32 %v2107_v5, 0.0  ;;  %v1981_v47 = vld [vmem:[%s3183_s7 + $0xe8] sm:$0xff]  ;;  %v1982_v34 = vld [vmem:[%s3183_s7 + $0xf0] sm:$0xff]  ;;  %2360 = vst.msk [vmem:[%s3183_s7 + $0x80] sm:$0xff] %vm2343_vm6, %v2231_v27  ;;  %v2236_v45 = vmax.f32 %v2108_v30, 0.0  ;;  %v2112_v8 = vadd.f32 %v4605_v57, %v1977_v3  ;;  %v2113_v6 = vadd.f32 %v4605_v57, %v1978_v55 }
 0x1f2   : > { %2361 = vst.msk [vmem:[%s3183_s7 + $0x88] sm:$0xff] %vm2343_vm6, %v2232_v32  ;;  %v2237_v40 = vmax.f32 %v2109_v36, 0.0  ;;  %v1983_v9 = vld [vmem:[%s3183_s7 + $0xf8] sm:$0xff]  ;;  %2362 = vst.msk [vmem:[%s3183_s7 + $0x90] sm:$0xff] %vm2343_vm6, %v2233_v7  ;;  %v2238_v43 = vmax.f32 %v2110_v49, 0.0  ;;  %v2114_v41 = vadd.f32 %v4605_v57, %v1979_v53  ;;  %v2115_v44 = vadd.f32 %v4605_v57, %v1980_v51  ;;  %v1984_v42 = vld [vmem:[%s3183_s7 + $0x100] sm:$0xff] }
 0x1f3   : > { %2363 = vst.msk [vmem:[%s3183_s7 + $0x98] sm:$0xff] %vm2343_vm6, %v2234_v31  ;;  %2364 = vst.msk [vmem:[%s3183_s7 + $0xa0] sm:$0xff] %vm2343_vm6, %v2235_v33  ;;  %v1985_v48 = vld [vmem:[%s3183_s7 + $0x108] sm:$0xff]  ;;  %v2239_v10 = vmax.f32 %v2111_v38, 0.0  ;;  %v2240_v12 = vmax.f32 %v2112_v8, 0.0  ;;  %v2116_v14 = vadd.f32 %v4605_v57, %v1981_v47  ;;  %v2117_v46 = vadd.f32 %v4605_v57, %v1982_v34  ;;  %v1986_v52 = vld [vmem:[%s3183_s7 + $0x110] sm:$0xff] }
 0x1f4   : > { %2365 = vst.msk [vmem:[%s3183_s7 + $0xa8] sm:$0xff] %vm2343_vm6, %v2236_v45  ;;  %2366 = vst.msk [vmem:[%s3183_s7 + $0xb0] sm:$0xff] %vm2343_vm6, %v2237_v40  ;;  %v1987_v50 = vld [vmem:[%s3183_s7 + $0x118] sm:$0xff]  ;;  %v1988_v16 = vld [vmem:[%s3183_s7 + $0x120] sm:$0xff]  ;;  %v2241_v21 = vmax.f32 %v2113_v6, 0.0  ;;  %v2242_v11 = vmax.f32 %v2114_v41, 0.0  ;;  %v2118_v54 = vadd.f32 %v4605_v57, %v1983_v9  ;;  %v2119_v24 = vadd.f32 %v4605_v57, %v1984_v42 }
 0x1f5   : > { %2367 = vst.msk [vmem:[%s3183_s7 + $0xb8] sm:$0xff] %vm2343_vm6, %v2238_v43  ;;  %v2243_v56 = vmax.f32 %v2115_v44, 0.0  ;;  %v1989_v60 = vld [vmem:[%s3183_s7 + $0x128] sm:$0xff]  ;;  %v1990_v20 = vld [vmem:[%s3183_s7 + $0x130] sm:$0xff]  ;;  %2368 = vst.msk [vmem:[%s3183_s7 + $0xc0] sm:$0xff] %vm2343_vm6, %v2239_v10  ;;  %v2244_v29 = vmax.f32 %v2116_v14, 0.0  ;;  %v2120_v58 = vadd.f32 %v4605_v57, %v1985_v48  ;;  %v2121_v35 = vadd.f32 %v4605_v57, %v1986_v52 }
 0x1f6   : > { %2369 = vst.msk [vmem:[%s3183_s7 + $0xc8] sm:$0xff] %vm2343_vm6, %v2240_v12  ;;  %v2245_v18 = vmax.f32 %v2117_v46, 0.0  ;;  %v1991_v0 = vld [vmem:[%s3183_s7 + $0x138] sm:$0xff]  ;;  %2370 = vst.msk [vmem:[%s3183_s7 + $0xd0] sm:$0xff] %vm2343_vm6, %v2241_v21  ;;  %v2246_v62 = vmax.f32 %v2118_v54, 0.0  ;;  %v2122_v37 = vadd.f32 %v4605_v57, %v1987_v50  ;;  %v2123_v39 = vadd.f32 %v4605_v57, %v1988_v16  ;;  %v1992_v4 = vld [vmem:[%s3183_s7 + $0x140] sm:$0xff] }
 0x1f7   : > { %2371 = vst.msk [vmem:[%s3183_s7 + $0xd8] sm:$0xff] %vm2343_vm6, %v2242_v11  ;;  %2372 = vst.msk [vmem:[%s3183_s7 + $0xe0] sm:$0xff] %vm2343_vm6, %v2243_v56  ;;  %v1993_v2 = vld [vmem:[%s3183_s7 + $0x148] sm:$0xff]  ;;  %v2247_v61 = vmax.f32 %v2119_v24, 0.0  ;;  %v2248_v15 = vmax.f32 %v2120_v58, 0.0  ;;  %v2124_v19 = vadd.f32 %v4605_v57, %v1989_v60  ;;  %v2125_v22 = vadd.f32 %v4605_v57, %v1990_v20  ;;  %v1994_v59 = vld [vmem:[%s3183_s7 + $0x150] sm:$0xff] }
 0x1f8   : > { %2373 = vst.msk [vmem:[%s3183_s7 + $0xe8] sm:$0xff] %vm2343_vm6, %v2244_v29  ;;  %2374 = vst.msk [vmem:[%s3183_s7 + $0xf0] sm:$0xff] %vm2343_vm6, %v2245_v18  ;;  %v1995_v17 = vld [vmem:[%s3183_s7 + $0x158] sm:$0xff]  ;;  %v1996_v1 = vld [vmem:[%s3183_s7 + $0x160] sm:$0xff]  ;;  %v2249_v63 = vmax.f32 %v2121_v35, 0.0  ;;  %v2250_v23 = vmax.f32 %v2122_v37, 0.0  ;;  %v2126_v26 = vadd.f32 %v4605_v57, %v1991_v0  ;;  %v2127_v27 = vadd.f32 %v4605_v57, %v1992_v4 }
 0x1f9   : > { %2375 = vst.msk [vmem:[%s3183_s7 + $0xf8] sm:$0xff] %vm2343_vm6, %v2246_v62  ;;  %v2251_v25 = vmax.f32 %v2123_v39, 0.0  ;;  %v1997_v28 = vld [vmem:[%s3183_s7 + $0x168] sm:$0xff]  ;;  %v1998_v5 = vld [vmem:[%s3183_s7 + $0x170] sm:$0xff]  ;;  %2376 = vst.msk [vmem:[%s3183_s7 + $0x100] sm:$0xff] %vm2343_vm6, %v2247_v61  ;;  %v2252_v13 = vmax.f32 %v2124_v19, 0.0  ;;  %v2128_v32 = vadd.f32 %v4605_v57, %v1993_v2  ;;  %v2129_v55 = vadd.f32 %v4605_v57, %v1994_v59 }
 0x1fa   : > { %2377 = vst.msk [vmem:[%s3183_s7 + $0x108] sm:$0xff] %vm2343_vm6, %v2248_v15  ;;  %v2253_v3 = vmax.f32 %v2125_v22, 0.0  ;;  %v1999_v30 = vld [vmem:[%s3183_s7 + $0x178] sm:$0xff]  ;;  %2378 = vst.msk [vmem:[%s3183_s7 + $0x110] sm:$0xff] %vm2343_vm6, %v2249_v63  ;;  %v2254_v36 = vmax.f32 %v2126_v26, 0.0  ;;  %v2130_v53 = vadd.f32 %v4605_v57, %v1995_v17  ;;  %v2131_v51 = vadd.f32 %v4605_v57, %v1996_v1  ;;  %v2000_v7 = vld [vmem:[%s3183_s7 + $0x180] sm:$0xff] }
 0x1fb   : > { %2379 = vst.msk [vmem:[%s3183_s7 + $0x118] sm:$0xff] %vm2343_vm6, %v2250_v23  ;;  %2380 = vst.msk [vmem:[%s3183_s7 + $0x120] sm:$0xff] %vm2343_vm6, %v2251_v25  ;;  %v2001_v31 = vld [vmem:[%s3183_s7 + $0x188] sm:$0xff]  ;;  %v2255_v33 = vmax.f32 %v2127_v27, 0.0  ;;  %v2256_v49 = vmax.f32 %v2128_v32, 0.0  ;;  %v2132_v47 = vadd.f32 %v4605_v57, %v1997_v28  ;;  %v2133_v34 = vadd.f32 %v4605_v57, %v1998_v5  ;;  %v2002_v45 = vld [vmem:[%s3183_s7 + $0x190] sm:$0xff] }
 0x1fc   : > { %2381 = vst.msk [vmem:[%s3183_s7 + $0x128] sm:$0xff] %vm2343_vm6, %v2252_v13  ;;  %2382 = vst.msk [vmem:[%s3183_s7 + $0x130] sm:$0xff] %vm2343_vm6, %v2253_v3  ;;  %v2003_v40 = vld [vmem:[%s3183_s7 + $0x198] sm:$0xff]  ;;  %v2004_v38 = vld [vmem:[%s3183_s7 + $0x1a0] sm:$0xff]  ;;  %v2257_v8 = vmax.f32 %v2129_v55, 0.0  ;;  %v2258_v9 = vmax.f32 %v2130_v53, 0.0  ;;  %v2134_v6 = vadd.f32 %v4605_v57, %v1999_v30  ;;  %v2135_v10 = vadd.f32 %v4605_v57, %v2000_v7 }
 0x1fd   : > { %2383 = vst.msk [vmem:[%s3183_s7 + $0x138] sm:$0xff] %vm2343_vm6, %v2254_v36  ;;  %v2259_v43 = vmax.f32 %v2131_v51, 0.0  ;;  %v2005_v41 = vld [vmem:[%s3183_s7 + $0x1a8] sm:$0xff]  ;;  %v2006_v44 = vld [vmem:[%s3183_s7 + $0x1b0] sm:$0xff]  ;;  %2384 = vst.msk [vmem:[%s3183_s7 + $0x140] sm:$0xff] %vm2343_vm6, %v2255_v33  ;;  %v2260_v42 = vmax.f32 %v2132_v47, 0.0  ;;  %v2136_v12 = vadd.f32 %v4605_v57, %v2001_v31  ;;  %v2137_v52 = vadd.f32 %v4605_v57, %v2002_v45 }
 0x1fe   : > { %2385 = vst.msk [vmem:[%s3183_s7 + $0x148] sm:$0xff] %vm2343_vm6, %v2256_v49  ;;  %v2261_v48 = vmax.f32 %v2133_v34, 0.0  ;;  %v2007_v14 = vld [vmem:[%s3183_s7 + $0x1b8] sm:$0xff]  ;;  %2386 = vst.msk [vmem:[%s3183_s7 + $0x150] sm:$0xff] %vm2343_vm6, %v2257_v8  ;;  %v2262_v46 = vmax.f32 %v2134_v6, 0.0  ;;  %v2138_v50 = vadd.f32 %v4605_v57, %v2003_v40  ;;  %v2139_v16 = vadd.f32 %v4605_v57, %v2004_v38  ;;  %v2008_v21 = vld [vmem:[%s3183_s7 + $0x1c0] sm:$0xff] }
 0x1ff   : > { %2387 = vst.msk [vmem:[%s3183_s7 + $0x158] sm:$0xff] %vm2343_vm6, %v2258_v9  ;;  %2388 = vst.msk [vmem:[%s3183_s7 + $0x160] sm:$0xff] %vm2343_vm6, %v2259_v43  ;;  %v2009_v11 = vld [vmem:[%s3183_s7 + $0x1c8] sm:$0xff]  ;;  %v2263_v56 = vmax.f32 %v2135_v10, 0.0  ;;  %v2264_v54 = vmax.f32 %v2136_v12, 0.0  ;;  %v2140_v60 = vadd.f32 %v4605_v57, %v2005_v41  ;;  %v2141_v20 = vadd.f32 %v4605_v57, %v2006_v44  ;;  %v2010_v29 = vld [vmem:[%s3183_s7 + $0x1d0] sm:$0xff] }
 0x200   : > { %2389 = vst.msk [vmem:[%s3183_s7 + $0x168] sm:$0xff] %vm2343_vm6, %v2260_v42  ;;  %2390 = vst.msk [vmem:[%s3183_s7 + $0x170] sm:$0xff] %vm2343_vm6, %v2261_v48  ;;  %v2011_v18 = vld [vmem:[%s3183_s7 + $0x1d8] sm:$0xff]  ;;  %v2012_v24 = vld [vmem:[%s3183_s7 + $0x1e0] sm:$0xff]  ;;  %v2265_v58 = vmax.f32 %v2137_v52, 0.0  ;;  %v2266_v0 = vmax.f32 %v2138_v50, 0.0  ;;  %v2142_v35 = vadd.f32 %v4605_v57, %v2007_v14  ;;  %v2143_v61 = vadd.f32 %v4605_v57, %v2008_v21 }
 0x201   : > { %2391 = vst.msk [vmem:[%s3183_s7 + $0x178] sm:$0xff] %vm2343_vm6, %v2262_v46  ;;  %v2267_v62 = vmax.f32 %v2139_v16, 0.0  ;;  %v2013_v37 = vld [vmem:[%s3183_s7 + $0x1e8] sm:$0xff]  ;;  %v2014_v39 = vld [vmem:[%s3183_s7 + $0x1f0] sm:$0xff]  ;;  %2392 = vst.msk [vmem:[%s3183_s7 + $0x180] sm:$0xff] %vm2343_vm6, %v2263_v56  ;;  %v2268_v4 = vmax.f32 %v2140_v60, 0.0  ;;  %v2144_v15 = vadd.f32 %v4605_v57, %v2009_v11  ;;  %v2145_v59 = vadd.f32 %v4605_v57, %v2010_v29 }
 0x202   : > { %2393 = vst.msk [vmem:[%s3183_s7 + $0x188] sm:$0xff] %vm2343_vm6, %v2264_v54  ;;  %v2269_v2 = vmax.f32 %v2141_v20, 0.0  ;;  %v2015_v19 = vld [vmem:[%s3183_s7 + $0x1f8] sm:$0xff]  ;;  %2394 = vst.msk [vmem:[%s3183_s7 + $0x190] sm:$0xff] %vm2343_vm6, %v2265_v58  ;;  %v2270_v22 = vmax.f32 %v2142_v35, 0.0  ;;  %v2146_v17 = vadd.f32 %v4605_v57, %v2011_v18  ;;  %v2147_v1 = vadd.f32 %v4605_v57, %v2012_v24  ;;  %v2016_v63 = vld [vmem:[%s3183_s7 + $0x200] sm:$0xff] }
 0x203   : > { %2395 = vst.msk [vmem:[%s3183_s7 + $0x198] sm:$0xff] %vm2343_vm6, %v2266_v0  ;;  %2396 = vst.msk [vmem:[%s3183_s7 + $0x1a0] sm:$0xff] %vm2343_vm6, %v2267_v62  ;;  %v2017_v23 = vld [vmem:[%s3183_s7 + $0x208] sm:$0xff]  ;;  %v2271_v25 = vmax.f32 %v2143_v61, 0.0  ;;  %v2272_v26 = vmax.f32 %v2144_v15, 0.0  ;;  %v2148_v28 = vadd.f32 %v4605_v57, %v2013_v37  ;;  %v2149_v5 = vadd.f32 %v4605_v57, %v2014_v39  ;;  %v2018_v13 = vld [vmem:[%s3183_s7 + $0x210] sm:$0xff] }
 0x204   : > { %2397 = vst.msk [vmem:[%s3183_s7 + $0x1a8] sm:$0xff] %vm2343_vm6, %v2268_v4  ;;  %2398 = vst.msk [vmem:[%s3183_s7 + $0x1b0] sm:$0xff] %vm2343_vm6, %v2269_v2  ;;  %v2019_v3 = vld [vmem:[%s3183_s7 + $0x218] sm:$0xff]  ;;  %v2020_v27 = vld [vmem:[%s3183_s7 + $0x220] sm:$0xff]  ;;  %v2273_v32 = vmax.f32 %v2145_v59, 0.0  ;;  %v2274_v30 = vmax.f32 %v2146_v17, 0.0  ;;  %v2150_v55 = vadd.f32 %v4605_v57, %v2015_v19  ;;  %v2151_v33 = vadd.f32 %v4605_v57, %v2016_v63 }
 0x205   : > { %2399 = vst.msk [vmem:[%s3183_s7 + $0x1b8] sm:$0xff] %vm2343_vm6, %v2270_v22  ;;  %v2275_v36 = vmax.f32 %v2147_v1, 0.0  ;;  %v2021_v53 = vld [vmem:[%s3183_s7 + $0x228] sm:$0xff]  ;;  %v2022_v51 = vld [vmem:[%s3183_s7 + $0x230] sm:$0xff]  ;;  %2400 = vst.msk [vmem:[%s3183_s7 + $0x1c0] sm:$0xff] %vm2343_vm6, %v2271_v25  ;;  %v2276_v7 = vmax.f32 %v2148_v28, 0.0  ;;  %v2152_v49 = vadd.f32 %v4605_v57, %v2017_v23  ;;  %v2153_v45 = vadd.f32 %v4605_v57, %v2018_v13 }
 0x206   : > { %2401 = vst.msk [vmem:[%s3183_s7 + $0x1c8] sm:$0xff] %vm2343_vm6, %v2272_v26  ;;  %v2277_v31 = vmax.f32 %v2149_v5, 0.0  ;;  %v2023_v47 = vld [vmem:[%s3183_s7 + $0x238] sm:$0xff]  ;;  %2402 = vst.msk [vmem:[%s3183_s7 + $0x1d0] sm:$0xff] %vm2343_vm6, %v2273_v32  ;;  %v2278_v34 = vmax.f32 %v2150_v55, 0.0  ;;  %v2154_v40 = vadd.f32 %v4605_v57, %v2019_v3  ;;  %v2155_v38 = vadd.f32 %v4605_v57, %v2020_v27  ;;  %v2024_v8 = vld [vmem:[%s3183_s7 + $0x240] sm:$0xff] }
 0x207   : > { %2403 = vst.msk [vmem:[%s3183_s7 + $0x1d8] sm:$0xff] %vm2343_vm6, %v2274_v30  ;;  %2404 = vst.msk [vmem:[%s3183_s7 + $0x1e0] sm:$0xff] %vm2343_vm6, %v2275_v36  ;;  %v2025_v9 = vld [vmem:[%s3183_s7 + $0x248] sm:$0xff]  ;;  %v2279_v43 = vmax.f32 %v2151_v33, 0.0  ;;  %v2280_v6 = vmax.f32 %v2152_v49, 0.0  ;;  %v2156_v41 = vadd.f32 %v4605_v57, %v2021_v53  ;;  %v2157_v44 = vadd.f32 %v4605_v57, %v2022_v51  ;;  %v2026_v42 = vld [vmem:[%s3183_s7 + $0x250] sm:$0xff] }
 0x208   : > { %2405 = vst.msk [vmem:[%s3183_s7 + $0x1e8] sm:$0xff] %vm2343_vm6, %v2276_v7  ;;  %2406 = vst.msk [vmem:[%s3183_s7 + $0x1f0] sm:$0xff] %vm2343_vm6, %v2277_v31  ;;  %v2027_v48 = vld [vmem:[%s3183_s7 + $0x258] sm:$0xff]  ;;  %v2028_v10 = vld [vmem:[%s3183_s7 + $0x260] sm:$0xff]  ;;  %v2281_v12 = vmax.f32 %v2153_v45, 0.0  ;;  %v2282_v14 = vmax.f32 %v2154_v40, 0.0  ;;  %v2158_v52 = vadd.f32 %v4605_v57, %v2023_v47  ;;  %v2159_v56 = vadd.f32 %v4605_v57, %v2024_v8 }
 0x209   : > { %2407 = vst.msk [vmem:[%s3183_s7 + $0x1f8] sm:$0xff] %vm2343_vm6, %v2278_v34  ;;  %v2283_v46 = vmax.f32 %v2155_v38, 0.0  ;;  %v2029_v50 = vld [vmem:[%s3183_s7 + $0x268] sm:$0xff]  ;;  %v2030_v16 = vld [vmem:[%s3183_s7 + $0x270] sm:$0xff]  ;;  %2408 = vst.msk [vmem:[%s3183_s7 + $0x200] sm:$0xff] %vm2343_vm6, %v2279_v43  ;;  %v2284_v21 = vmax.f32 %v2156_v41, 0.0  ;;  %v2160_v54 = vadd.f32 %v4605_v57, %v2025_v9  ;;  %v2161_v29 = vadd.f32 %v4605_v57, %v2026_v42 }
 0x20a   : > { %2409 = vst.msk [vmem:[%s3183_s7 + $0x208] sm:$0xff] %vm2343_vm6, %v2280_v6  ;;  %v2285_v11 = vmax.f32 %v2157_v44, 0.0  ;;  %v2031_v60 = vld [vmem:[%s3183_s7 + $0x278] sm:$0xff]  ;;  %2410 = vst.msk [vmem:[%s3183_s7 + $0x210] sm:$0xff] %vm2343_vm6, %v2281_v12  ;;  %v2286_v20 = vmax.f32 %v2158_v52, 0.0  ;;  %v2162_v18 = vadd.f32 %v4605_v57, %v2027_v48  ;;  %v2163_v24 = vadd.f32 %v4605_v57, %v2028_v10  ;;  %v2032_v58 = vld [vmem:[%s3183_s7 + $0x280] sm:$0xff] }
 0x20b   : > { %2411 = vst.msk [vmem:[%s3183_s7 + $0x218] sm:$0xff] %vm2343_vm6, %v2282_v14  ;;  %2412 = vst.msk [vmem:[%s3183_s7 + $0x220] sm:$0xff] %vm2343_vm6, %v2283_v46  ;;  %v2033_v0 = vld [vmem:[%s3183_s7 + $0x288] sm:$0xff]  ;;  %v2287_v62 = vmax.f32 %v2159_v56, 0.0  ;;  %v2288_v35 = vmax.f32 %v2160_v54, 0.0  ;;  %v2164_v37 = vadd.f32 %v4605_v57, %v2029_v50  ;;  %v2165_v39 = vadd.f32 %v4605_v57, %v2030_v16  ;;  %v2034_v4 = vld [vmem:[%s3183_s7 + $0x290] sm:$0xff] }
 0x20c   : > { %2413 = vst.msk [vmem:[%s3183_s7 + $0x228] sm:$0xff] %vm2343_vm6, %v2284_v21  ;;  %2414 = vst.msk [vmem:[%s3183_s7 + $0x230] sm:$0xff] %vm2343_vm6, %v2285_v11  ;;  %v2035_v2 = vld [vmem:[%s3183_s7 + $0x298] sm:$0xff]  ;;  %v2036_v61 = vld [vmem:[%s3183_s7 + $0x2a0] sm:$0xff]  ;;  %v2289_v15 = vmax.f32 %v2161_v29, 0.0  ;;  %v2290_v19 = vmax.f32 %v2162_v18, 0.0  ;;  %v2166_v59 = vadd.f32 %v4605_v57, %v2031_v60  ;;  %v2167_v25 = vadd.f32 %v4605_v57, %v2032_v58 }
 0x20d   : > { %2415 = vst.msk [vmem:[%s3183_s7 + $0x238] sm:$0xff] %vm2343_vm6, %v2286_v20  ;;  %v2291_v22 = vmax.f32 %v2163_v24, 0.0  ;;  %v2037_v17 = vld [vmem:[%s3183_s7 + $0x2a8] sm:$0xff]  ;;  %v2038_v1 = vld [vmem:[%s3183_s7 + $0x2b0] sm:$0xff]  ;;  %2416 = vst.msk [vmem:[%s3183_s7 + $0x240] sm:$0xff] %vm2343_vm6, %v2287_v62  ;;  %v2292_v63 = vmax.f32 %v2164_v37, 0.0  ;;  %v2168_v26 = vadd.f32 %v4605_v57, %v2033_v0  ;;  %v2169_v13 = vadd.f32 %v4605_v57, %v2034_v4 }
 0x20e   : > { %2417 = vst.msk [vmem:[%s3183_s7 + $0x248] sm:$0xff] %vm2343_vm6, %v2288_v35  ;;  %v2293_v23 = vmax.f32 %v2165_v39, 0.0  ;;  %v2039_v28 = vld [vmem:[%s3183_s7 + $0x2b8] sm:$0xff]  ;;  %2418 = vst.msk [vmem:[%s3183_s7 + $0x250] sm:$0xff] %vm2343_vm6, %v2289_v15  ;;  %v2294_v5 = vmax.f32 %v2166_v59, 0.0  ;;  %v2170_v3 = vadd.f32 %v4605_v57, %v2035_v2  ;;  %v2171_v27 = vadd.f32 %v4605_v57, %v2036_v61  ;;  %v2040_v32 = vld [vmem:[%s3183_s7 + $0x2c0] sm:$0xff] }
 0x20f   : > { %2419 = vst.msk [vmem:[%s3183_s7 + $0x258] sm:$0xff] %vm2343_vm6, %v2290_v19  ;;  %2420 = vst.msk [vmem:[%s3183_s7 + $0x260] sm:$0xff] %vm2343_vm6, %v2291_v22  ;;  %v2041_v30 = vld [vmem:[%s3183_s7 + $0x2c8] sm:$0xff]  ;;  %v2295_v36 = vmax.f32 %v2167_v25, 0.0  ;;  %v2296_v55 = vmax.f32 %v2168_v26, 0.0  ;;  %v2172_v53 = vadd.f32 %v4605_v57, %v2037_v17  ;;  %v2173_v51 = vadd.f32 %v4605_v57, %v2038_v1  ;;  %v2042_v7 = vld [vmem:[%s3183_s7 + $0x2d0] sm:$0xff] }
 0x210   : > { %2421 = vst.msk [vmem:[%s3183_s7 + $0x268] sm:$0xff] %vm2343_vm6, %v2292_v63  ;;  %2422 = vst.msk [vmem:[%s3183_s7 + $0x270] sm:$0xff] %vm2343_vm6, %v2293_v23  ;;  %v2043_v31 = vld [vmem:[%s3183_s7 + $0x2d8] sm:$0xff]  ;;  %v2044_v33 = vld [vmem:[%s3183_s7 + $0x2e0] sm:$0xff]  ;;  %v2297_v49 = vmax.f32 %v2169_v13, 0.0  ;;  %v2298_v47 = vmax.f32 %v2170_v3, 0.0  ;;  %v2174_v45 = vadd.f32 %v4605_v57, %v2039_v28  ;;  %v2175_v43 = vadd.f32 %v4605_v57, %v2040_v32 }
 0x211   : > { %2423 = vst.msk [vmem:[%s3183_s7 + $0x278] sm:$0xff] %vm2343_vm6, %v2294_v5  ;;  %v2299_v34 = vmax.f32 %v2171_v27, 0.0  ;;  %v2045_v40 = vld [vmem:[%s3183_s7 + $0x2e8] sm:$0xff]  ;;  %v2046_v38 = vld [vmem:[%s3183_s7 + $0x2f0] sm:$0xff]  ;;  %2424 = vst.msk [vmem:[%s3183_s7 + $0x280] sm:$0xff] %vm2343_vm6, %v2295_v36  ;;  %v2300_v8 = vmax.f32 %v2172_v53, 0.0  ;;  %v2176_v6 = vadd.f32 %v4605_v57, %v2041_v30  ;;  %v2177_v42 = vadd.f32 %v4605_v57, %v2042_v7 }
 0x212   : > { %2425 = vst.msk [vmem:[%s3183_s7 + $0x288] sm:$0xff] %vm2343_vm6, %v2296_v55  ;;  %v2301_v9 = vmax.f32 %v2173_v51, 0.0  ;;  %v2047_v41 = vld [vmem:[%s3183_s7 + $0x2f8] sm:$0xff]  ;;  %2426 = vst.msk [vmem:[%s3183_s7 + $0x290] sm:$0xff] %vm2343_vm6, %v2297_v49  ;;  %v2302_v44 = vmax.f32 %v2174_v45, 0.0  ;;  %v2178_v48 = vadd.f32 %v4605_v57, %v2043_v31  ;;  %v2179_v10 = vadd.f32 %v4605_v57, %v2044_v33  ;;  %v2048_v12 = vld [vmem:[%s3183_s7 + $0x300] sm:$0xff] }
 0x213   : > { %2427 = vst.msk [vmem:[%s3183_s7 + $0x298] sm:$0xff] %vm2343_vm6, %v2298_v47  ;;  %2428 = vst.msk [vmem:[%s3183_s7 + $0x2a0] sm:$0xff] %vm2343_vm6, %v2299_v34  ;;  %v2049_v14 = vld [vmem:[%s3183_s7 + $0x308] sm:$0xff]  ;;  %v2303_v46 = vmax.f32 %v2175_v43, 0.0  ;;  %v2304_v52 = vmax.f32 %v2176_v6, 0.0  ;;  %v2180_v50 = vadd.f32 %v4605_v57, %v2045_v40  ;;  %v2181_v16 = vadd.f32 %v4605_v57, %v2046_v38  ;;  %v2050_v21 = vld [vmem:[%s3183_s7 + $0x310] sm:$0xff] }
 0x214   : > { %2429 = vst.msk [vmem:[%s3183_s7 + $0x2a8] sm:$0xff] %vm2343_vm6, %v2300_v8  ;;  %2430 = vst.msk [vmem:[%s3183_s7 + $0x2b0] sm:$0xff] %vm2343_vm6, %v2301_v9  ;;  %v2051_v11 = vld [vmem:[%s3183_s7 + $0x318] sm:$0xff]  ;;  %v2052_v56 = vld [vmem:[%s3183_s7 + $0x320] sm:$0xff]  ;;  %v2305_v54 = vmax.f32 %v2177_v42, 0.0  ;;  %v2306_v60 = vmax.f32 %v2178_v48, 0.0  ;;  %v2182_v29 = vadd.f32 %v4605_v57, %v2047_v41  ;;  %v2183_v62 = vadd.f32 %v4605_v57, %v2048_v12 }
 0x215   : > { %2431 = vst.msk [vmem:[%s3183_s7 + $0x2b8] sm:$0xff] %vm2343_vm6, %v2302_v44  ;;  %v2307_v20 = vmax.f32 %v2179_v10, 0.0  ;;  %v2053_v18 = vld [vmem:[%s3183_s7 + $0x328] sm:$0xff]  ;;  %v2054_v24 = vld [vmem:[%s3183_s7 + $0x330] sm:$0xff]  ;;  %2432 = vst.msk [vmem:[%s3183_s7 + $0x2c0] sm:$0xff] %vm2343_vm6, %v2303_v46  ;;  %v2308_v58 = vmax.f32 %v2180_v50, 0.0  ;;  %v2184_v35 = vadd.f32 %v4605_v57, %v2049_v14  ;;  %v2185_v4 = vadd.f32 %v4605_v57, %v2050_v21 }
 0x216   : > { %2433 = vst.msk [vmem:[%s3183_s7 + $0x2c8] sm:$0xff] %vm2343_vm6, %v2304_v52  ;;  %v2309_v0 = vmax.f32 %v2181_v16, 0.0  ;;  %v2055_v37 = vld [vmem:[%s3183_s7 + $0x338] sm:$0xff]  ;;  %2434 = vst.msk [vmem:[%s3183_s7 + $0x2d0] sm:$0xff] %vm2343_vm6, %v2305_v54  ;;  %v2310_v39 = vmax.f32 %v2182_v29, 0.0  ;;  %v2186_v2 = vadd.f32 %v4605_v57, %v2051_v11  ;;  %v2187_v61 = vadd.f32 %v4605_v57, %v2052_v56  ;;  %v2056_v15 = vld [vmem:[%s3183_s7 + $0x340] sm:$0xff] }
 0x217   : > { %2435 = vst.msk [vmem:[%s3183_s7 + $0x2d8] sm:$0xff] %vm2343_vm6, %v2306_v60  ;;  %2436 = vst.msk [vmem:[%s3183_s7 + $0x2e0] sm:$0xff] %vm2343_vm6, %v2307_v20  ;;  %v2057_v19 = vld [vmem:[%s3183_s7 + $0x348] sm:$0xff]  ;;  %v2311_v22 = vmax.f32 %v2183_v62, 0.0  ;;  %v2312_v59 = vmax.f32 %v2184_v35, 0.0  ;;  %v2188_v17 = vadd.f32 %v4605_v57, %v2053_v18  ;;  %v2189_v1 = vadd.f32 %v4605_v57, %v2054_v24  ;;  %v2058_v63 = vld [vmem:[%s3183_s7 + $0x350] sm:$0xff] }
 0x218   : > { %2437 = vst.msk [vmem:[%s3183_s7 + $0x2e8] sm:$0xff] %vm2343_vm6, %v2308_v58  ;;  %2438 = vst.msk [vmem:[%s3183_s7 + $0x2f0] sm:$0xff] %vm2343_vm6, %v2309_v0  ;;  %v2059_v23 = vld [vmem:[%s3183_s7 + $0x358] sm:$0xff]  ;;  %v2060_v25 = vld [vmem:[%s3183_s7 + $0x360] sm:$0xff]  ;;  %v2313_v26 = vmax.f32 %v2185_v4, 0.0  ;;  %v2314_v28 = vmax.f32 %v2186_v2, 0.0  ;;  %v2190_v13 = vadd.f32 %v4605_v57, %v2055_v37  ;;  %v2191_v36 = vadd.f32 %v4605_v57, %v2056_v15 }
 0x219   : > { %2439 = vst.msk [vmem:[%s3183_s7 + $0x2f8] sm:$0xff] %vm2343_vm6, %v2310_v39  ;;  %v2315_v5 = vmax.f32 %v2187_v61, 0.0  ;;  %v2061_v3 = vld [vmem:[%s3183_s7 + $0x368] sm:$0xff]  ;;  %v2062_v27 = vld [vmem:[%s3183_s7 + $0x370] sm:$0xff]  ;;  %2440 = vst.msk [vmem:[%s3183_s7 + $0x300] sm:$0xff] %vm2343_vm6, %v2311_v22  ;;  %v2316_v32 = vmax.f32 %v2188_v17, 0.0  ;;  %v2192_v55 = vadd.f32 %v4605_v57, %v2057_v19  ;;  %v2193_v7 = vadd.f32 %v4605_v57, %v2058_v63 }
 0x21a   : > { %2441 = vst.msk [vmem:[%s3183_s7 + $0x308] sm:$0xff] %vm2343_vm6, %v2312_v59  ;;  %v2317_v30 = vmax.f32 %v2189_v1, 0.0  ;;  %v2063_v53 = vld [vmem:[%s3183_s7 + $0x378] sm:$0xff]  ;;  %2442 = vst.msk [vmem:[%s3183_s7 + $0x310] sm:$0xff] %vm2343_vm6, %v2313_v26  ;;  %v2318_v51 = vmax.f32 %v2190_v13, 0.0  ;;  %v2194_v31 = vadd.f32 %v4605_v57, %v2059_v23  ;;  %v2195_v33 = vadd.f32 %v4605_v57, %v2060_v25  ;;  %v2064_v49 = vld [vmem:[%s3183_s7 + $0x380] sm:$0xff] }
 0x21b   : > { %2443 = vst.msk [vmem:[%s3183_s7 + $0x318] sm:$0xff] %vm2343_vm6, %v2314_v28  ;;  %2444 = vst.msk [vmem:[%s3183_s7 + $0x320] sm:$0xff] %vm2343_vm6, %v2315_v5  ;;  %v2065_v47 = vld [vmem:[%s3183_s7 + $0x388] sm:$0xff]  ;;  %v2319_v34 = vmax.f32 %v2191_v36, 0.0  ;;  %v2320_v45 = vmax.f32 %v2192_v55, 0.0  ;;  %v2196_v40 = vadd.f32 %v4605_v57, %v2061_v3  ;;  %v2197_v38 = vadd.f32 %v4605_v57, %v2062_v27  ;;  %v2066_v8 = vld [vmem:[%s3183_s7 + $0x390] sm:$0xff] }
 0x21c   : > { %2445 = vst.msk [vmem:[%s3183_s7 + $0x328] sm:$0xff] %vm2343_vm6, %v2316_v32  ;;  %2446 = vst.msk [vmem:[%s3183_s7 + $0x330] sm:$0xff] %vm2343_vm6, %v2317_v30  ;;  %v2067_v9 = vld [vmem:[%s3183_s7 + $0x398] sm:$0xff]  ;;  %v2068_v43 = vld [vmem:[%s3183_s7 + $0x3a0] sm:$0xff]  ;;  %v2321_v6 = vmax.f32 %v2193_v7, 0.0  ;;  %v2322_v41 = vmax.f32 %v2194_v31, 0.0  ;;  %v2198_v42 = vadd.f32 %v4605_v57, %v2063_v53  ;;  %v2199_v46 = vadd.f32 %v4605_v57, %v2064_v49 }
 0x21d   : > { %2447 = vst.msk [vmem:[%s3183_s7 + $0x338] sm:$0xff] %vm2343_vm6, %v2318_v51  ;;  %v2323_v44 = vmax.f32 %v2195_v33, 0.0  ;;  %v2069_v48 = vld [vmem:[%s3183_s7 + $0x3a8] sm:$0xff]  ;;  %v2070_v10 = vld [vmem:[%s3183_s7 + $0x3b0] sm:$0xff]  ;;  %2448 = vst.msk [vmem:[%s3183_s7 + $0x340] sm:$0xff] %vm2343_vm6, %v2319_v34  ;;  %v2324_v12 = vmax.f32 %v2196_v40, 0.0  ;;  %v2200_v52 = vadd.f32 %v4605_v57, %v2065_v47  ;;  %v2201_v21 = vadd.f32 %v4605_v57, %v2066_v8 }
 0x21e   : > { %2449 = vst.msk [vmem:[%s3183_s7 + $0x348] sm:$0xff] %vm2343_vm6, %v2320_v45  ;;  %v2325_v14 = vmax.f32 %v2197_v38, 0.0  ;;  %v2071_v50 = vld [vmem:[%s3183_s7 + $0x3b8] sm:$0xff]  ;;  %2450 = vst.msk [vmem:[%s3183_s7 + $0x350] sm:$0xff] %vm2343_vm6, %v2321_v6  ;;  %v2326_v16 = vmax.f32 %v2198_v42, 0.0  ;;  %v2202_v11 = vadd.f32 %v4605_v57, %v2067_v9  ;;  %v2203_v56 = vadd.f32 %v4605_v57, %v2068_v43  ;;  %v2072_v54 = vld [vmem:[%s3183_s7 + $0x3c0] sm:$0xff] }
 0x21f   : > { %2451 = vst.msk [vmem:[%s3183_s7 + $0x358] sm:$0xff] %vm2343_vm6, %v2322_v41  ;;  %2452 = vst.msk [vmem:[%s3183_s7 + $0x360] sm:$0xff] %vm2343_vm6, %v2323_v44  ;;  %v2073_v60 = vld [vmem:[%s3183_s7 + $0x3c8] sm:$0xff]  ;;  %v2327_v20 = vmax.f32 %v2199_v46, 0.0  ;;  %v2328_v29 = vmax.f32 %v2200_v52, 0.0  ;;  %v2204_v18 = vadd.f32 %v4605_v57, %v2069_v48  ;;  %v2205_v24 = vadd.f32 %v4605_v57, %v2070_v10  ;;  %v2074_v58 = vld [vmem:[%s3183_s7 + $0x3d0] sm:$0xff] }
 0x220   : > { %2453 = vst.msk [vmem:[%s3183_s7 + $0x368] sm:$0xff] %vm2343_vm6, %v2324_v12  ;;  %2454 = vst.msk [vmem:[%s3183_s7 + $0x370] sm:$0xff] %vm2343_vm6, %v2325_v14  ;;  %v2075_v0 = vld [vmem:[%s3183_s7 + $0x3d8] sm:$0xff]  ;;  %v2076_v62 = vld [vmem:[%s3183_s7 + $0x3e0] sm:$0xff]  ;;  %v2329_v35 = vmax.f32 %v2201_v21, 0.0  ;;  %v2330_v37 = vmax.f32 %v2202_v11, 0.0  ;;  %v2206_v4 = vadd.f32 %v4605_v57, %v2071_v50  ;;  %v2207_v22 = vadd.f32 %v4605_v57, %v2072_v54 }
 0x221   : > { %2455 = vst.msk [vmem:[%s3183_s7 + $0x378] sm:$0xff] %vm2343_vm6, %v2326_v16  ;;  %v2331_v39 = vmax.f32 %v2203_v56, 0.0  ;;  %v2077_v2 = vld [vmem:[%s3183_s7 + $0x3e8] sm:$0xff]  ;;  %v2078_v61 = vld [vmem:[%s3183_s7 + $0x3f0] sm:$0xff]  ;;  %2456 = vst.msk [vmem:[%s3183_s7 + $0x380] sm:$0xff] %vm2343_vm6, %v2327_v20  ;;  %v2332_v15 = vmax.f32 %v2204_v18, 0.0  ;;  %v2208_v59 = vadd.f32 %v4605_v57, %v2073_v60  ;;  %v2209_v63 = vadd.f32 %v4605_v57, %v2074_v58 }
 0x222   : > { %2457 = vst.msk [vmem:[%s3183_s7 + $0x388] sm:$0xff] %vm2343_vm6, %v2328_v29  ;;  %v2333_v19 = vmax.f32 %v2205_v24, 0.0  ;;  %v2079_v17 = vld [vmem:[%s3183_s7 + $0x3f8] sm:$0xff]  ;;  %2458 = vst.msk [vmem:[%s3183_s7 + $0x390] sm:$0xff] %vm2343_vm6, %v2329_v35  ;;  %v2334_v1 = vmax.f32 %v2206_v4, 0.0  ;;  %v2210_v23 = vadd.f32 %v4605_v57, %v2075_v0  ;;  %v2211_v25 = vadd.f32 %v4605_v57, %v2076_v62 }
 0x223   : > { %2459 = vst.msk [vmem:[%s3183_s7 + $0x398] sm:$0xff] %vm2343_vm6, %v2330_v37  ;;  %2460 = vst.msk [vmem:[%s3183_s7 + $0x3a0] sm:$0xff] %vm2343_vm6, %v2331_v39  ;;  %v2335_v26 = vmax.f32 %v2207_v22, 0.0  ;;  %v2336_v28 = vmax.f32 %v2208_v59, 0.0  ;;  %v2212_v5 = vadd.f32 %v4605_v57, %v2077_v2  ;;  %v2213_v13 = vadd.f32 %v4605_v57, %v2078_v61 }
 0x224   : > { %2461 = vst.msk [vmem:[%s3183_s7 + $0x3a8] sm:$0xff] %vm2343_vm6, %v2332_v15  ;;  %2462 = vst.msk [vmem:[%s3183_s7 + $0x3b0] sm:$0xff] %vm2343_vm6, %v2333_v19  ;;  %v2337_v3 = vmax.f32 %v2209_v63, 0.0  ;;  %v2338_v27 = vmax.f32 %v2210_v23, 0.0  ;;  %v2339_v32 = vmax.f32 %v2211_v25, 0.0  ;;  %v2214_v30 = vadd.f32 %v4605_v57, %v2079_v17 }
 0x225   : > { %2463 = vst.msk [vmem:[%s3183_s7 + $0x3b8] sm:$0xff] %vm2343_vm6, %v2334_v1  ;;  %2464 = vst.msk [vmem:[%s3183_s7 + $0x3c0] sm:$0xff] %vm2343_vm6, %v2335_v26  ;;  %v2340_v36 = vmax.f32 %v2212_v5, 0.0  ;;  %v2341_v55 = vmax.f32 %v2213_v13, 0.0 }
 0x226   : > { %2465 = vst.msk [vmem:[%s3183_s7 + $0x3c8] sm:$0xff] %vm2343_vm6, %v2336_v28  ;;  %2466 = vst.msk [vmem:[%s3183_s7 + $0x3d0] sm:$0xff] %vm2343_vm6, %v2337_v3  ;;  %v2342_v53 = vmax.f32 %v2214_v30, 0.0 }
 0x227   : > { %2467 = vst.msk [vmem:[%s3183_s7 + $0x3d8] sm:$0xff] %vm2343_vm6, %v2338_v27  ;;  %2468 = vst.msk [vmem:[%s3183_s7 + $0x3e0] sm:$0xff] %vm2343_vm6, %v2339_v32 }
 0x228   : > { %2469 = vst.msk [vmem:[%s3183_s7 + $0x3e8] sm:$0xff] %vm2343_vm6, %v2340_v36  ;;  %2470 = vst.msk [vmem:[%s3183_s7 + $0x3f0] sm:$0xff] %vm2343_vm6, %v2341_v55 }
 0x229   : > { %2471 = vst.msk [vmem:[%s3183_s7 + $0x3f8] sm:$0xff] %vm2343_vm6, %v2342_v53 }
 0x22a PF: > { %s13_s16 = sadd.s32 1, %s3112_s16   ;;  %s5365_s12 = smov %s3104_s14 }
 0x22b   : > { %p10_p10 = scmp.ge.s32.totalorder %s13_s16, 10   ;;  %s5366_s13 = smov %s3108_s15 }
 0x22c   : > { %s5367_s14 = smov %s5370_s17  ;;  %s5368_s15 = smov %s5374_s18 }
 0x22d   :  { %12 = sbr.rel (!%p10_p10) target bundleno = 3 (0x3), region = 74 }

// kernel: cnn_forward.5
= control target key start
LH: loop header
LB: loop body
LE: loop exit
PB: predicated region body
PF: predicated region fallthrough
CT: control target
= control target key end

     0   :  { %s2952_s12 = smov 0   ;;  %s2954_s13 = smov 0   ;;  %s4764_s0 = inlined_call_operand.vmem [shape: f32[1376,800], index: 0, kind: input, shape index: {}]   ;;  %s4765_s1 = inlined_call_operand.vmem [shape: f32[800,32], index: 1, kind: input, shape index: {}]   ;;  %s4766_s2 = inlined_call_operand.vmem [shape: f32[1,32], index: 2, kind: input, shape index: {}]   ;;  %s4767_s3 = inlined_call_operand.vmem [shape: f32[344,32], index: 3, kind: output, shape index: {}]  }
   0x1   :  { %s2956_s14 = smov 0  }
   0x2 LB: > { %s22_s15 = sadd.s32 1, %s2923_s13  ;;  %p2275_p0 = scmp.ge.s32.totalorder %s2927_s14, 1  ;;  %s2927_s14 = sphi %s2956_s14, %s13_s14   ;;  %s2923_s13 = sphi %s2954_s13, %s4769_s13   ;;  %s2919_s12 = sphi %s2952_s12, %s4768_s12  }
   0x3   : > { %p23_p1 = scmp.ge.s32.totalorder %s22_s15, 4  ;;  %p155_p2 = scmp.lt.s32.totalorder %s2927_s14, 5 }
   0x5   : > { %s4771_s15 = smov (%p23_p1, %s22_s15), 0  ;;  %p156_p3 = pnand %p2275_p0, %p155_p2 }
   0x6   : > { %v497_v0 = vld [vmem:[%s4765_s1] sm:$0xff] (!%p156_p3)  ;;  %v498_v1 = vld [vmem:[%s4765_s1 + $0x8] sm:$0xff] (!%p156_p3)  ;;  %v2929_v3 = vmov (!%p156_p3), 0.0|0.0   ;;  %v499_v6 = vld [vmem:[%s4765_s1 + $0x10] sm:$0xff] (!%p156_p3)  ;;  %s182_s5 = smul.u32 (!%p156_p3), 43, %s2919_s12  ;;  %vm2930_vm0 = vmmov (!%p156_p3), 0  }
   0x7   : > { %159 = sbr.rel (%p156_p3) target bundleno = 682 (0x2aa), region = 32  ;;  %v561_v2 = vld [vmem:[%s4765_s1 + $0x200] sm:$0xff] (!%p156_p3)  ;;  %2512 = vmatprep.subr.bf16.mxu1 (!%p156_p3), %v2929_v3  ;;  %2608 = vmatprep.subr.bf16.mxu0 (!%p156_p3), %v2929_v3  ;;  %v2513_v4 = vpack.c.bf16 (!%p156_p3), %v498_v1, %v497_v0  ;;  %v562_v5 = vld [vmem:[%s4765_s1 + $0x208] sm:$0xff] (!%p156_p3)  ;;  %v500_v7 = vld [vmem:[%s4765_s1 + $0x18] sm:$0xff] (!%p156_p3)  ;;  %vm597_vm1 = vcmask (!%p156_p3), 261120   ;;  %p2320_p5 = scmp.ne.s32.totalorder (!%p156_p3), %s2919_s12, 0 }
   0x8   : > { %v2609_v8 = vpack.c.bf16 (!%p156_p3), %v562_v5, %v561_v2  ;;  %v563_v9 = vld [vmem:[%s4765_s1 + $0x210] sm:$0xff] (!%p156_p3)  ;;  %v564_v10 = vld [vmem:[%s4765_s1 + $0x218] sm:$0xff] (!%p156_p3)  ;;  %v2516_v11 = vpack.c.bf16 (!%p156_p3), %v500_v7, %v499_v6  ;;  %v501_v13 = vld [vmem:[%s4765_s1 + $0x20] sm:$0xff] (!%p156_p3)  ;;  %p183_p4 = scmp.lt.s32.totalorder (!%p156_p3), %s182_s5, 171 }
   0x9   : > { %2514 = vmatpush1.bf16.msra.mxu1 (!%p156_p3), %v2513_v4  ;;  %v2612_v12 = vpack.c.bf16 (!%p156_p3), %v564_v10, %v563_v9  ;;  %v502_v14 = vld [vmem:[%s4765_s1 + $0x28] sm:$0xff] (!%p156_p3)  ;;  %v565_v15 = vld [vmem:[%s4765_s1 + $0x220] sm:$0xff] (!%p156_p3)  ;;  %v503_v19 = vld [vmem:[%s4765_s1 + $0x30] sm:$0xff] (!%p156_p3) }
   0xa   : > { %2610 = vmatpush1.bf16.msra.mxu0 (!%p156_p3), %v2609_v8  ;;  %2515 = vmatprep.subr.bf16.mxu1 (!%p156_p3), %v2929_v3  ;;  %v566_v16 = vld [vmem:[%s4765_s1 + $0x228] sm:$0xff] (!%p156_p3)  ;;  %v2519_v17 = vpack.c.bf16 (!%p156_p3), %v502_v14, %v501_v13  ;;  %v504_v20 = vld [vmem:[%s4765_s1 + $0x38] sm:$0xff] (!%p156_p3)  ;;  %v567_v21 = vld [vmem:[%s4765_s1 + $0x230] sm:$0xff] (!%p156_p3) }
   0xb   : > { %2611 = vmatprep.subr.bf16.mxu0 (!%p156_p3), %v2929_v3  ;;  %v2615_v18 = vpack.c.bf16 (!%p156_p3), %v566_v16, %v565_v15  ;;  %v568_v22 = vld [vmem:[%s4765_s1 + $0x238] sm:$0xff] (!%p156_p3)  ;;  %v2522_v23 = vpack.c.bf16 (!%p156_p3), %v504_v20, %v503_v19  ;;  %v505_v25 = vld [vmem:[%s4765_s1 + $0x40] sm:$0xff] (!%p156_p3)  ;;  %v506_v26 = vld [vmem:[%s4765_s1 + $0x48] sm:$0xff] (!%p156_p3) }
   0xc   : > { %v2618_v24 = vpack.c.bf16 (!%p156_p3), %v568_v22, %v567_v21  ;;  %v569_v27 = vld [vmem:[%s4765_s1 + $0x240] sm:$0xff] (!%p156_p3)  ;;  %v570_v28 = vld [vmem:[%s4765_s1 + $0x248] sm:$0xff] (!%p156_p3)  ;;  %v2525_v29 = vpack.c.bf16 (!%p156_p3), %v506_v26, %v505_v25  ;;  %v507_v31 = vld [vmem:[%s4765_s1 + $0x50] sm:$0xff] (!%p156_p3) }
   0xd   : > { %2517 = vmatpush1.bf16.msra.mxu1 (!%p156_p3), %v2516_v11  ;;  %v2621_v30 = vpack.c.bf16 (!%p156_p3), %v570_v28, %v569_v27  ;;  %v508_v32 = vld [vmem:[%s4765_s1 + $0x58] sm:$0xff] (!%p156_p3)  ;;  %v571_v33 = vld [vmem:[%s4765_s1 + $0x250] sm:$0xff] (!%p156_p3)  ;;  %v509_v37 = vld [vmem:[%s4765_s1 + $0x60] sm:$0xff] (!%p156_p3) }
   0xe   : > { %2613 = vmatpush1.bf16.msra.mxu0 %v2612_v12  ;;  %2518 = vmatprep.subr.bf16.mxu1 %v2929_v3  ;;  %s4773_s5 = smov (!%p183_p4, %s182_s5), 171  ;;  %v572_v34 = vld [vmem:[%s4765_s1 + $0x258] sm:$0xff]  ;;  %v2528_v35 = vpack.c.bf16 %v508_v32, %v507_v31  ;;  %v510_v38 = vld [vmem:[%s4765_s1 + $0x68] sm:$0xff]  ;;  %v573_v39 = vld [vmem:[%s4765_s1 + $0x260] sm:$0xff] }
   0xf   : > { %2614 = vmatprep.subr.bf16.mxu0 %v2929_v3  ;;  %s2877_s8 = smul.u32 56, %s4773_s5  ;;  %v2624_v36 = vpack.c.bf16 %v572_v34, %v571_v33  ;;  %v574_v40 = vld [vmem:[%s4765_s1 + $0x268] sm:$0xff]  ;;  %v2531_v43 = vpack.c.bf16 %v510_v38, %v509_v37  ;;  %v511_v45 = vld [vmem:[%s4765_s1 + $0x70] sm:$0xff]  ;;  %v512_v46 = vld [vmem:[%s4765_s1 + $0x78] sm:$0xff] }
  0x10   : > { %v2627_v44 = vpack.c.bf16 %v574_v40, %v573_v39  ;;  %v575_v47 = vld [vmem:[%s4765_s1 + $0x270] sm:$0xff]  ;;  %v576_v48 = vld [vmem:[%s4765_s1 + $0x278] sm:$0xff]  ;;  %v2534_v49 = vpack.c.bf16 %v512_v46, %v511_v45  ;;  %v513_v51 = vld [vmem:[%s4765_s1 + $0x80] sm:$0xff] }
  0x11   : > { %2520 = vmatpush1.bf16.msra.mxu1 %v2519_v17  ;;  %s3058_s22 = scalar_lea.vmem %s4764_s0, %s2877_s8  ;;  %v2630_v50 = vpack.c.bf16 %v576_v48, %v575_v47  ;;  %v514_v52 = vld [vmem:[%s4765_s1 + $0x88] sm:$0xff]  ;;  %v577_v53 = vld [vmem:[%s4765_s1 + $0x280] sm:$0xff]  ;;  %v515_v57 = vld [vmem:[%s4765_s1 + $0x90] sm:$0xff] }
  0x12   : > { %2616 = vmatpush1.bf16.msra.mxu0 %v2615_v18  ;;  %2521 = vmatprep.subr.bf16.mxu1 %v2929_v3  ;;  %v197_v41 = vld [vmem:[%s3058_s22 + $0x8] sm:$0xff]  ;;  %v2537_v55 = vpack.c.bf16 %v514_v52, %v513_v51  ;;  %v516_v58 = vld [vmem:[%s4765_s1 + $0x98] sm:$0xff]  ;;  %v579_v59 = vld [vmem:[%s4765_s1 + $0x290] sm:$0xff] }
  0x13   : > { %2617 = vmatprep.subr.bf16.mxu0 %v2929_v3  ;;  %v201_v42 = vld [vmem:[%s3058_s22 + $0x28] sm:$0xff]  ;;  %791 = vmatprep.mubr.f32.mxu1 %v197_v41  ;;  %v580_v60 = vld [vmem:[%s4765_s1 + $0x298] sm:$0xff]  ;;  %v2540_v61 = vpack.c.bf16 %v516_v58, %v515_v57  ;;  %v517_v63 = vld [vmem:[%s4765_s1 + $0xa0] sm:$0xff] }
  0x14   : > { %1351 = vmatprep.mubr.f32.mxu0 %v201_v42  ;;  %v578_v54 = vld [vmem:[%s4765_s1 + $0x288] sm:$0xff]  ;;  %v2636_v62 = vpack.c.bf16 %v580_v60, %v579_v59  ;;  %v581_v1 = vld [vmem:[%s4765_s1 + $0x2a0] sm:$0xff]  ;;  %v519_v6 = vld [vmem:[%s4765_s1 + $0xb0] sm:$0xff] }
  0x15   : > { %2523 = vmatpush1.bf16.msra.mxu1 %v2522_v23  ;;  %v2633_v56 = vpack.c.bf16 %v578_v54, %v577_v53  ;;  %v518_v0 = vld [vmem:[%s4765_s1 + $0xa8] sm:$0xff]  ;;  %v520_v7 = vld [vmem:[%s4765_s1 + $0xb8] sm:$0xff]  ;;  %v583_v8 = vld [vmem:[%s4765_s1 + $0x2b0] sm:$0xff] }
  0x16   : > { %2619 = vmatpush1.bf16.msra.mxu0 %v2618_v24  ;;  %2524 = vmatprep.subr.bf16.mxu1 %v2929_v3  ;;  %v582_v2 = vld [vmem:[%s4765_s1 + $0x2a8] sm:$0xff]  ;;  %v2543_v4 = vpack.c.bf16 %v518_v0, %v517_v63  ;;  %v584_v9 = vld [vmem:[%s4765_s1 + $0x2b8] sm:$0xff]  ;;  %v2546_v10 = vpack.c.bf16 %v520_v7, %v519_v6  ;;  %v521_v12 = vld [vmem:[%s4765_s1 + $0xc0] sm:$0xff] }
  0x17   : > { %2620 = vmatprep.subr.bf16.mxu0 %v2929_v3  ;;  %v2639_v5 = vpack.c.bf16 %v582_v2, %v581_v1  ;;  %v2642_v11 = vpack.c.bf16 %v584_v9, %v583_v8  ;;  %v522_v13 = vld [vmem:[%s4765_s1 + $0xc8] sm:$0xff]  ;;  %v585_v14 = vld [vmem:[%s4765_s1 + $0x2c0] sm:$0xff]  ;;  %v523_v18 = vld [vmem:[%s4765_s1 + $0xd0] sm:$0xff] }
  0x18   : > { %v586_v15 = vld [vmem:[%s4765_s1 + $0x2c8] sm:$0xff]  ;;  %v2549_v16 = vpack.c.bf16 %v522_v13, %v521_v12  ;;  %v524_v19 = vld [vmem:[%s4765_s1 + $0xd8] sm:$0xff]  ;;  %v587_v20 = vld [vmem:[%s4765_s1 + $0x2d0] sm:$0xff] }
  0x19   : > { %2526 = vmatpush1.bf16.msra.mxu1 %v2525_v29  ;;  %v2645_v17 = vpack.c.bf16 %v586_v15, %v585_v14  ;;  %v588_v21 = vld [vmem:[%s4765_s1 + $0x2d8] sm:$0xff]  ;;  %v2552_v22 = vpack.c.bf16 %v524_v19, %v523_v18  ;;  %v525_v24 = vld [vmem:[%s4765_s1 + $0xe0] sm:$0xff]  ;;  %v526_v25 = vld [vmem:[%s4765_s1 + $0xe8] sm:$0xff] }
  0x1a   : > { %2622 = vmatpush1.bf16.msra.mxu0 %v2621_v30  ;;  %2527 = vmatprep.subr.bf16.mxu1 %v2929_v3  ;;  %v2648_v23 = vpack.c.bf16 %v588_v21, %v587_v20  ;;  %v589_v26 = vld [vmem:[%s4765_s1 + $0x2e0] sm:$0xff]  ;;  %v590_v27 = vld [vmem:[%s4765_s1 + $0x2e8] sm:$0xff]  ;;  %v2555_v28 = vpack.c.bf16 %v526_v25, %v525_v24  ;;  %v527_v30 = vld [vmem:[%s4765_s1 + $0xf0] sm:$0xff] }
  0x1b   : > { %2623 = vmatprep.subr.bf16.mxu0 %v2929_v3  ;;  %v2651_v29 = vpack.c.bf16 %v590_v27, %v589_v26  ;;  %v528_v31 = vld [vmem:[%s4765_s1 + $0xf8] sm:$0xff]  ;;  %v591_v32 = vld [vmem:[%s4765_s1 + $0x2f0] sm:$0xff]  ;;  %v530_v37 = vld [vmem:[%s4765_s1 + $0x108] sm:$0xff] }
  0x1c   : > { %v592_v33 = vld [vmem:[%s4765_s1 + $0x2f8] sm:$0xff]  ;;  %v2558_v34 = vpack.c.bf16 %v528_v31, %v527_v30  ;;  %v593_v38 = vld [vmem:[%s4765_s1 + $0x300] sm:$0xff]  ;;  %v594_v39 = vld [vmem:[%s4765_s1 + $0x308] sm:$0xff] }
  0x1d   : > { %2529 = vmatpush1.bf16.msra.mxu1 %v2528_v35  ;;  %v2654_v35 = vpack.c.bf16 %v592_v33, %v591_v32  ;;  %v196_v40 = vld [vmem:[%s3058_s22] sm:$0xff]  ;;  %v531_v45 = vld [vmem:[%s4765_s1 + $0x110] sm:$0xff]  ;;  %v532_v46 = vld [vmem:[%s4765_s1 + $0x118] sm:$0xff] }
  0x1e   : > { %2625 = vmatpush1.bf16.msra.mxu0 %v2624_v36  ;;  %2530 = vmatprep.subr.bf16.mxu1 %v2929_v3  ;;  %v529_v36 = vld [vmem:[%s4765_s1 + $0x100] sm:$0xff]  ;;  %v595_v48 = vld [vmem:[%s4765_s1 + $0x310] sm:$0xff]  ;;  %v207_v51 = vld [vmem:[%s3058_s22 + $0x58] sm:$0xff]  ;;  %v2564_v53 = vpack.c.bf16 %v532_v46, %v531_v45 }
  0x1f   : > { %2626 = vmatprep.subr.bf16.mxu0 %v2929_v3  ;;  %v2561_v41 = vpack.c.bf16 %v530_v37, %v529_v36  ;;  %v200_v42 = vld [vmem:[%s3058_s22 + $0x20] sm:$0xff]  ;;  %v211_v52 = vld [vmem:[%s3058_s22 + $0x78] sm:$0xff]  ;;  %v210_v58 = vld [vmem:[%s3058_s22 + $0x70] sm:$0xff] }
  0x20   : > { %v208_v47 = vld [vmem:[%s3058_s22 + $0x60] sm:$0xff]  ;;  %v215_v54 = vld [vmem:[%s3058_s22 + $0x98] sm:$0xff]  ;;  %v214_v59 = vld [vmem:[%s3058_s22 + $0x90] sm:$0xff] }
  0x21   : > { %2532 = vmatpush1.bf16.msra.mxu1 %v2531_v43  ;;  %v2657_v43 = vpack.c.bf16 %v594_v39, %v593_v38  ;;  %v218_v60 = vld [vmem:[%s3058_s22 + $0xb0] sm:$0xff]  ;;  %v536_v0 = vld [vmem:[%s4765_s1 + $0x138] sm:$0xff]  ;;  %v217_v1 = vld [vmem:[%s3058_s22 + $0xa8] sm:$0xff] }
  0x22   : > { %2628 = vmatpush1.bf16.msra.mxu0 %v2627_v44  ;;  %2533 = vmatprep.subr.bf16.mxu1 %v2929_v3  ;;  %v204_v44 = vld [vmem:[%s3058_s22 + $0x40] sm:$0xff]  ;;  %v535_v63 = vld [vmem:[%s4765_s1 + $0x130] sm:$0xff]  ;;  %v221_v2 = vld [vmem:[%s3058_s22 + $0xc8] sm:$0xff] }
  0x23   : > { %2629 = vmatprep.subr.bf16.mxu0 %v2929_v3  ;;  %v229_v6 = vld [vmem:[%s3058_s22 + $0x108] sm:$0xff]  ;;  %v537_v7 = vld [vmem:[%s4765_s1 + $0x140] sm:$0xff]  ;;  %v539_v14 = vld [vmem:[%s4765_s1 + $0x150] sm:$0xff] }
  0x24   : > { %v538_v8 = vld [vmem:[%s4765_s1 + $0x148] sm:$0xff]  ;;  %v224_v9 = vld [vmem:[%s3058_s22 + $0xe0] sm:$0xff]  ;;  %v540_v15 = vld [vmem:[%s4765_s1 + $0x158] sm:$0xff] }
  0x25   : > { %2535 = vmatpush1.bf16.msra.mxu1 %v2534_v49  ;;  %v596_v49 = vld [vmem:[%s4765_s1 + $0x318] sm:$0xff]  ;;  %v2573_v12 = vpack.c.bf16 %v538_v8, %v537_v7  ;;  %v236_v13 = vld [vmem:[%s3058_s22 + $0x140] sm:$0xff]  ;;  %v2576_v19 = vpack.c.bf16 %v540_v15, %v539_v14  ;;  %v242_v24 = vld [vmem:[%s3058_s22 + $0x170] sm:$0xff] }
  0x26   : > { %2631 = vmatpush1.bf16.msra.mxu0 %v2630_v50  ;;  %2536 = vmatprep.subr.bf16.mxu1 %v2929_v3  ;;  %v203_v50 = vld [vmem:[%s3058_s22 + $0x38] sm:$0xff]  ;;  %v2660_v57 = vpack.c.bf16 %v596_v49, %v595_v48  ;;  %v541_v21 = vld [vmem:[%s4765_s1 + $0x160] sm:$0xff]  ;;  %v246_v25 = vld [vmem:[%s3058_s22 + $0x190] sm:$0xff] }
  0x27   : > { %2632 = vmatprep.subr.bf16.mxu0 %v2929_v3  ;;  %v239_v18 = vld [vmem:[%s3058_s22 + $0x158] sm:$0xff]  ;;  %v250_v27 = vld [vmem:[%s3058_s22 + $0x1b0] sm:$0xff]  ;;  %v245_v30 = vld [vmem:[%s3058_s22 + $0x188] sm:$0xff] }
  0x28   : > { %v243_v20 = vld [vmem:[%s3058_s22 + $0x178] sm:$0xff]  ;;  %v249_v31 = vld [vmem:[%s3058_s22 + $0x1a8] sm:$0xff]  ;;  %v252_v37 = vld [vmem:[%s3058_s22 + $0x1c0] sm:$0xff] }
  0x29   : > { %2538 = vmatpush1.bf16.msra.mxu1 %v2537_v55  ;;  %v533_v55 = vld [vmem:[%s4765_s1 + $0x120] sm:$0xff]  ;;  %v253_v32 = vld [vmem:[%s3058_s22 + $0x1c8] sm:$0xff]  ;;  %v263_v45 = vld [vmem:[%s3058_s22 + $0x218] sm:$0xff] }
  0x2a   : > { %2634 = vmatpush1.bf16.msra.mxu0 %v2633_v56  ;;  %2539 = vmatprep.subr.bf16.mxu1 %v2929_v3  ;;  %v534_v56 = vld [vmem:[%s4765_s1 + $0x128] sm:$0xff]  ;;  %v256_v38 = vld [vmem:[%s3058_s22 + $0x1e0] sm:$0xff]  ;;  %v267_v46 = vld [vmem:[%s3058_s22 + $0x238] sm:$0xff] }
  0x2b   : > { %2635 = vmatprep.subr.bf16.mxu0 %v2929_v3  ;;  %v546_v36 = vld [vmem:[%s4765_s1 + $0x188] sm:$0xff]  ;;  %v260_v39 = vld [vmem:[%s3058_s22 + $0x200] sm:$0xff]  ;;  %v271_v48 = vld [vmem:[%s3058_s22 + $0x258] sm:$0xff] }
  0x2c   : > { %v549_v49 = vld [vmem:[%s4765_s1 + $0x1a0] sm:$0xff]  ;;  %v555_v7 = vld [vmem:[%s4765_s1 + $0x1d0] sm:$0xff]  ;;  %v556_v8 = vld [vmem:[%s4765_s1 + $0x1d8] sm:$0xff] }
  0x2d   : > { %2541 = vmatpush1.bf16.msra.mxu1 %v2540_v61  ;;  %v2567_v61 = vpack.c.bf16 %v534_v56, %v533_v55  ;;  %v278_v55 = vld [vmem:[%s3058_s22 + $0x290] sm:$0xff]  ;;  %v557_v14 = vld [vmem:[%s4765_s1 + $0x1e0] sm:$0xff]  ;;  %v558_v15 = vld [vmem:[%s4765_s1 + $0x1e8] sm:$0xff] }
  0x2e   : > { %2637 = vmatpush1.bf16.msra.mxu0 %v2636_v62  ;;  %2542 = vmatprep.subr.bf16.mxu1 %v2929_v3  ;;  %v222_v62 = vld [vmem:[%s3058_s22 + $0xd0] sm:$0xff] }
  0x2f   : > { %2638 = vmatprep.subr.bf16.mxu0 %v2929_v3  ;;  %v551_v56 = vld [vmem:[%s4765_s1 + $0x1b0] sm:$0xff] }
  0x31   : > { %2544 = vmatpush1.bf16.msra.mxu1 %v2543_v4  ;;  %v225_v4 = vld [vmem:[%s3058_s22 + $0xe8] sm:$0xff] }
  0x32   : > { %2640 = vmatpush1.bf16.msra.mxu0 %v2639_v5  ;;  %2545 = vmatprep.subr.bf16.mxu1 %v2929_v3  ;;  %v2570_v5 = vpack.c.bf16 %v536_v0, %v535_v63  ;;  %v553_v63 = vld [vmem:[%s4765_s1 + $0x1c0] sm:$0xff]  ;;  %v554_v0 = vld [vmem:[%s4765_s1 + $0x1c8] sm:$0xff] }
  0x33   : > { %2641 = vmatprep.subr.bf16.mxu0 %v2929_v3 }
  0x35   : > { %2547 = vmatpush1.bf16.msra.mxu1 %v2546_v10  ;;  %v228_v10 = vld [vmem:[%s3058_s22 + $0x100] sm:$0xff] }
  0x36   : > { %2643 = vmatpush1.bf16.msra.mxu0 %v2642_v11  ;;  %2548 = vmatprep.subr.bf16.mxu1 %v2929_v3  ;;  %v232_v11 = vld [vmem:[%s3058_s22 + $0x120] sm:$0xff] }
  0x37   : > { %2644 = vmatprep.subr.bf16.mxu0 %v2929_v3 }
  0x39   : > { %2550 = vmatpush1.bf16.msra.mxu1 %v2549_v16  ;;  %v231_v16 = vld [vmem:[%s3058_s22 + $0x118] sm:$0xff] }
  0x3a   : > { %2646 = vmatpush1.bf16.msra.mxu0 %v2645_v17  ;;  %2551 = vmatprep.subr.bf16.mxu1 %v2929_v3  ;;  %v235_v17 = vld [vmem:[%s3058_s22 + $0x138] sm:$0xff] }
  0x3b   : > { %2647 = vmatprep.subr.bf16.mxu0 %v2929_v3 }
  0x3d   : > { %2553 = vmatpush1.bf16.msra.mxu1 %v2552_v22  ;;  %v542_v22 = vld [vmem:[%s4765_s1 + $0x168] sm:$0xff] }
  0x3e   : > { %2649 = vmatpush1.bf16.msra.mxu0 %v2648_v23  ;;  %2554 = vmatprep.subr.bf16.mxu1 %v2929_v3  ;;  %v238_v23 = vld [vmem:[%s3058_s22 + $0x150] sm:$0xff]  ;;  %v2579_v26 = vpack.c.bf16 %v542_v22, %v541_v21  ;;  %v560_v22 = vld [vmem:[%s4765_s1 + $0x1f8] sm:$0xff] }
  0x3f   : > { %2650 = vmatprep.subr.bf16.mxu0 %v2929_v3  ;;  %v559_v21 = vld [vmem:[%s4765_s1 + $0x1f0] sm:$0xff] }
  0x41   : > { %2556 = vmatpush1.bf16.msra.mxu1 %v2555_v28  ;;  %v543_v28 = vld [vmem:[%s4765_s1 + $0x170] sm:$0xff] }
  0x42   : > { %2652 = vmatpush1.bf16.msra.mxu0 %v2651_v29  ;;  %2557 = vmatprep.subr.bf16.mxu1 %v2929_v3  ;;  %v544_v29 = vld [vmem:[%s4765_s1 + $0x178] sm:$0xff] }
  0x43   : > { %2653 = vmatprep.subr.bf16.mxu0 %v2929_v3  ;;  %v2582_v33 = vpack.c.bf16 %v544_v29, %v543_v28  ;;  %v308_v28 = vld [vmem:[%s3058_s22 + $0x380] sm:$0xff] }
  0x44   : > { %v312_v29 = vld [vmem:[%s3058_s22 + $0x3a0] sm:$0xff] }
  0x45   : > { %2559 = vmatpush1.bf16.msra.mxu1 %v2558_v34  ;;  %v257_v34 = vld [vmem:[%s3058_s22 + $0x1e8] sm:$0xff] }
  0x46   : > { %2655 = vmatpush1.bf16.msra.mxu0 %v2654_v35  ;;  %2560 = vmatprep.subr.bf16.mxu1 %v2929_v3  ;;  %v545_v35 = vld [vmem:[%s4765_s1 + $0x180] sm:$0xff] }
  0x47   : > { %2656 = vmatprep.subr.bf16.mxu0 %v2929_v3 }
  0x48   : > { %792 = vmatmul.mubr.f32.vlgmr.msra.gmra.mrb[0].mxu1 %v196_v40  ;;  %v2585_v40 = vpack.c.bf16 %v546_v36, %v545_v35  ;;  %v322_v35 = vld [vmem:[%s3058_s22 + $0x3f0] sm:$0xff] }
  0x49   : > { %1352 = vmatmul.mubr.f32.vlgmr.msra.gmra.mrb[0].mxu0 %v200_v42  ;;  %2562 = vmatpush1.bf16.msra.mxu1 %v2561_v41  ;;  %v264_v41 = vld [vmem:[%s3058_s22 + $0x220] sm:$0xff]  ;;  %v547_v42 = vld [vmem:[%s4765_s1 + $0x190] sm:$0xff] }
  0x4a   : > { %2658 = vmatpush3.bf16.msra.mxu0 %v2657_v43  ;;  %796 = vmatprep.mubr.f32.mxu1 %v204_v44  ;;  %v548_v43 = vld [vmem:[%s4765_s1 + $0x198] sm:$0xff]  ;;  %v326_v36 = vld [vmem:[%s3058_s22 + $0x410] sm:$0xff] }
  0x4b   : > { %1356 = vmatprep.mubr.f32.mxu0 %v208_v47  ;;  %2563 = vmatprep.subr.bf16.mxu1 %v2929_v3  ;;  %v259_v44 = vld [vmem:[%s3058_s22 + $0x1f8] sm:$0xff]  ;;  %v2588_v47 = vpack.c.bf16 %v548_v43, %v547_v42  ;;  %v341_v42 = vld [vmem:[%s3058_s22 + $0x488] sm:$0xff]  ;;  %v336_v43 = vld [vmem:[%s3058_s22 + $0x460] sm:$0xff] }
  0x4c   : > { %797 = vmatmul.mubr.f32.gmra.mrb[2].mxu1 %v203_v50  ;;  %2659 = vmatprep.subr.bf16.mxu0 %v2929_v3  ;;  %v550_v50 = vld [vmem:[%s4765_s1 + $0x1a8] sm:$0xff] }
  0x4d   : > { %1357 = vmatmul.mubr.f32.gmra.mrb[2].mxu0 %v207_v51  ;;  %801 = vmatprep.mubr.f32.mxu1 %v211_v52  ;;  %v266_v51 = vld [vmem:[%s3058_s22 + $0x230] sm:$0xff] }
  0x4e   : > { %1361 = vmatprep.mubr.f32.mxu0 %v215_v54  ;;  %2565 = vmatpush1.bf16.msra.mxu1 %v2564_v53  ;;  %v270_v52 = vld [vmem:[%s3058_s22 + $0x250] sm:$0xff]  ;;  %v2591_v54 = vpack.c.bf16 %v550_v50, %v549_v49  ;;  %v351_v49 = vld [vmem:[%s3058_s22 + $0x4d8] sm:$0xff] }
  0x4f   : > { %2566 = vmatprep.subr.bf16.mxu1 %v2929_v3  ;;  %2661 = vmatpush3.bf16.msra.mxu0 %v2660_v57  ;;  %v274_v53 = vld [vmem:[%s3058_s22 + $0x270] sm:$0xff]  ;;  %v552_v57 = vld [vmem:[%s4765_s1 + $0x1b8] sm:$0xff] }
  0x50   : > { %802 = vmatmul.mubr.f32.gmra.mrb[4].mxu1 %v210_v58  ;;  %v273_v58 = vld [vmem:[%s3058_s22 + $0x268] sm:$0xff]  ;;  %v355_v50 = vld [vmem:[%s3058_s22 + $0x4f8] sm:$0xff] }
  0x51   : > { %1362 = vmatmul.mubr.f32.gmra.mrb[4].mxu0 %v214_v59  ;;  %806 = vmatprep.mubr.f32.mxu1 %v218_v60  ;;  %v277_v59 = vld [vmem:[%s3058_s22 + $0x288] sm:$0xff] }
  0x52   : > { %1366 = vmatprep.mubr.f32.mxu0 %v222_v62  ;;  %2568 = vmatpush1.bf16.msra.mxu1 %v2567_v61  ;;  %v281_v60 = vld [vmem:[%s3058_s22 + $0x2a8] sm:$0xff]  ;;  %v2594_v61 = vpack.c.bf16 %v552_v57, %v551_v56 }
  0x53   : > { %2569 = vmatprep.subr.bf16.mxu1 %v2929_v3  ;;  %v285_v62 = vld [vmem:[%s3058_s22 + $0x2c8] sm:$0xff] }
  0x54   : > { %807 = vmatmul.mubr.f32.gmra.mrb[6].mxu1 %v217_v1  ;;  %v280_v1 = vld [vmem:[%s3058_s22 + $0x2a0] sm:$0xff]  ;;  %v361_v56 = vld [vmem:[%s3058_s22 + $0x528] sm:$0xff] }
  0x55   : > { %1367 = vmatmul.mubr.f32.gmra.mrb[6].mxu0 %v221_v2  ;;  %811 = vmatprep.mubr.f32.mxu1 %v225_v4  ;;  %v284_v2 = vld [vmem:[%s3058_s22 + $0x2c0] sm:$0xff]  ;;  %v365_v57 = vld [vmem:[%s3058_s22 + $0x548] sm:$0xff] }
  0x56   : > { %1371 = vmatprep.mubr.f32.mxu0 %v229_v6  ;;  %2571 = vmatpush1.bf16.msra.mxu1 %v2570_v5  ;;  %v288_v4 = vld [vmem:[%s3058_s22 + $0x2e0] sm:$0xff]  ;;  %v2597_v5 = vpack.c.bf16 %v554_v0, %v553_v63  ;;  %v371_v63 = vld [vmem:[%s3058_s22 + $0x578] sm:$0xff] }
  0x57   : > { %2572 = vmatprep.subr.bf16.mxu1 %v2929_v3  ;;  %v292_v6 = vld [vmem:[%s3058_s22 + $0x300] sm:$0xff]  ;;  %v375_v0 = vld [vmem:[%s3058_s22 + $0x598] sm:$0xff] }
  0x58   : > { %812 = vmatmul.mubr.f32.gmra.mrb[8].mxu1 %v224_v9  ;;  %v287_v9 = vld [vmem:[%s3058_s22 + $0x2d8] sm:$0xff] }
  0x59   : > { %1372 = vmatmul.mubr.f32.gmra.mrb[8].mxu0 %v228_v10  ;;  %816 = vmatprep.mubr.f32.mxu1 %v232_v11  ;;  %v291_v10 = vld [vmem:[%s3058_s22 + $0x2f8] sm:$0xff] }
  0x5a   : > { %1376 = vmatprep.mubr.f32.mxu0 %v236_v13  ;;  %2574 = vmatpush1.bf16.msra.mxu1 %v2573_v12  ;;  %v295_v11 = vld [vmem:[%s3058_s22 + $0x318] sm:$0xff]  ;;  %v2600_v12 = vpack.c.bf16 %v556_v8, %v555_v7  ;;  %v390_v7 = vld [vmem:[%s3058_s22 + $0x610] sm:$0xff]  ;;  %v385_v8 = vld [vmem:[%s3058_s22 + $0x5e8] sm:$0xff] }
  0x5b   : > { %2575 = vmatprep.subr.bf16.mxu1 %v2929_v3  ;;  %v299_v13 = vld [vmem:[%s3058_s22 + $0x338] sm:$0xff] }
  0x5c   : > { %817 = vmatmul.mubr.f32.gmra.mrb[10].mxu1 %v231_v16  ;;  %v294_v16 = vld [vmem:[%s3058_s22 + $0x310] sm:$0xff] }
  0x5d   : > { %1377 = vmatmul.mubr.f32.gmra.mrb[10].mxu0 %v235_v17  ;;  %821 = vmatprep.mubr.f32.mxu1 %v239_v18  ;;  %v298_v17 = vld [vmem:[%s3058_s22 + $0x330] sm:$0xff] }
  0x5e   : > { %1381 = vmatprep.mubr.f32.mxu0 %v243_v20  ;;  %2577 = vmatpush1.bf16.msra.mxu1 %v2576_v19  ;;  %v302_v18 = vld [vmem:[%s3058_s22 + $0x350] sm:$0xff]  ;;  %v2603_v19 = vpack.c.bf16 %v558_v15, %v557_v14  ;;  %v400_v14 = vld [vmem:[%s3058_s22 + $0x660] sm:$0xff] }
  0x5f   : > { %2578 = vmatprep.subr.bf16.mxu1 %v2929_v3  ;;  %v306_v20 = vld [vmem:[%s3058_s22 + $0x370] sm:$0xff]  ;;  %v404_v15 = vld [vmem:[%s3058_s22 + $0x680] sm:$0xff] }
  0x60   : > { %822 = vmatmul.mubr.f32.gmra.mrb[12].mxu1 %v238_v23  ;;  %v301_v23 = vld [vmem:[%s3058_s22 + $0x348] sm:$0xff] }
  0x61   : > { %1382 = vmatmul.mubr.f32.gmra.mrb[12].mxu0 %v242_v24  ;;  %826 = vmatprep.mubr.f32.mxu1 %v246_v25  ;;  %v305_v24 = vld [vmem:[%s3058_s22 + $0x368] sm:$0xff] }
  0x62   : > { %1386 = vmatprep.mubr.f32.mxu0 %v250_v27  ;;  %2580 = vmatpush1.bf16.msra.mxu1 %v2579_v26  ;;  %v309_v25 = vld [vmem:[%s3058_s22 + $0x388] sm:$0xff]  ;;  %v2606_v26 = vpack.c.bf16 %v560_v22, %v559_v21  ;;  %v410_v21 = vld [vmem:[%s3058_s22 + $0x6b0] sm:$0xff] }
  0x63   : > { %2581 = vmatprep.subr.bf16.mxu1 %v2929_v3  ;;  %v313_v27 = vld [vmem:[%s3058_s22 + $0x3a8] sm:$0xff]  ;;  %v414_v22 = vld [vmem:[%s3058_s22 + $0x6d0] sm:$0xff] }
  0x64   : > { %827 = vmatmul.mubr.f32.gmra.mrb[14].mxu1 %v245_v30  ;;  %v316_v30 = vld [vmem:[%s3058_s22 + $0x3c0] sm:$0xff] }
  0x65   : > { %1387 = vmatmul.mubr.f32.gmra.mrb[14].mxu0 %v249_v31  ;;  %831 = vmatprep.mubr.f32.mxu1 %v253_v32  ;;  %v320_v31 = vld [vmem:[%s3058_s22 + $0x3e0] sm:$0xff]  ;;  %v315_v32 = vld [vmem:[%s3058_s22 + $0x3b8] sm:$0xff] }
  0x66   : > { %1391 = vmatprep.mubr.f32.mxu0 %v257_v34  ;;  %2583 = vmatpush1.bf16.msra.mxu1 %v2582_v33  ;;  %v323_v33 = vld [vmem:[%s3058_s22 + $0x3f8] sm:$0xff] }
  0x67   : > { %2584 = vmatprep.subr.bf16.mxu1 %v2929_v3  ;;  %v327_v34 = vld [vmem:[%s3058_s22 + $0x418] sm:$0xff] }
  0x68   : > { %832 = vmatmul.mubr.f32.gmra.mrb[16].mxu1 %v252_v37  ;;  %v330_v37 = vld [vmem:[%s3058_s22 + $0x430] sm:$0xff] }
  0x69   : > { %1392 = vmatmul.mubr.f32.gmra.mrb[16].mxu0 %v256_v38  ;;  %836 = vmatprep.mubr.f32.mxu1 %v260_v39  ;;  %v334_v38 = vld [vmem:[%s3058_s22 + $0x450] sm:$0xff]  ;;  %v329_v39 = vld [vmem:[%s3058_s22 + $0x428] sm:$0xff] }
  0x6a   : > { %1396 = vmatprep.mubr.f32.mxu0 %v264_v41  ;;  %2586 = vmatpush1.bf16.msra.mxu1 %v2585_v40  ;;  %v333_v40 = vld [vmem:[%s3058_s22 + $0x448] sm:$0xff] }
  0x6b   : > { %2587 = vmatprep.subr.bf16.mxu1 %v2929_v3  ;;  %v337_v41 = vld [vmem:[%s3058_s22 + $0x468] sm:$0xff] }
  0x6c   : > { %837 = vmatmul.mubr.f32.gmra.mrb[18].mxu1 %v259_v44  ;;  %v340_v44 = vld [vmem:[%s3058_s22 + $0x480] sm:$0xff] }
  0x6d   : > { %1397 = vmatmul.mubr.f32.gmra.mrb[18].mxu0 %v263_v45  ;;  %841 = vmatprep.mubr.f32.mxu1 %v267_v46  ;;  %v344_v45 = vld [vmem:[%s3058_s22 + $0x4a0] sm:$0xff] }
  0x6e   : > { %1401 = vmatprep.mubr.f32.mxu0 %v271_v48  ;;  %2589 = vmatpush1.bf16.msra.mxu1 %v2588_v47  ;;  %v348_v46 = vld [vmem:[%s3058_s22 + $0x4c0] sm:$0xff]  ;;  %v343_v47 = vld [vmem:[%s3058_s22 + $0x498] sm:$0xff] }
  0x6f   : > { %2590 = vmatprep.subr.bf16.mxu1 %v2929_v3  ;;  %v347_v48 = vld [vmem:[%s3058_s22 + $0x4b8] sm:$0xff] }
  0x70   : > { %842 = vmatmul.mubr.f32.gmra.mrb[20].mxu1 %v266_v51  ;;  %v350_v51 = vld [vmem:[%s3058_s22 + $0x4d0] sm:$0xff] }
  0x71   : > { %1402 = vmatmul.mubr.f32.gmra.mrb[20].mxu0 %v270_v52  ;;  %846 = vmatprep.mubr.f32.mxu1 %v274_v53  ;;  %v354_v52 = vld [vmem:[%s3058_s22 + $0x4f0] sm:$0xff] }
  0x72   : > { %1406 = vmatprep.mubr.f32.mxu0 %v278_v55  ;;  %2592 = vmatpush1.bf16.msra.mxu1 %v2591_v54  ;;  %v358_v53 = vld [vmem:[%s3058_s22 + $0x510] sm:$0xff]  ;;  %v357_v55 = vld [vmem:[%s3058_s22 + $0x508] sm:$0xff] }
  0x73   : > { %2593 = vmatprep.subr.bf16.mxu1 %v2929_v3  ;;  %v362_v54 = vld [vmem:[%s3058_s22 + $0x530] sm:$0xff] }
  0x74   : > { %847 = vmatmul.mubr.f32.gmra.mrb[22].mxu1 %v273_v58  ;;  %v369_v58 = vld [vmem:[%s3058_s22 + $0x568] sm:$0xff] }
  0x75   : > { %1407 = vmatmul.mubr.f32.gmra.mrb[22].mxu0 %v277_v59  ;;  %851 = vmatprep.mubr.f32.mxu1 %v281_v60  ;;  %v364_v59 = vld [vmem:[%s3058_s22 + $0x540] sm:$0xff] }
  0x76   : > { %1411 = vmatprep.mubr.f32.mxu0 %v285_v62  ;;  %2595 = vmatpush1.bf16.msra.mxu1 %v2594_v61  ;;  %v368_v60 = vld [vmem:[%s3058_s22 + $0x560] sm:$0xff] }
  0x77   : > { %2596 = vmatprep.subr.bf16.mxu1 %v2929_v3  ;;  %v372_v61 = vld [vmem:[%s3058_s22 + $0x580] sm:$0xff] }
  0x78   : > { %852 = vmatmul.mubr.f32.gmra.mrb[24].mxu1 %v280_v1  ;;  %v376_v62 = vld [vmem:[%s3058_s22 + $0x5a0] sm:$0xff]  ;;  %v379_v1 = vld [vmem:[%s3058_s22 + $0x5b8] sm:$0xff] }
  0x79   : > { %1412 = vmatmul.mubr.f32.gmra.mrb[24].mxu0 %v284_v2  ;;  %856 = vmatprep.mubr.f32.mxu1 %v288_v4  ;;  %v383_v2 = vld [vmem:[%s3058_s22 + $0x5d8] sm:$0xff]  ;;  %v378_v4 = vld [vmem:[%s3058_s22 + $0x5b0] sm:$0xff] }
  0x7a   : > { %1416 = vmatprep.mubr.f32.mxu0 %v292_v6  ;;  %2598 = vmatpush1.bf16.msra.mxu1 %v2597_v5  ;;  %v382_v5 = vld [vmem:[%s3058_s22 + $0x5d0] sm:$0xff] }
  0x7b   : > { %2599 = vmatprep.subr.bf16.mxu1 %v2929_v3  ;;  %v386_v6 = vld [vmem:[%s3058_s22 + $0x5f0] sm:$0xff] }
  0x7c   : > { %857 = vmatmul.mubr.f32.gmra.mrb[26].mxu1 %v287_v9  ;;  %v389_v9 = vld [vmem:[%s3058_s22 + $0x608] sm:$0xff] }
  0x7d   : > { %1417 = vmatmul.mubr.f32.gmra.mrb[26].mxu0 %v291_v10  ;;  %861 = vmatprep.mubr.f32.mxu1 %v295_v11  ;;  %v393_v10 = vld [vmem:[%s3058_s22 + $0x628] sm:$0xff] }
  0x7e   : > { %1421 = vmatprep.mubr.f32.mxu0 %v299_v13  ;;  %2601 = vmatpush1.bf16.msra.mxu1 %v2600_v12  ;;  %v397_v11 = vld [vmem:[%s3058_s22 + $0x648] sm:$0xff]  ;;  %v392_v12 = vld [vmem:[%s3058_s22 + $0x620] sm:$0xff] }
  0x7f   : > { %2602 = vmatprep.subr.bf16.mxu1 %v2929_v3  ;;  %v396_v13 = vld [vmem:[%s3058_s22 + $0x640] sm:$0xff] }
  0x80   : > { %862 = vmatmul.mubr.f32.gmra.mrb[28].mxu1 %v294_v16  ;;  %v399_v16 = vld [vmem:[%s3058_s22 + $0x658] sm:$0xff] }
  0x81   : > { %1422 = vmatmul.mubr.f32.gmra.mrb[28].mxu0 %v298_v17  ;;  %866 = vmatprep.mubr.f32.mxu1 %v302_v18  ;;  %v403_v17 = vld [vmem:[%s3058_s22 + $0x678] sm:$0xff] }
  0x82   : > { %1426 = vmatprep.mubr.f32.mxu0 %v306_v20  ;;  %2604 = vmatpush1.bf16.msra.mxu1 %v2603_v19  ;;  %v407_v18 = vld [vmem:[%s3058_s22 + $0x698] sm:$0xff]  ;;  %v406_v20 = vld [vmem:[%s3058_s22 + $0x690] sm:$0xff] }
  0x83   : > { %2605 = vmatprep.subr.bf16.mxu1 %v2929_v3  ;;  %v319_v3 = vld [vmem:[%s3058_s22 + $0x3d8] sm:$0xff] }
  0x84   : > { %867 = vmatmul.mubr.f32.gmra.mrb[30].mxu1 %v301_v23  ;;  %v411_v19 = vld [vmem:[%s3058_s22 + $0x6b8] sm:$0xff]  ;;  %v418_v23 = vld [vmem:[%s3058_s22 + $0x6f0] sm:$0xff] }
  0x85   : > { %1427 = vmatmul.mubr.f32.gmra.mrb[30].mxu0 %v305_v24  ;;  %871 = vmatprep.mubr.f32.mxu1 %v309_v25  ;;  %v413_v24 = vld [vmem:[%s3058_s22 + $0x6c8] sm:$0xff] }
  0x86   : > { %1431 = vmatprep.mubr.f32.mxu0 %v313_v27  ;;  %2607 = vmatpush1.bf16.msra.mxu1 %v2606_v26  ;;  %v417_v25 = vld [vmem:[%s3058_s22 + $0x6e8] sm:$0xff] }
  0x87   : > { %v421_v26 = vld [vmem:[%s3058_s22 + $0x708] sm:$0xff] }
  0x88   : > { %872 = vmatmul.mubr.f32.gmra.mrb[32].mxu1 %v308_v28  ;;  %v425_v27 = vld [vmem:[%s3058_s22 + $0x728] sm:$0xff]  ;;  %v420_v28 = vld [vmem:[%s3058_s22 + $0x700] sm:$0xff] }
  0x89   : > { %1432 = vmatmul.mubr.f32.gmra.mrb[32].mxu0 %v312_v29  ;;  %876 = vmatprep.mubr.f32.mxu1 %v316_v30  ;;  %v424_v29 = vld [vmem:[%s3058_s22 + $0x720] sm:$0xff] }
  0x8a   : > { %1436 = vmatprep.mubr.f32.mxu0 %v320_v31  ;;  %v428_v30 = vld [vmem:[%s3058_s22 + $0x740] sm:$0xff] }
  0x8b   : > { %v432_v31 = vld [vmem:[%s3058_s22 + $0x760] sm:$0xff] }
  0x8c   : > { %877 = vmatmul.mubr.f32.gmra.mrb[34].mxu1 %v315_v32  ;;  %v427_v32 = vld [vmem:[%s3058_s22 + $0x738] sm:$0xff] }
  0x8d   : > { %1437 = vmatmul.mubr.f32.gmra.mrb[34].mxu0 %v319_v3  ;;  %881 = vmatprep.mubr.f32.mxu1 %v323_v33  ;;  %v431_v3 = vld [vmem:[%s3058_s22 + $0x758] sm:$0xff] }
  0x8e   : > { %1441 = vmatprep.mubr.f32.mxu0 %v327_v34  ;;  %v435_v33 = vld [vmem:[%s3058_s22 + $0x778] sm:$0xff] }
  0x8f   : > { %v439_v34 = vld [vmem:[%s3058_s22 + $0x798] sm:$0xff] }
  0x90   : > { %882 = vmatmul.mubr.f32.gmra.mrb[36].mxu1 %v322_v35  ;;  %v434_v35 = vld [vmem:[%s3058_s22 + $0x770] sm:$0xff] }
  0x91   : > { %1442 = vmatmul.mubr.f32.gmra.mrb[36].mxu0 %v326_v36  ;;  %886 = vmatprep.mubr.f32.mxu1 %v330_v37  ;;  %v438_v36 = vld [vmem:[%s3058_s22 + $0x790] sm:$0xff] }
  0x92   : > { %1446 = vmatprep.mubr.f32.mxu0 %v334_v38  ;;  %v442_v37 = vld [vmem:[%s3058_s22 + $0x7b0] sm:$0xff] }
  0x93   : > { %v446_v38 = vld [vmem:[%s3058_s22 + $0x7d0] sm:$0xff] }
  0x94   : > { %887 = vmatmul.mubr.f32.gmra.mrb[38].mxu1 %v329_v39  ;;  %v441_v39 = vld [vmem:[%s3058_s22 + $0x7a8] sm:$0xff] }
  0x95   : > { %1447 = vmatmul.mubr.f32.gmra.mrb[38].mxu0 %v333_v40  ;;  %891 = vmatprep.mubr.f32.mxu1 %v337_v41  ;;  %v445_v40 = vld [vmem:[%s3058_s22 + $0x7c8] sm:$0xff] }
  0x96   : > { %1451 = vmatprep.mubr.f32.mxu0 %v341_v42  ;;  %v449_v41 = vld [vmem:[%s3058_s22 + $0x7e8] sm:$0xff] }
  0x97   : > { %v453_v42 = vld [vmem:[%s3058_s22 + $0x808] sm:$0xff] }
  0x98   : > { %892 = vmatmul.mubr.f32.gmra.mrb[40].mxu1 %v336_v43  ;;  %v448_v43 = vld [vmem:[%s3058_s22 + $0x7e0] sm:$0xff] }
  0x99   : > { %1452 = vmatmul.mubr.f32.gmra.mrb[40].mxu0 %v340_v44  ;;  %896 = vmatprep.mubr.f32.mxu1 %v344_v45  ;;  %v452_v44 = vld [vmem:[%s3058_s22 + $0x800] sm:$0xff] }
  0x9a   : > { %1456 = vmatprep.mubr.f32.mxu0 %v348_v46  ;;  %v456_v45 = vld [vmem:[%s3058_s22 + $0x820] sm:$0xff] }
  0x9b   : > { %v460_v46 = vld [vmem:[%s3058_s22 + $0x840] sm:$0xff] }
  0x9c   : > { %897 = vmatmul.mubr.f32.gmra.mrb[42].mxu1 %v343_v47  ;;  %v455_v47 = vld [vmem:[%s3058_s22 + $0x818] sm:$0xff] }
  0x9d   : > { %1457 = vmatmul.mubr.f32.gmra.mrb[42].mxu0 %v347_v48  ;;  %901 = vmatprep.mubr.f32.mxu1 %v351_v49  ;;  %v459_v48 = vld [vmem:[%s3058_s22 + $0x838] sm:$0xff] }
  0x9e   : > { %1461 = vmatprep.mubr.f32.mxu0 %v355_v50  ;;  %v463_v49 = vld [vmem:[%s3058_s22 + $0x858] sm:$0xff] }
  0x9f   : > { %v467_v50 = vld [vmem:[%s3058_s22 + $0x878] sm:$0xff] }
  0xa0   : > { %902 = vmatmul.mubr.f32.gmra.mrb[44].mxu1 %v350_v51  ;;  %v462_v51 = vld [vmem:[%s3058_s22 + $0x850] sm:$0xff] }
  0xa1   : > { %1462 = vmatmul.mubr.f32.gmra.mrb[44].mxu0 %v354_v52  ;;  %906 = vmatprep.mubr.f32.mxu1 %v358_v53  ;;  %v466_v52 = vld [vmem:[%s3058_s22 + $0x870] sm:$0xff] }
  0xa2   : > { %1466 = vmatprep.mubr.f32.mxu0 %v362_v54  ;;  %v470_v53 = vld [vmem:[%s3058_s22 + $0x890] sm:$0xff] }
  0xa3   : > { %v474_v54 = vld [vmem:[%s3058_s22 + $0x8b0] sm:$0xff] }
  0xa4   : > { %907 = vmatmul.mubr.f32.gmra.mrb[46].mxu1 %v357_v55  ;;  %v469_v55 = vld [vmem:[%s3058_s22 + $0x888] sm:$0xff] }
  0xa5   : > { %1467 = vmatmul.mubr.f32.gmra.mrb[46].mxu0 %v361_v56  ;;  %911 = vmatprep.mubr.f32.mxu1 %v365_v57  ;;  %v473_v56 = vld [vmem:[%s3058_s22 + $0x8a8] sm:$0xff] }
  0xa6   : > { %1471 = vmatprep.mubr.f32.mxu0 %v369_v58  ;;  %v477_v57 = vld [vmem:[%s3058_s22 + $0x8c8] sm:$0xff] }
  0xa7   : > { %v481_v58 = vld [vmem:[%s3058_s22 + $0x8e8] sm:$0xff] }
  0xa8   : > { %912 = vmatmul.mubr.f32.gmra.mrb[48].mxu1 %v364_v59  ;;  %v476_v59 = vld [vmem:[%s3058_s22 + $0x8c0] sm:$0xff] }
  0xa9   : > { %1472 = vmatmul.mubr.f32.gmra.mrb[48].mxu0 %v368_v60  ;;  %916 = vmatprep.mubr.f32.mxu1 %v372_v61  ;;  %v480_v60 = vld [vmem:[%s3058_s22 + $0x8e0] sm:$0xff] }
  0xaa   : > { %1476 = vmatprep.mubr.f32.mxu0 %v376_v62  ;;  %v484_v61 = vld [vmem:[%s3058_s22 + $0x900] sm:$0xff] }
  0xab   : > { %v488_v62 = vld [vmem:[%s3058_s22 + $0x920] sm:$0xff] }
  0xac   : > { %917 = vmatmul.mubr.f32.gmra.mrb[50].mxu1 %v371_v63  ;;  %v483_v63 = vld [vmem:[%s3058_s22 + $0x8f8] sm:$0xff] }
  0xad   : > { %1477 = vmatmul.mubr.f32.gmra.mrb[50].mxu0 %v375_v0  ;;  %921 = vmatprep.mubr.f32.mxu1 %v379_v1  ;;  %v487_v0 = vld [vmem:[%s3058_s22 + $0x918] sm:$0xff] }
  0xae   : > { %1481 = vmatprep.mubr.f32.mxu0 %v383_v2  ;;  %v491_v1 = vld [vmem:[%s3058_s22 + $0x938] sm:$0xff] }
  0xaf   : > { %v495_v2 = vld [vmem:[%s3058_s22 + $0x958] sm:$0xff] }
  0xb0   : > { %922 = vmatmul.mubr.f32.gmra.mrb[52].mxu1 %v378_v4  ;;  %v490_v4 = vld [vmem:[%s3058_s22 + $0x930] sm:$0xff] }
  0xb1   : > { %1482 = vmatmul.mubr.f32.gmra.mrb[52].mxu0 %v382_v5  ;;  %926 = vmatprep.mubr.f32.mxu1 %v386_v6  ;;  %v494_v5 = vld [vmem:[%s3058_s22 + $0x950] sm:$0xff]  ;;  %v199_v6 = vld [vmem:[%s3058_s22 + $0x18] sm:$0xff] }
  0xb2   : > { %1486 = vmatprep.mubr.f32.mxu0 %v390_v7  ;;  %v198_v7 = vld [vmem:[%s3058_s22 + $0x10] sm:$0xff] }
  0xb4   : > { %927 = vmatmul.mubr.f32.gmra.mrb[54].mxu1 %v385_v8  ;;  %v2931_v8 = vmov 0.0  }
  0xb5   : > { %1487 = vmatmul.mubr.f32.gmra.mrb[54].mxu0 %v389_v9  ;;  %931 = vmatprep.mubr.f32.mxu1 %v393_v10  ;;  %v202_v9 = vld [vmem:[%s3058_s22 + $0x30] sm:$0xff] }
  0xb6   : > { %1491 = vmatprep.mubr.f32.mxu0 %v397_v11  ;;  %v206_v10 = vld [vmem:[%s3058_s22 + $0x50] sm:$0xff]  ;;  %v205_v11 = vld [vmem:[%s3058_s22 + $0x48] sm:$0xff] }
  0xb8   : > { %932 = vmatmul.mubr.f32.gmra.mrb[56].mxu1 %v392_v12  ;;  %v209_v12 = vld [vmem:[%s3058_s22 + $0x68] sm:$0xff] }
  0xb9   : > { %1492 = vmatmul.mubr.f32.gmra.mrb[56].mxu0 %v396_v13  ;;  %936 = vmatprep.mubr.f32.mxu1 %v400_v14  ;;  %v213_v13 = vld [vmem:[%s3058_s22 + $0x88] sm:$0xff]  ;;  %v212_v14 = vld [vmem:[%s3058_s22 + $0x80] sm:$0xff] }
  0xba   : > { %1496 = vmatprep.mubr.f32.mxu0 %v404_v15  ;;  %v216_v15 = vld [vmem:[%s3058_s22 + $0xa0] sm:$0xff] }
  0xbc   : > { %937 = vmatmul.mubr.f32.gmra.mrb[58].mxu1 %v399_v16  ;;  %v220_v16 = vld [vmem:[%s3058_s22 + $0xc0] sm:$0xff] }
  0xbd   : > { %1497 = vmatmul.mubr.f32.gmra.mrb[58].mxu0 %v403_v17  ;;  %941 = vmatprep.mubr.f32.mxu1 %v407_v18  ;;  %v219_v17 = vld [vmem:[%s3058_s22 + $0xb8] sm:$0xff] }
  0xbe   : > { %1501 = vmatprep.mubr.f32.mxu0 %v411_v19  ;;  %v223_v18 = vld [vmem:[%s3058_s22 + $0xd8] sm:$0xff] }
  0xbf   : > { %v227_v19 = vld [vmem:[%s3058_s22 + $0xf8] sm:$0xff] }
  0xc0   : > { %942 = vmatmul.mubr.f32.gmra.mrb[60].mxu1 %v406_v20  ;;  %v226_v20 = vld [vmem:[%s3058_s22 + $0xf0] sm:$0xff] }
  0xc1   : > { %1502 = vmatmul.mubr.f32.gmra.mrb[60].mxu0 %v410_v21  ;;  %946 = vmatprep.mubr.f32.mxu1 %v414_v22  ;;  %v230_v21 = vld [vmem:[%s3058_s22 + $0x110] sm:$0xff] }
  0xc2   : > { %1506 = vmatprep.mubr.f32.mxu0 %v418_v23  ;;  %v234_v22 = vld [vmem:[%s3058_s22 + $0x130] sm:$0xff]  ;;  %v233_v23 = vld [vmem:[%s3058_s22 + $0x128] sm:$0xff] }
  0xc4   : > { %947 = vmatmul.mubr.f32.gmra.mrb[62].mxu1 %v413_v24  ;;  %v237_v24 = vld [vmem:[%s3058_s22 + $0x148] sm:$0xff] }
  0xc5   : > { %1507 = vmatmul.mubr.f32.gmra.mrb[62].mxu0 %v417_v25  ;;  %951 = vmatprep.mubr.f32.mxu1 %v421_v26  ;;  %v241_v25 = vld [vmem:[%s3058_s22 + $0x168] sm:$0xff]  ;;  %v240_v26 = vld [vmem:[%s3058_s22 + $0x160] sm:$0xff] }
  0xc6   : > { %1511 = vmatprep.mubr.f32.mxu0 %v425_v27  ;;  %v244_v27 = vld [vmem:[%s3058_s22 + $0x180] sm:$0xff] }
  0xc8   : > { %952 = vmatmul.mubr.f32.gmra.mrb[64].mxu1 %v420_v28  ;;  %v248_v28 = vld [vmem:[%s3058_s22 + $0x1a0] sm:$0xff] }
  0xc9   : > { %1512 = vmatmul.mubr.f32.gmra.mrb[64].mxu0 %v424_v29  ;;  %956 = vmatprep.mubr.f32.mxu1 %v428_v30  ;;  %v247_v29 = vld [vmem:[%s3058_s22 + $0x198] sm:$0xff] }
  0xca   : > { %1516 = vmatprep.mubr.f32.mxu0 %v432_v31  ;;  %v251_v30 = vld [vmem:[%s3058_s22 + $0x1b8] sm:$0xff] }
  0xcb   : > { %v255_v31 = vld [vmem:[%s3058_s22 + $0x1d8] sm:$0xff] }
  0xcc   : > { %957 = vmatmul.mubr.f32.gmra.mrb[66].mxu1 %v427_v32  ;;  %v254_v32 = vld [vmem:[%s3058_s22 + $0x1d0] sm:$0xff] }
  0xcd   : > { %1517 = vmatmul.mubr.f32.gmra.mrb[66].mxu0 %v431_v3  ;;  %961 = vmatprep.mubr.f32.mxu1 %v435_v33  ;;  %v258_v3 = vld [vmem:[%s3058_s22 + $0x1f0] sm:$0xff] }
  0xce   : > { %1521 = vmatprep.mubr.f32.mxu0 %v439_v34  ;;  %v262_v33 = vld [vmem:[%s3058_s22 + $0x210] sm:$0xff]  ;;  %v261_v34 = vld [vmem:[%s3058_s22 + $0x208] sm:$0xff] }
  0xd0   : > { %962 = vmatmul.mubr.f32.gmra.mrb[68].mxu1 %v434_v35  ;;  %v265_v35 = vld [vmem:[%s3058_s22 + $0x228] sm:$0xff] }
  0xd1   : > { %1522 = vmatmul.mubr.f32.gmra.mrb[68].mxu0 %v438_v36  ;;  %966 = vmatprep.mubr.f32.mxu1 %v442_v37  ;;  %v269_v36 = vld [vmem:[%s3058_s22 + $0x248] sm:$0xff]  ;;  %v268_v37 = vld [vmem:[%s3058_s22 + $0x240] sm:$0xff] }
  0xd2   : > { %1526 = vmatprep.mubr.f32.mxu0 %v446_v38  ;;  %v272_v38 = vld [vmem:[%s3058_s22 + $0x260] sm:$0xff] }
  0xd4   : > { %967 = vmatmul.mubr.f32.gmra.mrb[70].mxu1 %v441_v39  ;;  %v276_v39 = vld [vmem:[%s3058_s22 + $0x280] sm:$0xff] }
  0xd5   : > { %1527 = vmatmul.mubr.f32.gmra.mrb[70].mxu0 %v445_v40  ;;  %971 = vmatprep.mubr.f32.mxu1 %v449_v41  ;;  %v275_v40 = vld [vmem:[%s3058_s22 + $0x278] sm:$0xff] }
  0xd6   : > { %1531 = vmatprep.mubr.f32.mxu0 %v453_v42  ;;  %v279_v41 = vld [vmem:[%s3058_s22 + $0x298] sm:$0xff] }
  0xd7   : > { %v283_v42 = vld [vmem:[%s3058_s22 + $0x2b8] sm:$0xff] }
  0xd8   : > { %972 = vmatmul.mubr.f32.gmra.mrb[72].mxu1 %v448_v43  ;;  %v282_v43 = vld [vmem:[%s3058_s22 + $0x2b0] sm:$0xff] }
  0xd9   : > { %1532 = vmatmul.mubr.f32.gmra.mrb[72].mxu0 %v452_v44  ;;  %976 = vmatprep.mubr.f32.mxu1 %v456_v45  ;;  %v286_v44 = vld [vmem:[%s3058_s22 + $0x2d0] sm:$0xff] }
  0xda   : > { %1536 = vmatprep.mubr.f32.mxu0 %v460_v46  ;;  %v290_v45 = vld [vmem:[%s3058_s22 + $0x2f0] sm:$0xff]  ;;  %v289_v46 = vld [vmem:[%s3058_s22 + $0x2e8] sm:$0xff] }
  0xdc   : > { %977 = vmatmul.mubr.f32.gmra.mrb[74].mxu1 %v455_v47  ;;  %v293_v47 = vld [vmem:[%s3058_s22 + $0x308] sm:$0xff] }
  0xdd   : > { %1537 = vmatmul.mubr.f32.gmra.mrb[74].mxu0 %v459_v48  ;;  %981 = vmatprep.mubr.f32.mxu1 %v463_v49  ;;  %v297_v48 = vld [vmem:[%s3058_s22 + $0x328] sm:$0xff]  ;;  %v296_v49 = vld [vmem:[%s3058_s22 + $0x320] sm:$0xff] }
  0xde   : > { %1541 = vmatprep.mubr.f32.mxu0 %v467_v50  ;;  %v300_v50 = vld [vmem:[%s3058_s22 + $0x340] sm:$0xff] }
  0xe0   : > { %982 = vmatmul.mubr.f32.gmra.mrb[76].mxu1 %v462_v51  ;;  %v304_v51 = vld [vmem:[%s3058_s22 + $0x360] sm:$0xff] }
  0xe1   : > { %1542 = vmatmul.mubr.f32.gmra.mrb[76].mxu0 %v466_v52  ;;  %986 = vmatprep.mubr.f32.mxu1 %v470_v53  ;;  %v303_v52 = vld [vmem:[%s3058_s22 + $0x358] sm:$0xff] }
  0xe2   : > { %1546 = vmatprep.mubr.f32.mxu0 %v474_v54  ;;  %v307_v53 = vld [vmem:[%s3058_s22 + $0x378] sm:$0xff] }
  0xe3   : > { %v311_v54 = vld [vmem:[%s3058_s22 + $0x398] sm:$0xff] }
  0xe4   : > { %987 = vmatmul.mubr.f32.gmra.mrb[78].mxu1 %v469_v55  ;;  %v310_v55 = vld [vmem:[%s3058_s22 + $0x390] sm:$0xff] }
  0xe5   : > { %1547 = vmatmul.mubr.f32.gmra.mrb[78].mxu0 %v473_v56  ;;  %991 = vmatprep.mubr.f32.mxu1 %v477_v57  ;;  %v314_v56 = vld [vmem:[%s3058_s22 + $0x3b0] sm:$0xff] }
  0xe6   : > { %1551 = vmatprep.mubr.f32.mxu0 %v481_v58  ;;  %v318_v57 = vld [vmem:[%s3058_s22 + $0x3d0] sm:$0xff]  ;;  %v317_v58 = vld [vmem:[%s3058_s22 + $0x3c8] sm:$0xff] }
  0xe8   : > { %992 = vmatmul.mubr.f32.gmra.mrb[80].mxu1 %v476_v59  ;;  %v321_v59 = vld [vmem:[%s3058_s22 + $0x3e8] sm:$0xff] }
  0xe9   : > { %1552 = vmatmul.mubr.f32.gmra.mrb[80].mxu0 %v480_v60  ;;  %996 = vmatprep.mubr.f32.mxu1 %v484_v61  ;;  %v325_v60 = vld [vmem:[%s3058_s22 + $0x408] sm:$0xff]  ;;  %v324_v61 = vld [vmem:[%s3058_s22 + $0x400] sm:$0xff] }
  0xea   : > { %1556 = vmatprep.mubr.f32.mxu0 %v488_v62  ;;  %v328_v62 = vld [vmem:[%s3058_s22 + $0x420] sm:$0xff] }
  0xec   : > { %997 = vmatmul.mubr.f32.gmra.mrb[82].mxu1 %v483_v63  ;;  %v332_v63 = vld [vmem:[%s3058_s22 + $0x440] sm:$0xff] }
  0xed   : > { %1557 = vmatmul.mubr.f32.gmra.mrb[82].mxu0 %v487_v0  ;;  %1001 = vmatprep.mubr.f32.mxu1 %v491_v1  ;;  %v331_v0 = vld [vmem:[%s3058_s22 + $0x438] sm:$0xff] }
  0xee   : > { %1561 = vmatprep.mubr.f32.mxu0 %v495_v2  ;;  %v335_v1 = vld [vmem:[%s3058_s22 + $0x458] sm:$0xff] }
  0xef   : > { %v339_v2 = vld [vmem:[%s3058_s22 + $0x478] sm:$0xff] }
  0xf0   : > { %1002 = vmatmul.mubr.f32.gmra.mrb[84].mxu1 %v490_v4  ;;  %v338_v4 = vld [vmem:[%s3058_s22 + $0x470] sm:$0xff] }
  0xf1   : > { %1562 = vmatmul.mubr.f32.gmra.mrb[84].mxu0 %v494_v5  ;;  %1071 = vmatprep.mubr.f32.mxu1 %v199_v6  ;;  %v342_v5 = vld [vmem:[%s3058_s22 + $0x490] sm:$0xff] }
  0xf2   : > { %2383 = vmatprep.mubr.msk.f32.mxu0 %vm2930_vm0, %v2931_v8  ;;  %v346_v6 = vld [vmem:[%s3058_s22 + $0x4b0] sm:$0xff] }
  0xf4   : > { %1072 = vmatmul.mubr.f32.vlgmr.msra.gmra.mrb[0].mxu1 %v198_v7  ;;  %v345_v7 = vld [vmem:[%s3058_s22 + $0x4a8] sm:$0xff] }
  0xf5   : > { %2384 = vmatmul.mubr.msk.f32.vlgmr.msra.gmra.mrb[0].mxu0 %vm597_vm1, %v202_v9  ;;  %1076 = vmatprep.mubr.f32.mxu1 %v206_v10  ;;  %v349_v9 = vld [vmem:[%s3058_s22 + $0x4c8] sm:$0xff] }
  0xf6   : > { %2386 = vmatprep.mubr.msk.f32.mxu0 %vm2930_vm0, %v2931_v8  ;;  %v353_v10 = vld [vmem:[%s3058_s22 + $0x4e8] sm:$0xff] }
  0xf8   : > { %1077 = vmatmul.mubr.f32.gmra.mrb[2].mxu1 %v205_v11  ;;  %v352_v11 = vld [vmem:[%s3058_s22 + $0x4e0] sm:$0xff] }
  0xf9   : > { %2387 = vmatmul.mubr.msk.f32.gmra.mrb[2].mxu0 %vm597_vm1, %v209_v12  ;;  %1081 = vmatprep.mubr.f32.mxu1 %v213_v13  ;;  %v356_v12 = vld [vmem:[%s3058_s22 + $0x500] sm:$0xff] }
  0xfa   : > { %2389 = vmatprep.mubr.msk.f32.mxu0 %vm2930_vm0, %v2931_v8  ;;  %v360_v13 = vld [vmem:[%s3058_s22 + $0x520] sm:$0xff] }
  0xfc   : > { %1082 = vmatmul.mubr.f32.gmra.mrb[4].mxu1 %v212_v14  ;;  %v359_v14 = vld [vmem:[%s3058_s22 + $0x518] sm:$0xff] }
  0xfd   : > { %2390 = vmatmul.mubr.msk.f32.gmra.mrb[4].mxu0 %vm597_vm1, %v216_v15  ;;  %1086 = vmatprep.mubr.f32.mxu1 %v220_v16  ;;  %v363_v15 = vld [vmem:[%s3058_s22 + $0x538] sm:$0xff] }
  0xfe   : > { %2392 = vmatprep.mubr.msk.f32.mxu0 %vm2930_vm0, %v2931_v8  ;;  %v367_v16 = vld [vmem:[%s3058_s22 + $0x558] sm:$0xff] }
 0x100   : > { %1087 = vmatmul.mubr.f32.gmra.mrb[6].mxu1 %v219_v17  ;;  %v366_v17 = vld [vmem:[%s3058_s22 + $0x550] sm:$0xff] }
 0x101   : > { %2393 = vmatmul.mubr.msk.f32.gmra.mrb[6].mxu0 %vm597_vm1, %v223_v18  ;;  %1091 = vmatprep.mubr.f32.mxu1 %v227_v19  ;;  %v370_v18 = vld [vmem:[%s3058_s22 + $0x570] sm:$0xff] }
 0x102   : > { %2395 = vmatprep.mubr.msk.f32.mxu0 %vm2930_vm0, %v2931_v8  ;;  %v374_v19 = vld [vmem:[%s3058_s22 + $0x590] sm:$0xff] }
 0x104   : > { %1092 = vmatmul.mubr.f32.gmra.mrb[8].mxu1 %v226_v20  ;;  %v373_v20 = vld [vmem:[%s3058_s22 + $0x588] sm:$0xff] }
 0x105   : > { %2396 = vmatmul.mubr.msk.f32.gmra.mrb[8].mxu0 %vm597_vm1, %v230_v21  ;;  %1096 = vmatprep.mubr.f32.mxu1 %v234_v22  ;;  %v377_v21 = vld [vmem:[%s3058_s22 + $0x5a8] sm:$0xff] }
 0x106   : > { %2398 = vmatprep.mubr.msk.f32.mxu0 %vm2930_vm0, %v2931_v8  ;;  %v381_v22 = vld [vmem:[%s3058_s22 + $0x5c8] sm:$0xff] }
 0x108   : > { %1097 = vmatmul.mubr.f32.gmra.mrb[10].mxu1 %v233_v23  ;;  %v380_v23 = vld [vmem:[%s3058_s22 + $0x5c0] sm:$0xff] }
 0x109   : > { %2399 = vmatmul.mubr.msk.f32.gmra.mrb[10].mxu0 %vm597_vm1, %v237_v24  ;;  %1101 = vmatprep.mubr.f32.mxu1 %v241_v25  ;;  %v384_v24 = vld [vmem:[%s3058_s22 + $0x5e0] sm:$0xff] }
 0x10a   : > { %2401 = vmatprep.mubr.msk.f32.mxu0 %vm2930_vm0, %v2931_v8  ;;  %v388_v25 = vld [vmem:[%s3058_s22 + $0x600] sm:$0xff] }
 0x10c   : > { %1102 = vmatmul.mubr.f32.gmra.mrb[12].mxu1 %v240_v26  ;;  %v387_v26 = vld [vmem:[%s3058_s22 + $0x5f8] sm:$0xff] }
 0x10d   : > { %2402 = vmatmul.mubr.msk.f32.gmra.mrb[12].mxu0 %vm597_vm1, %v244_v27  ;;  %1106 = vmatprep.mubr.f32.mxu1 %v248_v28  ;;  %v391_v27 = vld [vmem:[%s3058_s22 + $0x618] sm:$0xff] }
 0x10e   : > { %2404 = vmatprep.mubr.msk.f32.mxu0 %vm2930_vm0, %v2931_v8  ;;  %v395_v28 = vld [vmem:[%s3058_s22 + $0x638] sm:$0xff] }
 0x110   : > { %1107 = vmatmul.mubr.f32.gmra.mrb[14].mxu1 %v247_v29  ;;  %v394_v29 = vld [vmem:[%s3058_s22 + $0x630] sm:$0xff] }
 0x111   : > { %2405 = vmatmul.mubr.msk.f32.gmra.mrb[14].mxu0 %vm597_vm1, %v251_v30  ;;  %1111 = vmatprep.mubr.f32.mxu1 %v255_v31  ;;  %v398_v30 = vld [vmem:[%s3058_s22 + $0x650] sm:$0xff] }
 0x112   : > { %2407 = vmatprep.mubr.msk.f32.mxu0 %vm2930_vm0, %v2931_v8  ;;  %v402_v31 = vld [vmem:[%s3058_s22 + $0x670] sm:$0xff] }
 0x114   : > { %1112 = vmatmul.mubr.f32.gmra.mrb[16].mxu1 %v254_v32  ;;  %v401_v32 = vld [vmem:[%s3058_s22 + $0x668] sm:$0xff] }
 0x115   : > { %2408 = vmatmul.mubr.msk.f32.gmra.mrb[16].mxu0 %vm597_vm1, %v258_v3  ;;  %1116 = vmatprep.mubr.f32.mxu1 %v262_v33  ;;  %v405_v3 = vld [vmem:[%s3058_s22 + $0x688] sm:$0xff] }
 0x116   : > { %2410 = vmatprep.mubr.msk.f32.mxu0 %vm2930_vm0, %v2931_v8  ;;  %v409_v33 = vld [vmem:[%s3058_s22 + $0x6a8] sm:$0xff] }
 0x118   : > { %1117 = vmatmul.mubr.f32.gmra.mrb[18].mxu1 %v261_v34  ;;  %v408_v34 = vld [vmem:[%s3058_s22 + $0x6a0] sm:$0xff] }
 0x119   : > { %2411 = vmatmul.mubr.msk.f32.gmra.mrb[18].mxu0 %vm597_vm1, %v265_v35  ;;  %1121 = vmatprep.mubr.f32.mxu1 %v269_v36  ;;  %v412_v35 = vld [vmem:[%s3058_s22 + $0x6c0] sm:$0xff] }
 0x11a   : > { %2413 = vmatprep.mubr.msk.f32.mxu0 %vm2930_vm0, %v2931_v8  ;;  %v416_v36 = vld [vmem:[%s3058_s22 + $0x6e0] sm:$0xff] }
 0x11c   : > { %1122 = vmatmul.mubr.f32.gmra.mrb[20].mxu1 %v268_v37  ;;  %v415_v37 = vld [vmem:[%s3058_s22 + $0x6d8] sm:$0xff] }
 0x11d   : > { %2414 = vmatmul.mubr.msk.f32.gmra.mrb[20].mxu0 %vm597_vm1, %v272_v38  ;;  %1126 = vmatprep.mubr.f32.mxu1 %v276_v39  ;;  %v419_v38 = vld [vmem:[%s3058_s22 + $0x6f8] sm:$0xff] }
 0x11e   : > { %2416 = vmatprep.mubr.msk.f32.mxu0 %vm2930_vm0, %v2931_v8  ;;  %v423_v39 = vld [vmem:[%s3058_s22 + $0x718] sm:$0xff] }
 0x120   : > { %1127 = vmatmul.mubr.f32.gmra.mrb[22].mxu1 %v275_v40  ;;  %v422_v40 = vld [vmem:[%s3058_s22 + $0x710] sm:$0xff] }
 0x121   : > { %2417 = vmatmul.mubr.msk.f32.gmra.mrb[22].mxu0 %vm597_vm1, %v279_v41  ;;  %1131 = vmatprep.mubr.f32.mxu1 %v283_v42  ;;  %v426_v41 = vld [vmem:[%s3058_s22 + $0x730] sm:$0xff] }
 0x122   : > { %2419 = vmatprep.mubr.msk.f32.mxu0 %vm2930_vm0, %v2931_v8  ;;  %v430_v42 = vld [vmem:[%s3058_s22 + $0x750] sm:$0xff] }
 0x124   : > { %1132 = vmatmul.mubr.f32.gmra.mrb[24].mxu1 %v282_v43  ;;  %v429_v43 = vld [vmem:[%s3058_s22 + $0x748] sm:$0xff] }
 0x125   : > { %2420 = vmatmul.mubr.msk.f32.gmra.mrb[24].mxu0 %vm597_vm1, %v286_v44  ;;  %1136 = vmatprep.mubr.f32.mxu1 %v290_v45  ;;  %v433_v44 = vld [vmem:[%s3058_s22 + $0x768] sm:$0xff] }
 0x126   : > { %2422 = vmatprep.mubr.msk.f32.mxu0 %vm2930_vm0, %v2931_v8  ;;  %v437_v45 = vld [vmem:[%s3058_s22 + $0x788] sm:$0xff] }
 0x128   : > { %1137 = vmatmul.mubr.f32.gmra.mrb[26].mxu1 %v289_v46  ;;  %v436_v46 = vld [vmem:[%s3058_s22 + $0x780] sm:$0xff] }
 0x129   : > { %2423 = vmatmul.mubr.msk.f32.gmra.mrb[26].mxu0 %vm597_vm1, %v293_v47  ;;  %1141 = vmatprep.mubr.f32.mxu1 %v297_v48  ;;  %v440_v47 = vld [vmem:[%s3058_s22 + $0x7a0] sm:$0xff] }
 0x12a   : > { %2425 = vmatprep.mubr.msk.f32.mxu0 %vm2930_vm0, %v2931_v8  ;;  %v444_v48 = vld [vmem:[%s3058_s22 + $0x7c0] sm:$0xff] }
 0x12c   : > { %1142 = vmatmul.mubr.f32.gmra.mrb[28].mxu1 %v296_v49  ;;  %v443_v49 = vld [vmem:[%s3058_s22 + $0x7b8] sm:$0xff] }
 0x12d   : > { %2426 = vmatmul.mubr.msk.f32.gmra.mrb[28].mxu0 %vm597_vm1, %v300_v50  ;;  %1146 = vmatprep.mubr.f32.mxu1 %v304_v51  ;;  %v447_v50 = vld [vmem:[%s3058_s22 + $0x7d8] sm:$0xff] }
 0x12e   : > { %2428 = vmatprep.mubr.msk.f32.mxu0 %vm2930_vm0, %v2931_v8  ;;  %v451_v51 = vld [vmem:[%s3058_s22 + $0x7f8] sm:$0xff] }
 0x130   : > { %1147 = vmatmul.mubr.f32.gmra.mrb[30].mxu1 %v303_v52  ;;  %v450_v52 = vld [vmem:[%s3058_s22 + $0x7f0] sm:$0xff] }
 0x131   : > { %2429 = vmatmul.mubr.msk.f32.gmra.mrb[30].mxu0 %vm597_vm1, %v307_v53  ;;  %1151 = vmatprep.mubr.f32.mxu1 %v311_v54  ;;  %v454_v53 = vld [vmem:[%s3058_s22 + $0x810] sm:$0xff] }
 0x132   : > { %2431 = vmatprep.mubr.msk.f32.mxu0 %vm2930_vm0, %v2931_v8  ;;  %v458_v54 = vld [vmem:[%s3058_s22 + $0x830] sm:$0xff] }
 0x134   : > { %1152 = vmatmul.mubr.f32.gmra.mrb[32].mxu1 %v310_v55  ;;  %v457_v55 = vld [vmem:[%s3058_s22 + $0x828] sm:$0xff] }
 0x135   : > { %2432 = vmatmul.mubr.msk.f32.gmra.mrb[32].mxu0 %vm597_vm1, %v314_v56  ;;  %1156 = vmatprep.mubr.f32.mxu1 %v318_v57  ;;  %v461_v56 = vld [vmem:[%s3058_s22 + $0x848] sm:$0xff] }
 0x136   : > { %2434 = vmatprep.mubr.msk.f32.mxu0 %vm2930_vm0, %v2931_v8  ;;  %v465_v57 = vld [vmem:[%s3058_s22 + $0x868] sm:$0xff] }
 0x138   : > { %1157 = vmatmul.mubr.f32.gmra.mrb[34].mxu1 %v317_v58  ;;  %v464_v58 = vld [vmem:[%s3058_s22 + $0x860] sm:$0xff] }
 0x139   : > { %2435 = vmatmul.mubr.msk.f32.gmra.mrb[34].mxu0 %vm597_vm1, %v321_v59  ;;  %1161 = vmatprep.mubr.f32.mxu1 %v325_v60  ;;  %v468_v59 = vld [vmem:[%s3058_s22 + $0x880] sm:$0xff] }
 0x13a   : > { %2437 = vmatprep.mubr.msk.f32.mxu0 %vm2930_vm0, %v2931_v8  ;;  %v472_v60 = vld [vmem:[%s3058_s22 + $0x8a0] sm:$0xff] }
 0x13c   : > { %1162 = vmatmul.mubr.f32.gmra.mrb[36].mxu1 %v324_v61  ;;  %v471_v61 = vld [vmem:[%s3058_s22 + $0x898] sm:$0xff] }
 0x13d   : > { %2438 = vmatmul.mubr.msk.f32.gmra.mrb[36].mxu0 %vm597_vm1, %v328_v62  ;;  %1166 = vmatprep.mubr.f32.mxu1 %v332_v63  ;;  %v475_v62 = vld [vmem:[%s3058_s22 + $0x8b8] sm:$0xff] }
 0x13e   : > { %2440 = vmatprep.mubr.msk.f32.mxu0 %vm2930_vm0, %v2931_v8  ;;  %v479_v63 = vld [vmem:[%s3058_s22 + $0x8d8] sm:$0xff] }
 0x140   : > { %1167 = vmatmul.mubr.f32.gmra.mrb[38].mxu1 %v331_v0  ;;  %v478_v0 = vld [vmem:[%s3058_s22 + $0x8d0] sm:$0xff] }
 0x141   : > { %2441 = vmatmul.mubr.msk.f32.gmra.mrb[38].mxu0 %vm597_vm1, %v335_v1  ;;  %1171 = vmatprep.mubr.f32.mxu1 %v339_v2  ;;  %v482_v1 = vld [vmem:[%s3058_s22 + $0x8f0] sm:$0xff] }
 0x142   : > { %2443 = vmatprep.mubr.msk.f32.mxu0 %vm2930_vm0, %v2931_v8  ;;  %v486_v2 = vld [vmem:[%s3058_s22 + $0x910] sm:$0xff] }
 0x144   : > { %1172 = vmatmul.mubr.f32.gmra.mrb[40].mxu1 %v338_v4  ;;  %v485_v4 = vld [vmem:[%s3058_s22 + $0x908] sm:$0xff] }
 0x145   : > { %2444 = vmatmul.mubr.msk.f32.gmra.mrb[40].mxu0 %vm597_vm1, %v342_v5  ;;  %1176 = vmatprep.mubr.f32.mxu1 %v346_v6  ;;  %v489_v5 = vld [vmem:[%s3058_s22 + $0x928] sm:$0xff] }
 0x146   : > { %2446 = vmatprep.mubr.msk.f32.mxu0 %vm2930_vm0, %v2931_v8  ;;  %v493_v6 = vld [vmem:[%s3058_s22 + $0x948] sm:$0xff] }
 0x148   : > { %1177 = vmatmul.mubr.f32.gmra.mrb[42].mxu1 %v345_v7  ;;  %v492_v7 = vld [vmem:[%s3058_s22 + $0x940] sm:$0xff] }
 0x149   : > { %2447 = vmatmul.mubr.msk.f32.gmra.mrb[42].mxu0 %vm597_vm1, %v349_v9  ;;  %1181 = vmatprep.mubr.f32.mxu1 %v353_v10  ;;  %v496_v9 = vld [vmem:[%s3058_s22 + $0x960] sm:$0xff] }
 0x14a   : > { %2449 = vmatprep.mubr.msk.f32.mxu0 %vm2930_vm0, %v2931_v8 }
 0x14c   : > { %1182 = vmatmul.mubr.f32.gmra.mrb[44].mxu1 %v352_v11 }
 0x14d   : > { %2450 = vmatmul.mubr.msk.f32.gmra.mrb[44].mxu0 %vm597_vm1, %v356_v12  ;;  %1186 = vmatprep.mubr.f32.mxu1 %v360_v13 }
 0x14e   : > { %2452 = vmatprep.mubr.msk.f32.mxu0 %vm2930_vm0, %v2931_v8 }
 0x150   : > { %1187 = vmatmul.mubr.f32.gmra.mrb[46].mxu1 %v359_v14 }
 0x151   : > { %2453 = vmatmul.mubr.msk.f32.gmra.mrb[46].mxu0 %vm597_vm1, %v363_v15  ;;  %1191 = vmatprep.mubr.f32.mxu1 %v367_v16 }
 0x152   : > { %2455 = vmatprep.mubr.msk.f32.mxu0 %vm2930_vm0, %v2931_v8 }
 0x154   : > { %1192 = vmatmul.mubr.f32.gmra.mrb[48].mxu1 %v366_v17 }
 0x155   : > { %2456 = vmatmul.mubr.msk.f32.gmra.mrb[48].mxu0 %vm597_vm1, %v370_v18  ;;  %1196 = vmatprep.mubr.f32.mxu1 %v374_v19 }
 0x156   : > { %2458 = vmatprep.mubr.msk.f32.mxu0 %vm2930_vm0, %v2931_v8 }
 0x158   : > { %1197 = vmatmul.mubr.f32.gmra.mrb[50].mxu1 %v373_v20 }
 0x159   : > { %2459 = vmatmul.mubr.msk.f32.gmra.mrb[50].mxu0 %vm597_vm1, %v377_v21  ;;  %1201 = vmatprep.mubr.f32.mxu1 %v381_v22 }
 0x15a   : > { %2461 = vmatprep.mubr.msk.f32.mxu0 %vm2930_vm0, %v2931_v8 }
 0x15c   : > { %1202 = vmatmul.mubr.f32.gmra.mrb[52].mxu1 %v380_v23 }
 0x15d   : > { %2462 = vmatmul.mubr.msk.f32.gmra.mrb[52].mxu0 %vm597_vm1, %v384_v24  ;;  %1206 = vmatprep.mubr.f32.mxu1 %v388_v25 }
 0x15e   : > { %2464 = vmatprep.mubr.msk.f32.mxu0 %vm2930_vm0, %v2931_v8 }
 0x160   : > { %1207 = vmatmul.mubr.f32.gmra.mrb[54].mxu1 %v387_v26 }
 0x161   : > { %2465 = vmatmul.mubr.msk.f32.gmra.mrb[54].mxu0 %vm597_vm1, %v391_v27  ;;  %1211 = vmatprep.mubr.f32.mxu1 %v395_v28 }
 0x162   : > { %2467 = vmatprep.mubr.msk.f32.mxu0 %vm2930_vm0, %v2931_v8 }
 0x164   : > { %1212 = vmatmul.mubr.f32.gmra.mrb[56].mxu1 %v394_v29 }
 0x165   : > { %2468 = vmatmul.mubr.msk.f32.gmra.mrb[56].mxu0 %vm597_vm1, %v398_v30  ;;  %1216 = vmatprep.mubr.f32.mxu1 %v402_v31 }
 0x166   : > { %2470 = vmatprep.mubr.msk.f32.mxu0 %vm2930_vm0, %v2931_v8 }
 0x168   : > { %1217 = vmatmul.mubr.f32.gmra.mrb[58].mxu1 %v401_v32 }
 0x169   : > { %2471 = vmatmul.mubr.msk.f32.gmra.mrb[58].mxu0 %vm597_vm1, %v405_v3  ;;  %1221 = vmatprep.mubr.f32.mxu1 %v409_v33 }
 0x16a   : > { %2473 = vmatprep.mubr.msk.f32.mxu0 %vm2930_vm0, %v2931_v8 }
 0x16c   : > { %1222 = vmatmul.mubr.f32.gmra.mrb[60].mxu1 %v408_v34 }
 0x16d   : > { %2474 = vmatmul.mubr.msk.f32.gmra.mrb[60].mxu0 %vm597_vm1, %v412_v35  ;;  %1226 = vmatprep.mubr.f32.mxu1 %v416_v36 }
 0x16e   : > { %2476 = vmatprep.mubr.msk.f32.mxu0 %vm2930_vm0, %v2931_v8 }
 0x170   : > { %1227 = vmatmul.mubr.f32.gmra.mrb[62].mxu1 %v415_v37 }
 0x171   : > { %2477 = vmatmul.mubr.msk.f32.gmra.mrb[62].mxu0 %vm597_vm1, %v419_v38  ;;  %1231 = vmatprep.mubr.f32.mxu1 %v423_v39 }
 0x172   : > { %2479 = vmatprep.mubr.msk.f32.mxu0 %vm2930_vm0, %v2931_v8 }
 0x174   : > { %1232 = vmatmul.mubr.f32.gmra.mrb[64].mxu1 %v422_v40 }
 0x175   : > { %2480 = vmatmul.mubr.msk.f32.gmra.mrb[64].mxu0 %vm597_vm1, %v426_v41  ;;  %1236 = vmatprep.mubr.f32.mxu1 %v430_v42 }
 0x176   : > { %2482 = vmatprep.mubr.msk.f32.mxu0 %vm2930_vm0, %v2931_v8 }
 0x178   : > { %1237 = vmatmul.mubr.f32.gmra.mrb[66].mxu1 %v429_v43 }
 0x179   : > { %2483 = vmatmul.mubr.msk.f32.gmra.mrb[66].mxu0 %vm597_vm1, %v433_v44  ;;  %1241 = vmatprep.mubr.f32.mxu1 %v437_v45 }
 0x17a   : > { %2485 = vmatprep.mubr.msk.f32.mxu0 %vm2930_vm0, %v2931_v8 }
 0x17c   : > { %1242 = vmatmul.mubr.f32.gmra.mrb[68].mxu1 %v436_v46 }
 0x17d   : > { %2486 = vmatmul.mubr.msk.f32.gmra.mrb[68].mxu0 %vm597_vm1, %v440_v47  ;;  %1246 = vmatprep.mubr.f32.mxu1 %v444_v48 }
 0x17e   : > { %2488 = vmatprep.mubr.msk.f32.mxu0 %vm2930_vm0, %v2931_v8 }
 0x180   : > { %1247 = vmatmul.mubr.f32.gmra.mrb[70].mxu1 %v443_v49 }
 0x181   : > { %2489 = vmatmul.mubr.msk.f32.gmra.mrb[70].mxu0 %vm597_vm1, %v447_v50  ;;  %1251 = vmatprep.mubr.f32.mxu1 %v451_v51 }
 0x182   : > { %2491 = vmatprep.mubr.msk.f32.mxu0 %vm2930_vm0, %v2931_v8 }
 0x184   : > { %1252 = vmatmul.mubr.f32.gmra.mrb[72].mxu1 %v450_v52 }
 0x185   : > { %2492 = vmatmul.mubr.msk.f32.gmra.mrb[72].mxu0 %vm597_vm1, %v454_v53  ;;  %1256 = vmatprep.mubr.f32.mxu1 %v458_v54 }
 0x186   : > { %2494 = vmatprep.mubr.msk.f32.mxu0 %vm2930_vm0, %v2931_v8 }
 0x188   : > { %1257 = vmatmul.mubr.f32.gmra.mrb[74].mxu1 %v457_v55 }
 0x189   : > { %2495 = vmatmul.mubr.msk.f32.gmra.mrb[74].mxu0 %vm597_vm1, %v461_v56  ;;  %1261 = vmatprep.mubr.f32.mxu1 %v465_v57 }
 0x18a   : > { %2497 = vmatprep.mubr.msk.f32.mxu0 %vm2930_vm0, %v2931_v8 }
 0x18c   : > { %1262 = vmatmul.mubr.f32.gmra.mrb[76].mxu1 %v464_v58 }
 0x18d   : > { %2498 = vmatmul.mubr.msk.f32.gmra.mrb[76].mxu0 %vm597_vm1, %v468_v59  ;;  %1266 = vmatprep.mubr.f32.mxu1 %v472_v60 }
 0x18e   : > { %2500 = vmatprep.mubr.msk.f32.mxu0 %vm2930_vm0, %v2931_v8 }
 0x190   : > { %1267 = vmatmul.mubr.f32.gmra.mrb[78].mxu1 %v471_v61 }
 0x191   : > { %2501 = vmatmul.mubr.msk.f32.gmra.mrb[78].mxu0 %vm597_vm1, %v475_v62  ;;  %1271 = vmatprep.mubr.f32.mxu1 %v479_v63 }
 0x192   : > { %2503 = vmatprep.mubr.msk.f32.mxu0 %vm2930_vm0, %v2931_v8 }
 0x194   : > { %1272 = vmatmul.mubr.f32.gmra.mrb[80].mxu1 %v478_v0 }
 0x195   : > { %2504 = vmatmul.mubr.msk.f32.gmra.mrb[80].mxu0 %vm597_vm1, %v482_v1  ;;  %1276 = vmatprep.mubr.f32.mxu1 %v486_v2 }
 0x196   : > { %2506 = vmatprep.mubr.msk.f32.mxu0 %vm2930_vm0, %v2931_v8 }
 0x198   : > { %1277 = vmatmul.mubr.f32.gmra.mrb[82].mxu1 %v485_v4 }
 0x199   : > { %2507 = vmatmul.mubr.msk.f32.gmra.mrb[82].mxu0 %vm597_vm1, %v489_v5  ;;  %1281 = vmatprep.mubr.f32.mxu1 %v493_v6 }
 0x19a   : > { %2509 = vmatprep.mubr.msk.f32.mxu0 %vm2930_vm0, %v2931_v8 }
 0x19c   : > { %1282 = vmatmul.mubr.f32.gmra.mrb[84].mxu1 %v492_v7 }
 0x19d   : > { %2510 = vmatmul.mubr.msk.f32.gmra.mrb[84].mxu0 %vm597_vm1, %v496_v9 }
 0x1c7   : > { %v1073_v10 = vpop.f32.mrb[0].mxu1 }
 0x1c8   : > { %v1633_v11 = vpop.f32.mrb[0].mxu0  ;;  %v1075_v12 = vpop.f32.mrb[1].mxu1 }
 0x1c9   : > { %v3758_v13 = vadd.f32 %v1633_v11, %v1073_v10  ;;  %v2385_v14 = vpop.f32.mrb[1].mxu0 }
 0x1cb   : > { %v1078_v15 = vpop.f32.mrb[2].mxu1  ;;  %1851 = vst.msk [vmem:[%s4767_s3] sm:$0xff] (!%p2320_p5), %vm597_vm1, %v3758_v13 }
 0x1cc   : > { %v1638_v16 = vpop.f32.mrb[2].mxu0  ;;  %v1080_v17 = vpop.f32.mrb[3].mxu1 }
 0x1cd   : > { %v3760_v18 = vadd.f32 %v1638_v16, %v1078_v15  ;;  %v2388_v19 = vpop.f32.mrb[3].mxu0 }
 0x1cf   : > { %v1083_v20 = vpop.f32.mrb[4].mxu1  ;;  %1852 = vst.msk [vmem:[%s4767_s3 + $0x8] sm:$0xff] (!%p2320_p5), %vm597_vm1, %v3760_v18 }
 0x1d0   : > { %v1643_v21 = vpop.f32.mrb[4].mxu0  ;;  %v1085_v22 = vpop.f32.mrb[5].mxu1 }
 0x1d1   : > { %v3762_v8 = vadd.f32 %v1643_v21, %v1083_v20  ;;  %v2391_v23 = vpop.f32.mrb[5].mxu0 }
 0x1d3   : > { %v1088_v24 = vpop.f32.mrb[6].mxu1  ;;  %1853 = vst.msk [vmem:[%s4767_s3 + $0x10] sm:$0xff] (!%p2320_p5), %vm597_vm1, %v3762_v8 }
 0x1d4   : > { %v1648_v25 = vpop.f32.mrb[6].mxu0  ;;  %v1090_v26 = vpop.f32.mrb[7].mxu1 }
 0x1d5   : > { %v3764_v27 = vadd.f32 %v1648_v25, %v1088_v24  ;;  %v2394_v28 = vpop.f32.mrb[7].mxu0 }
 0x1d7   : > { %v1093_v29 = vpop.f32.mrb[8].mxu1  ;;  %1854 = vst.msk [vmem:[%s4767_s3 + $0x18] sm:$0xff] (!%p2320_p5), %vm597_vm1, %v3764_v27 }
 0x1d8   : > { %v1653_v30 = vpop.f32.mrb[8].mxu0  ;;  %v1095_v31 = vpop.f32.mrb[9].mxu1 }
 0x1d9   : > { %v3766_v32 = vadd.f32 %v1653_v30, %v1093_v29  ;;  %v2397_v3 = vpop.f32.mrb[9].mxu0 }
 0x1db   : > { %v1098_v33 = vpop.f32.mrb[10].mxu1  ;;  %1855 = vst.msk [vmem:[%s4767_s3 + $0x20] sm:$0xff] (!%p2320_p5), %vm597_vm1, %v3766_v32 }
 0x1dc   : > { %v1658_v34 = vpop.f32.mrb[10].mxu0  ;;  %v1100_v35 = vpop.f32.mrb[11].mxu1 }
 0x1dd   : > { %v3768_v36 = vadd.f32 %v1658_v34, %v1098_v33  ;;  %v2400_v37 = vpop.f32.mrb[11].mxu0 }
 0x1df   : > { %v1103_v38 = vpop.f32.mrb[12].mxu1  ;;  %1856 = vst.msk [vmem:[%s4767_s3 + $0x28] sm:$0xff] (!%p2320_p5), %vm597_vm1, %v3768_v36 }
 0x1e0   : > { %v1663_v39 = vpop.f32.mrb[12].mxu0  ;;  %v1105_v40 = vpop.f32.mrb[13].mxu1 }
 0x1e1   : > { %v3770_v41 = vadd.f32 %v1663_v39, %v1103_v38  ;;  %v2403_v42 = vpop.f32.mrb[13].mxu0 }
 0x1e3   : > { %v1108_v43 = vpop.f32.mrb[14].mxu1  ;;  %1857 = vst.msk [vmem:[%s4767_s3 + $0x30] sm:$0xff] (!%p2320_p5), %vm597_vm1, %v3770_v41 }
 0x1e4   : > { %v1668_v44 = vpop.f32.mrb[14].mxu0  ;;  %v1110_v45 = vpop.f32.mrb[15].mxu1 }
 0x1e5   : > { %v3772_v46 = vadd.f32 %v1668_v44, %v1108_v43  ;;  %v2406_v47 = vpop.f32.mrb[15].mxu0 }
 0x1e7   : > { %v1113_v48 = vpop.f32.mrb[16].mxu1  ;;  %1858 = vst.msk [vmem:[%s4767_s3 + $0x38] sm:$0xff] (!%p2320_p5), %vm597_vm1, %v3772_v46 }
 0x1e8   : > { %v1673_v49 = vpop.f32.mrb[16].mxu0  ;;  %v1115_v50 = vpop.f32.mrb[17].mxu1 }
 0x1e9   : > { %v3774_v51 = vadd.f32 %v1673_v49, %v1113_v48  ;;  %v2409_v52 = vpop.f32.mrb[17].mxu0 }
 0x1eb   : > { %v1118_v53 = vpop.f32.mrb[18].mxu1  ;;  %1859 = vst.msk [vmem:[%s4767_s3 + $0x40] sm:$0xff] (!%p2320_p5), %vm597_vm1, %v3774_v51 }
 0x1ec   : > { %v1678_v54 = vpop.f32.mrb[18].mxu0  ;;  %v1120_v55 = vpop.f32.mrb[19].mxu1 }
 0x1ed   : > { %v3776_v56 = vadd.f32 %v1678_v54, %v1118_v53  ;;  %v2412_v57 = vpop.f32.mrb[19].mxu0 }
 0x1ef   : > { %v1123_v58 = vpop.f32.mrb[20].mxu1  ;;  %1860 = vst.msk [vmem:[%s4767_s3 + $0x48] sm:$0xff] (!%p2320_p5), %vm597_vm1, %v3776_v56 }
 0x1f0   : > { %v1683_v59 = vpop.f32.mrb[20].mxu0  ;;  %v1125_v60 = vpop.f32.mrb[21].mxu1 }
 0x1f1   : > { %v3778_v61 = vadd.f32 %v1683_v59, %v1123_v58  ;;  %v2415_v62 = vpop.f32.mrb[21].mxu0 }
 0x1f3   : > { %v1128_v63 = vpop.f32.mrb[22].mxu1  ;;  %1861 = vst.msk [vmem:[%s4767_s3 + $0x50] sm:$0xff] (!%p2320_p5), %vm597_vm1, %v3778_v61 }
 0x1f4   : > { %v1688_v0 = vpop.f32.mrb[22].mxu0  ;;  %v1130_v1 = vpop.f32.mrb[23].mxu1 }
 0x1f5   : > { %v3780_v2 = vadd.f32 %v1688_v0, %v1128_v63  ;;  %v2418_v4 = vpop.f32.mrb[23].mxu0 }
 0x1f7   : > { %v1133_v5 = vpop.f32.mrb[24].mxu1  ;;  %1862 = vst.msk [vmem:[%s4767_s3 + $0x58] sm:$0xff] (!%p2320_p5), %vm597_vm1, %v3780_v2 }
 0x1f8   : > { %v1693_v6 = vpop.f32.mrb[24].mxu0  ;;  %v1135_v7 = vpop.f32.mrb[25].mxu1 }
 0x1f9   : > { %v3782_v9 = vadd.f32 %v1693_v6, %v1133_v5  ;;  %v2421_v10 = vpop.f32.mrb[25].mxu0 }
 0x1fb   : > { %v1138_v11 = vpop.f32.mrb[26].mxu1  ;;  %1863 = vst.msk [vmem:[%s4767_s3 + $0x60] sm:$0xff] (!%p2320_p5), %vm597_vm1, %v3782_v9 }
 0x1fc   : > { %v1698_v12 = vpop.f32.mrb[26].mxu0  ;;  %v1140_v14 = vpop.f32.mrb[27].mxu1 }
 0x1fd   : > { %v3784_v15 = vadd.f32 %v1698_v12, %v1138_v11  ;;  %v2424_v16 = vpop.f32.mrb[27].mxu0 }
 0x1ff   : > { %v1143_v17 = vpop.f32.mrb[28].mxu1  ;;  %1864 = vst.msk [vmem:[%s4767_s3 + $0x68] sm:$0xff] (!%p2320_p5), %vm597_vm1, %v3784_v15 }
 0x200   : > { %v1703_v19 = vpop.f32.mrb[28].mxu0  ;;  %v1145_v20 = vpop.f32.mrb[29].mxu1 }
 0x201   : > { %v3786_v21 = vadd.f32 %v1703_v19, %v1143_v17  ;;  %v2427_v22 = vpop.f32.mrb[29].mxu0 }
 0x203   : > { %v1148_v23 = vpop.f32.mrb[30].mxu1  ;;  %1865 = vst.msk [vmem:[%s4767_s3 + $0x70] sm:$0xff] (!%p2320_p5), %vm597_vm1, %v3786_v21 }
 0x204   : > { %v1708_v24 = vpop.f32.mrb[30].mxu0  ;;  %v1150_v25 = vpop.f32.mrb[31].mxu1 }
 0x205   : > { %v3788_v26 = vadd.f32 %v1708_v24, %v1148_v23  ;;  %v2430_v28 = vpop.f32.mrb[31].mxu0 }
 0x207   : > { %v1153_v29 = vpop.f32.mrb[32].mxu1  ;;  %1866 = vst.msk [vmem:[%s4767_s3 + $0x78] sm:$0xff] (!%p2320_p5), %vm597_vm1, %v3788_v26 }
 0x208   : > { %v1713_v30 = vpop.f32.mrb[32].mxu0  ;;  %v1155_v31 = vpop.f32.mrb[33].mxu1 }
 0x209   : > { %v3790_v3 = vadd.f32 %v1713_v30, %v1153_v29  ;;  %v2433_v33 = vpop.f32.mrb[33].mxu0 }
 0x20b   : > { %v1158_v34 = vpop.f32.mrb[34].mxu1  ;;  %1867 = vst.msk [vmem:[%s4767_s3 + $0x80] sm:$0xff] (!%p2320_p5), %vm597_vm1, %v3790_v3 }
 0x20c   : > { %v1718_v35 = vpop.f32.mrb[34].mxu0  ;;  %v1160_v37 = vpop.f32.mrb[35].mxu1 }
 0x20d   : > { %v3792_v38 = vadd.f32 %v1718_v35, %v1158_v34  ;;  %v2436_v39 = vpop.f32.mrb[35].mxu0 }
 0x20f   : > { %v1163_v40 = vpop.f32.mrb[36].mxu1  ;;  %1868 = vst.msk [vmem:[%s4767_s3 + $0x88] sm:$0xff] (!%p2320_p5), %vm597_vm1, %v3792_v38 }
 0x210   : > { %v1723_v42 = vpop.f32.mrb[36].mxu0  ;;  %v1165_v43 = vpop.f32.mrb[37].mxu1 }
 0x211   : > { %v3794_v44 = vadd.f32 %v1723_v42, %v1163_v40  ;;  %v2439_v45 = vpop.f32.mrb[37].mxu0 }
 0x213   : > { %v1168_v47 = vpop.f32.mrb[38].mxu1  ;;  %1869 = vst.msk [vmem:[%s4767_s3 + $0x90] sm:$0xff] (!%p2320_p5), %vm597_vm1, %v3794_v44 }
 0x214   : > { %v1728_v48 = vpop.f32.mrb[38].mxu0  ;;  %v1170_v49 = vpop.f32.mrb[39].mxu1 }
 0x215   : > { %v3796_v50 = vadd.f32 %v1728_v48, %v1168_v47  ;;  %v2442_v52 = vpop.f32.mrb[39].mxu0 }
 0x217   : > { %v1173_v53 = vpop.f32.mrb[40].mxu1  ;;  %1870 = vst.msk [vmem:[%s4767_s3 + $0x98] sm:$0xff] (!%p2320_p5), %vm597_vm1, %v3796_v50 }
 0x218   : > { %v1733_v54 = vpop.f32.mrb[40].mxu0  ;;  %v1175_v55 = vpop.f32.mrb[41].mxu1 }
 0x219   : > { %v3798_v57 = vadd.f32 %v1733_v54, %v1173_v53  ;;  %v2445_v58 = vpop.f32.mrb[41].mxu0 }
 0x21b   : > { %v1178_v59 = vpop.f32.mrb[42].mxu1  ;;  %1871 = vst.msk [vmem:[%s4767_s3 + $0xa0] sm:$0xff] (!%p2320_p5), %vm597_vm1, %v3798_v57 }
 0x21c   : > { %v1738_v60 = vpop.f32.mrb[42].mxu0  ;;  %v1180_v62 = vpop.f32.mrb[43].mxu1 }
 0x21d   : > { %v3800_v63 = vadd.f32 %v1738_v60, %v1178_v59  ;;  %v2448_v0 = vpop.f32.mrb[43].mxu0 }
 0x21f   : > { %v1183_v1 = vpop.f32.mrb[44].mxu1  ;;  %1872 = vst.msk [vmem:[%s4767_s3 + $0xa8] sm:$0xff] (!%p2320_p5), %vm597_vm1, %v3800_v63 }
 0x220   : > { %v1743_v4 = vpop.f32.mrb[44].mxu0  ;;  %v1185_v5 = vpop.f32.mrb[45].mxu1 }
 0x221   : > { %v3802_v6 = vadd.f32 %v1743_v4, %v1183_v1  ;;  %v2451_v7 = vpop.f32.mrb[45].mxu0 }
 0x223   : > { %v1188_v10 = vpop.f32.mrb[46].mxu1  ;;  %1873 = vst.msk [vmem:[%s4767_s3 + $0xb0] sm:$0xff] (!%p2320_p5), %vm597_vm1, %v3802_v6 }
 0x224   : > { %v1748_v11 = vpop.f32.mrb[46].mxu0  ;;  %v1190_v12 = vpop.f32.mrb[47].mxu1 }
 0x225   : > { %v3804_v14 = vadd.f32 %v1748_v11, %v1188_v10  ;;  %v2454_v16 = vpop.f32.mrb[47].mxu0 }
 0x227   : > { %v1193_v17 = vpop.f32.mrb[48].mxu1  ;;  %1874 = vst.msk [vmem:[%s4767_s3 + $0xb8] sm:$0xff] (!%p2320_p5), %vm597_vm1, %v3804_v14 }
 0x228   : > { %v1753_v19 = vpop.f32.mrb[48].mxu0  ;;  %v1195_v20 = vpop.f32.mrb[49].mxu1 }
 0x229   : > { %v3806_v22 = vadd.f32 %v1753_v19, %v1193_v17  ;;  %v2457_v23 = vpop.f32.mrb[49].mxu0 }
 0x22b   : > { %v1198_v24 = vpop.f32.mrb[50].mxu1  ;;  %1875 = vst.msk [vmem:[%s4767_s3 + $0xc0] sm:$0xff] (!%p2320_p5), %vm597_vm1, %v3806_v22 }
 0x22c   : > { %v1758_v25 = vpop.f32.mrb[50].mxu0  ;;  %v1200_v28 = vpop.f32.mrb[51].mxu1 }
 0x22d   : > { %v3808_v29 = vadd.f32 %v1758_v25, %v1198_v24  ;;  %v2460_v30 = vpop.f32.mrb[51].mxu0 }
 0x22f   : > { %v1203_v31 = vpop.f32.mrb[52].mxu1  ;;  %1876 = vst.msk [vmem:[%s4767_s3 + $0xc8] sm:$0xff] (!%p2320_p5), %vm597_vm1, %v3808_v29 }
 0x230   : > { %v1763_v33 = vpop.f32.mrb[52].mxu0  ;;  %v1205_v34 = vpop.f32.mrb[53].mxu1 }
 0x231   : > { %v3810_v35 = vadd.f32 %v1763_v33, %v1203_v31  ;;  %v2463_v37 = vpop.f32.mrb[53].mxu0 }
 0x233   : > { %v1208_v39 = vpop.f32.mrb[54].mxu1  ;;  %1877 = vst.msk [vmem:[%s4767_s3 + $0xd0] sm:$0xff] (!%p2320_p5), %vm597_vm1, %v3810_v35 }
 0x234   : > { %v1768_v40 = vpop.f32.mrb[54].mxu0  ;;  %v1210_v42 = vpop.f32.mrb[55].mxu1 }
 0x235   : > { %v3812_v43 = vadd.f32 %v1768_v40, %v1208_v39  ;;  %v2466_v45 = vpop.f32.mrb[55].mxu0 }
 0x237   : > { %v1213_v47 = vpop.f32.mrb[56].mxu1  ;;  %1878 = vst.msk [vmem:[%s4767_s3 + $0xd8] sm:$0xff] (!%p2320_p5), %vm597_vm1, %v3812_v43 }
 0x238   : > { %v1773_v48 = vpop.f32.mrb[56].mxu0  ;;  %v1215_v49 = vpop.f32.mrb[57].mxu1 }
 0x239   : > { %v3814_v52 = vadd.f32 %v1773_v48, %v1213_v47  ;;  %v2469_v53 = vpop.f32.mrb[57].mxu0 }
 0x23b   : > { %v1218_v54 = vpop.f32.mrb[58].mxu1  ;;  %1879 = vst.msk [vmem:[%s4767_s3 + $0xe0] sm:$0xff] (!%p2320_p5), %vm597_vm1, %v3814_v52 }
 0x23c   : > { %v1778_v55 = vpop.f32.mrb[58].mxu0  ;;  %v1220_v58 = vpop.f32.mrb[59].mxu1 }
 0x23d   : > { %v3816_v59 = vadd.f32 %v1778_v55, %v1218_v54  ;;  %v2472_v60 = vpop.f32.mrb[59].mxu0 }
 0x23f   : > { %v1223_v62 = vpop.f32.mrb[60].mxu1  ;;  %1880 = vst.msk [vmem:[%s4767_s3 + $0xe8] sm:$0xff] (!%p2320_p5), %vm597_vm1, %v3816_v59 }
 0x240   : > { %v1783_v0 = vpop.f32.mrb[60].mxu0  ;;  %v1225_v1 = vpop.f32.mrb[61].mxu1 }
 0x241   : > { %v3818_v4 = vadd.f32 %v1783_v0, %v1223_v62  ;;  %v2475_v5 = vpop.f32.mrb[61].mxu0 }
 0x243   : > { %v1228_v7 = vpop.f32.mrb[62].mxu1  ;;  %1881 = vst.msk [vmem:[%s4767_s3 + $0xf0] sm:$0xff] (!%p2320_p5), %vm597_vm1, %v3818_v4 }
 0x244   : > { %v1788_v10 = vpop.f32.mrb[62].mxu0  ;;  %v1230_v11 = vpop.f32.mrb[63].mxu1 }
 0x245   : > { %v3820_v12 = vadd.f32 %v1788_v10, %v1228_v7  ;;  %v2478_v16 = vpop.f32.mrb[63].mxu0 }
 0x247   : > { %v1233_v17 = vpop.f32.mrb[64].mxu1  ;;  %1882 = vst.msk [vmem:[%s4767_s3 + $0xf8] sm:$0xff] (!%p2320_p5), %vm597_vm1, %v3820_v12 }
 0x248   : > { %v1793_v19 = vpop.f32.mrb[64].mxu0  ;;  %v1235_v20 = vpop.f32.mrb[65].mxu1 }
 0x249   : > { %v3822_v23 = vadd.f32 %v1793_v19, %v1233_v17  ;;  %v2481_v24 = vpop.f32.mrb[65].mxu0 }
 0x24b   : > { %v1238_v25 = vpop.f32.mrb[66].mxu1  ;;  %1883 = vst.msk [vmem:[%s4767_s3 + $0x100] sm:$0xff] (!%p2320_p5), %vm597_vm1, %v3822_v23 }
 0x24c   : > { %v1798_v28 = vpop.f32.mrb[66].mxu0  ;;  %v1240_v30 = vpop.f32.mrb[67].mxu1 }
 0x24d   : > { %v3824_v31 = vadd.f32 %v1798_v28, %v1238_v25  ;;  %v2484_v33 = vpop.f32.mrb[67].mxu0 }
 0x24f   : > { %v1243_v34 = vpop.f32.mrb[68].mxu1  ;;  %1884 = vst.msk [vmem:[%s4767_s3 + $0x108] sm:$0xff] (!%p2320_p5), %vm597_vm1, %v3824_v31 }
 0x250   : > { %v1803_v37 = vpop.f32.mrb[68].mxu0  ;;  %v1245_v39 = vpop.f32.mrb[69].mxu1 }
 0x251   : > { %v3826_v40 = vadd.f32 %v1803_v37, %v1243_v34  ;;  %v2487_v42 = vpop.f32.mrb[69].mxu0 }
 0x253   : > { %v1248_v45 = vpop.f32.mrb[70].mxu1  ;;  %1885 = vst.msk [vmem:[%s4767_s3 + $0x110] sm:$0xff] (!%p2320_p5), %vm597_vm1, %v3826_v40 }
 0x254   : > { %v1808_v47 = vpop.f32.mrb[70].mxu0  ;;  %v1250_v48 = vpop.f32.mrb[71].mxu1 }
 0x255   : > { %v3828_v49 = vadd.f32 %v1808_v47, %v1248_v45  ;;  %v2490_v53 = vpop.f32.mrb[71].mxu0 }
 0x257   : > { %v1253_v54 = vpop.f32.mrb[72].mxu1  ;;  %1886 = vst.msk [vmem:[%s4767_s3 + $0x118] sm:$0xff] (!%p2320_p5), %vm597_vm1, %v3828_v49 }
 0x258   : > { %v1813_v55 = vpop.f32.mrb[72].mxu0  ;;  %v1255_v58 = vpop.f32.mrb[73].mxu1 }
 0x259   : > { %v3830_v60 = vadd.f32 %v1813_v55, %v1253_v54  ;;  %v2493_v62 = vpop.f32.mrb[73].mxu0 }
 0x25b   : > { %v1258_v0 = vpop.f32.mrb[74].mxu1  ;;  %1887 = vst.msk [vmem:[%s4767_s3 + $0x120] sm:$0xff] (!%p2320_p5), %vm597_vm1, %v3830_v60 }
 0x25c   : > { %v1818_v1 = vpop.f32.mrb[74].mxu0  ;;  %v1260_v5 = vpop.f32.mrb[75].mxu1 }
 0x25d   : > { %v3832_v7 = vadd.f32 %v1818_v1, %v1258_v0  ;;  %v2496_v10 = vpop.f32.mrb[75].mxu0 }
 0x25f   : > { %v1263_v11 = vpop.f32.mrb[76].mxu1  ;;  %1888 = vst.msk [vmem:[%s4767_s3 + $0x128] sm:$0xff] (!%p2320_p5), %vm597_vm1, %v3832_v7 }
 0x260   : > { %v1823_v16 = vpop.f32.mrb[76].mxu0  ;;  %v1265_v17 = vpop.f32.mrb[77].mxu1 }
 0x261   : > { %v3834_v19 = vadd.f32 %v1823_v16, %v1263_v11  ;;  %v2499_v20 = vpop.f32.mrb[77].mxu0 }
 0x263   : > { %v1268_v24 = vpop.f32.mrb[78].mxu1  ;;  %1889 = vst.msk [vmem:[%s4767_s3 + $0x130] sm:$0xff] (!%p2320_p5), %vm597_vm1, %v3834_v19 }
 0x264   : > { %v1828_v25 = vpop.f32.mrb[78].mxu0  ;;  %v1270_v28 = vpop.f32.mrb[79].mxu1 }
 0x265   : > { %v3836_v30 = vadd.f32 %v1828_v25, %v1268_v24  ;;  %v2502_v33 = vpop.f32.mrb[79].mxu0 }
 0x267   : > { %v1273_v34 = vpop.f32.mrb[80].mxu1  ;;  %1890 = vst.msk [vmem:[%s4767_s3 + $0x138] sm:$0xff] (!%p2320_p5), %vm597_vm1, %v3836_v30 }
 0x268   : > { %v1833_v37 = vpop.f32.mrb[80].mxu0  ;;  %v1275_v39 = vpop.f32.mrb[81].mxu1 }
 0x269   : > { %v3838_v42 = vadd.f32 %v1833_v37, %v1273_v34  ;;  %v2505_v45 = vpop.f32.mrb[81].mxu0 }
 0x26b   : > { %v1278_v47 = vpop.f32.mrb[82].mxu1  ;;  %1850 = sbr.rel (%p2320_p5) target bundleno = 628 (0x274), region = 36  ;;  %1891 = vst.msk [vmem:[%s4767_s3 + $0x140] sm:$0xff] (!%p2320_p5), %vm597_vm1, %v3838_v42 }
 0x26c   : > { %v1838_v48 = vpop.f32.mrb[82].mxu0  ;;  %v1280_v53 = vpop.f32.mrb[83].mxu1 }
 0x26d   : > { %v3840_v54 = vadd.f32 %v1838_v48, %v1278_v47  ;;  %v2508_v55 = vpop.f32.mrb[83].mxu0 }
 0x26f   : > { %v1283_v58 = vpop.f32.mrb[84].mxu1  ;;  %1892 = vst.msk [vmem:[%s4767_s3 + $0x148] sm:$0xff] (!%p2320_p5), %vm597_vm1, %v3840_v54 }
 0x270   : > { %v1843_v62 = vpop.f32.mrb[84].mxu0  ;;  %v1285_v0 = vpop.f32.mrb[85].mxu1 }
 0x271   : > { %v3842_v1 = vadd.f32 %v1843_v62, %v1283_v58  ;;  %v2511_v5 = vpop.f32.mrb[85].mxu0 }
 0x273   : > { %1893 = vst.msk [vmem:[%s4767_s3 + $0x150] sm:$0xff] %vm597_vm1, %v3842_v1 }
 0x274 PF: > { %p2321_p6 = scmp.eq.s32.totalorder %s2919_s12, 0 }
 0x275   : > { %v1898_v10 = vld [vmem:[%s4767_s3] sm:$0xff] (!%p2321_p6)  ;;  %v1899_v11 = vld [vmem:[%s4767_s3 + $0x8] sm:$0xff] (!%p2321_p6)  ;;  %v1900_v16 = vld [vmem:[%s4767_s3 + $0x10] sm:$0xff] (!%p2321_p6) }
 0x276   : > { %1897 = sbr.rel (%p2321_p6) target bundleno = 654 (0x28e), region = 40  ;;  %v1941_v17 = vmax.f32 (!%p2321_p6), %v1898_v10, %v3758_v13  ;;  %v1942_v20 = vmax.f32 (!%p2321_p6), %v1899_v11, %v3760_v18  ;;  %v1943_v24 = vmax.f32 (!%p2321_p6), %v1900_v16, %v3762_v8  ;;  %v1901_v25 = vld [vmem:[%s4767_s3 + $0x18] sm:$0xff] (!%p2321_p6)  ;;  %v1902_v28 = vld [vmem:[%s4767_s3 + $0x20] sm:$0xff] (!%p2321_p6)  ;;  %v1903_v33 = vld [vmem:[%s4767_s3 + $0x28] sm:$0xff] (!%p2321_p6) }
 0x277   : > { %v1944_v34 = vmax.f32 (!%p2321_p6), %v1901_v25, %v3764_v27  ;;  %v1945_v13 = vmax.f32 (!%p2321_p6), %v1902_v28, %v3766_v32  ;;  %v1946_v18 = vmax.f32 (!%p2321_p6), %v1903_v33, %v3768_v36  ;;  %v1904_v8 = vld [vmem:[%s4767_s3 + $0x30] sm:$0xff] (!%p2321_p6)  ;;  %v1905_v37 = vld [vmem:[%s4767_s3 + $0x38] sm:$0xff] (!%p2321_p6)  ;;  %v1906_v39 = vld [vmem:[%s4767_s3 + $0x40] sm:$0xff] (!%p2321_p6) }
 0x278   : > { %1984 = vst.msk [vmem:[%s4767_s3] sm:$0xff] (!%p2321_p6), %vm597_vm1, %v1941_v17  ;;  %1985 = vst.msk [vmem:[%s4767_s3 + $0x8] sm:$0xff] (!%p2321_p6), %vm597_vm1, %v1942_v20  ;;  %v1947_v27 = vmax.f32 (!%p2321_p6), %v1904_v8, %v3770_v41  ;;  %v1948_v32 = vmax.f32 (!%p2321_p6), %v1905_v37, %v3772_v46  ;;  %v1949_v36 = vmax.f32 (!%p2321_p6), %v1906_v39, %v3774_v51  ;;  %v1907_v45 = vld [vmem:[%s4767_s3 + $0x48] sm:$0xff] (!%p2321_p6)  ;;  %v1908_v47 = vld [vmem:[%s4767_s3 + $0x50] sm:$0xff] (!%p2321_p6) }
 0x279   : > { %1986 = vst.msk [vmem:[%s4767_s3 + $0x10] sm:$0xff] (!%p2321_p6), %vm597_vm1, %v1943_v24  ;;  %v1909_v48 = vld [vmem:[%s4767_s3 + $0x58] sm:$0xff] (!%p2321_p6)  ;;  %1987 = vst.msk [vmem:[%s4767_s3 + $0x18] sm:$0xff] (!%p2321_p6), %vm597_vm1, %v1944_v34  ;;  %v1950_v41 = vmax.f32 (!%p2321_p6), %v1907_v45, %v3776_v56  ;;  %v1951_v46 = vmax.f32 (!%p2321_p6), %v1908_v47, %v3778_v61  ;;  %v1910_v53 = vld [vmem:[%s4767_s3 + $0x60] sm:$0xff] (!%p2321_p6) }
 0x27a   : > { %1988 = vst.msk [vmem:[%s4767_s3 + $0x20] sm:$0xff] (!%p2321_p6), %vm597_vm1, %v1945_v13  ;;  %1989 = vst.msk [vmem:[%s4767_s3 + $0x28] sm:$0xff] (!%p2321_p6), %vm597_vm1, %v1946_v18  ;;  %v1952_v51 = vmax.f32 (!%p2321_p6), %v1909_v48, %v3780_v2  ;;  %v1911_v55 = vld [vmem:[%s4767_s3 + $0x68] sm:$0xff] (!%p2321_p6)  ;;  %v1912_v58 = vld [vmem:[%s4767_s3 + $0x70] sm:$0xff] (!%p2321_p6)  ;;  %v1953_v56 = vmax.f32 (!%p2321_p6), %v1910_v53, %v3782_v9 }
 0x27b   : > { %1990 = vst.msk [vmem:[%s4767_s3 + $0x30] sm:$0xff] (!%p2321_p6), %vm597_vm1, %v1947_v27  ;;  %1991 = vst.msk [vmem:[%s4767_s3 + $0x38] sm:$0xff] (!%p2321_p6), %vm597_vm1, %v1948_v32  ;;  %v1954_v61 = vmax.f32 (!%p2321_p6), %v1911_v55, %v3784_v15  ;;  %v1955_v2 = vmax.f32 (!%p2321_p6), %v1912_v58, %v3786_v21  ;;  %v1913_v62 = vld [vmem:[%s4767_s3 + $0x78] sm:$0xff] (!%p2321_p6)  ;;  %v1914_v0 = vld [vmem:[%s4767_s3 + $0x80] sm:$0xff] (!%p2321_p6) }
 0x27c   : > { %1992 = vst.msk [vmem:[%s4767_s3 + $0x40] sm:$0xff] (!%p2321_p6), %vm597_vm1, %v1949_v36  ;;  %v1915_v5 = vld [vmem:[%s4767_s3 + $0x88] sm:$0xff] (!%p2321_p6)  ;;  %1993 = vst.msk [vmem:[%s4767_s3 + $0x48] sm:$0xff] (!%p2321_p6), %vm597_vm1, %v1950_v41  ;;  %v1956_v9 = vmax.f32 (!%p2321_p6), %v1913_v62, %v3788_v26  ;;  %v1957_v15 = vmax.f32 (!%p2321_p6), %v1914_v0, %v3790_v3  ;;  %v1916_v10 = vld [vmem:[%s4767_s3 + $0x90] sm:$0xff] (!%p2321_p6) }
 0x27d   : > { %1994 = vst.msk [vmem:[%s4767_s3 + $0x50] sm:$0xff] %vm597_vm1, %v1951_v46  ;;  %1995 = vst.msk [vmem:[%s4767_s3 + $0x58] sm:$0xff] %vm597_vm1, %v1952_v51  ;;  %v1958_v21 = vmax.f32 %v1915_v5, %v3792_v38  ;;  %v1917_v11 = vld [vmem:[%s4767_s3 + $0x98] sm:$0xff]  ;;  %v1918_v16 = vld [vmem:[%s4767_s3 + $0xa0] sm:$0xff]  ;;  %v1959_v26 = vmax.f32 %v1916_v10, %v3794_v44 }
 0x27e   : > { %1996 = vst.msk [vmem:[%s4767_s3 + $0x60] sm:$0xff] %vm597_vm1, %v1953_v56  ;;  %1997 = vst.msk [vmem:[%s4767_s3 + $0x68] sm:$0xff] %vm597_vm1, %v1954_v61  ;;  %v1960_v3 = vmax.f32 %v1917_v11, %v3796_v50  ;;  %v1961_v38 = vmax.f32 %v1918_v16, %v3798_v57  ;;  %v1919_v17 = vld [vmem:[%s4767_s3 + $0xa8] sm:$0xff]  ;;  %v1920_v20 = vld [vmem:[%s4767_s3 + $0xb0] sm:$0xff] }
 0x27f   : > { %1998 = vst.msk [vmem:[%s4767_s3 + $0x70] sm:$0xff] %vm597_vm1, %v1955_v2  ;;  %v1921_v24 = vld [vmem:[%s4767_s3 + $0xb8] sm:$0xff]  ;;  %1999 = vst.msk [vmem:[%s4767_s3 + $0x78] sm:$0xff] %vm597_vm1, %v1956_v9  ;;  %v1962_v44 = vmax.f32 %v1919_v17, %v3800_v63  ;;  %v1963_v50 = vmax.f32 %v1920_v20, %v3802_v6  ;;  %v1922_v25 = vld [vmem:[%s4767_s3 + $0xc0] sm:$0xff] }
 0x280   : > { %2000 = vst.msk [vmem:[%s4767_s3 + $0x80] sm:$0xff] %vm597_vm1, %v1957_v15  ;;  %2001 = vst.msk [vmem:[%s4767_s3 + $0x88] sm:$0xff] %vm597_vm1, %v1958_v21  ;;  %v1964_v57 = vmax.f32 %v1921_v24, %v3804_v14  ;;  %v1923_v28 = vld [vmem:[%s4767_s3 + $0xc8] sm:$0xff]  ;;  %v1924_v33 = vld [vmem:[%s4767_s3 + $0xd0] sm:$0xff]  ;;  %v1965_v63 = vmax.f32 %v1922_v25, %v3806_v22 }
 0x281   : > { %2002 = vst.msk [vmem:[%s4767_s3 + $0x90] sm:$0xff] %vm597_vm1, %v1959_v26  ;;  %2003 = vst.msk [vmem:[%s4767_s3 + $0x98] sm:$0xff] %vm597_vm1, %v1960_v3  ;;  %v1966_v6 = vmax.f32 %v1923_v28, %v3808_v29  ;;  %v1967_v14 = vmax.f32 %v1924_v33, %v3810_v35  ;;  %v1925_v34 = vld [vmem:[%s4767_s3 + $0xd8] sm:$0xff]  ;;  %v1926_v13 = vld [vmem:[%s4767_s3 + $0xe0] sm:$0xff] }
 0x282   : > { %2004 = vst.msk [vmem:[%s4767_s3 + $0xa0] sm:$0xff] %vm597_vm1, %v1961_v38  ;;  %v1927_v18 = vld [vmem:[%s4767_s3 + $0xe8] sm:$0xff]  ;;  %2005 = vst.msk [vmem:[%s4767_s3 + $0xa8] sm:$0xff] %vm597_vm1, %v1962_v44  ;;  %v1968_v22 = vmax.f32 %v1925_v34, %v3812_v43  ;;  %v1969_v29 = vmax.f32 %v1926_v13, %v3814_v52  ;;  %v1928_v8 = vld [vmem:[%s4767_s3 + $0xf0] sm:$0xff] }
 0x283   : > { %2006 = vst.msk [vmem:[%s4767_s3 + $0xb0] sm:$0xff] %vm597_vm1, %v1963_v50  ;;  %2007 = vst.msk [vmem:[%s4767_s3 + $0xb8] sm:$0xff] %vm597_vm1, %v1964_v57  ;;  %v1970_v35 = vmax.f32 %v1927_v18, %v3816_v59  ;;  %v1929_v37 = vld [vmem:[%s4767_s3 + $0xf8] sm:$0xff]  ;;  %v1930_v39 = vld [vmem:[%s4767_s3 + $0x100] sm:$0xff]  ;;  %v1971_v43 = vmax.f32 %v1928_v8, %v3818_v4 }
 0x284   : > { %2008 = vst.msk [vmem:[%s4767_s3 + $0xc0] sm:$0xff] %vm597_vm1, %v1965_v63  ;;  %2009 = vst.msk [vmem:[%s4767_s3 + $0xc8] sm:$0xff] %vm597_vm1, %v1966_v6  ;;  %v1972_v52 = vmax.f32 %v1929_v37, %v3820_v12  ;;  %v1973_v59 = vmax.f32 %v1930_v39, %v3822_v23  ;;  %v1931_v27 = vld [vmem:[%s4767_s3 + $0x108] sm:$0xff]  ;;  %v1932_v32 = vld [vmem:[%s4767_s3 + $0x110] sm:$0xff] }
 0x285   : > { %2010 = vst.msk [vmem:[%s4767_s3 + $0xd0] sm:$0xff] %vm597_vm1, %v1967_v14  ;;  %v1933_v36 = vld [vmem:[%s4767_s3 + $0x118] sm:$0xff]  ;;  %2011 = vst.msk [vmem:[%s4767_s3 + $0xd8] sm:$0xff] %vm597_vm1, %v1968_v22  ;;  %v1974_v4 = vmax.f32 %v1931_v27, %v3824_v31  ;;  %v1975_v12 = vmax.f32 %v1932_v32, %v3826_v40  ;;  %v1934_v45 = vld [vmem:[%s4767_s3 + $0x120] sm:$0xff] }
 0x286   : > { %2012 = vst.msk [vmem:[%s4767_s3 + $0xe0] sm:$0xff] %vm597_vm1, %v1969_v29  ;;  %2013 = vst.msk [vmem:[%s4767_s3 + $0xe8] sm:$0xff] %vm597_vm1, %v1970_v35  ;;  %v1976_v23 = vmax.f32 %v1933_v36, %v3828_v49  ;;  %v1935_v47 = vld [vmem:[%s4767_s3 + $0x128] sm:$0xff]  ;;  %v1936_v48 = vld [vmem:[%s4767_s3 + $0x130] sm:$0xff]  ;;  %v1977_v31 = vmax.f32 %v1934_v45, %v3830_v60 }
 0x287   : > { %2014 = vst.msk [vmem:[%s4767_s3 + $0xf0] sm:$0xff] %vm597_vm1, %v1971_v43  ;;  %2015 = vst.msk [vmem:[%s4767_s3 + $0xf8] sm:$0xff] %vm597_vm1, %v1972_v52  ;;  %v1978_v40 = vmax.f32 %v1935_v47, %v3832_v7  ;;  %v1979_v49 = vmax.f32 %v1936_v48, %v3834_v19  ;;  %v1937_v41 = vld [vmem:[%s4767_s3 + $0x138] sm:$0xff]  ;;  %v1938_v46 = vld [vmem:[%s4767_s3 + $0x140] sm:$0xff] }
 0x288   : > { %2016 = vst.msk [vmem:[%s4767_s3 + $0x100] sm:$0xff] %vm597_vm1, %v1973_v59  ;;  %v1939_v51 = vld [vmem:[%s4767_s3 + $0x148] sm:$0xff]  ;;  %2017 = vst.msk [vmem:[%s4767_s3 + $0x108] sm:$0xff] %vm597_vm1, %v1974_v4  ;;  %v1980_v60 = vmax.f32 %v1937_v41, %v3836_v30  ;;  %v1981_v7 = vmax.f32 %v1938_v46, %v3838_v42  ;;  %v1940_v53 = vld [vmem:[%s4767_s3 + $0x150] sm:$0xff] }
 0x289   : > { %2018 = vst.msk [vmem:[%s4767_s3 + $0x110] sm:$0xff] %vm597_vm1, %v1975_v12  ;;  %2019 = vst.msk [vmem:[%s4767_s3 + $0x118] sm:$0xff] %vm597_vm1, %v1976_v23  ;;  %v1982_v19 = vmax.f32 %v1939_v51, %v3840_v54  ;;  %v1983_v30 = vmax.f32 %v1940_v53, %v3842_v1 }
 0x28a   : > { %2020 = vst.msk [vmem:[%s4767_s3 + $0x120] sm:$0xff] %vm597_vm1, %v1977_v31  ;;  %2021 = vst.msk [vmem:[%s4767_s3 + $0x128] sm:$0xff] %vm597_vm1, %v1978_v40 }
 0x28b   : > { %2022 = vst.msk [vmem:[%s4767_s3 + $0x130] sm:$0xff] %vm597_vm1, %v1979_v49  ;;  %2023 = vst.msk [vmem:[%s4767_s3 + $0x138] sm:$0xff] %vm597_vm1, %v1980_v60 }
 0x28c   : > { %2024 = vst.msk [vmem:[%s4767_s3 + $0x140] sm:$0xff] %vm597_vm1, %v1981_v7  ;;  %2025 = vst.msk [vmem:[%s4767_s3 + $0x148] sm:$0xff] %vm597_vm1, %v1982_v19 }
 0x28d   : > { %2026 = vst.msk [vmem:[%s4767_s3 + $0x150] sm:$0xff] %vm597_vm1, %v1983_v30 }
 0x28e PF: > { %p2322_p7 = scmp.ne.s32.totalorder %s2919_s12, 3 }
 0x28f   : > { %v4412_v54 = vld [vmem:[%s4766_s2] ss:$0 sm:$0xff] (!%p2322_p7)  ;;  %v2044_v28 = vld [vmem:[%s4767_s3 + $0x68] sm:$0xff] (!%p2322_p7)  ;;  %v2045_v34 = vld [vmem:[%s4767_s3 + $0x70] sm:$0xff] (!%p2322_p7) }
 0x290   : > { %2030 = sbr.rel (%p2322_p7) target bundleno = 682 (0x2aa), region = 44  ;;  %v2031_v42 = vld [vmem:[%s4767_s3] sm:$0xff] (!%p2322_p7)  ;;  %v2032_v1 = vld [vmem:[%s4767_s3 + $0x8] sm:$0xff] (!%p2322_p7)  ;;  %v2046_v13 = vld [vmem:[%s4767_s3 + $0x78] sm:$0xff] (!%p2322_p7)  ;;  %v2094_v52 = vadd.f32 (!%p2322_p7), %v4412_v54, %v2044_v28  ;;  %v2095_v59 = vadd.f32 (!%p2322_p7), %v4412_v54, %v2045_v34 }
 0x291   : > { %v2081_v55 = vadd.f32 (!%p2322_p7), %v4412_v54, %v2031_v42  ;;  %v2082_v58 = vadd.f32 (!%p2322_p7), %v4412_v54, %v2032_v1  ;;  %v2033_v56 = vld [vmem:[%s4767_s3 + $0x10] sm:$0xff] (!%p2322_p7)  ;;  %v2034_v61 = vld [vmem:[%s4767_s3 + $0x18] sm:$0xff] (!%p2322_p7)  ;;  %v2043_v25 = vld [vmem:[%s4767_s3 + $0x60] sm:$0xff] (!%p2322_p7)  ;;  %v2096_v45 = vadd.f32 (!%p2322_p7), %v4412_v54, %v2046_v13 }
 0x292   : > { %v2035_v2 = vld [vmem:[%s4767_s3 + $0x20] sm:$0xff] (!%p2322_p7)  ;;  %v2083_v62 = vadd.f32 (!%p2322_p7), %v4412_v54, %v2033_v56  ;;  %v2084_v0 = vadd.f32 (!%p2322_p7), %v4412_v54, %v2034_v61  ;;  %v2036_v9 = vld [vmem:[%s4767_s3 + $0x28] sm:$0xff] (!%p2322_p7)  ;;  %v2093_v35 = vadd.f32 (!%p2322_p7), %v4412_v54, %v2043_v25  ;;  %v2049_v27 = vld [vmem:[%s4767_s3 + $0x90] sm:$0xff] (!%p2322_p7)  ;;  %v2137_v31 = vmax.f32 (!%p2322_p7), %v2094_v52, 0.0 }
 0x293   : > { %v2085_v5 = vadd.f32 (!%p2322_p7), %v4412_v54, %v2035_v2  ;;  %v2037_v15 = vld [vmem:[%s4767_s3 + $0x30] sm:$0xff] (!%p2322_p7)  ;;  %v2038_v21 = vld [vmem:[%s4767_s3 + $0x38] sm:$0xff] (!%p2322_p7)  ;;  %v2124_v10 = vmax.f32 (!%p2322_p7), %v2081_v55, 0.0  ;;  %v2125_v11 = vmax.f32 (!%p2322_p7), %v2082_v58, 0.0  ;;  %v2086_v16 = vadd.f32 (!%p2322_p7), %v4412_v54, %v2036_v9  ;;  %v2047_v8 = vld [vmem:[%s4767_s3 + $0x80] sm:$0xff] (!%p2322_p7) }
 0x294   : > { %v2087_v26 = vadd.f32 (!%p2322_p7), %v4412_v54, %v2037_v15  ;;  %v2039_v3 = vld [vmem:[%s4767_s3 + $0x40] sm:$0xff] (!%p2322_p7)  ;;  %v2040_v38 = vld [vmem:[%s4767_s3 + $0x48] sm:$0xff] (!%p2322_p7)  ;;  %v2126_v20 = vmax.f32 (!%p2322_p7), %v2083_v62, 0.0  ;;  %v2127_v24 = vmax.f32 (!%p2322_p7), %v2084_v0, 0.0  ;;  %v2088_v50 = vadd.f32 (!%p2322_p7), %v4412_v54, %v2038_v21  ;;  %v2050_v32 = vld [vmem:[%s4767_s3 + $0x98] sm:$0xff] (!%p2322_p7)  ;;  %2180 = vst.msk [vmem:[%s4767_s3 + $0x68] sm:$0xff] (!%p2322_p7), %vm597_vm1, %v2137_v31 }
 0x295   : > { %v2041_v17 = vld [vmem:[%s4767_s3 + $0x50] sm:$0xff] (!%p2322_p7)  ;;  %v2128_v44 = vmax.f32 (!%p2322_p7), %v2085_v5, 0.0  ;;  %v2042_v57 = vld [vmem:[%s4767_s3 + $0x58] sm:$0xff] (!%p2322_p7)  ;;  %2167 = vst.msk [vmem:[%s4767_s3] sm:$0xff] (!%p2322_p7), %vm597_vm1, %v2124_v10  ;;  %2168 = vst.msk [vmem:[%s4767_s3 + $0x8] sm:$0xff] (!%p2322_p7), %vm597_vm1, %v2125_v11  ;;  %v2129_v33 = vmax.f32 (!%p2322_p7), %v2086_v16, 0.0  ;;  %v2089_v6 = vadd.f32 (!%p2322_p7), %v4412_v54, %v2039_v3  ;;  %v2090_v14 = vadd.f32 (!%p2322_p7), %v4412_v54, %v2040_v38 }
 0x296   : > { %v2130_v63 = vmax.f32 (!%p2322_p7), %v2087_v26, 0.0  ;;  %2169 = vst.msk [vmem:[%s4767_s3 + $0x10] sm:$0xff] (!%p2322_p7), %vm597_vm1, %v2126_v20  ;;  %2170 = vst.msk [vmem:[%s4767_s3 + $0x18] sm:$0xff] (!%p2322_p7), %vm597_vm1, %v2127_v24  ;;  %v2131_v18 = vmax.f32 (!%p2322_p7), %v2088_v50, 0.0  ;;  %v2091_v22 = vadd.f32 (!%p2322_p7), %v4412_v54, %v2041_v17  ;;  %v2092_v29 = vadd.f32 (!%p2322_p7), %v4412_v54, %v2042_v57  ;;  %v2048_v37 = vld [vmem:[%s4767_s3 + $0x88] sm:$0xff] (!%p2322_p7)  ;;  %v2051_v36 = vld [vmem:[%s4767_s3 + $0xa0] sm:$0xff] (!%p2322_p7) }
 0x297   : > { %2171 = vst.msk [vmem:[%s4767_s3 + $0x20] sm:$0xff] %vm597_vm1, %v2128_v44  ;;  %2172 = vst.msk [vmem:[%s4767_s3 + $0x28] sm:$0xff] %vm597_vm1, %v2129_v33  ;;  %v2132_v39 = vmax.f32 %v2089_v6, 0.0  ;;  %v2133_v43 = vmax.f32 %v2090_v14, 0.0  ;;  %v2136_v23 = vmax.f32 %v2093_v35, 0.0  ;;  %v2052_v47 = vld [vmem:[%s4767_s3 + $0xa8] sm:$0xff]  ;;  %v2097_v49 = vadd.f32 %v4412_v54, %v2047_v8 }
 0x298   : > { %2173 = vst.msk [vmem:[%s4767_s3 + $0x30] sm:$0xff] %vm597_vm1, %v2130_v63  ;;  %2174 = vst.msk [vmem:[%s4767_s3 + $0x38] sm:$0xff] %vm597_vm1, %v2131_v18  ;;  %v2134_v4 = vmax.f32 %v2091_v22, 0.0  ;;  %v2135_v12 = vmax.f32 %v2092_v29, 0.0  ;;  %v2053_v48 = vld [vmem:[%s4767_s3 + $0xb0] sm:$0xff]  ;;  %v2138_v40 = vmax.f32 %v2095_v59, 0.0  ;;  %v2098_v41 = vadd.f32 %v4412_v54, %v2048_v37 }
 0x299   : > { %2175 = vst.msk [vmem:[%s4767_s3 + $0x40] sm:$0xff] %vm597_vm1, %v2132_v39  ;;  %2176 = vst.msk [vmem:[%s4767_s3 + $0x48] sm:$0xff] %vm597_vm1, %v2133_v43  ;;  %v2054_v46 = vld [vmem:[%s4767_s3 + $0xb8] sm:$0xff]  ;;  %v2139_v51 = vmax.f32 %v2096_v45, 0.0  ;;  %v2099_v60 = vadd.f32 %v4412_v54, %v2049_v27  ;;  %v2100_v7 = vadd.f32 %v4412_v54, %v2050_v32  ;;  %v2101_v19 = vadd.f32 %v4412_v54, %v2051_v36  ;;  %v2055_v53 = vld [vmem:[%s4767_s3 + $0xc0] sm:$0xff] }
 0x29a   : > { %2177 = vst.msk [vmem:[%s4767_s3 + $0x50] sm:$0xff] %vm597_vm1, %v2134_v4  ;;  %2178 = vst.msk [vmem:[%s4767_s3 + $0x58] sm:$0xff] %vm597_vm1, %v2135_v12  ;;  %v2056_v30 = vld [vmem:[%s4767_s3 + $0xc8] sm:$0xff]  ;;  %v2140_v42 = vmax.f32 %v2097_v49, 0.0  ;;  %v2141_v1 = vmax.f32 %v2098_v41, 0.0  ;;  %v2102_v55 = vadd.f32 %v4412_v54, %v2052_v47  ;;  %v2103_v58 = vadd.f32 %v4412_v54, %v2053_v48  ;;  %v2057_v56 = vld [vmem:[%s4767_s3 + $0xd0] sm:$0xff] }
 0x29b   : > { %2179 = vst.msk [vmem:[%s4767_s3 + $0x60] sm:$0xff] %vm597_vm1, %v2136_v23  ;;  %2181 = vst.msk [vmem:[%s4767_s3 + $0x70] sm:$0xff] %vm597_vm1, %v2138_v40  ;;  %v2058_v61 = vld [vmem:[%s4767_s3 + $0xd8] sm:$0xff]  ;;  %v2059_v2 = vld [vmem:[%s4767_s3 + $0xe0] sm:$0xff]  ;;  %v2142_v62 = vmax.f32 %v2099_v60, 0.0  ;;  %v2143_v0 = vmax.f32 %v2100_v7, 0.0  ;;  %v2104_v9 = vadd.f32 %v4412_v54, %v2054_v46  ;;  %v2105_v16 = vadd.f32 %v4412_v54, %v2055_v53 }
 0x29c   : > { %2182 = vst.msk [vmem:[%s4767_s3 + $0x78] sm:$0xff] %vm597_vm1, %v2139_v51  ;;  %v2144_v5 = vmax.f32 %v2101_v19, 0.0  ;;  %v2060_v15 = vld [vmem:[%s4767_s3 + $0xe8] sm:$0xff]  ;;  %v2061_v21 = vld [vmem:[%s4767_s3 + $0xf0] sm:$0xff]  ;;  %2183 = vst.msk [vmem:[%s4767_s3 + $0x80] sm:$0xff] %vm597_vm1, %v2140_v42  ;;  %v2145_v10 = vmax.f32 %v2102_v55, 0.0  ;;  %v2106_v26 = vadd.f32 %v4412_v54, %v2056_v30  ;;  %v2107_v17 = vadd.f32 %v4412_v54, %v2057_v56 }
 0x29d   : > { %2184 = vst.msk [vmem:[%s4767_s3 + $0x88] sm:$0xff] %vm597_vm1, %v2141_v1  ;;  %v2146_v11 = vmax.f32 %v2103_v58, 0.0  ;;  %v2062_v3 = vld [vmem:[%s4767_s3 + $0xf8] sm:$0xff]  ;;  %2185 = vst.msk [vmem:[%s4767_s3 + $0x90] sm:$0xff] %vm597_vm1, %v2142_v62  ;;  %v2147_v38 = vmax.f32 %v2104_v9, 0.0  ;;  %v2108_v20 = vadd.f32 %v4412_v54, %v2058_v61  ;;  %v2109_v24 = vadd.f32 %v4412_v54, %v2059_v2  ;;  %v2063_v44 = vld [vmem:[%s4767_s3 + $0x100] sm:$0xff] }
 0x29e   : > { %2186 = vst.msk [vmem:[%s4767_s3 + $0x98] sm:$0xff] %vm597_vm1, %v2143_v0  ;;  %2187 = vst.msk [vmem:[%s4767_s3 + $0xa0] sm:$0xff] %vm597_vm1, %v2144_v5  ;;  %v2064_v50 = vld [vmem:[%s4767_s3 + $0x108] sm:$0xff]  ;;  %v2148_v57 = vmax.f32 %v2105_v16, 0.0  ;;  %v2149_v25 = vmax.f32 %v2106_v26, 0.0  ;;  %v2110_v28 = vadd.f32 %v4412_v54, %v2060_v15  ;;  %v2111_v33 = vadd.f32 %v4412_v54, %v2061_v21  ;;  %v2065_v63 = vld [vmem:[%s4767_s3 + $0x110] sm:$0xff] }
 0x29f   : > { %2188 = vst.msk [vmem:[%s4767_s3 + $0xa8] sm:$0xff] %vm597_vm1, %v2145_v10  ;;  %2189 = vst.msk [vmem:[%s4767_s3 + $0xb0] sm:$0xff] %vm597_vm1, %v2146_v11  ;;  %v2066_v6 = vld [vmem:[%s4767_s3 + $0x118] sm:$0xff]  ;;  %v2067_v14 = vld [vmem:[%s4767_s3 + $0x120] sm:$0xff]  ;;  %v2150_v34 = vmax.f32 %v2107_v17, 0.0  ;;  %v2151_v13 = vmax.f32 %v2108_v20, 0.0  ;;  %v2112_v22 = vadd.f32 %v4412_v54, %v2062_v3  ;;  %v2113_v39 = vadd.f32 %v4412_v54, %v2063_v44 }
 0x2a0   : > { %2190 = vst.msk [vmem:[%s4767_s3 + $0xb8] sm:$0xff] %vm597_vm1, %v2147_v38  ;;  %v2152_v18 = vmax.f32 %v2109_v24, 0.0  ;;  %v2068_v29 = vld [vmem:[%s4767_s3 + $0x128] sm:$0xff]  ;;  %v2069_v35 = vld [vmem:[%s4767_s3 + $0x130] sm:$0xff]  ;;  %2191 = vst.msk [vmem:[%s4767_s3 + $0xc0] sm:$0xff] %vm597_vm1, %v2148_v57  ;;  %v2153_v8 = vmax.f32 %v2110_v28, 0.0  ;;  %v2114_v43 = vadd.f32 %v4412_v54, %v2064_v50  ;;  %v2115_v27 = vadd.f32 %v4412_v54, %v2065_v63 }
 0x2a1   : > { %2192 = vst.msk [vmem:[%s4767_s3 + $0xc8] sm:$0xff] %vm597_vm1, %v2149_v25  ;;  %v2154_v37 = vmax.f32 %v2111_v33, 0.0  ;;  %v2070_v52 = vld [vmem:[%s4767_s3 + $0x138] sm:$0xff]  ;;  %2193 = vst.msk [vmem:[%s4767_s3 + $0xd0] sm:$0xff] %vm597_vm1, %v2150_v34  ;;  %v2155_v59 = vmax.f32 %v2112_v22, 0.0  ;;  %v2116_v32 = vadd.f32 %v4412_v54, %v2066_v6  ;;  %v2117_v36 = vadd.f32 %v4412_v54, %v2067_v14  ;;  %v2071_v4 = vld [vmem:[%s4767_s3 + $0x140] sm:$0xff] }
 0x2a2   : > { %2194 = vst.msk [vmem:[%s4767_s3 + $0xd8] sm:$0xff] %vm597_vm1, %v2151_v13  ;;  %2195 = vst.msk [vmem:[%s4767_s3 + $0xe0] sm:$0xff] %vm597_vm1, %v2152_v18  ;;  %v2072_v12 = vld [vmem:[%s4767_s3 + $0x148] sm:$0xff]  ;;  %v2156_v23 = vmax.f32 %v2113_v39, 0.0  ;;  %v2157_v45 = vmax.f32 %v2114_v43, 0.0  ;;  %v2118_v47 = vadd.f32 %v4412_v54, %v2068_v29  ;;  %v2119_v48 = vadd.f32 %v4412_v54, %v2069_v35  ;;  %v2073_v31 = vld [vmem:[%s4767_s3 + $0x150] sm:$0xff] }
 0x2a3   : > { %2196 = vst.msk [vmem:[%s4767_s3 + $0xe8] sm:$0xff] %vm597_vm1, %v2153_v8  ;;  %2197 = vst.msk [vmem:[%s4767_s3 + $0xf0] sm:$0xff] %vm597_vm1, %v2154_v37  ;;  %v2158_v40 = vmax.f32 %v2115_v27, 0.0  ;;  %v2159_v49 = vmax.f32 %v2116_v32, 0.0  ;;  %v2160_v41 = vmax.f32 %v2117_v36, 0.0  ;;  %v2120_v46 = vadd.f32 %v4412_v54, %v2070_v52 }
 0x2a4   : > { %2198 = vst.msk [vmem:[%s4767_s3 + $0xf8] sm:$0xff] %vm597_vm1, %v2155_v59  ;;  %2199 = vst.msk [vmem:[%s4767_s3 + $0x100] sm:$0xff] %vm597_vm1, %v2156_v23  ;;  %v2161_v51 = vmax.f32 %v2118_v47, 0.0  ;;  %v2162_v60 = vmax.f32 %v2119_v48, 0.0  ;;  %v2121_v7 = vadd.f32 %v4412_v54, %v2071_v4  ;;  %v2122_v19 = vadd.f32 %v4412_v54, %v2072_v12 }
 0x2a5   : > { %2200 = vst.msk [vmem:[%s4767_s3 + $0x108] sm:$0xff] %vm597_vm1, %v2157_v45  ;;  %2201 = vst.msk [vmem:[%s4767_s3 + $0x110] sm:$0xff] %vm597_vm1, %v2158_v40  ;;  %v2163_v53 = vmax.f32 %v2120_v46, 0.0  ;;  %v2123_v30 = vadd.f32 %v4412_v54, %v2073_v31 }
 0x2a6   : > { %2202 = vst.msk [vmem:[%s4767_s3 + $0x118] sm:$0xff] %vm597_vm1, %v2159_v49  ;;  %2203 = vst.msk [vmem:[%s4767_s3 + $0x120] sm:$0xff] %vm597_vm1, %v2160_v41  ;;  %v2164_v42 = vmax.f32 %v2121_v7, 0.0  ;;  %v2165_v1 = vmax.f32 %v2122_v19, 0.0 }
 0x2a7   : > { %2204 = vst.msk [vmem:[%s4767_s3 + $0x128] sm:$0xff] %vm597_vm1, %v2161_v51  ;;  %2205 = vst.msk [vmem:[%s4767_s3 + $0x130] sm:$0xff] %vm597_vm1, %v2162_v60  ;;  %v2166_v55 = vmax.f32 %v2123_v30, 0.0 }
 0x2a8   : > { %2206 = vst.msk [vmem:[%s4767_s3 + $0x138] sm:$0xff] %vm597_vm1, %v2163_v53  ;;  %2207 = vst.msk [vmem:[%s4767_s3 + $0x140] sm:$0xff] %vm597_vm1, %v2164_v42 }
 0x2a9   : > { %2208 = vst.msk [vmem:[%s4767_s3 + $0x148] sm:$0xff] %vm597_vm1, %v2165_v1  ;;  %2209 = vst.msk [vmem:[%s4767_s3 + $0x150] sm:$0xff] %vm597_vm1, %v2166_v55 }
 0x2aa PF: > { %s13_s14 = sadd.s32 1, %s2927_s14   ;;  %s4768_s12 = smov %s2923_s13 }
 0x2ab   : > { %p10_p8 = scmp.ge.s32.totalorder %s13_s14, 6   ;;  %s4769_s13 = smov %s4771_s15 }
 0x2ad   :  { %12 = sbr.rel (!%p10_p8) target bundleno = 2 (0x2), region = 74 }

// kernel: cnn_forward.6
= control target key start
LH: loop header
LB: loop body
LE: loop exit
PB: predicated region body
PF: predicated region fallthrough
CT: control target
= control target key end

     0   :  { %s838_s12 = smov 0   ;;  %s840_s13 = smov 0   ;;  %s1155_s0 = inlined_call_operand.vmem [shape: f32[224,288], index: 0, kind: input, shape index: {}]   ;;  %s1156_s1 = inlined_call_operand.vmem [shape: f32[288,32], index: 1, kind: input, shape index: {}]   ;;  %s1157_s2 = inlined_call_operand.vmem [shape: f32[1,32], index: 2, kind: input, shape index: {}]   ;;  %s1158_s3 = inlined_call_operand.vmem [shape: f32[56,32], index: 3, kind: output, shape index: {}]  }
   0x1   :  { %s842_s14 = smov 0  }
   0x2 LB: > { %s22_s15 = sadd.s32 1, %s809_s13  ;;  %p615_p0 = scmp.ge.s32.totalorder %s813_s14, 1  ;;  %s813_s14 = sphi %s842_s14, %s13_s14   ;;  %s809_s13 = sphi %s840_s13, %s1160_s13   ;;  %s805_s12 = sphi %s838_s12, %s1159_s12  }
   0x3   : > { %p23_p1 = scmp.ge.s32.totalorder %s22_s15, 4  ;;  %p155_p2 = scmp.lt.s32.totalorder %s813_s14, 5 }
   0x5   : > { %s1162_s15 = smov (%p23_p1, %s22_s15), 0  ;;  %p156_p3 = pnand %p615_p0, %p155_p2 }
   0x6   : > { %v233_v0 = vld [vmem:[%s1156_s1 + $0x80] sm:$0xff] (!%p156_p3)  ;;  %v234_v1 = vld [vmem:[%s1156_s1 + $0x88] sm:$0xff] (!%p156_p3)  ;;  %s182_s22 = smul.u32 (!%p156_p3), 7, %s805_s12  ;;  %v235_v5 = vld [vmem:[%s1156_s1 + $0x90] sm:$0xff] (!%p156_p3)  ;;  %v815_v7 = vmov (!%p156_p3), 0.0|0.0   ;;  %vm816_vm0 = vmmov (!%p156_p3), 0  }
   0x7   : > { %159 = sbr.rel (%p156_p3) target bundleno = 305 (0x131), region = 32  ;;  %v217_v2 = vld [vmem:[%s1156_s1] sm:$0xff] (!%p156_p3)  ;;  %v725_v3 = vpack.c.bf16 (!%p156_p3), %v234_v1, %v233_v0  ;;  %v218_v4 = vld [vmem:[%s1156_s1 + $0x8] sm:$0xff] (!%p156_p3)  ;;  %v236_v6 = vld [vmem:[%s1156_s1 + $0x98] sm:$0xff] (!%p156_p3)  ;;  %757 = vmatprep.subr.bf16.mxu1 (!%p156_p3), %v815_v7  ;;  %v817_v13 = vmov (!%p156_p3), 0.0   ;;  %vm253_vm1 = vcmask (!%p156_p3), 261120  }
   0x8   : > { %v727_v8 = vpack.c.bf16 (!%p156_p3), %v218_v4, %v217_v2  ;;  %v729_v9 = vpack.c.bf16 (!%p156_p3), %v236_v6, %v235_v5  ;;  %v219_v10 = vld [vmem:[%s1156_s1 + $0x10] sm:$0xff] (!%p156_p3)  ;;  %v220_v11 = vld [vmem:[%s1156_s1 + $0x18] sm:$0xff] (!%p156_p3)  ;;  %v237_v12 = vld [vmem:[%s1156_s1 + $0xa0] sm:$0xff] (!%p156_p3)  ;;  %p183_p4 = scmp.lt.s32.totalorder (!%p156_p3), %s182_s22, 27  ;;  %704 = vmatprep.mubr.msk.f32.mxu1 (!%p156_p3), %vm816_vm0, %v817_v13  ;;  %p624_p5 = scmp.ne.s32.totalorder (!%p156_p3), %s805_s12, 0 }
   0x9   : > { %726 = vmatprep.subr.bf16.mxu0 (!%p156_p3), %v725_v3  ;;  %v238_v14 = vld [vmem:[%s1156_s1 + $0xa8] sm:$0xff] (!%p156_p3)  ;;  %v731_v15 = vpack.c.bf16 (!%p156_p3), %v220_v11, %v219_v10  ;;  %v221_v17 = vld [vmem:[%s1156_s1 + $0x20] sm:$0xff] (!%p156_p3)  ;;  %v239_v19 = vld [vmem:[%s1156_s1 + $0xb0] sm:$0xff] (!%p156_p3) }
   0xa   : > { %728 = vmatpush3.bf16.msra.mxu0 (!%p156_p3), %v727_v8  ;;  %v733_v16 = vpack.c.bf16 (!%p156_p3), %v238_v14, %v237_v12  ;;  %v222_v18 = vld [vmem:[%s1156_s1 + $0x28] sm:$0xff] (!%p156_p3)  ;;  %v240_v20 = vld [vmem:[%s1156_s1 + $0xb8] sm:$0xff] (!%p156_p3)  ;;  %v223_v22 = vld [vmem:[%s1156_s1 + $0x30] sm:$0xff] (!%p156_p3) }
   0xb   : > { %730 = vmatprep.subr.bf16.mxu0 (!%p156_p3), %v729_v9  ;;  %v735_v21 = vpack.c.bf16 (!%p156_p3), %v222_v18, %v221_v17  ;;  %v737_v23 = vpack.c.bf16 (!%p156_p3), %v240_v20, %v239_v19  ;;  %v224_v24 = vld [vmem:[%s1156_s1 + $0x38] sm:$0xff] (!%p156_p3)  ;;  %v249_v25 = vld [vmem:[%s1156_s1 + $0x100] sm:$0xff] (!%p156_p3)  ;;  %v250_v26 = vld [vmem:[%s1156_s1 + $0x108] sm:$0xff] (!%p156_p3) }
   0xc   : > { %v241_v27 = vld [vmem:[%s1156_s1 + $0xc0] sm:$0xff] (!%p156_p3)  ;;  %v242_v28 = vld [vmem:[%s1156_s1 + $0xc8] sm:$0xff] (!%p156_p3)  ;;  %v758_v29 = vpack.c.bf16 (!%p156_p3), %v250_v26, %v249_v25  ;;  %v251_v31 = vld [vmem:[%s1156_s1 + $0x110] sm:$0xff] (!%p156_p3)  ;;  %v739_v32 = vpack.c.bf16 (!%p156_p3), %v224_v24, %v223_v22 }
   0xd   : > { %v252_v33 = vld [vmem:[%s1156_s1 + $0x118] sm:$0xff] (!%p156_p3)  ;;  %v741_v34 = vpack.c.bf16 (!%p156_p3), %v242_v28, %v241_v27  ;;  %v225_v35 = vld [vmem:[%s1156_s1 + $0x40] sm:$0xff] (!%p156_p3)  ;;  %v226_v36 = vld [vmem:[%s1156_s1 + $0x48] sm:$0xff] (!%p156_p3) }
   0xe   : > { %s1164_s22 = smov (!%p183_p4, %s182_s22), 27  ;;  %732 = vmatpush3.bf16.msra.mxu0 %v731_v15  ;;  %759 = vmatpush3.bf16.msra.mxu1 %v758_v29  ;;  %v761_v37 = vpack.c.bf16 %v252_v33, %v251_v31  ;;  %v243_v38 = vld [vmem:[%s1156_s1 + $0xd0] sm:$0xff]  ;;  %v244_v39 = vld [vmem:[%s1156_s1 + $0xd8] sm:$0xff]  ;;  %v743_v40 = vpack.c.bf16 %v226_v36, %v225_v35  ;;  %v245_v45 = vld [vmem:[%s1156_s1 + $0xe0] sm:$0xff] }
   0xf   : > { %s763_s23 = smul.u32 24, %s1164_s22  ;;  %734 = vmatprep.subr.bf16.mxu0 %v733_v16  ;;  %760 = vmatprep.subr.bf16.mxu1 %v815_v7  ;;  %v745_v42 = vpack.c.bf16 %v244_v39, %v243_v38  ;;  %v227_v43 = vld [vmem:[%s1156_s1 + $0x50] sm:$0xff]  ;;  %v228_v44 = vld [vmem:[%s1156_s1 + $0x58] sm:$0xff]  ;;  %v246_v46 = vld [vmem:[%s1156_s1 + $0xe8] sm:$0xff] }
  0x10   : > { %v747_v47 = vpack.c.bf16 %v228_v44, %v227_v43  ;;  %v749_v49 = vpack.c.bf16 %v246_v46, %v245_v45  ;;  %v229_v50 = vld [vmem:[%s1156_s1 + $0x60] sm:$0xff]  ;;  %v230_v51 = vld [vmem:[%s1156_s1 + $0x68] sm:$0xff]  ;;  %v247_v52 = vld [vmem:[%s1156_s1 + $0xf0] sm:$0xff] }
  0x11   : > { %s909_s28 = scalar_lea.vmem %s1155_s0, %s763_s23  ;;  %v248_v53 = vld [vmem:[%s1156_s1 + $0xf8] sm:$0xff]  ;;  %v751_v54 = vpack.c.bf16 %v230_v51, %v229_v50  ;;  %v231_v57 = vld [vmem:[%s1156_s1 + $0x70] sm:$0xff] }
  0x12   : > { %v197_v30 = vld [vmem:[%s909_s28 + $0x8] sm:$0xff]  ;;  %736 = vmatpush3.bf16.msra.mxu0 %v735_v21  ;;  %762 = vmatpush3.bf16.msra.mxu1 %v761_v37  ;;  %v198_v41 = vld [vmem:[%s909_s28 + $0x10] sm:$0xff]  ;;  %v204_v55 = vld [vmem:[%s909_s28 + $0x40] sm:$0xff]  ;;  %v753_v56 = vpack.c.bf16 %v248_v53, %v247_v52 }
  0x13   : > { %738 = vmatprep.subr.bf16.mxu0 %v737_v23  ;;  %339 = vmatprep.mubr.f32.mxu0 %v197_v30  ;;  %v201_v48 = vld [vmem:[%s909_s28 + $0x28] sm:$0xff]  ;;  %v232_v58 = vld [vmem:[%s1156_s1 + $0x78] sm:$0xff]  ;;  %v196_v61 = vld [vmem:[%s909_s28] sm:$0xff] }
  0x14   : > { %v755_v59 = vpack.c.bf16 %v232_v58, %v231_v57  ;;  %v207_v60 = vld [vmem:[%s909_s28 + $0x58] sm:$0xff]  ;;  %v210_v62 = vld [vmem:[%s909_s28 + $0x70] sm:$0xff]  ;;  %v200_v63 = vld [vmem:[%s909_s28 + $0x20] sm:$0xff] }
  0x15   : > { %705 = vmatmul.mubr.msk.f32.vlgmr.msra.gmra.mrb[0].mxu1 %vm253_vm1, %v198_v41  ;;  %v199_v0 = vld [vmem:[%s909_s28 + $0x18] sm:$0xff]  ;;  %v213_v1 = vld [vmem:[%s909_s28 + $0x88] sm:$0xff]  ;;  %v202_v3 = vld [vmem:[%s909_s28 + $0x30] sm:$0xff] }
  0x16   : > { %740 = vmatpush3.bf16.msra.mxu0 %v739_v32  ;;  %707 = vmatprep.mubr.msk.f32.mxu1 %vm816_vm0, %v817_v13  ;;  %v203_v2 = vld [vmem:[%s909_s28 + $0x38] sm:$0xff]  ;;  %v216_v4 = vld [vmem:[%s909_s28 + $0xa0] sm:$0xff]  ;;  %v206_v5 = vld [vmem:[%s909_s28 + $0x50] sm:$0xff] }
  0x17   : > { %742 = vmatprep.subr.bf16.mxu0 %v741_v34  ;;  %v205_v6 = vld [vmem:[%s909_s28 + $0x48] sm:$0xff]  ;;  %v208_v8 = vld [vmem:[%s909_s28 + $0x60] sm:$0xff]  ;;  %v211_v10 = vld [vmem:[%s909_s28 + $0x78] sm:$0xff] }
  0x18   : > { %v209_v7 = vld [vmem:[%s909_s28 + $0x68] sm:$0xff]  ;;  %v212_v9 = vld [vmem:[%s909_s28 + $0x80] sm:$0xff]  ;;  %v215_v11 = vld [vmem:[%s909_s28 + $0x98] sm:$0xff] }
  0x19   : > { %708 = vmatmul.mubr.msk.f32.gmra.mrb[2].mxu1 %vm253_vm1, %v201_v48  ;;  %v214_v12 = vld [vmem:[%s909_s28 + $0x90] sm:$0xff] }
  0x1a   : > { %744 = vmatpush3.bf16.msra.mxu0 %v743_v40  ;;  %710 = vmatprep.mubr.msk.f32.mxu1 %vm816_vm0, %v817_v13 }
  0x1b   : > { %746 = vmatprep.subr.bf16.mxu0 %v745_v42 }
  0x1d   : > { %711 = vmatmul.mubr.msk.f32.gmra.mrb[4].mxu1 %vm253_vm1, %v204_v55 }
  0x1e   : > { %748 = vmatpush3.bf16.msra.mxu0 %v747_v47  ;;  %713 = vmatprep.mubr.msk.f32.mxu1 %vm816_vm0, %v817_v13 }
  0x1f   : > { %750 = vmatprep.subr.bf16.mxu0 %v749_v49 }
  0x21   : > { %714 = vmatmul.mubr.msk.f32.gmra.mrb[6].mxu1 %vm253_vm1, %v207_v60 }
  0x22   : > { %752 = vmatpush3.bf16.msra.mxu0 %v751_v54  ;;  %716 = vmatprep.mubr.msk.f32.mxu1 %vm816_vm0, %v817_v13 }
  0x23   : > { %754 = vmatprep.subr.bf16.mxu0 %v753_v56 }
  0x25   : > { %717 = vmatmul.mubr.msk.f32.gmra.mrb[8].mxu1 %vm253_vm1, %v210_v62 }
  0x26   : > { %756 = vmatpush3.bf16.msra.mxu0 %v755_v59  ;;  %719 = vmatprep.mubr.msk.f32.mxu1 %vm816_vm0, %v817_v13 }
  0x29   : > { %340 = vmatmul.mubr.f32.vlgmr.msra.gmra.mrb[0].mxu0 %v196_v61  ;;  %720 = vmatmul.mubr.msk.f32.gmra.mrb[10].mxu1 %vm253_vm1, %v213_v1 }
  0x2a   : > { %344 = vmatprep.mubr.f32.mxu0 %v200_v63  ;;  %722 = vmatprep.mubr.msk.f32.mxu1 %vm816_vm0, %v817_v13 }
  0x2d   : > { %345 = vmatmul.mubr.f32.gmra.mrb[2].mxu0 %v199_v0  ;;  %723 = vmatmul.mubr.msk.f32.gmra.mrb[12].mxu1 %vm253_vm1, %v216_v4 }
  0x2e   : > { %349 = vmatprep.mubr.f32.mxu0 %v203_v2 }
  0x31   : > { %350 = vmatmul.mubr.f32.gmra.mrb[4].mxu0 %v202_v3 }
  0x32   : > { %354 = vmatprep.mubr.f32.mxu0 %v206_v5 }
  0x35   : > { %355 = vmatmul.mubr.f32.gmra.mrb[6].mxu0 %v205_v6 }
  0x36   : > { %359 = vmatprep.mubr.f32.mxu0 %v209_v7 }
  0x39   : > { %360 = vmatmul.mubr.f32.gmra.mrb[8].mxu0 %v208_v8 }
  0x3a   : > { %364 = vmatprep.mubr.f32.mxu0 %v212_v9 }
  0x3d   : > { %365 = vmatmul.mubr.f32.gmra.mrb[10].mxu0 %v211_v10 }
  0x3e   : > { %369 = vmatprep.mubr.f32.mxu0 %v215_v11 }
  0x41   : > { %370 = vmatmul.mubr.f32.gmra.mrb[12].mxu0 %v214_v12 }
  0xe8   : > { %v441_v13 = vpop.f32.mrb[0].mxu1 }
  0xe9   : > { %v706_v14 = vpop.f32.mrb[1].mxu1 }
  0xec   : > { %v446_v15 = vpop.f32.mrb[2].mxu1 }
  0xed   : > { %v709_v16 = vpop.f32.mrb[3].mxu1 }
  0xf0   : > { %v451_v17 = vpop.f32.mrb[4].mxu1 }
  0xf1   : > { %v712_v18 = vpop.f32.mrb[5].mxu1 }
  0xf4   : > { %v456_v19 = vpop.f32.mrb[6].mxu1 }
  0xf5   : > { %v715_v20 = vpop.f32.mrb[7].mxu1 }
  0xf8   : > { %v461_v22 = vpop.f32.mrb[8].mxu1 }
  0xf9   : > { %v718_v24 = vpop.f32.mrb[9].mxu1 }
  0xfc   : > { %v664_v21 = vpop.f32.mrb[0].mxu0  ;;  %v466_v28 = vpop.f32.mrb[10].mxu1 }
  0xfd   : > { %v665_v23 = vpop.f32.mrb[1].mxu0  ;;  %v721_v30 = vpop.f32.mrb[11].mxu1 }
  0xfe   : > { %v666_v25 = vadd.f32 %v665_v23, %v664_v21 }
 0x100   : > { %v442_v26 = vadd.f32 %v666_v25, %v441_v13  ;;  %v667_v27 = vpop.f32.mrb[2].mxu0  ;;  %v471_v34 = vpop.f32.mrb[12].mxu1 }
 0x101   : > { %v668_v29 = vpop.f32.mrb[3].mxu0  ;;  %v724_v36 = vpop.f32.mrb[13].mxu1 }
 0x102   : > { %v669_v31 = vadd.f32 %v668_v29, %v667_v27  ;;  %479 = vst.msk [vmem:[%s1158_s3] sm:$0xff] (!%p624_p5), %vm253_vm1, %v442_v26 }
 0x104   : > { %v447_v32 = vadd.f32 %v669_v31, %v446_v15  ;;  %v670_v33 = vpop.f32.mrb[4].mxu0 }
 0x105   : > { %v671_v35 = vpop.f32.mrb[5].mxu0 }
 0x106   : > { %v672_v37 = vadd.f32 %v671_v35, %v670_v33  ;;  %480 = vst.msk [vmem:[%s1158_s3 + $0x8] sm:$0xff] (!%p624_p5), %vm253_vm1, %v447_v32 }
 0x108   : > { %v452_v38 = vadd.f32 %v672_v37, %v451_v17  ;;  %v673_v39 = vpop.f32.mrb[6].mxu0 }
 0x109   : > { %v674_v40 = vpop.f32.mrb[7].mxu0 }
 0x10a   : > { %v675_v41 = vadd.f32 %v674_v40, %v673_v39  ;;  %481 = vst.msk [vmem:[%s1158_s3 + $0x10] sm:$0xff] (!%p624_p5), %vm253_vm1, %v452_v38 }
 0x10c   : > { %v457_v42 = vadd.f32 %v675_v41, %v456_v19  ;;  %v676_v43 = vpop.f32.mrb[8].mxu0 }
 0x10d   : > { %v677_v44 = vpop.f32.mrb[9].mxu0 }
 0x10e   : > { %v678_v45 = vadd.f32 %v677_v44, %v676_v43  ;;  %482 = vst.msk [vmem:[%s1158_s3 + $0x18] sm:$0xff] (!%p624_p5), %vm253_vm1, %v457_v42 }
 0x110   : > { %v462_v46 = vadd.f32 %v678_v45, %v461_v22  ;;  %v679_v47 = vpop.f32.mrb[10].mxu0 }
 0x111   : > { %v680_v48 = vpop.f32.mrb[11].mxu0 }
 0x112   : > { %v681_v49 = vadd.f32 %v680_v48, %v679_v47  ;;  %478 = sbr.rel (%p624_p5) target bundleno = 283 (0x11b), region = 36  ;;  %483 = vst.msk [vmem:[%s1158_s3 + $0x20] sm:$0xff] (!%p624_p5), %vm253_vm1, %v462_v46 }
 0x114   : > { %v467_v50 = vadd.f32 %v681_v49, %v466_v28  ;;  %v682_v51 = vpop.f32.mrb[12].mxu0 }
 0x115   : > { %v683_v52 = vpop.f32.mrb[13].mxu0 }
 0x116   : > { %v684_v53 = vadd.f32 %v683_v52, %v682_v51  ;;  %484 = vst.msk [vmem:[%s1158_s3 + $0x28] sm:$0xff] (!%p624_p5), %vm253_vm1, %v467_v50 }
 0x118   : > { %v472_v54 = vadd.f32 %v684_v53, %v471_v34 }
 0x11a   : > { %485 = vst.msk [vmem:[%s1158_s3 + $0x30] sm:$0xff] %vm253_vm1, %v472_v54 }
 0x11b PF: > { %p625_p6 = scmp.eq.s32.totalorder %s805_s12, 0 }
 0x11c   : > { %v490_v55 = vld [vmem:[%s1158_s3] sm:$0xff] (!%p625_p6)  ;;  %v491_v56 = vld [vmem:[%s1158_s3 + $0x8] sm:$0xff] (!%p625_p6)  ;;  %v492_v57 = vld [vmem:[%s1158_s3 + $0x10] sm:$0xff] (!%p625_p6) }
 0x11d   : > { %489 = sbr.rel (%p625_p6) target bundleno = 293 (0x125), region = 40  ;;  %v497_v58 = vmax.f32 (!%p625_p6), %v490_v55, %v442_v26  ;;  %v498_v59 = vmax.f32 (!%p625_p6), %v491_v56, %v447_v32  ;;  %v499_v60 = vmax.f32 (!%p625_p6), %v492_v57, %v452_v38  ;;  %v493_v61 = vld [vmem:[%s1158_s3 + $0x18] sm:$0xff] (!%p625_p6)  ;;  %v494_v62 = vld [vmem:[%s1158_s3 + $0x20] sm:$0xff] (!%p625_p6) }
 0x11e   : > { %v500_v0 = vmax.f32 (!%p625_p6), %v493_v61, %v457_v42  ;;  %v501_v1 = vmax.f32 (!%p625_p6), %v494_v62, %v462_v46 }
 0x11f   : > { %v495_v63 = vld [vmem:[%s1158_s3 + $0x28] sm:$0xff] (!%p625_p6)  ;;  %504 = vst.msk [vmem:[%s1158_s3] sm:$0xff] (!%p625_p6), %vm253_vm1, %v497_v58  ;;  %505 = vst.msk [vmem:[%s1158_s3 + $0x8] sm:$0xff] (!%p625_p6), %vm253_vm1, %v498_v59 }
 0x120   : > { %v502_v2 = vmax.f32 (!%p625_p6), %v495_v63, %v467_v50  ;;  %506 = vst.msk [vmem:[%s1158_s3 + $0x10] sm:$0xff] (!%p625_p6), %vm253_vm1, %v499_v60  ;;  %507 = vst.msk [vmem:[%s1158_s3 + $0x18] sm:$0xff] (!%p625_p6), %vm253_vm1, %v500_v0 }
 0x121   : > { %v496_v3 = vld [vmem:[%s1158_s3 + $0x30] sm:$0xff] (!%p625_p6)  ;;  %508 = vst.msk [vmem:[%s1158_s3 + $0x20] sm:$0xff] (!%p625_p6), %vm253_vm1, %v501_v1 }
 0x122   : > { %v503_v4 = vmax.f32 (!%p625_p6), %v496_v3, %v472_v54  ;;  %509 = vst.msk [vmem:[%s1158_s3 + $0x28] sm:$0xff] (!%p625_p6), %vm253_vm1, %v502_v2 }
 0x124   : > { %510 = vst.msk [vmem:[%s1158_s3 + $0x30] sm:$0xff] %vm253_vm1, %v503_v4 }
 0x125 PF: > { %p626_p7 = scmp.ne.s32.totalorder %s805_s12, 3 }
 0x126   : > { %v627_v6 = vld [vmem:[%s1157_s2] ss:$0 sm:$0xff] (!%p626_p7) }
 0x127   : > { %514 = sbr.rel (%p626_p7) target bundleno = 305 (0x131), region = 44  ;;  %v515_v5 = vld [vmem:[%s1158_s3] sm:$0xff] (!%p626_p7)  ;;  %v516_v7 = vld [vmem:[%s1158_s3 + $0x8] sm:$0xff] (!%p626_p7) }
 0x128   : > { %v529_v8 = vadd.f32 (!%p626_p7), %v627_v6, %v515_v5  ;;  %v530_v9 = vadd.f32 (!%p626_p7), %v627_v6, %v516_v7  ;;  %v517_v10 = vld [vmem:[%s1158_s3 + $0x10] sm:$0xff] (!%p626_p7)  ;;  %v518_v11 = vld [vmem:[%s1158_s3 + $0x18] sm:$0xff] (!%p626_p7) }
 0x129   : > { %v519_v12 = vld [vmem:[%s1158_s3 + $0x20] sm:$0xff] (!%p626_p7)  ;;  %v531_v13 = vadd.f32 (!%p626_p7), %v627_v6, %v517_v10  ;;  %v532_v14 = vadd.f32 (!%p626_p7), %v627_v6, %v518_v11 }
 0x12a   : > { %v533_v15 = vadd.f32 (!%p626_p7), %v627_v6, %v519_v12  ;;  %v520_v16 = vld [vmem:[%s1158_s3 + $0x28] sm:$0xff] (!%p626_p7)  ;;  %v536_v18 = vmax.f32 (!%p626_p7), %v529_v8, 0.0  ;;  %v537_v19 = vmax.f32 (!%p626_p7), %v530_v9, 0.0 }
 0x12b   : > { %v521_v17 = vld [vmem:[%s1158_s3 + $0x30] sm:$0xff] (!%p626_p7)  ;;  %v534_v20 = vadd.f32 (!%p626_p7), %v627_v6, %v520_v16  ;;  %v538_v22 = vmax.f32 (!%p626_p7), %v531_v13, 0.0  ;;  %v539_v23 = vmax.f32 (!%p626_p7), %v532_v14, 0.0 }
 0x12c   : > { %v535_v21 = vadd.f32 (!%p626_p7), %v627_v6, %v521_v17  ;;  %v540_v24 = vmax.f32 (!%p626_p7), %v533_v15, 0.0  ;;  %543 = vst.msk [vmem:[%s1158_s3] sm:$0xff] (!%p626_p7), %vm253_vm1, %v536_v18  ;;  %544 = vst.msk [vmem:[%s1158_s3 + $0x8] sm:$0xff] (!%p626_p7), %vm253_vm1, %v537_v19 }
 0x12d   : > { %v541_v25 = vmax.f32 (!%p626_p7), %v534_v20, 0.0  ;;  %545 = vst.msk [vmem:[%s1158_s3 + $0x10] sm:$0xff] (!%p626_p7), %vm253_vm1, %v538_v22  ;;  %546 = vst.msk [vmem:[%s1158_s3 + $0x18] sm:$0xff] (!%p626_p7), %vm253_vm1, %v539_v23 }
 0x12e   : > { %v542_v26 = vmax.f32 %v535_v21, 0.0  ;;  %547 = vst.msk [vmem:[%s1158_s3 + $0x20] sm:$0xff] %vm253_vm1, %v540_v24 }
 0x12f   : > { %548 = vst.msk [vmem:[%s1158_s3 + $0x28] sm:$0xff] %vm253_vm1, %v541_v25 }
 0x130   : > { %549 = vst.msk [vmem:[%s1158_s3 + $0x30] sm:$0xff] %vm253_vm1, %v542_v26 }
 0x131 PF: > { %s13_s14 = sadd.s32 1, %s813_s14   ;;  %s1159_s12 = smov %s809_s13 }
 0x132   : > { %p10_p8 = scmp.ge.s32.totalorder %s13_s14, 6   ;;  %s1160_s13 = smov %s1162_s15 }
 0x134   :  { %12 = sbr.rel (!%p10_p8) target bundleno = 2 (0x2), region = 74 }

// kernel: cnn_forward.7
= control target key start
LH: loop header
LB: loop body
LE: loop exit
PB: predicated region body
PF: predicated region fallthrough
CT: control target
= control target key end

     0   :  { %s1047_s24 = smov 0   ;;  %s1049_s25 = smov 0   ;;  %s1273_s0 = inlined_call_operand.vmem [shape: f32[32,288], index: 0, kind: input, shape index: {}]   ;;  %s1274_s1 = inlined_call_operand.vmem [shape: f32[288,32], index: 1, kind: input, shape index: {}]   ;;  %s1275_s2 = inlined_call_operand.vmem [shape: f32[1,32], index: 2, kind: input, shape index: {}]   ;;  %s1276_s3 = inlined_call_operand.vmem [shape: f32[32,128], index: 3, kind: input, shape index: {}]   ;;  %s1277_s4 = inlined_call_operand.vmem [shape: f32[1,128], index: 4, kind: input, shape index: {}]   ;;  %s1278_s5 = inlined_call_operand.vmem [shape: f32[128,128], index: 5, kind: input, shape index: {}]   ;;  %s1279_s6 = inlined_call_operand.vmem [shape: f32[1,128], index: 6, kind: input, shape index: {}]   ;;  %s1280_s7 = inlined_call_operand.vmem [shape: f32[8,128], index: 7, kind: output, shape index: {}]  }
   0x1   :  { %s1051_s26 = smov 0  }
   0x2 LB: > { %s26_s27 = sadd.s32 1, %s995_s25  ;;  %p746_p0 = scmp.ge.s32.totalorder %s999_s26, 1  ;;  %s999_s26 = sphi %s1051_s26, %s17_s26   ;;  %s995_s25 = sphi %s1049_s25, %s1282_s25   ;;  %s991_s24 = sphi %s1047_s24, %s1281_s24  }
   0x3   : > { %p27_p1 = scmp.ge.s32.totalorder %s26_s27, 4  ;;  %p253_p2 = scmp.lt.s32.totalorder %s999_s26, 5 }
   0x5   : > { %s1284_s27 = smov (%p27_p1, %s26_s27), 0  ;;  %p254_p3 = pnand %p746_p0, %p253_p2 }
   0x6   : > { %v315_v0 = vld [vmem:[%s1274_s1 + $0x80] sm:$0xff] (!%p254_p3)  ;;  %v316_v1 = vld [vmem:[%s1274_s1 + $0x88] sm:$0xff] (!%p254_p3)  ;;  %p286_p4 = scmp.lt.s32.totalorder (!%p254_p3), %s991_s24, 3  ;;  %v317_v5 = vld [vmem:[%s1274_s1 + $0x90] sm:$0xff] (!%p254_p3)  ;;  %v1001_v7 = vmov (!%p254_p3), 0.0|0.0   ;;  %vm1002_vm0 = vmmov (!%p254_p3), 0  }
   0x7   : > { %257 = sbr.rel (%p254_p3) target bundleno = 711 (0x2c7), region = 48  ;;  %v299_v2 = vld [vmem:[%s1274_s1] sm:$0xff] (!%p254_p3)  ;;  %v878_v3 = vpack.c.bf16 (!%p254_p3), %v316_v1, %v315_v0  ;;  %v300_v4 = vld [vmem:[%s1274_s1 + $0x8] sm:$0xff] (!%p254_p3)  ;;  %v318_v6 = vld [vmem:[%s1274_s1 + $0x98] sm:$0xff] (!%p254_p3)  ;;  %910 = vmatprep.subr.bf16.mxu1 (!%p254_p3), %v1001_v7  ;;  %v1003_v13 = vmov (!%p254_p3), 0.0   ;;  %vm335_vm1 = vcmask (!%p254_p3), 261120  }
   0x8   : > { %v880_v8 = vpack.c.bf16 (!%p254_p3), %v300_v4, %v299_v2  ;;  %v882_v9 = vpack.c.bf16 (!%p254_p3), %v318_v6, %v317_v5  ;;  %v301_v10 = vld [vmem:[%s1274_s1 + $0x10] sm:$0xff] (!%p254_p3)  ;;  %v302_v11 = vld [vmem:[%s1274_s1 + $0x18] sm:$0xff] (!%p254_p3)  ;;  %v319_v12 = vld [vmem:[%s1274_s1 + $0xa0] sm:$0xff] (!%p254_p3)  ;;  %829 = vmatprep.mubr.msk.f32.mxu1 (!%p254_p3), %vm1002_vm0, %v1003_v13  ;;  %p749_p5 = scmp.ne.s32.totalorder (!%p254_p3), %s991_s24, 0 }
   0x9   : > { %879 = vmatprep.subr.bf16.mxu0 (!%p254_p3), %v878_v3  ;;  %v320_v14 = vld [vmem:[%s1274_s1 + $0xa8] sm:$0xff] (!%p254_p3)  ;;  %v884_v15 = vpack.c.bf16 (!%p254_p3), %v302_v11, %v301_v10  ;;  %v303_v17 = vld [vmem:[%s1274_s1 + $0x20] sm:$0xff] (!%p254_p3)  ;;  %v321_v19 = vld [vmem:[%s1274_s1 + $0xb0] sm:$0xff] (!%p254_p3) }
   0xa   : > { %881 = vmatpush3.bf16.msra.mxu0 (!%p254_p3), %v880_v8  ;;  %v886_v16 = vpack.c.bf16 (!%p254_p3), %v320_v14, %v319_v12  ;;  %v304_v18 = vld [vmem:[%s1274_s1 + $0x28] sm:$0xff] (!%p254_p3)  ;;  %v322_v20 = vld [vmem:[%s1274_s1 + $0xb8] sm:$0xff] (!%p254_p3)  ;;  %v305_v22 = vld [vmem:[%s1274_s1 + $0x30] sm:$0xff] (!%p254_p3) }
   0xb   : > { %883 = vmatprep.subr.bf16.mxu0 (!%p254_p3), %v882_v9  ;;  %v888_v21 = vpack.c.bf16 (!%p254_p3), %v304_v18, %v303_v17  ;;  %v890_v23 = vpack.c.bf16 (!%p254_p3), %v322_v20, %v321_v19  ;;  %v306_v24 = vld [vmem:[%s1274_s1 + $0x38] sm:$0xff] (!%p254_p3)  ;;  %v331_v25 = vld [vmem:[%s1274_s1 + $0x100] sm:$0xff] (!%p254_p3)  ;;  %v332_v26 = vld [vmem:[%s1274_s1 + $0x108] sm:$0xff] (!%p254_p3) }
   0xc   : > { %v323_v27 = vld [vmem:[%s1274_s1 + $0xc0] sm:$0xff] (!%p254_p3)  ;;  %v324_v28 = vld [vmem:[%s1274_s1 + $0xc8] sm:$0xff] (!%p254_p3)  ;;  %v911_v29 = vpack.c.bf16 (!%p254_p3), %v332_v26, %v331_v25  ;;  %v333_v31 = vld [vmem:[%s1274_s1 + $0x110] sm:$0xff] (!%p254_p3)  ;;  %v892_v32 = vpack.c.bf16 (!%p254_p3), %v306_v24, %v305_v22 }
   0xd   : > { %v334_v33 = vld [vmem:[%s1274_s1 + $0x118] sm:$0xff] (!%p254_p3)  ;;  %v894_v34 = vpack.c.bf16 (!%p254_p3), %v324_v28, %v323_v27  ;;  %v307_v35 = vld [vmem:[%s1274_s1 + $0x40] sm:$0xff] (!%p254_p3)  ;;  %v308_v36 = vld [vmem:[%s1274_s1 + $0x48] sm:$0xff] (!%p254_p3) }
   0xe   : > { %s287_s23 = scalar_select %p286_p4, %s991_s24, 3  ;;  %885 = vmatpush3.bf16.msra.mxu0 %v884_v15  ;;  %912 = vmatpush3.bf16.msra.mxu1 %v911_v29  ;;  %v914_v37 = vpack.c.bf16 %v334_v33, %v333_v31  ;;  %v325_v38 = vld [vmem:[%s1274_s1 + $0xd0] sm:$0xff]  ;;  %v326_v39 = vld [vmem:[%s1274_s1 + $0xd8] sm:$0xff]  ;;  %v896_v40 = vpack.c.bf16 %v308_v36, %v307_v35  ;;  %v327_v45 = vld [vmem:[%s1274_s1 + $0xe0] sm:$0xff] }
   0xf   : > { %887 = vmatprep.subr.bf16.mxu0 %v886_v16  ;;  %913 = vmatprep.subr.bf16.mxu1 %v1001_v7  ;;  %v898_v42 = vpack.c.bf16 %v326_v39, %v325_v38  ;;  %v309_v43 = vld [vmem:[%s1274_s1 + $0x50] sm:$0xff]  ;;  %v310_v44 = vld [vmem:[%s1274_s1 + $0x58] sm:$0xff]  ;;  %v328_v46 = vld [vmem:[%s1274_s1 + $0xe8] sm:$0xff] }
  0x10   : > { %s946_s30 = smul.u32 24, %s287_s23  ;;  %v900_v47 = vpack.c.bf16 %v310_v44, %v309_v43  ;;  %v902_v48 = vpack.c.bf16 %v328_v46, %v327_v45  ;;  %v311_v49 = vld [vmem:[%s1274_s1 + $0x60] sm:$0xff]  ;;  %v312_v50 = vld [vmem:[%s1274_s1 + $0x68] sm:$0xff]  ;;  %v329_v51 = vld [vmem:[%s1274_s1 + $0xf0] sm:$0xff] }
  0x11   : > { %v330_v52 = vld [vmem:[%s1274_s1 + $0xf8] sm:$0xff]  ;;  %v904_v53 = vpack.c.bf16 %v312_v50, %v311_v49  ;;  %v313_v55 = vld [vmem:[%s1274_s1 + $0x70] sm:$0xff] }
  0x12   : > { %s1117_s20 = scalar_lea.vmem %s1273_s0, %s946_s30  ;;  %889 = vmatpush3.bf16.msra.mxu0 %v888_v21  ;;  %915 = vmatpush3.bf16.msra.mxu1 %v914_v37  ;;  %v906_v54 = vpack.c.bf16 %v330_v52, %v329_v51  ;;  %v314_v56 = vld [vmem:[%s1274_s1 + $0x78] sm:$0xff] }
  0x13   : > { %v297_v30 = vld [vmem:[%s1117_s20 + $0x8] sm:$0xff]  ;;  %891 = vmatprep.subr.bf16.mxu0 %v890_v23  ;;  %v298_v41 = vld [vmem:[%s1117_s20 + $0x10] sm:$0xff]  ;;  %v908_v57 = vpack.c.bf16 %v314_v56, %v313_v55  ;;  %v296_v58 = vld [vmem:[%s1117_s20] sm:$0xff] }
  0x14   : > { %403 = vmatprep.mubr.f32.mxu0 %v297_v30 }
  0x15   : > { %830 = vmatmul.mubr.msk.f32.vlgmr.msra.gmra.mrb[0].mxu1 %vm335_vm1, %v298_v41 }
  0x16   : > { %893 = vmatpush3.bf16.msra.mxu0 %v892_v32 }
  0x17   : > { %895 = vmatprep.subr.bf16.mxu0 %v894_v34 }
  0x1a   : > { %897 = vmatpush3.bf16.msra.mxu0 %v896_v40 }
  0x1b   : > { %899 = vmatprep.subr.bf16.mxu0 %v898_v42 }
  0x1e   : > { %901 = vmatpush3.bf16.msra.mxu0 %v900_v47 }
  0x1f   : > { %903 = vmatprep.subr.bf16.mxu0 %v902_v48 }
  0x22   : > { %905 = vmatpush3.bf16.msra.mxu0 %v904_v53 }
  0x23   : > { %907 = vmatprep.subr.bf16.mxu0 %v906_v54 }
  0x26   : > { %909 = vmatpush3.bf16.msra.mxu0 %v908_v57 }
  0x29   : > { %404 = vmatmul.mubr.f32.vlgmr.msra.gmra.mrb[0].mxu0 %v296_v58 }
  0xe8   : > { %v475_v59 = vpop.f32.mrb[0].mxu1 }
  0xe9   : > { %v831_v60 = vpop.f32.mrb[1].mxu1 }
  0xfa   : > { %482 = sbr.rel (%p749_p5) target bundleno = 259 (0x103), region = 52 }
  0xfc   : > { %v791_v61 = vpop.f32.mrb[0].mxu0 }
  0xfd   : > { %v792_v62 = vpop.f32.mrb[1].mxu0 }
  0xfe   : > { %v793_v63 = vadd.f32 %v792_v62, %v791_v61 }
 0x100   : > { %v476_v0 = vadd.f32 %v793_v63, %v475_v59 }
 0x102   : > { %483 = vst.msk [vmem:[#allocation2] sm:$0xff] %vm335_vm1, %v476_v0 }
 0x103 PF: > { %p750_p6 = scmp.eq.s32.totalorder %s991_s24, 0 }
 0x105   : > { %487 = sbr.rel (%p750_p6) target bundleno = 269 (0x10d), region = 56 }
 0x109   : > { %v488_v1 = vld [vmem:[#allocation2] sm:$0xff] (!%p750_p6) }
 0x10a   : > { %v489_v2 = vmax.f32 (!%p750_p6), %v488_v1, %v476_v0 }
 0x10c   : > { %490 = vst.msk [vmem:[#allocation2] sm:$0xff] %vm335_vm1, %v489_v2 }
 0x10d PF: > { %p751_p7 = scmp.ne.s32.totalorder %s991_s24, 3 }
 0x10e   : > { %v505_v3 = vld [vmem:[%s1276_s3] sm:$0xff] (!%p751_p7)  ;;  %v506_v4 = vld [vmem:[%s1276_s3 + $0x8] sm:$0xff] (!%p751_p7)  ;;  %v507_v5 = vld [vmem:[%s1276_s3 + $0x10] sm:$0xff] (!%p751_p7)  ;;  %v1004_v6 = vmov (!%p751_p7), 0.0|0.0   ;;  %vm1005_vm2 = vmmov (!%p751_p7), 0   ;;  %v1006_v9 = vmov (!%p751_p7), 0.0  }
 0x10f   : > { %494 = sbr.rel (%p751_p7) target bundleno = 711 (0x2c7), region = 60  ;;  %916 = vmatprep.subr.bf16.mxu0 (!%p751_p7), %v1004_v6  ;;  %v917_v7 = vpack.c.bf16 (!%p751_p7), %v506_v4, %v505_v3  ;;  %v508_v8 = vld [vmem:[%s1276_s3 + $0x18] sm:$0xff] (!%p751_p7)  ;;  %840 = vmatprep.mubr.msk.f32.mxu0 (!%p751_p7), %vm1005_vm2, %v1006_v9  ;;  %v752_v11 = vld [vmem:[%s1275_s2] ss:$0 sm:$0xff] (!%p751_p7)  ;;  %v591_v14 = vld [vmem:[%s1278_s5 + $0x8] sm:$0xff] (!%p751_p7) }
 0x110   : > { %922 = vmatprep.subr.bf16.mxu1 (!%p751_p7), %v1004_v6  ;;  %v590_v13 = vld [vmem:[%s1278_s5] sm:$0xff] (!%p751_p7)  ;;  %v592_v15 = vld [vmem:[%s1278_s5 + $0x10] sm:$0xff] (!%p751_p7)  ;;  %875 = vmatprep.mubr.msk.f32.mxu1 (!%p751_p7), %vm1005_vm2, %v1006_v9  ;;  %v920_v16 = vpack.c.bf16 (!%p751_p7), %v508_v8, %v507_v5  ;;  %v593_v18 = vld [vmem:[%s1278_s5 + $0x18] sm:$0xff] (!%p751_p7) }
 0x111   : > { %918 = vmatpush3.bf16.msra.mxu0 (!%p751_p7), %v917_v7  ;;  %v923_v17 = vpack.c.bf16 (!%p751_p7), %v591_v14, %v590_v13  ;;  %v926_v19 = vpack.c.bf16 (!%p751_p7), %v593_v18, %v592_v15  ;;  %v594_v21 = vld [vmem:[%s1278_s5 + $0x20] sm:$0xff] (!%p751_p7)  ;;  %v595_v22 = vld [vmem:[%s1278_s5 + $0x28] sm:$0xff] (!%p751_p7)  ;;  %v596_v24 = vld [vmem:[%s1278_s5 + $0x30] sm:$0xff] (!%p751_p7) }
 0x112   : > { %919 = vmatprep.subr.bf16.mxu0 (!%p751_p7), %v1004_v6  ;;  %v929_v23 = vpack.c.bf16 (!%p751_p7), %v595_v22, %v594_v21  ;;  %v597_v25 = vld [vmem:[%s1278_s5 + $0x38] sm:$0xff] (!%p751_p7)  ;;  %v598_v27 = vld [vmem:[%s1278_s5 + $0x40] sm:$0xff] (!%p751_p7)  ;;  %v599_v28 = vld [vmem:[%s1278_s5 + $0x48] sm:$0xff] (!%p751_p7) }
 0x113   : > { %v495_v10 = vld [vmem:[#allocation2] sm:$0xff] (!%p751_p7)  ;;  %924 = vmatpush3.bf16.msra.mxu1 (!%p751_p7), %v923_v17  ;;  %v932_v26 = vpack.c.bf16 (!%p751_p7), %v597_v25, %v596_v24  ;;  %v935_v29 = vpack.c.bf16 (!%p751_p7), %v599_v28, %v598_v27  ;;  %v600_v30 = vld [vmem:[%s1278_s5 + $0x50] sm:$0xff] (!%p751_p7)  ;;  %v601_v31 = vld [vmem:[%s1278_s5 + $0x58] sm:$0xff] (!%p751_p7) }
 0x114   : > { %v503_v12 = vadd.f32 (!%p751_p7), %v752_v11, %v495_v10  ;;  %925 = vmatprep.subr.bf16.mxu1 (!%p751_p7), %v1004_v6  ;;  %v938_v32 = vpack.c.bf16 (!%p751_p7), %v601_v31, %v600_v30  ;;  %v602_v33 = vld [vmem:[%s1278_s5 + $0x60] sm:$0xff] (!%p751_p7)  ;;  %v603_v34 = vld [vmem:[%s1278_s5 + $0x68] sm:$0xff] (!%p751_p7)  ;;  %v604_v36 = vld [vmem:[%s1278_s5 + $0x70] sm:$0xff] (!%p751_p7) }
 0x115   : > { %921 = vmatpush3.bf16.msra.mxu0 (!%p751_p7), %v920_v16  ;;  %v941_v35 = vpack.c.bf16 (!%p751_p7), %v603_v34, %v602_v33  ;;  %v605_v37 = vld [vmem:[%s1278_s5 + $0x78] sm:$0xff] (!%p751_p7)  ;;  %v753_v39 = vld [vmem:[%s1277_s4] ss:$0 sm:$0xff] (!%p751_p7) }
 0x116   : > { %v504_v20 = vmax.f32 %v503_v12, 0.0  ;;  %v944_v38 = vpack.c.bf16 %v605_v37, %v604_v36  ;;  %v755_v44 = vld [vmem:[%s1279_s6] ss:$0 sm:$0xff] }
 0x117   : > { %927 = vmatpush3.bf16.msra.mxu1 %v926_v19 }
 0x118   : > { %841 = vmatmul.mubr.msk.f32.vlgmr.msra.gmra.mrb[0].mxu0 %vm335_vm1, %v504_v20  ;;  %928 = vmatprep.subr.bf16.mxu1 %v1004_v6 }
 0x11b   : > { %930 = vmatpush3.bf16.msra.mxu1 %v929_v23 }
 0x11c   : > { %931 = vmatprep.subr.bf16.mxu1 %v1004_v6 }
 0x11f   : > { %933 = vmatpush3.bf16.msra.mxu1 %v932_v26 }
 0x120   : > { %934 = vmatprep.subr.bf16.mxu1 %v1004_v6 }
 0x123   : > { %936 = vmatpush3.bf16.msra.mxu1 %v935_v29 }
 0x124   : > { %937 = vmatprep.subr.bf16.mxu1 %v1004_v6 }
 0x127   : > { %939 = vmatpush3.bf16.msra.mxu1 %v938_v32 }
 0x128   : > { %940 = vmatprep.subr.bf16.mxu1 %v1004_v6 }
 0x12b   : > { %942 = vmatpush3.bf16.msra.mxu1 %v941_v35 }
 0x12c   : > { %943 = vmatprep.subr.bf16.mxu1 %v1004_v6 }
 0x12f   : > { %945 = vmatpush3.bf16.msra.mxu1 %v944_v38 }
 0x1eb   : > { %v585_v40 = vpop.f32.mrb[0].mxu0 }
 0x1ec   : > { %v586_v41 = vadd.f32 %v753_v39, %v585_v40  ;;  %v842_v42 = vpop.f32.mrb[1].mxu0 }
 0x1ee   : > { %v589_v43 = vmax.f32 %v586_v41, 0.0 }
 0x1f0   : > { %876 = vmatmul.mubr.f32.vlgmr.msra.gmra.mrb[0].mxu1 %v589_v43 }
 0x2c3   : > { %v679_v45 = vpop.f32.mrb[0].mxu1 }
 0x2c4   : > { %v680_v46 = vadd.f32 %v755_v44, %v679_v45  ;;  %v877_v47 = vpop.f32.mrb[1].mxu1 }
 0x2c6   : > { %683 = vst [vmem:[%s1280_s7] sm:$0xff] %v680_v46 }
 0x2c7 PF: > { %s17_s26 = sadd.s32 1, %s999_s26   ;;  %s1281_s24 = smov %s995_s25 }
 0x2c8   : > { %p14_p8 = scmp.ge.s32.totalorder %s17_s26, 6   ;;  %s1282_s25 = smov %s1284_s27 }
 0x2ca   :  { %16 = sbr.rel (!%p14_p8) target bundleno = 2 (0x2), region = 90 }

</bundles_post_ra>
